<compile_context>
chip_gen: v7x
topology: tpu7x:2x2x1
jax: 0.10.0
libtpu: 0.0.40
codegen_flags: <defaults>
</compile_context>

<pallas_src>
import math

import jax
import jax.numpy as jnp
from jax import lax
from jax.experimental import pallas as pl
from jax.experimental.pallas import tpu as pltpu


def _nbytes(shape, dtype):
    return math.prod(shape) * jnp.dtype(dtype).itemsize


# -----------------------------------------------------------------------------
# Fused kernel: BiGRU + linear + CRF Viterbi forward DP + backtrack.
# Sequence data is time-major; per-timestep slices are static and
# sublane-aligned (B block is a multiple of 16).
# -----------------------------------------------------------------------------
def _fused_bigru_crf_kernel(x_ref, len_ref,
                            wih_ref, bih_ref, whh_blk_ref, bhh_ref,
                            lin_w_ref, lin_b_ref,
                            start_ref, end_ref, trans_t_ref,
                            tags_ref,
                            gi_scr, seq_scr, em_scr, hist_scr):
    T, B, H_in = x_ref.shape               # x: (T, B, H_in) bf16
    H = whh_blk_ref.shape[0] // 2          # GRU hidden size
    L = trans_t_ref.shape[0]               # num labels

    # --- 1) Input projections for BOTH directions: one lane-dense bf16 MXU
    #        matmul hoisted off the serial recurrence (cuDNN-style split).
    x2 = x_ref[...].reshape(T * B, H_in)                    # tile-aligned merge
    gi_scr[...] = (jnp.dot(x2, wih_ref[...],
                           preferred_element_type=jnp.float32)
                   + bih_ref[...])                          # (T*B, 6H) f32

    # --- 2) Forward + backward GRU recurrences, fused into ONE matmul/step via
    #        a block-diagonal hidden-to-hidden weight.  Fully unrolled (T small).
    whh_blk = whh_blk_ref[...]                              # (2H, 6H) bf16
    bhh = bhh_ref[...]                                      # (1, 6H) f32
    hc = jnp.zeros((B, 2 * H), jnp.float32)                 # [h_f | h_b]
    for t in range(T):
        tb = T - 1 - t
        gh = jnp.dot(hc.astype(jnp.bfloat16), whh_blk,
                     preferred_element_type=jnp.float32) + bhh   # (B, 6H)
        gi_f = gi_scr[t * B:(t + 1) * B, 0:3 * H]
        gi_b = gi_scr[tb * B:(tb + 1) * B, 3 * H:6 * H]
        # PyTorch GRU gate order (r, z, n); b_hn stays inside the r*(.) term.
        r_f = jax.nn.sigmoid(gi_f[:, 0:H] + gh[:, 0:H])
        z_f = jax.nn.sigmoid(gi_f[:, H:2 * H] + gh[:, H:2 * H])
        n_f = jnp.tanh(gi_f[:, 2 * H:3 * H] + r_f * gh[:, 2 * H:3 * H])
        h_f = (1.0 - z_f) * n_f + z_f * hc[:, 0:H]
        r_b = jax.nn.sigmoid(gi_b[:, 0:H] + gh[:, 3 * H:4 * H])
        z_b = jax.nn.sigmoid(gi_b[:, H:2 * H] + gh[:, 4 * H:5 * H])
        n_b = jnp.tanh(gi_b[:, 2 * H:3 * H] + r_b * gh[:, 5 * H:6 * H])
        h_b = (1.0 - z_b) * n_b + z_b * hc[:, H:2 * H]
        hc = jnp.concatenate([h_f, h_b], axis=-1)
        seq_scr[t * B:(t + 1) * B, 0:H] = h_f.astype(seq_scr.dtype)
        seq_scr[tb * B:(tb + 1) * B, H:2 * H] = h_b.astype(seq_scr.dtype)

    # --- 3) Emission scores for every timestep: one bf16 matmul, f32 result.
    em_scr[...] = (jnp.dot(seq_scr[...], lin_w_ref[...],
                           preferred_element_type=jnp.float32)
                   + lin_b_ref[...])                        # (T*B, L) f32

    # --- 4) CRF Viterbi forward (max-sum DP); backpointers go to VMEM scratch.
    lens = len_ref[...]                                     # (B, 1) int32
    trans_t = trans_t_ref[...]                              # (L, L) = trans.T
    score = start_ref[...] + em_scr[0:B, :]                 # (B, L) f32
    iota3 = lax.broadcasted_iota(jnp.int32, (B, L, L), 2)
    for t in range(1, T):
        # bscore[b, j, i] = score[b, i] + transitions[i, j]; emission added
        # after the max (constant over the reduced axis, argmax unchanged).
        bscore = score[:, None, :] + trans_t[None, :, :]
        best = jnp.max(bscore, axis=-1)                     # (B, L)
        is_max = bscore >= best[:, :, None]
        idx = jnp.min(jnp.where(is_max, iota3, L), axis=-1) # first argmax
        hist_scr[t * B:(t + 1) * B, :] = idx.astype(jnp.int32)
        active = jnp.int32(t) < lens                        # (B, 1) bool
        score = jnp.where(active, best + em_scr[t * B:(t + 1) * B, :], score)
    score = score + end_ref[...]                            # (B, L) final

    # --- 5) Backtrack: O(T) — one (B,1) one-hot gather + one column store/step.
    seq_end = lens - 1                                      # (B, 1)
    col_iota = lax.broadcasted_iota(jnp.int32, (B, L), 1)
    best_all = jnp.max(score, axis=-1, keepdims=True)
    cur = jnp.min(jnp.where(score >= best_all, col_iota, L),
                  axis=-1, keepdims=True)                   # (B, 1) tag@seq_end
    for p in range(T - 1, -1, -1):
        if p < T - 1:
            hist_t = hist_scr[(p + 1) * B:(p + 2) * B, :]   # (B, L)
            onehot = col_iota == cur
            prev = jnp.sum(jnp.where(onehot, hist_t, 0),
                           axis=-1, keepdims=True)          # (B, 1)
            cur = jnp.where(jnp.int32(p) < seq_end, prev, cur)
        tags_ref[:, p:p + 1] = jnp.where(jnp.int32(p) <= seq_end,
                                         cur, jnp.int32(-1))


# -----------------------------------------------------------------------------
# Wrapper: embedding gather + layout prep (glue), one fused pallas_call with a
# parallel batch grid.
# -----------------------------------------------------------------------------
@jax.jit
def _fused_forward(params, input_ids, attention_mask):
    B, T = input_ids.shape
    H_in = params['embedding'].shape[1]
    H = params['whh_f'].shape[1]
    L = params['crf_trans'].shape[0]

    # Pad batch to a multiple of 16 (bf16 sublane packing); pick the largest
    # batch block <= 128 per kernel instance (MXU M-occupancy of the recurrence).
    B_pad = max(16, ((B + 15) // 16) * 16)
    B_blk = min(128, B_pad)
    B_pad = ((B_pad + B_blk - 1) // B_blk) * B_blk
    pad = B_pad - B
    if pad:
        input_ids = jnp.pad(input_ids, ((0, pad), (0, 0)))
        attention_mask = jnp.pad(attention_mask, ((0, pad), (0, 0)))

    # Embedding lookup, gathered directly time-major (no extra transpose pass).
    x = params['embedding'][input_ids.T].astype(jnp.bfloat16)   # (T, B_pad, H_in)
    lengths = attention_mask.sum(axis=1).astype(jnp.int32)[:, None]  # (B_pad, 1)

    # Parameter repacking (layout-only; constant-folded under jit).
    f32, bf16 = jnp.float32, jnp.bfloat16
    wih_all = jnp.concatenate([params['wih_f'].T, params['wih_b'].T],
                              axis=1).astype(bf16)                # (H_in, 6H)
    bih_all = jnp.concatenate([params['bih_f'], params['bih_b']])[None, :]
    zeros = jnp.zeros((H, 3 * H), f32)
    whh_blk = jnp.concatenate(
        [jnp.concatenate([params['whh_f'].T, zeros], axis=1),
         jnp.concatenate([zeros, params['whh_b'].T], axis=1)],
        axis=0).astype(bf16)                                      # (2H, 6H)
    bhh_cat = jnp.concatenate([params['bhh_f'], params['bhh_b']])[None, :]
    lin_w = params['linear_w'].T.astype(bf16)                     # (2H, L)
    lin_b = params['linear_b'][None, :]
    start = params['crf_start'][None, :]
    end = params['crf_end'][None, :]
    trans_t = params['crf_trans'].T

    # Explicit VMEM budget: double-buffered blocks + scratch, ~30% headroom.
    est = 2 * (_nbytes((T, B_blk, H_in), bf16) + _nbytes((B_blk, 1), jnp.int32)
               + _nbytes((H_in, 6 * H), bf16) + _nbytes((1, 6 * H), f32)
               + _nbytes((2 * H, 6 * H), bf16) + _nbytes((1, 6 * H), f32)
               + _nbytes((2 * H, L), bf16) + 3 * _nbytes((1, L), f32)
               + _nbytes((L, L), f32) + _nbytes((B_blk, T), jnp.int32))
    est += (_nbytes((T * B_blk, 6 * H), f32) + _nbytes((T * B_blk, 2 * H), bf16)
            + _nbytes((T * B_blk, L), f32) + _nbytes((T * B_blk, L), jnp.int32))
    vmem_limit = min(64 << 20, max(32 << 20, int(est * 1.3)))

    fixed = lambda b: (0, 0)   # grid-invariant (weights / CRF params)
    tags = pl.pallas_call(
        _fused_bigru_crf_kernel,
        out_shape=jax.ShapeDtypeStruct((B_pad, T), jnp.int32),
        grid=(B_pad // B_blk,),
        in_specs=[
            pl.BlockSpec((T, B_blk, H_in), lambda b: (0, b, 0)),   # x
            pl.BlockSpec((B_blk, 1), lambda b: (b, 0)),            # lengths
            pl.BlockSpec((H_in, 6 * H), fixed),                    # W_ih (both)
            pl.BlockSpec((1, 6 * H), fixed),                       # b_ih (both)
            pl.BlockSpec((2 * H, 6 * H), fixed),                   # W_hh blockdiag
            pl.BlockSpec((1, 6 * H), fixed),                       # b_hh (both)
            pl.BlockSpec((2 * H, L), fixed),                       # linear W
            pl.BlockSpec((1, L), fixed),                           # linear b
            pl.BlockSpec((1, L), fixed),                           # crf start
            pl.BlockSpec((1, L), fixed),                           # crf end
            pl.BlockSpec((L, L), fixed),                           # crf trans.T
        ],
        out_specs=pl.BlockSpec((B_blk, T), lambda b: (b, 0)),
        scratch_shapes=[
            pltpu.VMEM((T * B_blk, 6 * H), jnp.float32),   # input projections
            pltpu.VMEM((T * B_blk, 2 * H), jnp.bfloat16),  # GRU outputs [fwd|bwd]
            pltpu.VMEM((T * B_blk, L), jnp.float32),       # emissions
            pltpu.VMEM((T * B_blk, L), jnp.int32),         # Viterbi backptrs
        ],
        compiler_params=pltpu.CompilerParams(
            dimension_semantics=("parallel",),
            vmem_limit_bytes=vmem_limit),
    )(x, lengths, wih_all, bih_all, whh_blk, bhh_cat,
      lin_w, lin_b, start, end, trans_t)
    return tags[:B]


class ModelOutput:
    def __init__(self, logits, labels, loss=None):
        self.logits = logits
        self.labels = labels
        self.loss = loss


def bigru_ner_forward(params, input_ids, attention_mask, labels=None):
    tags = _fused_forward(params, input_ids, attention_mask)
    loss = None
    # TODO(synk): CRF negative log-likelihood (labels branch) not implemented;
    # this reproduces the labels=None (decode-only) forward path.
    return ModelOutput(tags, labels, loss)


def init_params(key, vocab_size, hidden_size, gru_hidden, num_labels):
    ks = jax.random.split(key, 15)

    def rnd(k, shape, scale=0.1):
        return (scale * jax.random.normal(k, shape)).astype(jnp.float32)

    return {
        'embedding': rnd(ks[0], (vocab_size, hidden_size)),
        # nn.GRU(hidden_size, gru_hidden, bidirectional=True): per direction
        # weight_ih (3H, in), weight_hh (3H, H), bias_ih (3H,), bias_hh (3H,)
        'wih_f': rnd(ks[1], (3 * gru_hidden, hidden_size)),
        'whh_f': rnd(ks[2], (3 * gru_hidden, gru_hidden)),
        'bih_f': rnd(ks[3], (3 * gru_hidden,)),
        'bhh_f': rnd(ks[4], (3 * gru_hidden,)),
        'wih_b': rnd(ks[5], (3 * gru_hidden, hidden_size)),
        'whh_b': rnd(ks[6], (3 * gru_hidden, gru_hidden)),
        'bih_b': rnd(ks[7], (3 * gru_hidden,)),
        'bhh_b': rnd(ks[8], (3 * gru_hidden,)),
        # nn.Linear(2*gru_hidden, num_labels)
        'linear_w': rnd(ks[9], (num_labels, 2 * gru_hidden)),
        'linear_b': rnd(ks[10], (num_labels,)),
        # CRF(num_labels)
        'crf_start': rnd(ks[11], (num_labels,)),
        'crf_end': rnd(ks[12], (num_labels,)),
        'crf_trans': rnd(ks[13], (num_labels, num_labels)),
    }


if __name__ == "__main__":
    B, T = 2, 8                       # batch, max_seq_len
    vocab_size, hidden_size = 64, 32  # bert_config.vocab_size / hidden_size (small)
    gru_hidden, num_labels = 32, 8    # self.lstm_hiden (small), args.num_labels

    key = jax.random.PRNGKey(0)
    kp, kid = jax.random.split(key)
    params = init_params(kp, vocab_size, hidden_size, gru_hidden, num_labels)

    input_ids = jax.random.randint(kid, (B, T), 0, vocab_size, dtype=jnp.int32)
    attention_mask = jnp.array([[1, 1, 1, 1, 1, 1, 1, 1],
                                [1, 1, 1, 1, 1, 1, 0, 0]], dtype=jnp.int32)

    out = bigru_ner_forward(params, input_ids, attention_mask)
    jax.block_until_ready(out.logits)
    assert out.logits.shape == (B, T)
    assert out.logits.dtype == jnp.int32
    # padded (masked-out) positions of the shorter sequence must be -1
    assert bool(jnp.all(out.logits[1, 6:] == -1))
    # all in-sequence tags must be valid label ids
    assert bool(jnp.all((out.logits[0] >= 0) & (out.logits[0] < num_labels)))
    assert bool(jnp.all((out.logits[1, :6] >= 0) & (out.logits[1, :6] < num_labels)))
    print("KERNEL_OK")
</pallas_src>

<mosaic_0001>
module attributes {stable_mosaic.version = 11 : i64} {
  func.func @_fused_bigru_crf_kernel(%arg0: i32, %arg1: memref<8x16x32xbf16, #tpu.memory_space<vmem>>, %arg2: memref<16x1xi32, #tpu.memory_space<vmem>>, %arg3: memref<32x192xbf16, #tpu.memory_space<vmem>>, %arg4: memref<1x192xf32, #tpu.memory_space<vmem>>, %arg5: memref<64x192xbf16, #tpu.memory_space<vmem>>, %arg6: memref<1x192xf32, #tpu.memory_space<vmem>>, %arg7: memref<64x8xbf16, #tpu.memory_space<vmem>>, %arg8: memref<1x8xf32, #tpu.memory_space<vmem>>, %arg9: memref<1x8xf32, #tpu.memory_space<vmem>>, %arg10: memref<1x8xf32, #tpu.memory_space<vmem>>, %arg11: memref<8x8xf32, #tpu.memory_space<vmem>>, %arg12: memref<16x8xi32, #tpu.memory_space<vmem>>, %arg13: memref<128x192xf32, #tpu.memory_space<vmem>>, %arg14: memref<128x64xbf16, #tpu.memory_space<vmem>>, %arg15: memref<128x8xf32, #tpu.memory_space<vmem>>, %arg16: memref<128x8xi32, #tpu.memory_space<vmem>>) attributes {dimension_semantics = [#tpu.dimension_semantics<parallel>], iteration_bounds = array<i64: 1>, scalar_prefetch = 0 : i64, scratch_operands = 4 : i64, tpu.core_type = #tpu.core_type<tc>, window_params = [{transform_indices = @transform_0, window_bounds = array<i64: 8, 16, 32>}, {transform_indices = @transform_1, window_bounds = array<i64: 16, 1>}, {pipeline_mode = #tpu.pipeline_mode<synchronous>, transform_indices = @transform_2, window_bounds = array<i64: 32, 192>}, {pipeline_mode = #tpu.pipeline_mode<synchronous>, transform_indices = @transform_3, window_bounds = array<i64: 1, 192>}, {pipeline_mode = #tpu.pipeline_mode<synchronous>, transform_indices = @transform_4, window_bounds = array<i64: 64, 192>}, {pipeline_mode = #tpu.pipeline_mode<synchronous>, transform_indices = @transform_5, window_bounds = array<i64: 1, 192>}, {pipeline_mode = #tpu.pipeline_mode<synchronous>, transform_indices = @transform_6, window_bounds = array<i64: 64, 8>}, {pipeline_mode = #tpu.pipeline_mode<synchronous>, transform_indices = @transform_7, window_bounds = array<i64: 1, 8>}, {pipeline_mode = #tpu.pipeline_mode<synchronous>, transform_indices = @transform_8, window_bounds = array<i64: 1, 8>}, {pipeline_mode = #tpu.pipeline_mode<synchronous>, transform_indices = @transform_9, window_bounds = array<i64: 1, 8>}, {pipeline_mode = #tpu.pipeline_mode<synchronous>, transform_indices = @transform_10, window_bounds = array<i64: 8, 8>}, {transform_indices = @transform_11, window_bounds = array<i64: 16, 8>}]} {
    %c0 = arith.constant 0 : index
    %c0_0 = arith.constant 0 : index
    %c0_1 = arith.constant 0 : index
    %0 = vector.load %arg1[%c0, %c0_0, %c0_1] : memref<8x16x32xbf16, #tpu.memory_space<vmem>>, vector<8x16x32xbf16>
    %1 = vector.shape_cast %0 : vector<8x16x32xbf16> to vector<128x32xbf16>
    %c0_2 = arith.constant 0 : index
    %c0_3 = arith.constant 0 : index
    %2 = vector.load %arg3[%c0_2, %c0_3] : memref<32x192xbf16, #tpu.memory_space<vmem>>, vector<32x192xbf16>
    %cst = arith.constant dense<0.000000e+00> : vector<128x192xf32>
    %3 = tpu.matmul %1, %2, %cst {dimension_numbers = #tpu.dot_dimension_numbers<[1], [0], [0], [1], [0, 0, 1, 1], [], []>} : vector<128x32xbf16>, vector<32x192xbf16>, vector<128x192xf32> -> vector<128x192xf32>
    %c0_4 = arith.constant 0 : index
    %c0_5 = arith.constant 0 : index
    %4 = vector.load %arg4[%c0_4, %c0_5] : memref<1x192xf32, #tpu.memory_space<vmem>>, vector<1x192xf32>
    %5 = vector.broadcast %4 : vector<1x192xf32> to vector<128x192xf32>
    %6 = arith.addf %3, %5 : vector<128x192xf32>
    %c0_6 = arith.constant 0 : index
    %c0_7 = arith.constant 0 : index
    %7 = vector.load %arg13[%c0_6, %c0_7] : memref<128x192xf32, #tpu.memory_space<vmem>>, vector<128x192xf32>
    tpu.vector_store %arg13[%c0_6, %c0_7], %6 {strides = array<i32>} : memref<128x192xf32, #tpu.memory_space<vmem>>, vector<128x192xf32>,
    %c0_8 = arith.constant 0 : index
    %c0_9 = arith.constant 0 : index
    %8 = vector.load %arg5[%c0_8, %c0_9] : memref<64x192xbf16, #tpu.memory_space<vmem>>, vector<64x192xbf16>
    %c0_10 = arith.constant 0 : index
    %c0_11 = arith.constant 0 : index
    %9 = vector.load %arg6[%c0_10, %c0_11] : memref<1x192xf32, #tpu.memory_space<vmem>>, vector<1x192xf32>
    %cst_12 = arith.constant 0.000000e+00 : f32
    %10 = vector.broadcast %cst_12 : f32 to vector<16x64xf32>
    %11 = arith.truncf %10 : vector<16x64xf32> to vector<16x64xbf16>
    %cst_13 = arith.constant dense<0.000000e+00> : vector<16x192xf32>
    %12 = tpu.matmul %11, %8, %cst_13 {dimension_numbers = #tpu.dot_dimension_numbers<[1], [0], [0], [1], [0, 0, 1, 1], [], []>} : vector<16x64xbf16>, vector<64x192xbf16>, vector<16x192xf32> -> vector<16x192xf32>
    %13 = vector.broadcast %9 : vector<1x192xf32> to vector<16x192xf32>
    %14 = arith.addf %12, %13 : vector<16x192xf32>
    %c0_14 = arith.constant 0 : index
    %c0_15 = arith.constant 0 : index
    %15 = vector.load %arg13[%c0_14, %c0_15] : memref<128x192xf32, #tpu.memory_space<vmem>>, vector<16x96xf32>
    %c112 = arith.constant 112 : index
    %c96 = arith.constant 96 : index
    %16 = vector.load %arg13[%c112, %c96] : memref<128x192xf32, #tpu.memory_space<vmem>>, vector<16x96xf32>
    %17 = vector.extract_strided_slice %15 {offsets = [0, 0], sizes = [16, 32], strides = [1, 1]} : vector<16x96xf32> to vector<16x32xf32>
    %18 = vector.extract_strided_slice %14 {offsets = [0, 0], sizes = [16, 32], strides = [1, 1]} : vector<16x192xf32> to vector<16x32xf32>
    %19 = arith.addf %17, %18 : vector<16x32xf32>
    %20 = arith.negf %19 : vector<16x32xf32>
    %21 = math.exp %20 : vector<16x32xf32>
    %cst_16 = arith.constant 1.000000e+00 : f32
    %22 = vector.broadcast %cst_16 : f32 to vector<16x32xf32>
    %23 = arith.addf %22, %21 : vector<16x32xf32>
    %24 = arith.divf %22, %23 : vector<16x32xf32>
    %25 = vector.extract_strided_slice %15 {offsets = [0, 32], sizes = [16, 32], strides = [1, 1]} : vector<16x96xf32> to vector<16x32xf32>
    %26 = vector.extract_strided_slice %14 {offsets = [0, 32], sizes = [16, 32], strides = [1, 1]} : vector<16x192xf32> to vector<16x32xf32>
    %27 = arith.addf %25, %26 : vector<16x32xf32>
    %28 = arith.negf %27 : vector<16x32xf32>
    %29 = math.exp %28 : vector<16x32xf32>
    %cst_17 = arith.constant 1.000000e+00 : f32
    %30 = vector.broadcast %cst_17 : f32 to vector<16x32xf32>
    %31 = arith.addf %30, %29 : vector<16x32xf32>
    %32 = arith.divf %30, %31 : vector<16x32xf32>
    %33 = vector.extract_strided_slice %15 {offsets = [0, 64], sizes = [16, 32], strides = [1, 1]} : vector<16x96xf32> to vector<16x32xf32>
    %34 = vector.extract_strided_slice %14 {offsets = [0, 64], sizes = [16, 32], strides = [1, 1]} : vector<16x192xf32> to vector<16x32xf32>
    %35 = arith.mulf %24, %34 : vector<16x32xf32>
    %36 = arith.addf %33, %35 : vector<16x32xf32>
    %37 = math.tanh %36 : vector<16x32xf32>
    %cst_18 = arith.constant 1.000000e+00 : f32
    %38 = vector.broadcast %cst_18 : f32 to vector<16x32xf32>
    %39 = arith.subf %38, %32 : vector<16x32xf32>
    %40 = arith.mulf %39, %37 : vector<16x32xf32>
    %41 = vector.extract_strided_slice %10 {offsets = [0, 0], sizes = [16, 32], strides = [1, 1]} : vector<16x64xf32> to vector<16x32xf32>
    %42 = arith.mulf %32, %41 : vector<16x32xf32>
    %43 = arith.addf %40, %42 : vector<16x32xf32>
    %44 = vector.extract_strided_slice %16 {offsets = [0, 0], sizes = [16, 32], strides = [1, 1]} : vector<16x96xf32> to vector<16x32xf32>
    %45 = vector.extract_strided_slice %14 {offsets = [0, 96], sizes = [16, 32], strides = [1, 1]} : vector<16x192xf32> to vector<16x32xf32>
    %46 = arith.addf %44, %45 : vector<16x32xf32>
    %47 = arith.negf %46 : vector<16x32xf32>
    %48 = math.exp %47 : vector<16x32xf32>
    %cst_19 = arith.constant 1.000000e+00 : f32
    %49 = vector.broadcast %cst_19 : f32 to vector<16x32xf32>
    %50 = arith.addf %49, %48 : vector<16x32xf32>
    %51 = arith.divf %49, %50 : vector<16x32xf32>
    %52 = vector.extract_strided_slice %16 {offsets = [0, 32], sizes = [16, 32], strides = [1, 1]} : vector<16x96xf32> to vector<16x32xf32>
    %53 = vector.extract_strided_slice %14 {offsets = [0, 128], sizes = [16, 32], strides = [1, 1]} : vector<16x192xf32> to vector<16x32xf32>
    %54 = arith.addf %52, %53 : vector<16x32xf32>
    %55 = arith.negf %54 : vector<16x32xf32>
    %56 = math.exp %55 : vector<16x32xf32>
    %cst_20 = arith.constant 1.000000e+00 : f32
    %57 = vector.broadcast %cst_20 : f32 to vector<16x32xf32>
    %58 = arith.addf %57, %56 : vector<16x32xf32>
    %59 = arith.divf %57, %58 : vector<16x32xf32>
    %60 = vector.extract_strided_slice %16 {offsets = [0, 64], sizes = [16, 32], strides = [1, 1]} : vector<16x96xf32> to vector<16x32xf32>
    %61 = vector.extract_strided_slice %14 {offsets = [0, 160], sizes = [16, 32], strides = [1, 1]} : vector<16x192xf32> to vector<16x32xf32>
    %62 = arith.mulf %51, %61 : vector<16x32xf32>
    %63 = arith.addf %60, %62 : vector<16x32xf32>
    %64 = math.tanh %63 : vector<16x32xf32>
    %cst_21 = arith.constant 1.000000e+00 : f32
    %65 = vector.broadcast %cst_21 : f32 to vector<16x32xf32>
    %66 = arith.subf %65, %59 : vector<16x32xf32>
    %67 = arith.mulf %66, %64 : vector<16x32xf32>
    %68 = vector.extract_strided_slice %10 {offsets = [0, 32], sizes = [16, 32], strides = [1, 1]} : vector<16x64xf32> to vector<16x32xf32>
    %69 = arith.mulf %59, %68 : vector<16x32xf32>
    %70 = arith.addf %67, %69 : vector<16x32xf32>
    %71 = tpu.concatenate %43, %70 in 1 : vector<16x32xf32>, vector<16x32xf32> -> vector<16x64xf32>
    %72 = arith.truncf %43 : vector<16x32xf32> to vector<16x32xbf16>
    %c0_22 = arith.constant 0 : index
    %c0_23 = arith.constant 0 : index
    %73 = vector.load %arg14[%c0_22, %c0_23] : memref<128x64xbf16, #tpu.memory_space<vmem>>, vector<16x32xbf16>
    tpu.vector_store %arg14[%c0_22, %c0_23], %72 {strides = array<i32>} : memref<128x64xbf16, #tpu.memory_space<vmem>>, vector<16x32xbf16>,
    %74 = arith.truncf %70 : vector<16x32xf32> to vector<16x32xbf16>
    %c112_24 = arith.constant 112 : index
    %c32 = arith.constant 32 : index
    %75 = vector.load %arg14[%c112_24, %c32] : memref<128x64xbf16, #tpu.memory_space<vmem>>, vector<16x32xbf16>
    tpu.vector_store %arg14[%c112_24, %c32], %74 {strides = array<i32>} : memref<128x64xbf16, #tpu.memory_space<vmem>>, vector<16x32xbf16>,
    %76 = arith.truncf %71 : vector<16x64xf32> to vector<16x64xbf16>
    %cst_25 = arith.constant dense<0.000000e+00> : vector<16x192xf32>
    %77 = tpu.matmul %76, %8, %cst_25 {dimension_numbers = #tpu.dot_dimension_numbers<[1], [0], [0], [1], [0, 0, 1, 1], [], []>} : vector<16x64xbf16>, vector<64x192xbf16>, vector<16x192xf32> -> vector<16x192xf32>
    %78 = vector.broadcast %9 : vector<1x192xf32> to vector<16x192xf32>
    %79 = arith.addf %77, %78 : vector<16x192xf32>
    %c16 = arith.constant 16 : index
    %c0_26 = arith.constant 0 : index
    %80 = vector.load %arg13[%c16, %c0_26] : memref<128x192xf32, #tpu.memory_space<vmem>>, vector<16x96xf32>
    %c96_27 = arith.constant 96 : index
    %c96_28 = arith.constant 96 : index
    %81 = vector.load %arg13[%c96_27, %c96_28] : memref<128x192xf32, #tpu.memory_space<vmem>>, vector<16x96xf32>
    %82 = vector.extract_strided_slice %80 {offsets = [0, 0], sizes = [16, 32], strides = [1, 1]} : vector<16x96xf32> to vector<16x32xf32>
    %83 = vector.extract_strided_slice %79 {offsets = [0, 0], sizes = [16, 32], strides = [1, 1]} : vector<16x192xf32> to vector<16x32xf32>
    %84 = arith.addf %82, %83 : vector<16x32xf32>
    %85 = arith.negf %84 : vector<16x32xf32>
    %86 = math.exp %85 : vector<16x32xf32>
    %cst_29 = arith.constant 1.000000e+00 : f32
    %87 = vector.broadcast %cst_29 : f32 to vector<16x32xf32>
    %88 = arith.addf %87, %86 : vector<16x32xf32>
    %89 = arith.divf %87, %88 : vector<16x32xf32>
    %90 = vector.extract_strided_slice %80 {offsets = [0, 32], sizes = [16, 32], strides = [1, 1]} : vector<16x96xf32> to vector<16x32xf32>
    %91 = vector.extract_strided_slice %79 {offsets = [0, 32], sizes = [16, 32], strides = [1, 1]} : vector<16x192xf32> to vector<16x32xf32>
    %92 = arith.addf %90, %91 : vector<16x32xf32>
    %93 = arith.negf %92 : vector<16x32xf32>
    %94 = math.exp %93 : vector<16x32xf32>
    %cst_30 = arith.constant 1.000000e+00 : f32
    %95 = vector.broadcast %cst_30 : f32 to vector<16x32xf32>
    %96 = arith.addf %95, %94 : vector<16x32xf32>
    %97 = arith.divf %95, %96 : vector<16x32xf32>
    %98 = vector.extract_strided_slice %80 {offsets = [0, 64], sizes = [16, 32], strides = [1, 1]} : vector<16x96xf32> to vector<16x32xf32>
    %99 = vector.extract_strided_slice %79 {offsets = [0, 64], sizes = [16, 32], strides = [1, 1]} : vector<16x192xf32> to vector<16x32xf32>
    %100 = arith.mulf %89, %99 : vector<16x32xf32>
    %101 = arith.addf %98, %100 : vector<16x32xf32>
    %102 = math.tanh %101 : vector<16x32xf32>
    %cst_31 = arith.constant 1.000000e+00 : f32
    %103 = vector.broadcast %cst_31 : f32 to vector<16x32xf32>
    %104 = arith.subf %103, %97 : vector<16x32xf32>
    %105 = arith.mulf %104, %102 : vector<16x32xf32>
    %106 = vector.extract_strided_slice %71 {offsets = [0, 0], sizes = [16, 32], strides = [1, 1]} : vector<16x64xf32> to vector<16x32xf32>
    %107 = arith.mulf %97, %106 : vector<16x32xf32>
    %108 = arith.addf %105, %107 : vector<16x32xf32>
    %109 = vector.extract_strided_slice %81 {offsets = [0, 0], sizes = [16, 32], strides = [1, 1]} : vector<16x96xf32> to vector<16x32xf32>
    %110 = vector.extract_strided_slice %79 {offsets = [0, 96], sizes = [16, 32], strides = [1, 1]} : vector<16x192xf32> to vector<16x32xf32>
    %111 = arith.addf %109, %110 : vector<16x32xf32>
    %112 = arith.negf %111 : vector<16x32xf32>
    %113 = math.exp %112 : vector<16x32xf32>
    %cst_32 = arith.constant 1.000000e+00 : f32
    %114 = vector.broadcast %cst_32 : f32 to vector<16x32xf32>
    %115 = arith.addf %114, %113 : vector<16x32xf32>
    %116 = arith.divf %114, %115 : vector<16x32xf32>
    %117 = vector.extract_strided_slice %81 {offsets = [0, 32], sizes = [16, 32], strides = [1, 1]} : vector<16x96xf32> to vector<16x32xf32>
    %118 = vector.extract_strided_slice %79 {offsets = [0, 128], sizes = [16, 32], strides = [1, 1]} : vector<16x192xf32> to vector<16x32xf32>
    %119 = arith.addf %117, %118 : vector<16x32xf32>
    %120 = arith.negf %119 : vector<16x32xf32>
    %121 = math.exp %120 : vector<16x32xf32>
    %cst_33 = arith.constant 1.000000e+00 : f32
    %122 = vector.broadcast %cst_33 : f32 to vector<16x32xf32>
    %123 = arith.addf %122, %121 : vector<16x32xf32>
    %124 = arith.divf %122, %123 : vector<16x32xf32>
    %125 = vector.extract_strided_slice %81 {offsets = [0, 64], sizes = [16, 32], strides = [1, 1]} : vector<16x96xf32> to vector<16x32xf32>
    %126 = vector.extract_strided_slice %79 {offsets = [0, 160], sizes = [16, 32], strides = [1, 1]} : vector<16x192xf32> to vector<16x32xf32>
    %127 = arith.mulf %116, %126 : vector<16x32xf32>
    %128 = arith.addf %125, %127 : vector<16x32xf32>
    %129 = math.tanh %128 : vector<16x32xf32>
    %cst_34 = arith.constant 1.000000e+00 : f32
    %130 = vector.broadcast %cst_34 : f32 to vector<16x32xf32>
    %131 = arith.subf %130, %124 : vector<16x32xf32>
    %132 = arith.mulf %131, %129 : vector<16x32xf32>
    %133 = vector.extract_strided_slice %71 {offsets = [0, 32], sizes = [16, 32], strides = [1, 1]} : vector<16x64xf32> to vector<16x32xf32>
    %134 = arith.mulf %124, %133 : vector<16x32xf32>
    %135 = arith.addf %132, %134 : vector<16x32xf32>
    %136 = tpu.concatenate %108, %135 in 1 : vector<16x32xf32>, vector<16x32xf32> -> vector<16x64xf32>
    %137 = arith.truncf %108 : vector<16x32xf32> to vector<16x32xbf16>
    %c16_35 = arith.constant 16 : index
    %c0_36 = arith.constant 0 : index
    %138 = vector.load %arg14[%c16_35, %c0_36] : memref<128x64xbf16, #tpu.memory_space<vmem>>, vector<16x32xbf16>
    tpu.vector_store %arg14[%c16_35, %c0_36], %137 {strides = array<i32>} : memref<128x64xbf16, #tpu.memory_space<vmem>>, vector<16x32xbf16>,
    %139 = arith.truncf %135 : vector<16x32xf32> to vector<16x32xbf16>
    %c96_37 = arith.constant 96 : index
    %c32_38 = arith.constant 32 : index
    %140 = vector.load %arg14[%c96_37, %c32_38] : memref<128x64xbf16, #tpu.memory_space<vmem>>, vector<16x32xbf16>
    tpu.vector_store %arg14[%c96_37, %c32_38], %139 {strides = array<i32>} : memref<128x64xbf16, #tpu.memory_space<vmem>>, vector<16x32xbf16>,
    %141 = arith.truncf %136 : vector<16x64xf32> to vector<16x64xbf16>
    %cst_39 = arith.constant dense<0.000000e+00> : vector<16x192xf32>
    %142 = tpu.matmul %141, %8, %cst_39 {dimension_numbers = #tpu.dot_dimension_numbers<[1], [0], [0], [1], [0, 0, 1, 1], [], []>} : vector<16x64xbf16>, vector<64x192xbf16>, vector<16x192xf32> -> vector<16x192xf32>
    %143 = vector.broadcast %9 : vector<1x192xf32> to vector<16x192xf32>
    %144 = arith.addf %142, %143 : vector<16x192xf32>
    %c32_40 = arith.constant 32 : index
    %c0_41 = arith.constant 0 : index
    %145 = vector.load %arg13[%c32_40, %c0_41] : memref<128x192xf32, #tpu.memory_space<vmem>>, vector<16x96xf32>
    %c80 = arith.constant 80 : index
    %c96_42 = arith.constant 96 : index
    %146 = vector.load %arg13[%c80, %c96_42] : memref<128x192xf32, #tpu.memory_space<vmem>>, vector<16x96xf32>
    %147 = vector.extract_strided_slice %145 {offsets = [0, 0], sizes = [16, 32], strides = [1, 1]} : vector<16x96xf32> to vector<16x32xf32>
    %148 = vector.extract_strided_slice %144 {offsets = [0, 0], sizes = [16, 32], strides = [1, 1]} : vector<16x192xf32> to vector<16x32xf32>
    %149 = arith.addf %147, %148 : vector<16x32xf32>
    %150 = arith.negf %149 : vector<16x32xf32>
    %151 = math.exp %150 : vector<16x32xf32>
    %cst_43 = arith.constant 1.000000e+00 : f32
    %152 = vector.broadcast %cst_43 : f32 to vector<16x32xf32>
    %153 = arith.addf %152, %151 : vector<16x32xf32>
    %154 = arith.divf %152, %153 : vector<16x32xf32>
    %155 = vector.extract_strided_slice %145 {offsets = [0, 32], sizes = [16, 32], strides = [1, 1]} : vector<16x96xf32> to vector<16x32xf32>
    %156 = vector.extract_strided_slice %144 {offsets = [0, 32], sizes = [16, 32], strides = [1, 1]} : vector<16x192xf32> to vector<16x32xf32>
    %157 = arith.addf %155, %156 : vector<16x32xf32>
    %158 = arith.negf %157 : vector<16x32xf32>
    %159 = math.exp %158 : vector<16x32xf32>
    %cst_44 = arith.constant 1.000000e+00 : f32
    %160 = vector.broadcast %cst_44 : f32 to vector<16x32xf32>
    %161 = arith.addf %160, %159 : vector<16x32xf32>
    %162 = arith.divf %160, %161 : vector<16x32xf32>
    %163 = vector.extract_strided_slice %145 {offsets = [0, 64], sizes = [16, 32], strides = [1, 1]} : vector<16x96xf32> to vector<16x32xf32>
    %164 = vector.extract_strided_slice %144 {offsets = [0, 64], sizes = [16, 32], strides = [1, 1]} : vector<16x192xf32> to vector<16x32xf32>
    %165 = arith.mulf %154, %164 : vector<16x32xf32>
    %166 = arith.addf %163, %165 : vector<16x32xf32>
    %167 = math.tanh %166 : vector<16x32xf32>
    %cst_45 = arith.constant 1.000000e+00 : f32
    %168 = vector.broadcast %cst_45 : f32 to vector<16x32xf32>
    %169 = arith.subf %168, %162 : vector<16x32xf32>
    %170 = arith.mulf %169, %167 : vector<16x32xf32>
    %171 = vector.extract_strided_slice %136 {offsets = [0, 0], sizes = [16, 32], strides = [1, 1]} : vector<16x64xf32> to vector<16x32xf32>
    %172 = arith.mulf %162, %171 : vector<16x32xf32>
    %173 = arith.addf %170, %172 : vector<16x32xf32>
    %174 = vector.extract_strided_slice %146 {offsets = [0, 0], sizes = [16, 32], strides = [1, 1]} : vector<16x96xf32> to vector<16x32xf32>
    %175 = vector.extract_strided_slice %144 {offsets = [0, 96], sizes = [16, 32], strides = [1, 1]} : vector<16x192xf32> to vector<16x32xf32>
    %176 = arith.addf %174, %175 : vector<16x32xf32>
    %177 = arith.negf %176 : vector<16x32xf32>
    %178 = math.exp %177 : vector<16x32xf32>
    %cst_46 = arith.constant 1.000000e+00 : f32
    %179 = vector.broadcast %cst_46 : f32 to vector<16x32xf32>
    %180 = arith.addf %179, %178 : vector<16x32xf32>
    %181 = arith.divf %179, %180 : vector<16x32xf32>
    %182 = vector.extract_strided_slice %146 {offsets = [0, 32], sizes = [16, 32], strides = [1, 1]} : vector<16x96xf32> to vector<16x32xf32>
    %183 = vector.extract_strided_slice %144 {offsets = [0, 128], sizes = [16, 32], strides = [1, 1]} : vector<16x192xf32> to vector<16x32xf32>
    %184 = arith.addf %182, %183 : vector<16x32xf32>
    %185 = arith.negf %184 : vector<16x32xf32>
    %186 = math.exp %185 : vector<16x32xf32>
    %cst_47 = arith.constant 1.000000e+00 : f32
    %187 = vector.broadcast %cst_47 : f32 to vector<16x32xf32>
    %188 = arith.addf %187, %186 : vector<16x32xf32>
    %189 = arith.divf %187, %188 : vector<16x32xf32>
    %190 = vector.extract_strided_slice %146 {offsets = [0, 64], sizes = [16, 32], strides = [1, 1]} : vector<16x96xf32> to vector<16x32xf32>
    %191 = vector.extract_strided_slice %144 {offsets = [0, 160], sizes = [16, 32], strides = [1, 1]} : vector<16x192xf32> to vector<16x32xf32>
    %192 = arith.mulf %181, %191 : vector<16x32xf32>
    %193 = arith.addf %190, %192 : vector<16x32xf32>
    %194 = math.tanh %193 : vector<16x32xf32>
    %cst_48 = arith.constant 1.000000e+00 : f32
    %195 = vector.broadcast %cst_48 : f32 to vector<16x32xf32>
    %196 = arith.subf %195, %189 : vector<16x32xf32>
    %197 = arith.mulf %196, %194 : vector<16x32xf32>
    %198 = vector.extract_strided_slice %136 {offsets = [0, 32], sizes = [16, 32], strides = [1, 1]} : vector<16x64xf32> to vector<16x32xf32>
    %199 = arith.mulf %189, %198 : vector<16x32xf32>
    %200 = arith.addf %197, %199 : vector<16x32xf32>
    %201 = tpu.concatenate %173, %200 in 1 : vector<16x32xf32>, vector<16x32xf32> -> vector<16x64xf32>
    %202 = arith.truncf %173 : vector<16x32xf32> to vector<16x32xbf16>
    %c32_49 = arith.constant 32 : index
    %c0_50 = arith.constant 0 : index
    %203 = vector.load %arg14[%c32_49, %c0_50] : memref<128x64xbf16, #tpu.memory_space<vmem>>, vector<16x32xbf16>
    tpu.vector_store %arg14[%c32_49, %c0_50], %202 {strides = array<i32>} : memref<128x64xbf16, #tpu.memory_space<vmem>>, vector<16x32xbf16>,
    %204 = arith.truncf %200 : vector<16x32xf32> to vector<16x32xbf16>
    %c80_51 = arith.constant 80 : index
    %c32_52 = arith.constant 32 : index
    %205 = vector.load %arg14[%c80_51, %c32_52] : memref<128x64xbf16, #tpu.memory_space<vmem>>, vector<16x32xbf16>
    tpu.vector_store %arg14[%c80_51, %c32_52], %204 {strides = array<i32>} : memref<128x64xbf16, #tpu.memory_space<vmem>>, vector<16x32xbf16>,
    %206 = arith.truncf %201 : vector<16x64xf32> to vector<16x64xbf16>
    %cst_53 = arith.constant dense<0.000000e+00> : vector<16x192xf32>
    %207 = tpu.matmul %206, %8, %cst_53 {dimension_numbers = #tpu.dot_dimension_numbers<[1], [0], [0], [1], [0, 0, 1, 1], [], []>} : vector<16x64xbf16>, vector<64x192xbf16>, vector<16x192xf32> -> vector<16x192xf32>
    %208 = vector.broadcast %9 : vector<1x192xf32> to vector<16x192xf32>
    %209 = arith.addf %207, %208 : vector<16x192xf32>
    %c48 = arith.constant 48 : index
    %c0_54 = arith.constant 0 : index
    %210 = vector.load %arg13[%c48, %c0_54] : memref<128x192xf32, #tpu.memory_space<vmem>>, vector<16x96xf32>
    %c64 = arith.constant 64 : index
    %c96_55 = arith.constant 96 : index
    %211 = vector.load %arg13[%c64, %c96_55] : memref<128x192xf32, #tpu.memory_space<vmem>>, vector<16x96xf32>
    %212 = vector.extract_strided_slice %210 {offsets = [0, 0], sizes = [16, 32], strides = [1, 1]} : vector<16x96xf32> to vector<16x32xf32>
    %213 = vector.extract_strided_slice %209 {offsets = [0, 0], sizes = [16, 32], strides = [1, 1]} : vector<16x192xf32> to vector<16x32xf32>
    %214 = arith.addf %212, %213 : vector<16x32xf32>
    %215 = arith.negf %214 : vector<16x32xf32>
    %216 = math.exp %215 : vector<16x32xf32>
    %cst_56 = arith.constant 1.000000e+00 : f32
    %217 = vector.broadcast %cst_56 : f32 to vector<16x32xf32>
    %218 = arith.addf %217, %216 : vector<16x32xf32>
    %219 = arith.divf %217, %218 : vector<16x32xf32>
    %220 = vector.extract_strided_slice %210 {offsets = [0, 32], sizes = [16, 32], strides = [1, 1]} : vector<16x96xf32> to vector<16x32xf32>
    %221 = vector.extract_strided_slice %209 {offsets = [0, 32], sizes = [16, 32], strides = [1, 1]} : vector<16x192xf32> to vector<16x32xf32>
    %222 = arith.addf %220, %221 : vector<16x32xf32>
    %223 = arith.negf %222 : vector<16x32xf32>
    %224 = math.exp %223 : vector<16x32xf32>
    %cst_57 = arith.constant 1.000000e+00 : f32
    %225 = vector.broadcast %cst_57 : f32 to vector<16x32xf32>
    %226 = arith.addf %225, %224 : vector<16x32xf32>
    %227 = arith.divf %225, %226 : vector<16x32xf32>
    %228 = vector.extract_strided_slice %210 {offsets = [0, 64], sizes = [16, 32], strides = [1, 1]} : vector<16x96xf32> to vector<16x32xf32>
    %229 = vector.extract_strided_slice %209 {offsets = [0, 64], sizes = [16, 32], strides = [1, 1]} : vector<16x192xf32> to vector<16x32xf32>
    %230 = arith.mulf %219, %229 : vector<16x32xf32>
    %231 = arith.addf %228, %230 : vector<16x32xf32>
    %232 = math.tanh %231 : vector<16x32xf32>
    %cst_58 = arith.constant 1.000000e+00 : f32
    %233 = vector.broadcast %cst_58 : f32 to vector<16x32xf32>
    %234 = arith.subf %233, %227 : vector<16x32xf32>
    %235 = arith.mulf %234, %232 : vector<16x32xf32>
    %236 = vector.extract_strided_slice %201 {offsets = [0, 0], sizes = [16, 32], strides = [1, 1]} : vector<16x64xf32> to vector<16x32xf32>
    %237 = arith.mulf %227, %236 : vector<16x32xf32>
    %238 = arith.addf %235, %237 : vector<16x32xf32>
    %239 = vector.extract_strided_slice %211 {offsets = [0, 0], sizes = [16, 32], strides = [1, 1]} : vector<16x96xf32> to vector<16x32xf32>
    %240 = vector.extract_strided_slice %209 {offsets = [0, 96], sizes = [16, 32], strides = [1, 1]} : vector<16x192xf32> to vector<16x32xf32>
    %241 = arith.addf %239, %240 : vector<16x32xf32>
    %242 = arith.negf %241 : vector<16x32xf32>
    %243 = math.exp %242 : vector<16x32xf32>
    %cst_59 = arith.constant 1.000000e+00 : f32
    %244 = vector.broadcast %cst_59 : f32 to vector<16x32xf32>
    %245 = arith.addf %244, %243 : vector<16x32xf32>
    %246 = arith.divf %244, %245 : vector<16x32xf32>
    %247 = vector.extract_strided_slice %211 {offsets = [0, 32], sizes = [16, 32], strides = [1, 1]} : vector<16x96xf32> to vector<16x32xf32>
    %248 = vector.extract_strided_slice %209 {offsets = [0, 128], sizes = [16, 32], strides = [1, 1]} : vector<16x192xf32> to vector<16x32xf32>
    %249 = arith.addf %247, %248 : vector<16x32xf32>
    %250 = arith.negf %249 : vector<16x32xf32>
    %251 = math.exp %250 : vector<16x32xf32>
    %cst_60 = arith.constant 1.000000e+00 : f32
    %252 = vector.broadcast %cst_60 : f32 to vector<16x32xf32>
    %253 = arith.addf %252, %251 : vector<16x32xf32>
    %254 = arith.divf %252, %253 : vector<16x32xf32>
    %255 = vector.extract_strided_slice %211 {offsets = [0, 64], sizes = [16, 32], strides = [1, 1]} : vector<16x96xf32> to vector<16x32xf32>
    %256 = vector.extract_strided_slice %209 {offsets = [0, 160], sizes = [16, 32], strides = [1, 1]} : vector<16x192xf32> to vector<16x32xf32>
    %257 = arith.mulf %246, %256 : vector<16x32xf32>
    %258 = arith.addf %255, %257 : vector<16x32xf32>
    %259 = math.tanh %258 : vector<16x32xf32>
    %cst_61 = arith.constant 1.000000e+00 : f32
    %260 = vector.broadcast %cst_61 : f32 to vector<16x32xf32>
    %261 = arith.subf %260, %254 : vector<16x32xf32>
    %262 = arith.mulf %261, %259 : vector<16x32xf32>
    %263 = vector.extract_strided_slice %201 {offsets = [0, 32], sizes = [16, 32], strides = [1, 1]} : vector<16x64xf32> to vector<16x32xf32>
    %264 = arith.mulf %254, %263 : vector<16x32xf32>
    %265 = arith.addf %262, %264 : vector<16x32xf32>
    %266 = tpu.concatenate %238, %265 in 1 : vector<16x32xf32>, vector<16x32xf32> -> vector<16x64xf32>
    %267 = arith.truncf %238 : vector<16x32xf32> to vector<16x32xbf16>
    %c48_62 = arith.constant 48 : index
    %c0_63 = arith.constant 0 : index
    %268 = vector.load %arg14[%c48_62, %c0_63] : memref<128x64xbf16, #tpu.memory_space<vmem>>, vector<16x32xbf16>
    tpu.vector_store %arg14[%c48_62, %c0_63], %267 {strides = array<i32>} : memref<128x64xbf16, #tpu.memory_space<vmem>>, vector<16x32xbf16>,
    %269 = arith.truncf %265 : vector<16x32xf32> to vector<16x32xbf16>
    %c64_64 = arith.constant 64 : index
    %c32_65 = arith.constant 32 : index
    %270 = vector.load %arg14[%c64_64, %c32_65] : memref<128x64xbf16, #tpu.memory_space<vmem>>, vector<16x32xbf16>
    tpu.vector_store %arg14[%c64_64, %c32_65], %269 {strides = array<i32>} : memref<128x64xbf16, #tpu.memory_space<vmem>>, vector<16x32xbf16>,
    %271 = arith.truncf %266 : vector<16x64xf32> to vector<16x64xbf16>
    %cst_66 = arith.constant dense<0.000000e+00> : vector<16x192xf32>
    %272 = tpu.matmul %271, %8, %cst_66 {dimension_numbers = #tpu.dot_dimension_numbers<[1], [0], [0], [1], [0, 0, 1, 1], [], []>} : vector<16x64xbf16>, vector<64x192xbf16>, vector<16x192xf32> -> vector<16x192xf32>
    %273 = vector.broadcast %9 : vector<1x192xf32> to vector<16x192xf32>
    %274 = arith.addf %272, %273 : vector<16x192xf32>
    %c64_67 = arith.constant 64 : index
    %c0_68 = arith.constant 0 : index
    %275 = vector.load %arg13[%c64_67, %c0_68] : memref<128x192xf32, #tpu.memory_space<vmem>>, vector<16x96xf32>
    %c48_69 = arith.constant 48 : index
    %c96_70 = arith.constant 96 : index
    %276 = vector.load %arg13[%c48_69, %c96_70] : memref<128x192xf32, #tpu.memory_space<vmem>>, vector<16x96xf32>
    %277 = vector.extract_strided_slice %275 {offsets = [0, 0], sizes = [16, 32], strides = [1, 1]} : vector<16x96xf32> to vector<16x32xf32>
    %278 = vector.extract_strided_slice %274 {offsets = [0, 0], sizes = [16, 32], strides = [1, 1]} : vector<16x192xf32> to vector<16x32xf32>
    %279 = arith.addf %277, %278 : vector<16x32xf32>
    %280 = arith.negf %279 : vector<16x32xf32>
    %281 = math.exp %280 : vector<16x32xf32>
    %cst_71 = arith.constant 1.000000e+00 : f32
    %282 = vector.broadcast %cst_71 : f32 to vector<16x32xf32>
    %283 = arith.addf %282, %281 : vector<16x32xf32>
    %284 = arith.divf %282, %283 : vector<16x32xf32>
    %285 = vector.extract_strided_slice %275 {offsets = [0, 32], sizes = [16, 32], strides = [1, 1]} : vector<16x96xf32> to vector<16x32xf32>
    %286 = vector.extract_strided_slice %274 {offsets = [0, 32], sizes = [16, 32], strides = [1, 1]} : vector<16x192xf32> to vector<16x32xf32>
    %287 = arith.addf %285, %286 : vector<16x32xf32>
    %288 = arith.negf %287 : vector<16x32xf32>
    %289 = math.exp %288 : vector<16x32xf32>
    %cst_72 = arith.constant 1.000000e+00 : f32
    %290 = vector.broadcast %cst_72 : f32 to vector<16x32xf32>
    %291 = arith.addf %290, %289 : vector<16x32xf32>
    %292 = arith.divf %290, %291 : vector<16x32xf32>
    %293 = vector.extract_strided_slice %275 {offsets = [0, 64], sizes = [16, 32], strides = [1, 1]} : vector<16x96xf32> to vector<16x32xf32>
    %294 = vector.extract_strided_slice %274 {offsets = [0, 64], sizes = [16, 32], strides = [1, 1]} : vector<16x192xf32> to vector<16x32xf32>
    %295 = arith.mulf %284, %294 : vector<16x32xf32>
    %296 = arith.addf %293, %295 : vector<16x32xf32>
    %297 = math.tanh %296 : vector<16x32xf32>
    %cst_73 = arith.constant 1.000000e+00 : f32
    %298 = vector.broadcast %cst_73 : f32 to vector<16x32xf32>
    %299 = arith.subf %298, %292 : vector<16x32xf32>
    %300 = arith.mulf %299, %297 : vector<16x32xf32>
    %301 = vector.extract_strided_slice %266 {offsets = [0, 0], sizes = [16, 32], strides = [1, 1]} : vector<16x64xf32> to vector<16x32xf32>
    %302 = arith.mulf %292, %301 : vector<16x32xf32>
    %303 = arith.addf %300, %302 : vector<16x32xf32>
    %304 = vector.extract_strided_slice %276 {offsets = [0, 0], sizes = [16, 32], strides = [1, 1]} : vector<16x96xf32> to vector<16x32xf32>
    %305 = vector.extract_strided_slice %274 {offsets = [0, 96], sizes = [16, 32], strides = [1, 1]} : vector<16x192xf32> to vector<16x32xf32>
    %306 = arith.addf %304, %305 : vector<16x32xf32>
    %307 = arith.negf %306 : vector<16x32xf32>
    %308 = math.exp %307 : vector<16x32xf32>
    %cst_74 = arith.constant 1.000000e+00 : f32
    %309 = vector.broadcast %cst_74 : f32 to vector<16x32xf32>
    %310 = arith.addf %309, %308 : vector<16x32xf32>
    %311 = arith.divf %309, %310 : vector<16x32xf32>
    %312 = vector.extract_strided_slice %276 {offsets = [0, 32], sizes = [16, 32], strides = [1, 1]} : vector<16x96xf32> to vector<16x32xf32>
    %313 = vector.extract_strided_slice %274 {offsets = [0, 128], sizes = [16, 32], strides = [1, 1]} : vector<16x192xf32> to vector<16x32xf32>
    %314 = arith.addf %312, %313 : vector<16x32xf32>
    %315 = arith.negf %314 : vector<16x32xf32>
    %316 = math.exp %315 : vector<16x32xf32>
    %cst_75 = arith.constant 1.000000e+00 : f32
    %317 = vector.broadcast %cst_75 : f32 to vector<16x32xf32>
    %318 = arith.addf %317, %316 : vector<16x32xf32>
    %319 = arith.divf %317, %318 : vector<16x32xf32>
    %320 = vector.extract_strided_slice %276 {offsets = [0, 64], sizes = [16, 32], strides = [1, 1]} : vector<16x96xf32> to vector<16x32xf32>
    %321 = vector.extract_strided_slice %274 {offsets = [0, 160], sizes = [16, 32], strides = [1, 1]} : vector<16x192xf32> to vector<16x32xf32>
    %322 = arith.mulf %311, %321 : vector<16x32xf32>
    %323 = arith.addf %320, %322 : vector<16x32xf32>
    %324 = math.tanh %323 : vector<16x32xf32>
    %cst_76 = arith.constant 1.000000e+00 : f32
    %325 = vector.broadcast %cst_76 : f32 to vector<16x32xf32>
    %326 = arith.subf %325, %319 : vector<16x32xf32>
    %327 = arith.mulf %326, %324 : vector<16x32xf32>
    %328 = vector.extract_strided_slice %266 {offsets = [0, 32], sizes = [16, 32], strides = [1, 1]} : vector<16x64xf32> to vector<16x32xf32>
    %329 = arith.mulf %319, %328 : vector<16x32xf32>
    %330 = arith.addf %327, %329 : vector<16x32xf32>
    %331 = tpu.concatenate %303, %330 in 1 : vector<16x32xf32>, vector<16x32xf32> -> vector<16x64xf32>
    %332 = arith.truncf %303 : vector<16x32xf32> to vector<16x32xbf16>
    %c64_77 = arith.constant 64 : index
    %c0_78 = arith.constant 0 : index
    %333 = vector.load %arg14[%c64_77, %c0_78] : memref<128x64xbf16, #tpu.memory_space<vmem>>, vector<16x32xbf16>
    tpu.vector_store %arg14[%c64_77, %c0_78], %332 {strides = array<i32>} : memref<128x64xbf16, #tpu.memory_space<vmem>>, vector<16x32xbf16>,
    %334 = arith.truncf %330 : vector<16x32xf32> to vector<16x32xbf16>
    %c48_79 = arith.constant 48 : index
    %c32_80 = arith.constant 32 : index
    %335 = vector.load %arg14[%c48_79, %c32_80] : memref<128x64xbf16, #tpu.memory_space<vmem>>, vector<16x32xbf16>
    tpu.vector_store %arg14[%c48_79, %c32_80], %334 {strides = array<i32>} : memref<128x64xbf16, #tpu.memory_space<vmem>>, vector<16x32xbf16>,
    %336 = arith.truncf %331 : vector<16x64xf32> to vector<16x64xbf16>
    %cst_81 = arith.constant dense<0.000000e+00> : vector<16x192xf32>
    %337 = tpu.matmul %336, %8, %cst_81 {dimension_numbers = #tpu.dot_dimension_numbers<[1], [0], [0], [1], [0, 0, 1, 1], [], []>} : vector<16x64xbf16>, vector<64x192xbf16>, vector<16x192xf32> -> vector<16x192xf32>
    %338 = vector.broadcast %9 : vector<1x192xf32> to vector<16x192xf32>
    %339 = arith.addf %337, %338 : vector<16x192xf32>
    %c80_82 = arith.constant 80 : index
    %c0_83 = arith.constant 0 : index
    %340 = vector.load %arg13[%c80_82, %c0_83] : memref<128x192xf32, #tpu.memory_space<vmem>>, vector<16x96xf32>
    %c32_84 = arith.constant 32 : index
    %c96_85 = arith.constant 96 : index
    %341 = vector.load %arg13[%c32_84, %c96_85] : memref<128x192xf32, #tpu.memory_space<vmem>>, vector<16x96xf32>
    %342 = vector.extract_strided_slice %340 {offsets = [0, 0], sizes = [16, 32], strides = [1, 1]} : vector<16x96xf32> to vector<16x32xf32>
    %343 = vector.extract_strided_slice %339 {offsets = [0, 0], sizes = [16, 32], strides = [1, 1]} : vector<16x192xf32> to vector<16x32xf32>
    %344 = arith.addf %342, %343 : vector<16x32xf32>
    %345 = arith.negf %344 : vector<16x32xf32>
    %346 = math.exp %345 : vector<16x32xf32>
    %cst_86 = arith.constant 1.000000e+00 : f32
    %347 = vector.broadcast %cst_86 : f32 to vector<16x32xf32>
    %348 = arith.addf %347, %346 : vector<16x32xf32>
    %349 = arith.divf %347, %348 : vector<16x32xf32>
    %350 = vector.extract_strided_slice %340 {offsets = [0, 32], sizes = [16, 32], strides = [1, 1]} : vector<16x96xf32> to vector<16x32xf32>
    %351 = vector.extract_strided_slice %339 {offsets = [0, 32], sizes = [16, 32], strides = [1, 1]} : vector<16x192xf32> to vector<16x32xf32>
    %352 = arith.addf %350, %351 : vector<16x32xf32>
    %353 = arith.negf %352 : vector<16x32xf32>
    %354 = math.exp %353 : vector<16x32xf32>
    %cst_87 = arith.constant 1.000000e+00 : f32
    %355 = vector.broadcast %cst_87 : f32 to vector<16x32xf32>
    %356 = arith.addf %355, %354 : vector<16x32xf32>
    %357 = arith.divf %355, %356 : vector<16x32xf32>
    %358 = vector.extract_strided_slice %340 {offsets = [0, 64], sizes = [16, 32], strides = [1, 1]} : vector<16x96xf32> to vector<16x32xf32>
    %359 = vector.extract_strided_slice %339 {offsets = [0, 64], sizes = [16, 32], strides = [1, 1]} : vector<16x192xf32> to vector<16x32xf32>
    %360 = arith.mulf %349, %359 : vector<16x32xf32>
    %361 = arith.addf %358, %360 : vector<16x32xf32>
    %362 = math.tanh %361 : vector<16x32xf32>
    %cst_88 = arith.constant 1.000000e+00 : f32
    %363 = vector.broadcast %cst_88 : f32 to vector<16x32xf32>
    %364 = arith.subf %363, %357 : vector<16x32xf32>
    %365 = arith.mulf %364, %362 : vector<16x32xf32>
    %366 = vector.extract_strided_slice %331 {offsets = [0, 0], sizes = [16, 32], strides = [1, 1]} : vector<16x64xf32> to vector<16x32xf32>
    %367 = arith.mulf %357, %366 : vector<16x32xf32>
    %368 = arith.addf %365, %367 : vector<16x32xf32>
    %369 = vector.extract_strided_slice %341 {offsets = [0, 0], sizes = [16, 32], strides = [1, 1]} : vector<16x96xf32> to vector<16x32xf32>
    %370 = vector.extract_strided_slice %339 {offsets = [0, 96], sizes = [16, 32], strides = [1, 1]} : vector<16x192xf32> to vector<16x32xf32>
    %371 = arith.addf %369, %370 : vector<16x32xf32>
    %372 = arith.negf %371 : vector<16x32xf32>
    %373 = math.exp %372 : vector<16x32xf32>
    %cst_89 = arith.constant 1.000000e+00 : f32
    %374 = vector.broadcast %cst_89 : f32 to vector<16x32xf32>
    %375 = arith.addf %374, %373 : vector<16x32xf32>
    %376 = arith.divf %374, %375 : vector<16x32xf32>
    %377 = vector.extract_strided_slice %341 {offsets = [0, 32], sizes = [16, 32], strides = [1, 1]} : vector<16x96xf32> to vector<16x32xf32>
    %378 = vector.extract_strided_slice %339 {offsets = [0, 128], sizes = [16, 32], strides = [1, 1]} : vector<16x192xf32> to vector<16x32xf32>
    %379 = arith.addf %377, %378 : vector<16x32xf32>
    %380 = arith.negf %379 : vector<16x32xf32>
    %381 = math.exp %380 : vector<16x32xf32>
    %cst_90 = arith.constant 1.000000e+00 : f32
    %382 = vector.broadcast %cst_90 : f32 to vector<16x32xf32>
    %383 = arith.addf %382, %381 : vector<16x32xf32>
    %384 = arith.divf %382, %383 : vector<16x32xf32>
    %385 = vector.extract_strided_slice %341 {offsets = [0, 64], sizes = [16, 32], strides = [1, 1]} : vector<16x96xf32> to vector<16x32xf32>
    %386 = vector.extract_strided_slice %339 {offsets = [0, 160], sizes = [16, 32], strides = [1, 1]} : vector<16x192xf32> to vector<16x32xf32>
    %387 = arith.mulf %376, %386 : vector<16x32xf32>
    %388 = arith.addf %385, %387 : vector<16x32xf32>
    %389 = math.tanh %388 : vector<16x32xf32>
    %cst_91 = arith.constant 1.000000e+00 : f32
    %390 = vector.broadcast %cst_91 : f32 to vector<16x32xf32>
    %391 = arith.subf %390, %384 : vector<16x32xf32>
    %392 = arith.mulf %391, %389 : vector<16x32xf32>
    %393 = vector.extract_strided_slice %331 {offsets = [0, 32], sizes = [16, 32], strides = [1, 1]} : vector<16x64xf32> to vector<16x32xf32>
    %394 = arith.mulf %384, %393 : vector<16x32xf32>
    %395 = arith.addf %392, %394 : vector<16x32xf32>
    %396 = tpu.concatenate %368, %395 in 1 : vector<16x32xf32>, vector<16x32xf32> -> vector<16x64xf32>
    %397 = arith.truncf %368 : vector<16x32xf32> to vector<16x32xbf16>
    %c80_92 = arith.constant 80 : index
    %c0_93 = arith.constant 0 : index
    %398 = vector.load %arg14[%c80_92, %c0_93] : memref<128x64xbf16, #tpu.memory_space<vmem>>, vector<16x32xbf16>
    tpu.vector_store %arg14[%c80_92, %c0_93], %397 {strides = array<i32>} : memref<128x64xbf16, #tpu.memory_space<vmem>>, vector<16x32xbf16>,
    %399 = arith.truncf %395 : vector<16x32xf32> to vector<16x32xbf16>
    %c32_94 = arith.constant 32 : index
    %c32_95 = arith.constant 32 : index
    %400 = vector.load %arg14[%c32_94, %c32_95] : memref<128x64xbf16, #tpu.memory_space<vmem>>, vector<16x32xbf16>
    tpu.vector_store %arg14[%c32_94, %c32_95], %399 {strides = array<i32>} : memref<128x64xbf16, #tpu.memory_space<vmem>>, vector<16x32xbf16>,
    %401 = arith.truncf %396 : vector<16x64xf32> to vector<16x64xbf16>
    %cst_96 = arith.constant dense<0.000000e+00> : vector<16x192xf32>
    %402 = tpu.matmul %401, %8, %cst_96 {dimension_numbers = #tpu.dot_dimension_numbers<[1], [0], [0], [1], [0, 0, 1, 1], [], []>} : vector<16x64xbf16>, vector<64x192xbf16>, vector<16x192xf32> -> vector<16x192xf32>
    %403 = vector.broadcast %9 : vector<1x192xf32> to vector<16x192xf32>
    %404 = arith.addf %402, %403 : vector<16x192xf32>
    %c96_97 = arith.constant 96 : index
    %c0_98 = arith.constant 0 : index
    %405 = vector.load %arg13[%c96_97, %c0_98] : memref<128x192xf32, #tpu.memory_space<vmem>>, vector<16x96xf32>
    %c16_99 = arith.constant 16 : index
    %c96_100 = arith.constant 96 : index
    %406 = vector.load %arg13[%c16_99, %c96_100] : memref<128x192xf32, #tpu.memory_space<vmem>>, vector<16x96xf32>
    %407 = vector.extract_strided_slice %405 {offsets = [0, 0], sizes = [16, 32], strides = [1, 1]} : vector<16x96xf32> to vector<16x32xf32>
    %408 = vector.extract_strided_slice %404 {offsets = [0, 0], sizes = [16, 32], strides = [1, 1]} : vector<16x192xf32> to vector<16x32xf32>
    %409 = arith.addf %407, %408 : vector<16x32xf32>
    %410 = arith.negf %409 : vector<16x32xf32>
    %411 = math.exp %410 : vector<16x32xf32>
    %cst_101 = arith.constant 1.000000e+00 : f32
    %412 = vector.broadcast %cst_101 : f32 to vector<16x32xf32>
    %413 = arith.addf %412, %411 : vector<16x32xf32>
    %414 = arith.divf %412, %413 : vector<16x32xf32>
    %415 = vector.extract_strided_slice %405 {offsets = [0, 32], sizes = [16, 32], strides = [1, 1]} : vector<16x96xf32> to vector<16x32xf32>
    %416 = vector.extract_strided_slice %404 {offsets = [0, 32], sizes = [16, 32], strides = [1, 1]} : vector<16x192xf32> to vector<16x32xf32>
    %417 = arith.addf %415, %416 : vector<16x32xf32>
    %418 = arith.negf %417 : vector<16x32xf32>
    %419 = math.exp %418 : vector<16x32xf32>
    %cst_102 = arith.constant 1.000000e+00 : f32
    %420 = vector.broadcast %cst_102 : f32 to vector<16x32xf32>
    %421 = arith.addf %420, %419 : vector<16x32xf32>
    %422 = arith.divf %420, %421 : vector<16x32xf32>
    %423 = vector.extract_strided_slice %405 {offsets = [0, 64], sizes = [16, 32], strides = [1, 1]} : vector<16x96xf32> to vector<16x32xf32>
    %424 = vector.extract_strided_slice %404 {offsets = [0, 64], sizes = [16, 32], strides = [1, 1]} : vector<16x192xf32> to vector<16x32xf32>
    %425 = arith.mulf %414, %424 : vector<16x32xf32>
    %426 = arith.addf %423, %425 : vector<16x32xf32>
    %427 = math.tanh %426 : vector<16x32xf32>
    %cst_103 = arith.constant 1.000000e+00 : f32
    %428 = vector.broadcast %cst_103 : f32 to vector<16x32xf32>
    %429 = arith.subf %428, %422 : vector<16x32xf32>
    %430 = arith.mulf %429, %427 : vector<16x32xf32>
    %431 = vector.extract_strided_slice %396 {offsets = [0, 0], sizes = [16, 32], strides = [1, 1]} : vector<16x64xf32> to vector<16x32xf32>
    %432 = arith.mulf %422, %431 : vector<16x32xf32>
    %433 = arith.addf %430, %432 : vector<16x32xf32>
    %434 = vector.extract_strided_slice %406 {offsets = [0, 0], sizes = [16, 32], strides = [1, 1]} : vector<16x96xf32> to vector<16x32xf32>
    %435 = vector.extract_strided_slice %404 {offsets = [0, 96], sizes = [16, 32], strides = [1, 1]} : vector<16x192xf32> to vector<16x32xf32>
    %436 = arith.addf %434, %435 : vector<16x32xf32>
    %437 = arith.negf %436 : vector<16x32xf32>
    %438 = math.exp %437 : vector<16x32xf32>
    %cst_104 = arith.constant 1.000000e+00 : f32
    %439 = vector.broadcast %cst_104 : f32 to vector<16x32xf32>
    %440 = arith.addf %439, %438 : vector<16x32xf32>
    %441 = arith.divf %439, %440 : vector<16x32xf32>
    %442 = vector.extract_strided_slice %406 {offsets = [0, 32], sizes = [16, 32], strides = [1, 1]} : vector<16x96xf32> to vector<16x32xf32>
    %443 = vector.extract_strided_slice %404 {offsets = [0, 128], sizes = [16, 32], strides = [1, 1]} : vector<16x192xf32> to vector<16x32xf32>
    %444 = arith.addf %442, %443 : vector<16x32xf32>
    %445 = arith.negf %444 : vector<16x32xf32>
    %446 = math.exp %445 : vector<16x32xf32>
    %cst_105 = arith.constant 1.000000e+00 : f32
    %447 = vector.broadcast %cst_105 : f32 to vector<16x32xf32>
    %448 = arith.addf %447, %446 : vector<16x32xf32>
    %449 = arith.divf %447, %448 : vector<16x32xf32>
    %450 = vector.extract_strided_slice %406 {offsets = [0, 64], sizes = [16, 32], strides = [1, 1]} : vector<16x96xf32> to vector<16x32xf32>
    %451 = vector.extract_strided_slice %404 {offsets = [0, 160], sizes = [16, 32], strides = [1, 1]} : vector<16x192xf32> to vector<16x32xf32>
    %452 = arith.mulf %441, %451 : vector<16x32xf32>
    %453 = arith.addf %450, %452 : vector<16x32xf32>
    %454 = math.tanh %453 : vector<16x32xf32>
    %cst_106 = arith.constant 1.000000e+00 : f32
    %455 = vector.broadcast %cst_106 : f32 to vector<16x32xf32>
    %456 = arith.subf %455, %449 : vector<16x32xf32>
    %457 = arith.mulf %456, %454 : vector<16x32xf32>
    %458 = vector.extract_strided_slice %396 {offsets = [0, 32], sizes = [16, 32], strides = [1, 1]} : vector<16x64xf32> to vector<16x32xf32>
    %459 = arith.mulf %449, %458 : vector<16x32xf32>
    %460 = arith.addf %457, %459 : vector<16x32xf32>
    %461 = tpu.concatenate %433, %460 in 1 : vector<16x32xf32>, vector<16x32xf32> -> vector<16x64xf32>
    %462 = arith.truncf %433 : vector<16x32xf32> to vector<16x32xbf16>
    %c96_107 = arith.constant 96 : index
    %c0_108 = arith.constant 0 : index
    %463 = vector.load %arg14[%c96_107, %c0_108] : memref<128x64xbf16, #tpu.memory_space<vmem>>, vector<16x32xbf16>
    tpu.vector_store %arg14[%c96_107, %c0_108], %462 {strides = array<i32>} : memref<128x64xbf16, #tpu.memory_space<vmem>>, vector<16x32xbf16>,
    %464 = arith.truncf %460 : vector<16x32xf32> to vector<16x32xbf16>
    %c16_109 = arith.constant 16 : index
    %c32_110 = arith.constant 32 : index
    %465 = vector.load %arg14[%c16_109, %c32_110] : memref<128x64xbf16, #tpu.memory_space<vmem>>, vector<16x32xbf16>
    tpu.vector_store %arg14[%c16_109, %c32_110], %464 {strides = array<i32>} : memref<128x64xbf16, #tpu.memory_space<vmem>>, vector<16x32xbf16>,
    %466 = arith.truncf %461 : vector<16x64xf32> to vector<16x64xbf16>
    %cst_111 = arith.constant dense<0.000000e+00> : vector<16x192xf32>
    %467 = tpu.matmul %466, %8, %cst_111 {dimension_numbers = #tpu.dot_dimension_numbers<[1], [0], [0], [1], [0, 0, 1, 1], [], []>} : vector<16x64xbf16>, vector<64x192xbf16>, vector<16x192xf32> -> vector<16x192xf32>
    %468 = vector.broadcast %9 : vector<1x192xf32> to vector<16x192xf32>
    %469 = arith.addf %467, %468 : vector<16x192xf32>
    %c112_112 = arith.constant 112 : index
    %c0_113 = arith.constant 0 : index
    %470 = vector.load %arg13[%c112_112, %c0_113] : memref<128x192xf32, #tpu.memory_space<vmem>>, vector<16x96xf32>
    %c0_114 = arith.constant 0 : index
    %c96_115 = arith.constant 96 : index
    %471 = vector.load %arg13[%c0_114, %c96_115] : memref<128x192xf32, #tpu.memory_space<vmem>>, vector<16x96xf32>
    %472 = vector.extract_strided_slice %470 {offsets = [0, 0], sizes = [16, 32], strides = [1, 1]} : vector<16x96xf32> to vector<16x32xf32>
    %473 = vector.extract_strided_slice %469 {offsets = [0, 0], sizes = [16, 32], strides = [1, 1]} : vector<16x192xf32> to vector<16x32xf32>
    %474 = arith.addf %472, %473 : vector<16x32xf32>
    %475 = arith.negf %474 : vector<16x32xf32>
    %476 = math.exp %475 : vector<16x32xf32>
    %cst_116 = arith.constant 1.000000e+00 : f32
    %477 = vector.broadcast %cst_116 : f32 to vector<16x32xf32>
    %478 = arith.addf %477, %476 : vector<16x32xf32>
    %479 = arith.divf %477, %478 : vector<16x32xf32>
    %480 = vector.extract_strided_slice %470 {offsets = [0, 32], sizes = [16, 32], strides = [1, 1]} : vector<16x96xf32> to vector<16x32xf32>
    %481 = vector.extract_strided_slice %469 {offsets = [0, 32], sizes = [16, 32], strides = [1, 1]} : vector<16x192xf32> to vector<16x32xf32>
    %482 = arith.addf %480, %481 : vector<16x32xf32>
    %483 = arith.negf %482 : vector<16x32xf32>
    %484 = math.exp %483 : vector<16x32xf32>
    %cst_117 = arith.constant 1.000000e+00 : f32
    %485 = vector.broadcast %cst_117 : f32 to vector<16x32xf32>
    %486 = arith.addf %485, %484 : vector<16x32xf32>
    %487 = arith.divf %485, %486 : vector<16x32xf32>
    %488 = vector.extract_strided_slice %470 {offsets = [0, 64], sizes = [16, 32], strides = [1, 1]} : vector<16x96xf32> to vector<16x32xf32>
    %489 = vector.extract_strided_slice %469 {offsets = [0, 64], sizes = [16, 32], strides = [1, 1]} : vector<16x192xf32> to vector<16x32xf32>
    %490 = arith.mulf %479, %489 : vector<16x32xf32>
    %491 = arith.addf %488, %490 : vector<16x32xf32>
    %492 = math.tanh %491 : vector<16x32xf32>
    %cst_118 = arith.constant 1.000000e+00 : f32
    %493 = vector.broadcast %cst_118 : f32 to vector<16x32xf32>
    %494 = arith.subf %493, %487 : vector<16x32xf32>
    %495 = arith.mulf %494, %492 : vector<16x32xf32>
    %496 = vector.extract_strided_slice %461 {offsets = [0, 0], sizes = [16, 32], strides = [1, 1]} : vector<16x64xf32> to vector<16x32xf32>
    %497 = arith.mulf %487, %496 : vector<16x32xf32>
    %498 = arith.addf %495, %497 : vector<16x32xf32>
    %499 = vector.extract_strided_slice %471 {offsets = [0, 0], sizes = [16, 32], strides = [1, 1]} : vector<16x96xf32> to vector<16x32xf32>
    %500 = vector.extract_strided_slice %469 {offsets = [0, 96], sizes = [16, 32], strides = [1, 1]} : vector<16x192xf32> to vector<16x32xf32>
    %501 = arith.addf %499, %500 : vector<16x32xf32>
    %502 = arith.negf %501 : vector<16x32xf32>
    %503 = math.exp %502 : vector<16x32xf32>
    %cst_119 = arith.constant 1.000000e+00 : f32
    %504 = vector.broadcast %cst_119 : f32 to vector<16x32xf32>
    %505 = arith.addf %504, %503 : vector<16x32xf32>
    %506 = arith.divf %504, %505 : vector<16x32xf32>
    %507 = vector.extract_strided_slice %471 {offsets = [0, 32], sizes = [16, 32], strides = [1, 1]} : vector<16x96xf32> to vector<16x32xf32>
    %508 = vector.extract_strided_slice %469 {offsets = [0, 128], sizes = [16, 32], strides = [1, 1]} : vector<16x192xf32> to vector<16x32xf32>
    %509 = arith.addf %507, %508 : vector<16x32xf32>
    %510 = arith.negf %509 : vector<16x32xf32>
    %511 = math.exp %510 : vector<16x32xf32>
    %cst_120 = arith.constant 1.000000e+00 : f32
    %512 = vector.broadcast %cst_120 : f32 to vector<16x32xf32>
    %513 = arith.addf %512, %511 : vector<16x32xf32>
    %514 = arith.divf %512, %513 : vector<16x32xf32>
    %515 = vector.extract_strided_slice %471 {offsets = [0, 64], sizes = [16, 32], strides = [1, 1]} : vector<16x96xf32> to vector<16x32xf32>
    %516 = vector.extract_strided_slice %469 {offsets = [0, 160], sizes = [16, 32], strides = [1, 1]} : vector<16x192xf32> to vector<16x32xf32>
    %517 = arith.mulf %506, %516 : vector<16x32xf32>
    %518 = arith.addf %515, %517 : vector<16x32xf32>
    %519 = math.tanh %518 : vector<16x32xf32>
    %cst_121 = arith.constant 1.000000e+00 : f32
    %520 = vector.broadcast %cst_121 : f32 to vector<16x32xf32>
    %521 = arith.subf %520, %514 : vector<16x32xf32>
    %522 = arith.mulf %521, %519 : vector<16x32xf32>
    %523 = vector.extract_strided_slice %461 {offsets = [0, 32], sizes = [16, 32], strides = [1, 1]} : vector<16x64xf32> to vector<16x32xf32>
    %524 = arith.mulf %514, %523 : vector<16x32xf32>
    %525 = arith.addf %522, %524 : vector<16x32xf32>
    %526 = arith.truncf %498 : vector<16x32xf32> to vector<16x32xbf16>
    %c112_122 = arith.constant 112 : index
    %c0_123 = arith.constant 0 : index
    %527 = vector.load %arg14[%c112_122, %c0_123] : memref<128x64xbf16, #tpu.memory_space<vmem>>, vector<16x32xbf16>
    tpu.vector_store %arg14[%c112_122, %c0_123], %526 {strides = array<i32>} : memref<128x64xbf16, #tpu.memory_space<vmem>>, vector<16x32xbf16>,
    %528 = arith.truncf %525 : vector<16x32xf32> to vector<16x32xbf16>
    %c0_124 = arith.constant 0 : index
    %c32_125 = arith.constant 32 : index
    %529 = vector.load %arg14[%c0_124, %c32_125] : memref<128x64xbf16, #tpu.memory_space<vmem>>, vector<16x32xbf16>
    tpu.vector_store %arg14[%c0_124, %c32_125], %528 {strides = array<i32>} : memref<128x64xbf16, #tpu.memory_space<vmem>>, vector<16x32xbf16>,
    %c0_126 = arith.constant 0 : index
    %c0_127 = arith.constant 0 : index
    %530 = vector.load %arg14[%c0_126, %c0_127] : memref<128x64xbf16, #tpu.memory_space<vmem>>, vector<128x64xbf16>
    %c0_128 = arith.constant 0 : index
    %c0_129 = arith.constant 0 : index
    %531 = vector.load %arg7[%c0_128, %c0_129] : memref<64x8xbf16, #tpu.memory_space<vmem>>, vector<64x8xbf16>
    %cst_130 = arith.constant dense<0.000000e+00> : vector<128x8xf32>
    %532 = tpu.matmul %530, %531, %cst_130 {dimension_numbers = #tpu.dot_dimension_numbers<[1], [0], [0], [1], [0, 0, 1, 1], [], []>} : vector<128x64xbf16>, vector<64x8xbf16>, vector<128x8xf32> -> vector<128x8xf32>
    %c0_131 = arith.constant 0 : index
    %c0_132 = arith.constant 0 : index
    %533 = vector.load %arg8[%c0_131, %c0_132] : memref<1x8xf32, #tpu.memory_space<vmem>>, vector<1x8xf32>
    %534 = vector.broadcast %533 : vector<1x8xf32> to vector<128x8xf32>
    %535 = arith.addf %532, %534 : vector<128x8xf32>
    %c0_133 = arith.constant 0 : index
    %c0_134 = arith.constant 0 : index
    %536 = vector.load %arg15[%c0_133, %c0_134] : memref<128x8xf32, #tpu.memory_space<vmem>>, vector<128x8xf32>
    tpu.vector_store %arg15[%c0_133, %c0_134], %535 {strides = array<i32>} : memref<128x8xf32, #tpu.memory_space<vmem>>, vector<128x8xf32>,
    %c0_135 = arith.constant 0 : index
    %c0_136 = arith.constant 0 : index
    %537 = vector.load %arg2[%c0_135, %c0_136] : memref<16x1xi32, #tpu.memory_space<vmem>>, vector<16x1xi32>
    %c0_137 = arith.constant 0 : index
    %c0_138 = arith.constant 0 : index
    %538 = vector.load %arg11[%c0_137, %c0_138] : memref<8x8xf32, #tpu.memory_space<vmem>>, vector<8x8xf32>
    %c0_139 = arith.constant 0 : index
    %c0_140 = arith.constant 0 : index
    %539 = vector.load %arg9[%c0_139, %c0_140] : memref<1x8xf32, #tpu.memory_space<vmem>>, vector<1x8xf32>
    %c0_141 = arith.constant 0 : index
    %c0_142 = arith.constant 0 : index
    %540 = vector.load %arg15[%c0_141, %c0_142] : memref<128x8xf32, #tpu.memory_space<vmem>>, vector<16x8xf32>
    %541 = vector.broadcast %539 : vector<1x8xf32> to vector<16x8xf32>
    %542 = arith.addf %541, %540 : vector<16x8xf32>
    %543 = tpu.iota {dimensions = array<i32: 2>} : vector<16x8x8xi32>
    %544 = vector.shape_cast %542 : vector<16x8xf32> to vector<16x1x8xf32>
    %545 = vector.shape_cast %538 : vector<8x8xf32> to vector<1x8x8xf32>
    %546 = vector.broadcast %544 : vector<16x1x8xf32> to vector<16x8x8xf32>
    %547 = vector.broadcast %545 : vector<1x8x8xf32> to vector<16x8x8xf32>
    %548 = arith.addf %546, %547 : vector<16x8x8xf32>
    %cst_143 = arith.constant dense<0xFF800000> : vector<16x8xf32>
    %549 = vector.multi_reduction <maximumf>, %548, %cst_143 [2] : vector<16x8x8xf32> to vector<16x8xf32>
    %550 = vector.shape_cast %549 : vector<16x8xf32> to vector<16x8x1xf32>
    %551 = vector.broadcast %550 : vector<16x8x1xf32> to vector<16x8x8xf32>
    %552 = arith.cmpf oge, %548, %551 : vector<16x8x8xf32>
    %c8_i32 = arith.constant 8 : i32
    %553 = vector.broadcast %c8_i32 : i32 to vector<16x8x8xi32>
    %554 = arith.select %552, %543, %553 : vector<16x8x8xi1>, vector<16x8x8xi32>
    %cst_144 = arith.constant dense<2147483647> : vector<16x8xi32>
    %555 = vector.multi_reduction <minsi>, %554, %cst_144 [2] : vector<16x8x8xi32> to vector<16x8xi32>
    %c16_145 = arith.constant 16 : index
    %c0_146 = arith.constant 0 : index
    %556 = vector.load %arg16[%c16_145, %c0_146] : memref<128x8xi32, #tpu.memory_space<vmem>>, vector<16x8xi32>
    tpu.vector_store %arg16[%c16_145, %c0_146], %555 {strides = array<i32>} : memref<128x8xi32, #tpu.memory_space<vmem>>, vector<16x8xi32>,
    %c1_i32 = arith.constant 1 : i32
    %557 = vector.broadcast %c1_i32 : i32 to vector<16x1xi32>
    %558 = arith.cmpi slt, %557, %537 : vector<16x1xi32>
    %c16_147 = arith.constant 16 : index
    %c0_148 = arith.constant 0 : index
    %559 = vector.load %arg15[%c16_147, %c0_148] : memref<128x8xf32, #tpu.memory_space<vmem>>, vector<16x8xf32>
    %560 = arith.addf %549, %559 : vector<16x8xf32>
    %561 = vector.shape_cast %558 : vector<16x1xi1> to vector<16x1xi1>
    %562 = vector.broadcast %561 : vector<16x1xi1> to vector<16x8xi1>
    %563 = arith.select %562, %560, %542 : vector<16x8xi1>, vector<16x8xf32>
    %564 = vector.shape_cast %563 : vector<16x8xf32> to vector<16x1x8xf32>
    %565 = vector.shape_cast %538 : vector<8x8xf32> to vector<1x8x8xf32>
    %566 = vector.broadcast %564 : vector<16x1x8xf32> to vector<16x8x8xf32>
    %567 = vector.broadcast %565 : vector<1x8x8xf32> to vector<16x8x8xf32>
    %568 = arith.addf %566, %567 : vector<16x8x8xf32>
    %cst_149 = arith.constant dense<0xFF800000> : vector<16x8xf32>
    %569 = vector.multi_reduction <maximumf>, %568, %cst_149 [2] : vector<16x8x8xf32> to vector<16x8xf32>
    %570 = vector.shape_cast %569 : vector<16x8xf32> to vector<16x8x1xf32>
    %571 = vector.broadcast %570 : vector<16x8x1xf32> to vector<16x8x8xf32>
    %572 = arith.cmpf oge, %568, %571 : vector<16x8x8xf32>
    %c8_i32_150 = arith.constant 8 : i32
    %573 = vector.broadcast %c8_i32_150 : i32 to vector<16x8x8xi32>
    %574 = arith.select %572, %543, %573 : vector<16x8x8xi1>, vector<16x8x8xi32>
    %cst_151 = arith.constant dense<2147483647> : vector<16x8xi32>
    %575 = vector.multi_reduction <minsi>, %574, %cst_151 [2] : vector<16x8x8xi32> to vector<16x8xi32>
    %c32_152 = arith.constant 32 : index
    %c0_153 = arith.constant 0 : index
    %576 = vector.load %arg16[%c32_152, %c0_153] : memref<128x8xi32, #tpu.memory_space<vmem>>, vector<16x8xi32>
    tpu.vector_store %arg16[%c32_152, %c0_153], %575 {strides = array<i32>} : memref<128x8xi32, #tpu.memory_space<vmem>>, vector<16x8xi32>,
    %c2_i32 = arith.constant 2 : i32
    %577 = vector.broadcast %c2_i32 : i32 to vector<16x1xi32>
    %578 = arith.cmpi slt, %577, %537 : vector<16x1xi32>
    %c32_154 = arith.constant 32 : index
    %c0_155 = arith.constant 0 : index
    %579 = vector.load %arg15[%c32_154, %c0_155] : memref<128x8xf32, #tpu.memory_space<vmem>>, vector<16x8xf32>
    %580 = arith.addf %569, %579 : vector<16x8xf32>
    %581 = vector.shape_cast %578 : vector<16x1xi1> to vector<16x1xi1>
    %582 = vector.broadcast %581 : vector<16x1xi1> to vector<16x8xi1>
    %583 = arith.select %582, %580, %563 : vector<16x8xi1>, vector<16x8xf32>
    %584 = vector.shape_cast %583 : vector<16x8xf32> to vector<16x1x8xf32>
    %585 = vector.shape_cast %538 : vector<8x8xf32> to vector<1x8x8xf32>
    %586 = vector.broadcast %584 : vector<16x1x8xf32> to vector<16x8x8xf32>
    %587 = vector.broadcast %585 : vector<1x8x8xf32> to vector<16x8x8xf32>
    %588 = arith.addf %586, %587 : vector<16x8x8xf32>
    %cst_156 = arith.constant dense<0xFF800000> : vector<16x8xf32>
    %589 = vector.multi_reduction <maximumf>, %588, %cst_156 [2] : vector<16x8x8xf32> to vector<16x8xf32>
    %590 = vector.shape_cast %589 : vector<16x8xf32> to vector<16x8x1xf32>
    %591 = vector.broadcast %590 : vector<16x8x1xf32> to vector<16x8x8xf32>
    %592 = arith.cmpf oge, %588, %591 : vector<16x8x8xf32>
    %c8_i32_157 = arith.constant 8 : i32
    %593 = vector.broadcast %c8_i32_157 : i32 to vector<16x8x8xi32>
    %594 = arith.select %592, %543, %593 : vector<16x8x8xi1>, vector<16x8x8xi32>
    %cst_158 = arith.constant dense<2147483647> : vector<16x8xi32>
    %595 = vector.multi_reduction <minsi>, %594, %cst_158 [2] : vector<16x8x8xi32> to vector<16x8xi32>
    %c48_159 = arith.constant 48 : index
    %c0_160 = arith.constant 0 : index
    %596 = vector.load %arg16[%c48_159, %c0_160] : memref<128x8xi32, #tpu.memory_space<vmem>>, vector<16x8xi32>
    tpu.vector_store %arg16[%c48_159, %c0_160], %595 {strides = array<i32>} : memref<128x8xi32, #tpu.memory_space<vmem>>, vector<16x8xi32>,
    %c3_i32 = arith.constant 3 : i32
    %597 = vector.broadcast %c3_i32 : i32 to vector<16x1xi32>
    %598 = arith.cmpi slt, %597, %537 : vector<16x1xi32>
    %c48_161 = arith.constant 48 : index
    %c0_162 = arith.constant 0 : index
    %599 = vector.load %arg15[%c48_161, %c0_162] : memref<128x8xf32, #tpu.memory_space<vmem>>, vector<16x8xf32>
    %600 = arith.addf %589, %599 : vector<16x8xf32>
    %601 = vector.shape_cast %598 : vector<16x1xi1> to vector<16x1xi1>
    %602 = vector.broadcast %601 : vector<16x1xi1> to vector<16x8xi1>
    %603 = arith.select %602, %600, %583 : vector<16x8xi1>, vector<16x8xf32>
    %604 = vector.shape_cast %603 : vector<16x8xf32> to vector<16x1x8xf32>
    %605 = vector.shape_cast %538 : vector<8x8xf32> to vector<1x8x8xf32>
    %606 = vector.broadcast %604 : vector<16x1x8xf32> to vector<16x8x8xf32>
    %607 = vector.broadcast %605 : vector<1x8x8xf32> to vector<16x8x8xf32>
    %608 = arith.addf %606, %607 : vector<16x8x8xf32>
    %cst_163 = arith.constant dense<0xFF800000> : vector<16x8xf32>
    %609 = vector.multi_reduction <maximumf>, %608, %cst_163 [2] : vector<16x8x8xf32> to vector<16x8xf32>
    %610 = vector.shape_cast %609 : vector<16x8xf32> to vector<16x8x1xf32>
    %611 = vector.broadcast %610 : vector<16x8x1xf32> to vector<16x8x8xf32>
    %612 = arith.cmpf oge, %608, %611 : vector<16x8x8xf32>
    %c8_i32_164 = arith.constant 8 : i32
    %613 = vector.broadcast %c8_i32_164 : i32 to vector<16x8x8xi32>
    %614 = arith.select %612, %543, %613 : vector<16x8x8xi1>, vector<16x8x8xi32>
    %cst_165 = arith.constant dense<2147483647> : vector<16x8xi32>
    %615 = vector.multi_reduction <minsi>, %614, %cst_165 [2] : vector<16x8x8xi32> to vector<16x8xi32>
    %c64_166 = arith.constant 64 : index
    %c0_167 = arith.constant 0 : index
    %616 = vector.load %arg16[%c64_166, %c0_167] : memref<128x8xi32, #tpu.memory_space<vmem>>, vector<16x8xi32>
    tpu.vector_store %arg16[%c64_166, %c0_167], %615 {strides = array<i32>} : memref<128x8xi32, #tpu.memory_space<vmem>>, vector<16x8xi32>,
    %c4_i32 = arith.constant 4 : i32
    %617 = vector.broadcast %c4_i32 : i32 to vector<16x1xi32>
    %618 = arith.cmpi slt, %617, %537 : vector<16x1xi32>
    %c64_168 = arith.constant 64 : index
    %c0_169 = arith.constant 0 : index
    %619 = vector.load %arg15[%c64_168, %c0_169] : memref<128x8xf32, #tpu.memory_space<vmem>>, vector<16x8xf32>
    %620 = arith.addf %609, %619 : vector<16x8xf32>
    %621 = vector.shape_cast %618 : vector<16x1xi1> to vector<16x1xi1>
    %622 = vector.broadcast %621 : vector<16x1xi1> to vector<16x8xi1>
    %623 = arith.select %622, %620, %603 : vector<16x8xi1>, vector<16x8xf32>
    %624 = vector.shape_cast %623 : vector<16x8xf32> to vector<16x1x8xf32>
    %625 = vector.shape_cast %538 : vector<8x8xf32> to vector<1x8x8xf32>
    %626 = vector.broadcast %624 : vector<16x1x8xf32> to vector<16x8x8xf32>
    %627 = vector.broadcast %625 : vector<1x8x8xf32> to vector<16x8x8xf32>
    %628 = arith.addf %626, %627 : vector<16x8x8xf32>
    %cst_170 = arith.constant dense<0xFF800000> : vector<16x8xf32>
    %629 = vector.multi_reduction <maximumf>, %628, %cst_170 [2] : vector<16x8x8xf32> to vector<16x8xf32>
    %630 = vector.shape_cast %629 : vector<16x8xf32> to vector<16x8x1xf32>
    %631 = vector.broadcast %630 : vector<16x8x1xf32> to vector<16x8x8xf32>
    %632 = arith.cmpf oge, %628, %631 : vector<16x8x8xf32>
    %c8_i32_171 = arith.constant 8 : i32
    %633 = vector.broadcast %c8_i32_171 : i32 to vector<16x8x8xi32>
    %634 = arith.select %632, %543, %633 : vector<16x8x8xi1>, vector<16x8x8xi32>
    %cst_172 = arith.constant dense<2147483647> : vector<16x8xi32>
    %635 = vector.multi_reduction <minsi>, %634, %cst_172 [2] : vector<16x8x8xi32> to vector<16x8xi32>
    %c80_173 = arith.constant 80 : index
    %c0_174 = arith.constant 0 : index
    %636 = vector.load %arg16[%c80_173, %c0_174] : memref<128x8xi32, #tpu.memory_space<vmem>>, vector<16x8xi32>
    tpu.vector_store %arg16[%c80_173, %c0_174], %635 {strides = array<i32>} : memref<128x8xi32, #tpu.memory_space<vmem>>, vector<16x8xi32>,
    %c5_i32 = arith.constant 5 : i32
    %637 = vector.broadcast %c5_i32 : i32 to vector<16x1xi32>
    %638 = arith.cmpi slt, %637, %537 : vector<16x1xi32>
    %c80_175 = arith.constant 80 : index
    %c0_176 = arith.constant 0 : index
    %639 = vector.load %arg15[%c80_175, %c0_176] : memref<128x8xf32, #tpu.memory_space<vmem>>, vector<16x8xf32>
    %640 = arith.addf %629, %639 : vector<16x8xf32>
    %641 = vector.shape_cast %638 : vector<16x1xi1> to vector<16x1xi1>
    %642 = vector.broadcast %641 : vector<16x1xi1> to vector<16x8xi1>
    %643 = arith.select %642, %640, %623 : vector<16x8xi1>, vector<16x8xf32>
    %644 = vector.shape_cast %643 : vector<16x8xf32> to vector<16x1x8xf32>
    %645 = vector.shape_cast %538 : vector<8x8xf32> to vector<1x8x8xf32>
    %646 = vector.broadcast %644 : vector<16x1x8xf32> to vector<16x8x8xf32>
    %647 = vector.broadcast %645 : vector<1x8x8xf32> to vector<16x8x8xf32>
    %648 = arith.addf %646, %647 : vector<16x8x8xf32>
    %cst_177 = arith.constant dense<0xFF800000> : vector<16x8xf32>
    %649 = vector.multi_reduction <maximumf>, %648, %cst_177 [2] : vector<16x8x8xf32> to vector<16x8xf32>
    %650 = vector.shape_cast %649 : vector<16x8xf32> to vector<16x8x1xf32>
    %651 = vector.broadcast %650 : vector<16x8x1xf32> to vector<16x8x8xf32>
    %652 = arith.cmpf oge, %648, %651 : vector<16x8x8xf32>
    %c8_i32_178 = arith.constant 8 : i32
    %653 = vector.broadcast %c8_i32_178 : i32 to vector<16x8x8xi32>
    %654 = arith.select %652, %543, %653 : vector<16x8x8xi1>, vector<16x8x8xi32>
    %cst_179 = arith.constant dense<2147483647> : vector<16x8xi32>
    %655 = vector.multi_reduction <minsi>, %654, %cst_179 [2] : vector<16x8x8xi32> to vector<16x8xi32>
    %c96_180 = arith.constant 96 : index
    %c0_181 = arith.constant 0 : index
    %656 = vector.load %arg16[%c96_180, %c0_181] : memref<128x8xi32, #tpu.memory_space<vmem>>, vector<16x8xi32>
    tpu.vector_store %arg16[%c96_180, %c0_181], %655 {strides = array<i32>} : memref<128x8xi32, #tpu.memory_space<vmem>>, vector<16x8xi32>,
    %c6_i32 = arith.constant 6 : i32
    %657 = vector.broadcast %c6_i32 : i32 to vector<16x1xi32>
    %658 = arith.cmpi slt, %657, %537 : vector<16x1xi32>
    %c96_182 = arith.constant 96 : index
    %c0_183 = arith.constant 0 : index
    %659 = vector.load %arg15[%c96_182, %c0_183] : memref<128x8xf32, #tpu.memory_space<vmem>>, vector<16x8xf32>
    %660 = arith.addf %649, %659 : vector<16x8xf32>
    %661 = vector.shape_cast %658 : vector<16x1xi1> to vector<16x1xi1>
    %662 = vector.broadcast %661 : vector<16x1xi1> to vector<16x8xi1>
    %663 = arith.select %662, %660, %643 : vector<16x8xi1>, vector<16x8xf32>
    %664 = vector.shape_cast %663 : vector<16x8xf32> to vector<16x1x8xf32>
    %665 = vector.shape_cast %538 : vector<8x8xf32> to vector<1x8x8xf32>
    %666 = vector.broadcast %664 : vector<16x1x8xf32> to vector<16x8x8xf32>
    %667 = vector.broadcast %665 : vector<1x8x8xf32> to vector<16x8x8xf32>
    %668 = arith.addf %666, %667 : vector<16x8x8xf32>
    %cst_184 = arith.constant dense<0xFF800000> : vector<16x8xf32>
    %669 = vector.multi_reduction <maximumf>, %668, %cst_184 [2] : vector<16x8x8xf32> to vector<16x8xf32>
    %670 = vector.shape_cast %669 : vector<16x8xf32> to vector<16x8x1xf32>
    %671 = vector.broadcast %670 : vector<16x8x1xf32> to vector<16x8x8xf32>
    %672 = arith.cmpf oge, %668, %671 : vector<16x8x8xf32>
    %c8_i32_185 = arith.constant 8 : i32
    %673 = vector.broadcast %c8_i32_185 : i32 to vector<16x8x8xi32>
    %674 = arith.select %672, %543, %673 : vector<16x8x8xi1>, vector<16x8x8xi32>
    %cst_186 = arith.constant dense<2147483647> : vector<16x8xi32>
    %675 = vector.multi_reduction <minsi>, %674, %cst_186 [2] : vector<16x8x8xi32> to vector<16x8xi32>
    %c112_187 = arith.constant 112 : index
    %c0_188 = arith.constant 0 : index
    %676 = vector.load %arg16[%c112_187, %c0_188] : memref<128x8xi32, #tpu.memory_space<vmem>>, vector<16x8xi32>
    tpu.vector_store %arg16[%c112_187, %c0_188], %675 {strides = array<i32>} : memref<128x8xi32, #tpu.memory_space<vmem>>, vector<16x8xi32>,
    %c7_i32 = arith.constant 7 : i32
    %677 = vector.broadcast %c7_i32 : i32 to vector<16x1xi32>
    %678 = arith.cmpi slt, %677, %537 : vector<16x1xi32>
    %c112_189 = arith.constant 112 : index
    %c0_190 = arith.constant 0 : index
    %679 = vector.load %arg15[%c112_189, %c0_190] : memref<128x8xf32, #tpu.memory_space<vmem>>, vector<16x8xf32>
    %680 = arith.addf %669, %679 : vector<16x8xf32>
    %681 = vector.shape_cast %678 : vector<16x1xi1> to vector<16x1xi1>
    %682 = vector.broadcast %681 : vector<16x1xi1> to vector<16x8xi1>
    %683 = arith.select %682, %680, %663 : vector<16x8xi1>, vector<16x8xf32>
    %c0_191 = arith.constant 0 : index
    %c0_192 = arith.constant 0 : index
    %684 = vector.load %arg10[%c0_191, %c0_192] : memref<1x8xf32, #tpu.memory_space<vmem>>, vector<1x8xf32>
    %685 = vector.broadcast %684 : vector<1x8xf32> to vector<16x8xf32>
    %686 = arith.addf %683, %685 : vector<16x8xf32>
    %c1_i32_193 = arith.constant 1 : i32
    %687 = vector.broadcast %c1_i32_193 : i32 to vector<16x1xi32>
    %688 = arith.subi %537, %687 : vector<16x1xi32>
    %689 = tpu.iota {dimensions = array<i32: 1>} : vector<16x8xi32>
    %cst_194 = arith.constant dense<0xFF800000> : vector<16xf32>
    %690 = vector.multi_reduction <maximumf>, %686, %cst_194 [1] : vector<16x8xf32> to vector<16xf32>
    %691 = vector.shape_cast %690 : vector<16xf32> to vector<16x1xf32>
    %692 = vector.broadcast %691 : vector<16x1xf32> to vector<16x8xf32>
    %693 = arith.cmpf oge, %686, %692 : vector<16x8xf32>
    %c8_i32_195 = arith.constant 8 : i32
    %694 = vector.broadcast %c8_i32_195 : i32 to vector<16x8xi32>
    %695 = arith.select %693, %689, %694 : vector<16x8xi1>, vector<16x8xi32>
    %cst_196 = arith.constant dense<2147483647> : vector<16xi32>
    %696 = vector.multi_reduction <minsi>, %695, %cst_196 [1] : vector<16x8xi32> to vector<16xi32>
    %697 = vector.shape_cast %696 : vector<16xi32> to vector<16x1xi32>
    %c7_i32_197 = arith.constant 7 : i32
    %698 = vector.broadcast %c7_i32_197 : i32 to vector<16x1xi32>
    %699 = arith.cmpi sle, %698, %688 : vector<16x1xi32>
    %c-1_i32 = arith.constant -1 : i32
    %700 = vector.broadcast %c-1_i32 : i32 to vector<16x1xi32>
    %701 = arith.select %699, %697, %700 : vector<16x1xi1>, vector<16x1xi32>
    %c0_198 = arith.constant 0 : index
    %c7 = arith.constant 7 : index
    %702 = vector.load %arg12[%c0_198, %c7] : memref<16x8xi32, #tpu.memory_space<vmem>>, vector<16x1xi32>
    tpu.vector_store %arg12[%c0_198, %c7], %701 {strides = array<i32>} : memref<16x8xi32, #tpu.memory_space<vmem>>, vector<16x1xi32>,
    %c112_199 = arith.constant 112 : index
    %c0_200 = arith.constant 0 : index
    %703 = vector.load %arg16[%c112_199, %c0_200] : memref<128x8xi32, #tpu.memory_space<vmem>>, vector<16x8xi32>
    %704 = vector.broadcast %697 : vector<16x1xi32> to vector<16x8xi32>
    %705 = arith.cmpi eq, %689, %704 : vector<16x8xi32>
    %c0_i32 = arith.constant 0 : i32
    %706 = vector.broadcast %c0_i32 : i32 to vector<16x8xi32>
    %707 = arith.select %705, %703, %706 : vector<16x8xi1>, vector<16x8xi32>
    %cst_201 = arith.constant dense<0> : vector<16xi32>
    %708 = vector.multi_reduction <add>, %707, %cst_201 [1] : vector<16x8xi32> to vector<16xi32>
    %709 = vector.shape_cast %708 : vector<16xi32> to vector<16x1xi32>
    %c6_i32_202 = arith.constant 6 : i32
    %710 = vector.broadcast %c6_i32_202 : i32 to vector<16x1xi32>
    %711 = arith.cmpi slt, %710, %688 : vector<16x1xi32>
    %712 = arith.select %711, %709, %697 : vector<16x1xi1>, vector<16x1xi32>
    %c6_i32_203 = arith.constant 6 : i32
    %713 = vector.broadcast %c6_i32_203 : i32 to vector<16x1xi32>
    %714 = arith.cmpi sle, %713, %688 : vector<16x1xi32>
    %c-1_i32_204 = arith.constant -1 : i32
    %715 = vector.broadcast %c-1_i32_204 : i32 to vector<16x1xi32>
    %716 = arith.select %714, %712, %715 : vector<16x1xi1>, vector<16x1xi32>
    %c0_205 = arith.constant 0 : index
    %c6 = arith.constant 6 : index
    %717 = vector.load %arg12[%c0_205, %c6] : memref<16x8xi32, #tpu.memory_space<vmem>>, vector<16x1xi32>
    tpu.vector_store %arg12[%c0_205, %c6], %716 {strides = array<i32>} : memref<16x8xi32, #tpu.memory_space<vmem>>, vector<16x1xi32>,
    %c96_206 = arith.constant 96 : index
    %c0_207 = arith.constant 0 : index
    %718 = vector.load %arg16[%c96_206, %c0_207] : memref<128x8xi32, #tpu.memory_space<vmem>>, vector<16x8xi32>
    %719 = vector.broadcast %712 : vector<16x1xi32> to vector<16x8xi32>
    %720 = arith.cmpi eq, %689, %719 : vector<16x8xi32>
    %c0_i32_208 = arith.constant 0 : i32
    %721 = vector.broadcast %c0_i32_208 : i32 to vector<16x8xi32>
    %722 = arith.select %720, %718, %721 : vector<16x8xi1>, vector<16x8xi32>
    %cst_209 = arith.constant dense<0> : vector<16xi32>
    %723 = vector.multi_reduction <add>, %722, %cst_209 [1] : vector<16x8xi32> to vector<16xi32>
    %724 = vector.shape_cast %723 : vector<16xi32> to vector<16x1xi32>
    %c5_i32_210 = arith.constant 5 : i32
    %725 = vector.broadcast %c5_i32_210 : i32 to vector<16x1xi32>
    %726 = arith.cmpi slt, %725, %688 : vector<16x1xi32>
    %727 = arith.select %726, %724, %712 : vector<16x1xi1>, vector<16x1xi32>
    %c5_i32_211 = arith.constant 5 : i32
    %728 = vector.broadcast %c5_i32_211 : i32 to vector<16x1xi32>
    %729 = arith.cmpi sle, %728, %688 : vector<16x1xi32>
    %c-1_i32_212 = arith.constant -1 : i32
    %730 = vector.broadcast %c-1_i32_212 : i32 to vector<16x1xi32>
    %731 = arith.select %729, %727, %730 : vector<16x1xi1>, vector<16x1xi32>
    %c0_213 = arith.constant 0 : index
    %c5 = arith.constant 5 : index
    %732 = vector.load %arg12[%c0_213, %c5] : memref<16x8xi32, #tpu.memory_space<vmem>>, vector<16x1xi32>
    tpu.vector_store %arg12[%c0_213, %c5], %731 {strides = array<i32>} : memref<16x8xi32, #tpu.memory_space<vmem>>, vector<16x1xi32>,
    %c80_214 = arith.constant 80 : index
    %c0_215 = arith.constant 0 : index
    %733 = vector.load %arg16[%c80_214, %c0_215] : memref<128x8xi32, #tpu.memory_space<vmem>>, vector<16x8xi32>
    %734 = vector.broadcast %727 : vector<16x1xi32> to vector<16x8xi32>
    %735 = arith.cmpi eq, %689, %734 : vector<16x8xi32>
    %c0_i32_216 = arith.constant 0 : i32
    %736 = vector.broadcast %c0_i32_216 : i32 to vector<16x8xi32>
    %737 = arith.select %735, %733, %736 : vector<16x8xi1>, vector<16x8xi32>
    %cst_217 = arith.constant dense<0> : vector<16xi32>
    %738 = vector.multi_reduction <add>, %737, %cst_217 [1] : vector<16x8xi32> to vector<16xi32>
    %739 = vector.shape_cast %738 : vector<16xi32> to vector<16x1xi32>
    %c4_i32_218 = arith.constant 4 : i32
    %740 = vector.broadcast %c4_i32_218 : i32 to vector<16x1xi32>
    %741 = arith.cmpi slt, %740, %688 : vector<16x1xi32>
    %742 = arith.select %741, %739, %727 : vector<16x1xi1>, vector<16x1xi32>
    %c4_i32_219 = arith.constant 4 : i32
    %743 = vector.broadcast %c4_i32_219 : i32 to vector<16x1xi32>
    %744 = arith.cmpi sle, %743, %688 : vector<16x1xi32>
    %c-1_i32_220 = arith.constant -1 : i32
    %745 = vector.broadcast %c-1_i32_220 : i32 to vector<16x1xi32>
    %746 = arith.select %744, %742, %745 : vector<16x1xi1>, vector<16x1xi32>
    %c0_221 = arith.constant 0 : index
    %c4 = arith.constant 4 : index
    %747 = vector.load %arg12[%c0_221, %c4] : memref<16x8xi32, #tpu.memory_space<vmem>>, vector<16x1xi32>
    tpu.vector_store %arg12[%c0_221, %c4], %746 {strides = array<i32>} : memref<16x8xi32, #tpu.memory_space<vmem>>, vector<16x1xi32>,
    %c64_222 = arith.constant 64 : index
    %c0_223 = arith.constant 0 : index
    %748 = vector.load %arg16[%c64_222, %c0_223] : memref<128x8xi32, #tpu.memory_space<vmem>>, vector<16x8xi32>
    %749 = vector.broadcast %742 : vector<16x1xi32> to vector<16x8xi32>
    %750 = arith.cmpi eq, %689, %749 : vector<16x8xi32>
    %c0_i32_224 = arith.constant 0 : i32
    %751 = vector.broadcast %c0_i32_224 : i32 to vector<16x8xi32>
    %752 = arith.select %750, %748, %751 : vector<16x8xi1>, vector<16x8xi32>
    %cst_225 = arith.constant dense<0> : vector<16xi32>
    %753 = vector.multi_reduction <add>, %752, %cst_225 [1] : vector<16x8xi32> to vector<16xi32>
    %754 = vector.shape_cast %753 : vector<16xi32> to vector<16x1xi32>
    %c3_i32_226 = arith.constant 3 : i32
    %755 = vector.broadcast %c3_i32_226 : i32 to vector<16x1xi32>
    %756 = arith.cmpi slt, %755, %688 : vector<16x1xi32>
    %757 = arith.select %756, %754, %742 : vector<16x1xi1>, vector<16x1xi32>
    %c3_i32_227 = arith.constant 3 : i32
    %758 = vector.broadcast %c3_i32_227 : i32 to vector<16x1xi32>
    %759 = arith.cmpi sle, %758, %688 : vector<16x1xi32>
    %c-1_i32_228 = arith.constant -1 : i32
    %760 = vector.broadcast %c-1_i32_228 : i32 to vector<16x1xi32>
    %761 = arith.select %759, %757, %760 : vector<16x1xi1>, vector<16x1xi32>
    %c0_229 = arith.constant 0 : index
    %c3 = arith.constant 3 : index
    %762 = vector.load %arg12[%c0_229, %c3] : memref<16x8xi32, #tpu.memory_space<vmem>>, vector<16x1xi32>
    tpu.vector_store %arg12[%c0_229, %c3], %761 {strides = array<i32>} : memref<16x8xi32, #tpu.memory_space<vmem>>, vector<16x1xi32>,
    %c48_230 = arith.constant 48 : index
    %c0_231 = arith.constant 0 : index
    %763 = vector.load %arg16[%c48_230, %c0_231] : memref<128x8xi32, #tpu.memory_space<vmem>>, vector<16x8xi32>
    %764 = vector.broadcast %757 : vector<16x1xi32> to vector<16x8xi32>
    %765 = arith.cmpi eq, %689, %764 : vector<16x8xi32>
    %c0_i32_232 = arith.constant 0 : i32
    %766 = vector.broadcast %c0_i32_232 : i32 to vector<16x8xi32>
    %767 = arith.select %765, %763, %766 : vector<16x8xi1>, vector<16x8xi32>
    %cst_233 = arith.constant dense<0> : vector<16xi32>
    %768 = vector.multi_reduction <add>, %767, %cst_233 [1] : vector<16x8xi32> to vector<16xi32>
    %769 = vector.shape_cast %768 : vector<16xi32> to vector<16x1xi32>
    %c2_i32_234 = arith.constant 2 : i32
    %770 = vector.broadcast %c2_i32_234 : i32 to vector<16x1xi32>
    %771 = arith.cmpi slt, %770, %688 : vector<16x1xi32>
    %772 = arith.select %771, %769, %757 : vector<16x1xi1>, vector<16x1xi32>
    %c2_i32_235 = arith.constant 2 : i32
    %773 = vector.broadcast %c2_i32_235 : i32 to vector<16x1xi32>
    %774 = arith.cmpi sle, %773, %688 : vector<16x1xi32>
    %c-1_i32_236 = arith.constant -1 : i32
    %775 = vector.broadcast %c-1_i32_236 : i32 to vector<16x1xi32>
    %776 = arith.select %774, %772, %775 : vector<16x1xi1>, vector<16x1xi32>
    %c0_237 = arith.constant 0 : index
    %c2 = arith.constant 2 : index
    %777 = vector.load %arg12[%c0_237, %c2] : memref<16x8xi32, #tpu.memory_space<vmem>>, vector<16x1xi32>
    tpu.vector_store %arg12[%c0_237, %c2], %776 {strides = array<i32>} : memref<16x8xi32, #tpu.memory_space<vmem>>, vector<16x1xi32>,
    %c32_238 = arith.constant 32 : index
    %c0_239 = arith.constant 0 : index
    %778 = vector.load %arg16[%c32_238, %c0_239] : memref<128x8xi32, #tpu.memory_space<vmem>>, vector<16x8xi32>
    %779 = vector.broadcast %772 : vector<16x1xi32> to vector<16x8xi32>
    %780 = arith.cmpi eq, %689, %779 : vector<16x8xi32>
    %c0_i32_240 = arith.constant 0 : i32
    %781 = vector.broadcast %c0_i32_240 : i32 to vector<16x8xi32>
    %782 = arith.select %780, %778, %781 : vector<16x8xi1>, vector<16x8xi32>
    %cst_241 = arith.constant dense<0> : vector<16xi32>
    %783 = vector.multi_reduction <add>, %782, %cst_241 [1] : vector<16x8xi32> to vector<16xi32>
    %784 = vector.shape_cast %783 : vector<16xi32> to vector<16x1xi32>
    %c1_i32_242 = arith.constant 1 : i32
    %785 = vector.broadcast %c1_i32_242 : i32 to vector<16x1xi32>
    %786 = arith.cmpi slt, %785, %688 : vector<16x1xi32>
    %787 = arith.select %786, %784, %772 : vector<16x1xi1>, vector<16x1xi32>
    %c1_i32_243 = arith.constant 1 : i32
    %788 = vector.broadcast %c1_i32_243 : i32 to vector<16x1xi32>
    %789 = arith.cmpi sle, %788, %688 : vector<16x1xi32>
    %c-1_i32_244 = arith.constant -1 : i32
    %790 = vector.broadcast %c-1_i32_244 : i32 to vector<16x1xi32>
    %791 = arith.select %789, %787, %790 : vector<16x1xi1>, vector<16x1xi32>
    %c0_245 = arith.constant 0 : index
    %c1 = arith.constant 1 : index
    %792 = vector.load %arg12[%c0_245, %c1] : memref<16x8xi32, #tpu.memory_space<vmem>>, vector<16x1xi32>
    tpu.vector_store %arg12[%c0_245, %c1], %791 {strides = array<i32>} : memref<16x8xi32, #tpu.memory_space<vmem>>, vector<16x1xi32>,
    %c16_246 = arith.constant 16 : index
    %c0_247 = arith.constant 0 : index
    %793 = vector.load %arg16[%c16_246, %c0_247] : memref<128x8xi32, #tpu.memory_space<vmem>>, vector<16x8xi32>
    %794 = vector.broadcast %787 : vector<16x1xi32> to vector<16x8xi32>
    %795 = arith.cmpi eq, %689, %794 : vector<16x8xi32>
    %c0_i32_248 = arith.constant 0 : i32
    %796 = vector.broadcast %c0_i32_248 : i32 to vector<16x8xi32>
    %797 = arith.select %795, %793, %796 : vector<16x8xi1>, vector<16x8xi32>
    %cst_249 = arith.constant dense<0> : vector<16xi32>
    %798 = vector.multi_reduction <add>, %797, %cst_249 [1] : vector<16x8xi32> to vector<16xi32>
    %799 = vector.shape_cast %798 : vector<16xi32> to vector<16x1xi32>
    %c0_i32_250 = arith.constant 0 : i32
    %800 = vector.broadcast %c0_i32_250 : i32 to vector<16x1xi32>
    %801 = arith.cmpi slt, %800, %688 : vector<16x1xi32>
    %802 = arith.select %801, %799, %787 : vector<16x1xi1>, vector<16x1xi32>
    %c0_i32_251 = arith.constant 0 : i32
    %803 = vector.broadcast %c0_i32_251 : i32 to vector<16x1xi32>
    %804 = arith.cmpi sle, %803, %688 : vector<16x1xi32>
    %c-1_i32_252 = arith.constant -1 : i32
    %805 = vector.broadcast %c-1_i32_252 : i32 to vector<16x1xi32>
    %806 = arith.select %804, %802, %805 : vector<16x1xi1>, vector<16x1xi32>
    %c0_253 = arith.constant 0 : index
    %c0_254 = arith.constant 0 : index
    %807 = vector.load %arg12[%c0_253, %c0_254] : memref<16x8xi32, #tpu.memory_space<vmem>>, vector<16x1xi32>
    tpu.vector_store %arg12[%c0_253, %c0_254], %806 {strides = array<i32>} : memref<16x8xi32, #tpu.memory_space<vmem>>, vector<16x1xi32>,
    return
  }
  func.func @transform_0(%arg0: i32) -> (i32, i32, i32) {
    %c0_i32 = arith.constant 0 : i32
    %c0_i32_0 = arith.constant 0 : i32
    %c0_i32_1 = arith.constant 0 : i32
    return %c0_i32, %arg0, %c0_i32_0 : i32, i32, i32
  }
  func.func @transform_1(%arg0: i32) -> (i32, i32) {
    %c0_i32 = arith.constant 0 : i32
    %c0_i32_0 = arith.constant 0 : i32
    return %arg0, %c0_i32 : i32, i32
  }
  func.func @transform_2(%arg0: i32) -> (i32, i32) {
    %c0_i32 = arith.constant 0 : i32
    %c0_i32_0 = arith.constant 0 : i32
    %c0_i32_1 = arith.constant 0 : i32
    return %c0_i32, %c0_i32_0 : i32, i32
  }
  func.func @transform_3(%arg0: i32) -> (i32, i32) {
    %c0_i32 = arith.constant 0 : i32
    %c0_i32_0 = arith.constant 0 : i32
    %c0_i32_1 = arith.constant 0 : i32
    return %c0_i32, %c0_i32_0 : i32, i32
  }
  func.func @transform_4(%arg0: i32) -> (i32, i32) {
    %c0_i32 = arith.constant 0 : i32
    %c0_i32_0 = arith.constant 0 : i32
    %c0_i32_1 = arith.constant 0 : i32
    return %c0_i32, %c0_i32_0 : i32, i32
  }
  func.func @transform_5(%arg0: i32) -> (i32, i32) {
    %c0_i32 = arith.constant 0 : i32
    %c0_i32_0 = arith.constant 0 : i32
    %c0_i32_1 = arith.constant 0 : i32
    return %c0_i32, %c0_i32_0 : i32, i32
  }
  func.func @transform_6(%arg0: i32) -> (i32, i32) {
    %c0_i32 = arith.constant 0 : i32
    %c0_i32_0 = arith.constant 0 : i32
    %c0_i32_1 = arith.constant 0 : i32
    return %c0_i32, %c0_i32_0 : i32, i32
  }
  func.func @transform_7(%arg0: i32) -> (i32, i32) {
    %c0_i32 = arith.constant 0 : i32
    %c0_i32_0 = arith.constant 0 : i32
    %c0_i32_1 = arith.constant 0 : i32
    return %c0_i32, %c0_i32_0 : i32, i32
  }
  func.func @transform_8(%arg0: i32) -> (i32, i32) {
    %c0_i32 = arith.constant 0 : i32
    %c0_i32_0 = arith.constant 0 : i32
    %c0_i32_1 = arith.constant 0 : i32
    return %c0_i32, %c0_i32_0 : i32, i32
  }
  func.func @transform_9(%arg0: i32) -> (i32, i32) {
    %c0_i32 = arith.constant 0 : i32
    %c0_i32_0 = arith.constant 0 : i32
    %c0_i32_1 = arith.constant 0 : i32
    return %c0_i32, %c0_i32_0 : i32, i32
  }
  func.func @transform_10(%arg0: i32) -> (i32, i32) {
    %c0_i32 = arith.constant 0 : i32
    %c0_i32_0 = arith.constant 0 : i32
    %c0_i32_1 = arith.constant 0 : i32
    return %c0_i32, %c0_i32_0 : i32, i32
  }
  func.func @transform_11(%arg0: i32) -> (i32, i32) {
    %c0_i32 = arith.constant 0 : i32
    %c0_i32_0 = arith.constant 0 : i32
    return %arg0, %c0_i32 : i32, i32
  }
}

</mosaic_0001>

<bundles_post_ra>
// kernel: _fused_forward.1
= control target key start
LH: loop header
LB: loop body
LE: loop exit
PB: predicated region body
PF: predicated region fallthrough
CT: control target
= control target key end

     0   :  { %v14633_v1 = vmov 0   ;;  %vm131_vm0 = vcmask 261120   ;;  %v14632_v16 = vlaneseq  ;;  %vm270_vm1 = vcmask 523264   ;;  %s9460_s30 = smov 96   ;;  %s9461_s13 = smov 32   ;;  %s14620_s2 = inlined_call_operand.vmem [shape: bf16[32,192], index: 2, kind: input, shape index: {}]   ;;  %s14621_s0 = inlined_call_operand.vmem [shape: bf16[8,16,32], index: 0, kind: input, shape index: {}]   ;;  %s14622_s4 = inlined_call_operand.vmem [shape: bf16[64,192], index: 4, kind: input, shape index: {}]   ;;  %s14623_s3 = inlined_call_operand.vmem [shape: f32[1,192], index: 3, kind: input, shape index: {}]   ;;  %s14624_s5 = inlined_call_operand.vmem [shape: f32[1,192], index: 5, kind: input, shape index: {}]   ;;  %s14625_s6 = inlined_call_operand.vmem [shape: bf16[64,8], index: 6, kind: input, shape index: {}]   ;;  %s14626_s7 = inlined_call_operand.vmem [shape: f32[1,8], index: 7, kind: input, shape index: {}]   ;;  %s14627_s8 = inlined_call_operand.vmem [shape: f32[1,8], index: 8, kind: input, shape index: {}]   ;;  %s14628_s10 = inlined_call_operand.vmem [shape: f32[8,8], index: 10, kind: input, shape index: {}]   ;;  %s14629_s1 = inlined_call_operand.vmem [shape: s32[16,1], index: 1, kind: input, shape index: {}]   ;;  %s14630_s9 = inlined_call_operand.vmem [shape: f32[1,8], index: 9, kind: input, shape index: {}]   ;;  %s14631_s11 = inlined_call_operand.vmem [shape: s32[16,8], index: 11, kind: output, shape index: {}]  }
   0x1   :  { %v9153_v0 = vld [vmem:[%s14620_s2 + $0x4] ss:$8 sps:$4 sm:$0xff]   ;;  %248 = vmatprep.mubr.bf16.mxu1 %v14633_v1  ;;  %188 = vmatprep.mubr.bf16.mxu0 %v14633_v1  ;;  %v9155_v2 = vld [vmem:[%s14620_s2] ss:$8 sps:$4 sm:$0xff]   ;;  %v9156_v3 = vld [vmem:[%s14620_s2 + $0x14] ss:$8 sps:$4 sm:$0xff]  }
   0x2   :  { %9151 = vset.pattern.permute.xlu0 %v14633_v1  ;;  %9152 = vset.pattern.permute.xlu1 %v14633_v1  ;;  %v9158_v4 = vld [vmem:[%s14620_s2 + $0x10] ss:$8 sps:$4 sm:$0xff]   ;;  %v9549_v5 = vld [vmem:[%s14622_s4 + $0x4] ss:$8 sps:$4 sm:$0xff]   ;;  %v9557_v7 = vld [vmem:[%s14622_s4] ss:$8 sps:$4 sm:$0xff]  }
   0x3   :  { %9135 = vmatprep.subr.bf16.mxu1 %v9153_v0  ;;  %156 = vmatprep.subr.bf16.mxu0 %v9153_v0  ;;  %v9159_v6 = vld [vmem:[%s14621_s0 + $0x30] sm:$0xff]   ;;  %v9166_v8 = vld [vmem:[%s14621_s0] sm:$0xff]   ;;  %v9167_v12 = vld [vmem:[%s14621_s0 + $0x38] sm:$0xff]   ;;  %v9630_v17 = vshrl.u32 %v14632_v16, 7  ;;  %vm561_vm2 = vcmask 523520   ;;  %vm2218_vm3 = vcmask 64512  }
   0x4   :  { %9137 = vmatpush1.bf16.msra.mxu1 %v9155_v2  ;;  %157 = vmatpush1.bf16.msra.mxu0 %v9155_v2  ;;  %v9566_v9 = vld [vmem:[%s14622_s4 + $0x14] ss:$8 sps:$4 sm:$0xff]   ;;  %v9573_v10 = vld [vmem:[%s14622_s4 + $0x10] ss:$8 sps:$4 sm:$0xff]   ;;  %v9581_v11 = vld [vmem:[%s14622_s4 + $0x24] ss:$8 sps:$4 sm:$0xff]  }
   0x5   :  { %9136 = vmatprep.subr.bf16.mxu1 %v9156_v3  ;;  %158 = vmatprep.subr.bf16.mxu0 %v9156_v3  ;;  %v9594_v13 = vld [vmem:[%s14622_s4 + $0x20] ss:$8 sps:$4 sm:$0xff]   ;;  %v9600_v14 = vld [vmem:[%s14622_s4 + $0x34] ss:$8 sps:$4 sm:$0xff]   ;;  %v9609_v15 = vld [vmem:[%s14622_s4 + $0x30] ss:$8 sps:$4 sm:$0xff]  }
   0x6   :  { %v9633_v18 = vsub.s32 0, %v9630_v17  ;;  %v59_v19 = vld [vmem:[%s14623_s3] sm:$0x3]  ;;  %v9639_v20 = vsub.s32 1, %v9630_v17  ;;  %vm2831_vm6 = vcmask 1041409   ;;  %vm2833_vm7 = vcmask 1042434  }
   0x7   :  { %v310_v44 = vld [vmem:[%s14624_s5] sm:$0x3]  ;;  %s9459_s5 = smov 64   ;;  %vm2835_vm8 = vcmask 1043459   ;;  %vm2837_vm9 = vcmask 1044484   ;;  %vm2839_vm10 = vcmask 1045509  }
   0x8   :  { %9138 = vmatpush1.bf16.msra.mxu1 %v9158_v4  ;;  %159 = vmatpush1.bf16.msra.mxu0 %v9158_v4  ;;  %v9642_v21 = vrot.slane %v59_v19, %v9633_v18  ;;  %v9645_v22 = vrot.slane %v59_v19, %v9639_v20  ;;  %v9680_v48 = vrot.slane %v310_v44, %v9633_v18  ;;  %vm14837_vm11 = vcmask 1046534   ;;  %s9464_s27 = smov 6   ;;  %s9465_s28 = smov 5  }
   0x9   :  { %365 = vmatprep.subr.bf16.mxu1 %v9549_v5  ;;  %1212 = vmatprep.subr.bf16.mxu0 %v9549_v5  ;;  %v9684_v49 = vrot.slane %v310_v44, %v9639_v20  ;;  %vm14836_vm12 = vcmask 1047559   ;;  %s9466_s3 = smov 4   ;;  %s9467_s29 = smov 3  }
   0xa   :  { %s9468_s2 = smov 2  }
   0xb   :  { %9017 = vmatmul.mubr.msk.bf16.vlgmr.msra.gmra.mrb[0].mxu1 %vm131_vm0, %v9159_v6  ;;  %9011 = vmatmul.mubr.msk.bf16.vlgmr.msra.gmra.mrb[0].mxu0 %vm131_vm0, %v9166_v8 }
   0xc   :  { %366 = vmatpush1.bf16.msra.mxu1 %v9557_v7  ;;  %258 = vmatprep.mubr.bf16.mxu1 %v14633_v1 }
   0xd   :  { %367 = vmatprep.subr.bf16.mxu1 %v9566_v9  ;;  %198 = vmatprep.mubr.bf16.mxu0 %v14633_v1 }
   0xe   :  { %1213 = vmatpush1.bf16.msra.mxu0 %v9557_v7 }
   0xf   :  { %1214 = vmatprep.subr.bf16.mxu0 %v9566_v9 }
  0x10   :  { %368 = vmatpush1.bf16.msra.mxu1 %v9573_v10 }
  0x11   :  { %369 = vmatprep.subr.bf16.mxu1 %v9581_v11 }
  0x12   :  { %1215 = vmatpush1.bf16.msra.mxu0 %v9573_v10 }
  0x13   :  { %9018 = vmatmul.mubr.msk.bf16.gmra.mrb[4].mxu1 %vm131_vm0, %v9167_v12  ;;  %1216 = vmatprep.subr.bf16.mxu0 %v9581_v11 }
  0x14   :  { %370 = vmatpush1.bf16.msra.mxu1 %v9594_v13  ;;  %397 = vmatprep.mubr.bf16.mxu1 %v14633_v1 }
  0x15   :  { %371 = vmatprep.subr.bf16.mxu1 %v9600_v14 }
  0x16   :  { %1217 = vmatpush1.bf16.msra.mxu0 %v9594_v13 }
  0x17   :  { %1218 = vmatprep.subr.bf16.mxu0 %v9600_v14 }
  0x18   :  { %372 = vmatpush1.bf16.msra.mxu1 %v9609_v15 }
  0x19   :  { %567 = vmatprep.subr.bf16.mxu1 %v9549_v5 }
  0x1a   :  { %1219 = vmatpush1.bf16.msra.mxu0 %v9609_v15 }
  0x1b   :  { %398 = vmatmul.mubr.bf16.vlgmr.msra.gmra.mrb[8].mxu1 %v14633_v1  ;;  %1642 = vmatprep.subr.bf16.mxu0 %v9549_v5 }
  0x1c   :  { %568 = vmatpush1.bf16.msra.mxu1 %v9557_v7  ;;  %599 = vmatprep.mubr.bf16.mxu1 %v14633_v1 }
  0x1d   :  { %569 = vmatprep.subr.bf16.mxu1 %v9566_v9 }
  0x20   :  { %570 = vmatpush1.bf16.msra.mxu1 %v9573_v10 }
  0x21   :  { %571 = vmatprep.subr.bf16.mxu1 %v9581_v11 }
  0x24   :  { %572 = vmatpush1.bf16.msra.mxu1 %v9594_v13 }
  0x25   :  { %573 = vmatprep.subr.bf16.mxu1 %v9600_v14 }
  0x28   :  { %574 = vmatpush1.bf16.msra.mxu1 %v9609_v15 }
  0x29   :  { %782 = vmatprep.subr.bf16.mxu1 %v9549_v5 }
  0xde   :  { %v250_v23 = vpop.f32.mrb[0].mxu1  ;;  %v190_v24 = vpop.f32.mrb[0].mxu0 }
  0xdf   :  { %v9648_v25 = vadd.f32 %v250_v23, %v9642_v21  ;;  %v252_v26 = vpop.f32.mrb[1].mxu1  ;;  %v9651_v27 = vadd.f32 %v190_v24, %v9642_v21  ;;  %v192_v28 = vpop.f32.mrb[1].mxu0 }
  0xe0   :  { %v253_v29 = vadd.f32 %v252_v26, %v9645_v22  ;;  %v254_v30 = vpop.f32.mrb[2].mxu1  ;;  %v193_v31 = vadd.f32 %v192_v28, %v9645_v22  ;;  %v194_v32 = vpop.f32.mrb[2].mxu0 }
  0xe1   :  { %294 = vst [vmem:[#allocation2 + $0xc0] sm:$0xff] %v9648_v25  ;;  %v9657_v33 = vadd.f32 %v254_v30, %v9642_v21  ;;  %v256_v34 = vpop.f32.mrb[3].mxu1  ;;  %269 = vst [vmem:[#allocation2] sm:$0xff] %v9651_v27  ;;  %v9661_v35 = vadd.f32 %v194_v32, %v9642_v21  ;;  %v196_v36 = vpop.f32.mrb[3].mxu0 }
  0xe2   :  { %295 = vst.msk [vmem:[#allocation2 + $0xc8] sm:$0xff] %vm270_vm1, %v253_v29  ;;  %v257_v37 = vadd.f32 %v256_v34, %v9645_v22  ;;  %271 = vst.msk [vmem:[#allocation2 + $0x8] sm:$0xff] %vm270_vm1, %v193_v31  ;;  %v197_v38 = vadd.f32 %v196_v36, %v9645_v22 }
  0xe3   :  { %296 = vst [vmem:[#allocation2 + $0xd0] sm:$0xff] %v9657_v33  ;;  %272 = vst [vmem:[#allocation2 + $0x10] sm:$0xff] %v9661_v35 }
  0xe4   :  { %297 = vst.msk [vmem:[#allocation2 + $0xd8] sm:$0xff] %vm270_vm1, %v257_v37  ;;  %273 = vst.msk [vmem:[#allocation2 + $0x18] sm:$0xff] %vm270_vm1, %v197_v38 }
  0xe6   :  { %v260_v39 = vpop.f32.mrb[4].mxu1 }
  0xe7   :  { %v261_v40 = vadd.f32 %v260_v39, %v9642_v21  ;;  %v262_v41 = vpop.f32.mrb[5].mxu1 }
  0xe8   :  { %v263_v42 = vadd.f32 %v262_v41, %v9645_v22  ;;  %v264_v43 = vpop.f32.mrb[6].mxu1 }
  0xe9   :  { %298 = vst [vmem:[#allocation2 + $0xe0] sm:$0xff] %v261_v40  ;;  %v265_v45 = vadd.f32 %v264_v43, %v9642_v21  ;;  %v266_v46 = vpop.f32.mrb[7].mxu1 }
  0xea   :  { %299 = vst.msk [vmem:[#allocation2 + $0xe8] sm:$0xff] %vm270_vm1, %v263_v42  ;;  %v267_v47 = vadd.f32 %v266_v46, %v9645_v22 }
  0xeb   :  { %300 = vst [vmem:[#allocation2 + $0xf0] sm:$0xff] %v265_v45 }
  0xec   :  { %301 = vst.msk [vmem:[#allocation2 + $0xf8] sm:$0xff] %vm270_vm1, %v267_v47 }
  0xee   :  { %v399_v50 = vpop.f32.mrb[8].mxu1 }
  0xef   :  { %v400_v51 = vadd.f32 %v399_v50, %v9680_v48  ;;  %v401_v52 = vpop.f32.mrb[9].mxu1 }
  0xf0   :  { %v9688_v53 = vadd.f32 %v401_v52, %v9684_v49  ;;  %v403_v54 = vpop.f32.mrb[10].mxu1 }
  0xf1   :  { %v466_v55 = vadd.f32 %v400_v51, %v261_v40  ;;  %v404_v56 = vadd.f32 %v403_v54, %v9680_v48  ;;  %v405_v57 = vpop.f32.mrb[11].mxu1  ;;  %430 = vrot.lane.b32.xlu0 %v400_v51, %s9459_s5  ;;  %v414_v60 = vadd.f32 %v400_v51, %v9651_v27  ;;  %v411_v43 = vld [vmem:[#allocation2 + $0xe8] sm:$0xff] }
  0xf2   :  { %496 = vrot.lane.b32.xlu1 %v9688_v53, %s9459_s5  ;;  %v9695_v59 = vadd.f32 %v405_v57, %v9684_v49 }
  0xf3   :  { %v467_v58 = vadd.f32 %v404_v56, %v265_v45  ;;  %v9027_v61 = vmul.f32 -1.442695, %v414_v60  ;;  %v415_v62 = vadd.f32 %v404_v56, %v9661_v35  ;;  %v9029_v63 = vmul.f32 -1.442695, %v466_v55  ;;  %v413_v50 = vld [vmem:[#allocation2 + $0xf8] sm:$0xff] }
  0xf4   :  { %v481_v57 = vadd.f32 %v413_v50, %v9695_v59 }
  0xf5   :  { %432 = vrot.lane.b32.xlu0 %v404_v56, %s9459_s5  ;;  %9183 = vpow2.f32 %v9027_v61  ;;  %v9028_v0 = vmul.f32 -1.442695, %v415_v62  ;;  %v9030_v2 = vmul.f32 -1.442695, %v467_v58 }
  0xf6   :  { %498 = vrot.lane.b32.xlu1 %v9695_v59, %s9459_s5  ;;  %9185 = vpow2.f32 %v9029_v63  ;;  %v9032_v60 = vmul.f32 -1.442695, %v481_v57 }
  0xf7   :  { %9187 = vpow2.f32 %v9028_v0 }
  0xf8   :  { %9189 = vpow2.f32 %v9030_v2  ;;  %v9174_v2 = vld [vmem:[%s14621_s0 + $0x8] sm:$0xff]  }
  0xf9   :  { %9012 = vmatmul.mubr.msk.bf16.gmra.mrb[4].mxu0 %vm131_vm0, %v9174_v2 }
  0xfa   :  { %208 = vmatprep.mubr.bf16.mxu0 %v14633_v1 }
  0xff   :  { %v9184_v3 = vpop.eup %9183 }
 0x100   :  { %v9186_v4 = vpop.eup %9185  ;;  %v422_v6 = vadd.f32 1.0, %v9184_v3 }
 0x101   :  { %v9188_v8 = vpop.eup %9187  ;;  %v474_v12 = vadd.f32 1.0, %v9186_v4 }
 0x102   :  { %9191 = vrcp.f32 %v422_v6  ;;  %v423_v19 = vadd.f32 1.0, %v9188_v8  ;;  %v9190_v23 = vpop.eup %9189 }
 0x103   :  { %9193 = vrcp.f32 %v474_v12  ;;  %v475_v24 = vadd.f32 1.0, %v9190_v23 }
 0x104   :  { %9195 = vrcp.f32 %v423_v19 }
 0x105   :  { %9197 = vrcp.f32 %v475_v24 }
 0x10c   :  { %v9192_v26 = vpop.eup %9191 }
 0x10d   :  { %v9194_v31 = vpop.eup %9193  ;;  %v462_v4 = vmul.f32 0.0, %v9192_v26 }
 0x10e   :  { %v9196_v32 = vpop.eup %9195 }
 0x10f   :  { %v9198_v39 = vpop.eup %9197  ;;  %v451_v12 = vsub.f32 1.0, %v9196_v32 }
 0x163   :  { %v431_v28 = vpop.permute.xlu0 %430 }
 0x164   :  { %v436_v29 = vmul.f32 %v9192_v26, %v431_v28  ;;  %v497_v30 = vpop.permute.xlu1 %496  ;;  %v463_v28 = vmul.f32 0.0, %v9196_v32 }
 0x165   :  { %v502_v36 = vmul.f32 %v9194_v31, %v497_v30 }
 0x166   :  { %440 = vrot.lane.b32.xlu0 %v436_v29, %s9459_s5 }
 0x167   :  { %v433_v34 = vpop.permute.xlu0 %432 }
 0x168   :  { %v437_v37 = vmul.f32 %v9196_v32, %v433_v34  ;;  %v499_v38 = vpop.permute.xlu1 %498 }
 0x169   :  { %v503_v40 = vmul.f32 %v9198_v39, %v499_v38 }
 0x16a   :  { %442 = vrot.lane.b32.xlu1 %v437_v37, %s9459_s5  ;;  %506 = vrot.lane.b32.xlu0 %v502_v36, %s9459_s5 }
 0x16e   :  { %508 = vrot.lane.b32.xlu1 %v503_v40, %s9459_s5 }
 0x1d8   :  { %v441_v41 = vpop.permute.xlu0 %440 }
 0x1d9   :  { %v446_v42 = vadd.f32 %v441_v41, %v9651_v27 }
 0x1db   :  { %9199 = vtanh.f32 %v446_v42 }
 0x1dc   :  { %v443_v44 = vpop.permute.xlu1 %442  ;;  %v507_v45 = vpop.permute.xlu0 %506 }
 0x1dd   :  { %v447_v46 = vadd.f32 %v443_v44, %v9661_v35  ;;  %v512_v47 = vadd.f32 %v507_v45, %v411_v43  ;;  %v480_v35 = vadd.f32 %v411_v43, %v9688_v53  ;;  %v450_v53 = vsub.f32 1.0, %v9192_v26 }
 0x1df   :  { %9201 = vtanh.f32 %v447_v46  ;;  %v9031_v58 = vmul.f32 -1.442695, %v480_v35 }
 0x1e0   :  { %9203 = vtanh.f32 %v512_v47  ;;  %v509_v51 = vpop.permute.xlu1 %508 }
 0x1e1   :  { %v513_v52 = vadd.f32 %v509_v51, %v413_v50 }
 0x1e3   :  { %9205 = vtanh.f32 %v513_v52  ;;  %v200_v52 = vpop.f32.mrb[4].mxu0 }
 0x1e4   :  { %9207 = vpow2.f32 %v9031_v58 }
 0x1e5   :  { %v9200_v54 = vpop.eup %9199  ;;  %9209 = vpow2.f32 %v9032_v60 }
 0x1e6   :  { %454 = vrot.lane.b32.xlu0 %v9200_v54, %s9460_s30  ;;  %v9758_v54 = vadd.f32 %v200_v52, %v9642_v21 }
 0x1e8   :  { %274 = vst [vmem:[#allocation2 + $0x20] sm:$0xff] %v9758_v54 }
 0x1e9   :  { %v9202_v55 = vpop.eup %9201 }
 0x1ea   :  { %v9204_v56 = vpop.eup %9203  ;;  %456 = vrot.lane.b32.xlu1 %v9202_v55, %s9460_s30  ;;  %v202_v55 = vpop.f32.mrb[5].mxu0 }
 0x1eb   :  { %520 = vrot.lane.b32.xlu0 %v9204_v56, %s9460_s30  ;;  %v203_v56 = vadd.f32 %v202_v55, %v9645_v22 }
 0x1ed   :  { %v9206_v27 = vpop.eup %9205  ;;  %275 = vst.msk [vmem:[#allocation2 + $0x28] sm:$0xff] %vm270_vm1, %v203_v56 }
 0x1ee   :  { %522 = vrot.lane.b32.xlu1 %v9206_v27, %s9460_s30  ;;  %v9208_v61 = vpop.eup %9207  ;;  %v204_v27 = vpop.f32.mrb[6].mxu0 }
 0x1ef   :  { %v9210_v62 = vpop.eup %9209  ;;  %v488_v63 = vadd.f32 1.0, %v9208_v61  ;;  %v9763_v35 = vadd.f32 %v204_v27, %v9642_v21  ;;  %v206_v57 = vpop.f32.mrb[7].mxu0 }
 0x1f0   :  { %v489_v0 = vadd.f32 1.0, %v9210_v62  ;;  %v207_v58 = vadd.f32 %v206_v57, %v9645_v22 }
 0x1f1   :  { %9211 = vrcp.f32 %v488_v63  ;;  %276 = vst [vmem:[#allocation2 + $0x30] sm:$0xff] %v9763_v35 }
 0x1f2   :  { %9213 = vrcp.f32 %v489_v0  ;;  %277 = vst.msk [vmem:[#allocation2 + $0x38] sm:$0xff] %vm270_vm1, %v207_v58 }
 0x1fb   :  { %v9212_v3 = vpop.eup %9211 }
 0x1fc   :  { %v9214_v19 = vpop.eup %9213  ;;  %v516_v24 = vsub.f32 1.0, %v9212_v3  ;;  %v528_v31 = vmul.f32 0.0, %v9212_v3 }
 0x1fd   :  { %v517_v37 = vsub.f32 1.0, %v9214_v19  ;;  %v529_v40 = vmul.f32 0.0, %v9214_v19 }
 0x258   :  { %v455_v59 = vpop.permute.xlu0 %454 }
 0x259   :  { %v460_v6 = vmul.f32 %v455_v59, %v450_v53 }
 0x25b   :  { %v9719_v8 = vadd.f32 %v462_v4, %v460_v6 }
 0x25c   :  { %v457_v23 = vpop.permute.xlu1 %456 }
 0x25d   :  { %v461_v29 = vmul.f32 %v457_v23, %v451_v12  ;;  %v521_v30 = vpop.permute.xlu0 %520  ;;  %534 = vrot.lane.b32.xlu0 %v9719_v8, %s9460_s30 }
 0x25e   :  { %v526_v34 = vmul.f32 %v521_v30, %v516_v24 }
 0x25f   :  { %v9723_v36 = vadd.f32 %v463_v28, %v461_v29 }
 0x260   :  { %v9725_v38 = vadd.f32 %v528_v31, %v526_v34  ;;  %v523_v26 = vpop.permute.xlu1 %522 }
 0x261   :  { %v550_v39 = vpack.c.bf16 %v9723_v36, %v9719_v8  ;;  %v527_v41 = vmul.f32 %v523_v26, %v517_v37  ;;  %536 = vrot.lane.b32.xlu1 %v9723_v36, %s9460_s30 }
 0x262   :  { %542 = vrot.lane.b32.xlu0 %v9725_v38, %s9461_s13 }
 0x263   :  { %v9733_v32 = vadd.f32 %v529_v40, %v527_v41 }
 0x265   :  { %544 = vrot.lane.b32.xlu1 %v9733_v32, %s9461_s13 }
 0x2cf   :  { %v535_v43 = vpop.permute.xlu0 %534 }
 0x2d3   :  { %v537_v44 = vpop.permute.xlu1 %536 }
 0x2d4   :  { %v543_v45 = vpop.permute.xlu0 %542 }
 0x2d5   :  { %v9740_v47 = vsel %vm131_vm0, %v535_v43, %v543_v45 }
 0x2d7   :  { %v545_v46 = vpop.permute.xlu1 %544 }
 0x2d8   :  { %v9743_v50 = vsel %vm131_vm0, %v537_v44, %v545_v46 }
 0x2d9   :  { %v563_v51 = vpack.c.bf16 %v9743_v50, %v9740_v47 }
 0x2db   :  { %9033 = vmatmul.mubr.msk.bf16.vlgmr.msra.gmra.mrb[12].mxu1 %vm270_vm1, %v563_v51 }
 0x2dc   :  { %783 = vmatpush1.bf16.msra.mxu1 %v9557_v7  ;;  %814 = vmatprep.mubr.bf16.mxu1 %v14633_v1 }
 0x2dd   :  { %784 = vmatprep.subr.bf16.mxu1 %v9566_v9 }
 0x2e0   :  { %785 = vmatpush1.bf16.msra.mxu1 %v9573_v10 }
 0x2e1   :  { %786 = vmatprep.subr.bf16.mxu1 %v9581_v11 }
 0x2e4   :  { %787 = vmatpush1.bf16.msra.mxu1 %v9594_v13 }
 0x2e5   :  { %788 = vmatprep.subr.bf16.mxu1 %v9600_v14 }
 0x2e8   :  { %789 = vmatpush1.bf16.msra.mxu1 %v9609_v15 }
 0x2e9   :  { %997 = vmatprep.subr.bf16.mxu1 %v9549_v5 }
 0x3ae   :  { %v601_v60 = vpop.f32.mrb[12].mxu1 }
 0x3af   :  { %v602_v61 = vadd.f32 %v601_v60, %v9680_v48  ;;  %v603_v62 = vpop.f32.mrb[13].mxu1 }
 0x3b0   :  { %v605_v63 = vpop.f32.mrb[14].mxu1  ;;  %v9773_v53 = vadd.f32 %v603_v62, %v9684_v49 }
 0x3b1   :  { %v606_v0 = vadd.f32 %v605_v63, %v9680_v48  ;;  %v607_v2 = vpop.f32.mrb[15].mxu1  ;;  %632 = vrot.lane.b32.xlu0 %v602_v61, %s9459_s5  ;;  %v616_v3 = vadd.f32 %v602_v61, %v9758_v54  ;;  %v676_v12 = vadd.f32 %v602_v61, %v9648_v25  ;;  %v613_v63 = vld [vmem:[#allocation2 + $0xc8] sm:$0xff] }
 0x3b2   :  { %v9777_v59 = vadd.f32 %v607_v2, %v9684_v49 }
 0x3b3   :  { %634 = vrot.lane.b32.xlu1 %v606_v0, %s9459_s5  ;;  %v617_v4 = vadd.f32 %v606_v0, %v9763_v35  ;;  %v9034_v6 = vmul.f32 -1.442695, %v616_v3  ;;  %v677_v23 = vadd.f32 %v606_v0, %v9657_v33  ;;  %v9036_v24 = vmul.f32 -1.442695, %v676_v12  ;;  %v615_v3 = vld [vmem:[#allocation2 + $0xd8] sm:$0xff] }
 0x3b5   :  { %706 = vrot.lane.b32.xlu0 %v9773_v53, %s9459_s5  ;;  %v9035_v19 = vmul.f32 -1.442695, %v617_v4  ;;  %9215 = vpow2.f32 %v9034_v6  ;;  %v9037_v28 = vmul.f32 -1.442695, %v677_v23 }
 0x3b7   :  { %708 = vrot.lane.b32.xlu1 %v9777_v59, %s9459_s5  ;;  %9217 = vpow2.f32 %v9035_v19 }
 0x3b8   :  { %9219 = vpow2.f32 %v9036_v24  ;;  %v9176_v24 = vld [vmem:[%s14621_s0 + $0x18] sm:$0xff]  }
 0x3b9   :  { %9221 = vpow2.f32 %v9037_v28  ;;  %v9177_v28 = vld [vmem:[%s14621_s0 + $0x20] sm:$0xff]  }
 0x3bf   :  { %v9216_v29 = vpop.eup %9215 }
 0x3c0   :  { %v624_v31 = vadd.f32 1.0, %v9216_v29  ;;  %v690_v29 = vadd.f32 %v613_v63, %v9773_v53 }
 0x3c1   :  { %v9218_v30 = vpop.eup %9217 }
 0x3c2   :  { %v9220_v34 = vpop.eup %9219  ;;  %v625_v37 = vadd.f32 1.0, %v9218_v30  ;;  %9223 = vrcp.f32 %v624_v31  ;;  %v691_v30 = vadd.f32 %v615_v3, %v9777_v59 }
 0x3c3   :  { %v9222_v26 = vpop.eup %9221  ;;  %v684_v40 = vadd.f32 1.0, %v9220_v34 }
 0x3c4   :  { %9225 = vrcp.f32 %v625_v37  ;;  %v685_v41 = vadd.f32 1.0, %v9222_v26  ;;  %v9039_v31 = vmul.f32 -1.442695, %v691_v30 }
 0x3c5   :  { %9227 = vrcp.f32 %v684_v40  ;;  %v9178_v40 = vld [vmem:[%s14621_s0 + $0x28] sm:$0xff]  }
 0x3c6   :  { %9229 = vrcp.f32 %v685_v41 }
 0x3cc   :  { %v9787_v25 = vpop.eup %9223 }
 0x3cd   :  { %v652_v59 = vsub.f32 1.0, %v9787_v25 }
 0x3ce   :  { %v9790_v44 = vpop.eup %9225 }
 0x3cf   :  { %v9228_v51 = vpop.eup %9227 }
 0x3d0   :  { %v9230_v56 = vpop.eup %9229 }
 0x423   :  { %v633_v33 = vpop.permute.xlu0 %632 }
 0x424   :  { %v638_v43 = vmul.f32 %v9787_v25, %v633_v33 }
 0x425   :  { %v635_v45 = vpop.permute.xlu1 %634 }
 0x426   :  { %v639_v46 = vmul.f32 %v9790_v44, %v635_v45  ;;  %642 = vrot.lane.b32.xlu0 %v638_v43, %s9459_s5 }
 0x427   :  { %v707_v52 = vpop.permute.xlu0 %706 }
 0x428   :  { %v712_v55 = vmul.f32 %v9228_v51, %v707_v52  ;;  %644 = vrot.lane.b32.xlu1 %v639_v46, %s9459_s5  ;;  %v653_v46 = vsub.f32 1.0, %v9790_v44 }
 0x429   :  { %v709_v27 = vpop.permute.xlu1 %708 }
 0x42a   :  { %v713_v57 = vmul.f32 %v9230_v56, %v709_v27  ;;  %716 = vrot.lane.b32.xlu0 %v712_v55, %s9459_s5 }
 0x42c   :  { %718 = vrot.lane.b32.xlu1 %v713_v57, %s9459_s5 }
 0x42e   :  { %666 = vrot.lane.b32.xlu0 %v9740_v47, %s9461_s13 }
 0x430   :  { %668 = vrot.lane.b32.xlu1 %v9743_v50, %s9461_s13 }
 0x498   :  { %v643_v58 = vpop.permute.xlu0 %642 }
 0x499   :  { %v648_v60 = vadd.f32 %v643_v58, %v9758_v54  ;;  %v9175_v54 = vld [vmem:[%s14621_s0 + $0x10] sm:$0xff]  }
 0x49a   :  { %v645_v61 = vpop.permute.xlu1 %644  ;;  %9013 = vmatmul.mubr.msk.bf16.gmra.mrb[8].mxu0 %vm131_vm0, %v9175_v54 }
 0x49b   :  { %9231 = vtanh.f32 %v648_v60  ;;  %v649_v62 = vadd.f32 %v645_v61, %v9763_v35  ;;  %218 = vmatprep.mubr.bf16.mxu0 %v14633_v1 }
 0x49c   :  { %v717_v0 = vpop.permute.xlu0 %716 }
 0x49d   :  { %9233 = vtanh.f32 %v649_v62  ;;  %v722_v2 = vadd.f32 %v717_v0, %v613_v63 }
 0x49e   :  { %v719_v4 = vpop.permute.xlu1 %718 }
 0x49f   :  { %9235 = vtanh.f32 %v722_v2  ;;  %v723_v6 = vadd.f32 %v719_v4, %v615_v3 }
 0x4a0   :  { %v667_v41 = vpop.permute.xlu0 %666 }
 0x4a1   :  { %9237 = vtanh.f32 %v723_v6  ;;  %v672_v43 = vmul.f32 %v9787_v25, %v667_v41 }
 0x4a2   :  { %9014 = vmatmul.mubr.msk.bf16.gmra.mrb[12].mxu0 %vm131_vm0, %v9176_v24  ;;  %v669_v53 = vpop.permute.xlu1 %668 }
 0x4a3   :  { %228 = vmatprep.mubr.bf16.mxu0 %v14633_v1  ;;  %v673_v52 = vmul.f32 %v9790_v44, %v669_v53 }
 0x4a5   :  { %v9232_v12 = vpop.eup %9231 }
 0x4a6   :  { %656 = vrot.lane.b32.xlu0 %v9232_v12, %s9460_s30 }
 0x4a7   :  { %v9234_v19 = vpop.eup %9233 }
 0x4a8   :  { %658 = vrot.lane.b32.xlu1 %v9234_v19, %s9460_s30 }
 0x4a9   :  { %v9236_v35 = vpop.eup %9235 }
 0x4aa   :  { %730 = vrot.lane.b32.xlu0 %v9236_v35, %s9460_s30  ;;  %9015 = vmatmul.mubr.msk.bf16.gmra.mrb[16].mxu0 %vm131_vm0, %v9177_v28 }
 0x4ab   :  { %v9238_v23 = vpop.eup %9237  ;;  %238 = vmatprep.mubr.bf16.mxu0 %v14633_v1 }
 0x4ac   :  { %732 = vrot.lane.b32.xlu1 %v9238_v23, %s9460_s30 }
 0x4ae   :  { %738 = vrot.lane.b32.xlu0 %v9740_v47, %s9460_s30  ;;  %v9038_v47 = vmul.f32 -1.442695, %v690_v29 }
 0x4b0   :  { %740 = vrot.lane.b32.xlu1 %v9743_v50, %s9460_s30  ;;  %9239 = vpow2.f32 %v9038_v47 }
 0x4b1   :  { %9241 = vpow2.f32 %v9039_v31 }
 0x4b2   :  { %9016 = vmatmul.mubr.msk.bf16.gmra.mrb[20].mxu0 %vm131_vm0, %v9178_v40 }
 0x4b3   :  { %1244 = vmatprep.mubr.bf16.mxu0 %v14633_v1 }
 0x4ba   :  { %v9240_v50 = vpop.eup %9239 }
 0x4bb   :  { %v9242_v34 = vpop.eup %9241  ;;  %v698_v37 = vadd.f32 1.0, %v9240_v50 }
 0x4bc   :  { %v699_v26 = vadd.f32 1.0, %v9242_v34 }
 0x4bd   :  { %9243 = vrcp.f32 %v698_v37 }
 0x4be   :  { %9245 = vrcp.f32 %v699_v26 }
 0x4c7   :  { %v9244_v27 = vpop.eup %9243 }
 0x4c8   :  { %v9246_v60 = vpop.eup %9245  ;;  %v726_v62 = vsub.f32 1.0, %v9244_v27 }
 0x4c9   :  { %v727_v0 = vsub.f32 1.0, %v9246_v60 }
 0x518   :  { %v657_v33 = vpop.permute.xlu0 %656 }
 0x519   :  { %v662_v45 = vmul.f32 %v657_v33, %v652_v59 }
 0x51a   :  { %v659_v51 = vpop.permute.xlu1 %658 }
 0x51b   :  { %v9837_v55 = vadd.f32 %v672_v43, %v662_v45  ;;  %v663_v56 = vmul.f32 %v659_v51, %v653_v46 }
 0x51c   :  { %v731_v57 = vpop.permute.xlu0 %730 }
 0x51d   :  { %v9839_v58 = vadd.f32 %v673_v52, %v663_v56  ;;  %750 = vrot.lane.b32.xlu0 %v9837_v55, %s9460_s30  ;;  %v736_v63 = vmul.f32 %v731_v57, %v726_v62 }
 0x51e   :  { %v733_v61 = vpop.permute.xlu1 %732 }
 0x51f   :  { %v766_v25 = vpack.c.bf16 %v9839_v58, %v9837_v55  ;;  %752 = vrot.lane.b32.xlu1 %v9839_v58, %s9460_s30  ;;  %v737_v4 = vmul.f32 %v733_v61, %v727_v0 }
 0x520   :  { %v739_v44 = vpop.permute.xlu0 %738 }
 0x521   :  { %v744_v2 = vmul.f32 %v9244_v27, %v739_v44 }
 0x522   :  { %v741_v3 = vpop.permute.xlu1 %740 }
 0x523   :  { %v9847_v6 = vadd.f32 %v744_v2, %v736_v63  ;;  %v745_v12 = vmul.f32 %v9246_v60, %v741_v3 }
 0x525   :  { %v9849_v19 = vadd.f32 %v745_v12, %v737_v4  ;;  %758 = vrot.lane.b32.xlu0 %v9847_v6, %s9461_s13 }
 0x527   :  { %760 = vrot.lane.b32.xlu1 %v9849_v19, %s9461_s13 }
 0x56d   :  { %v210_v35 = vpop.f32.mrb[8].mxu0 }
 0x56e   :  { %v9858_v23 = vadd.f32 %v210_v35, %v9642_v21  ;;  %v212_v24 = vpop.f32.mrb[9].mxu0 }
 0x56f   :  { %v213_v28 = vadd.f32 %v212_v24, %v9645_v22  ;;  %v214_v29 = vpop.f32.mrb[10].mxu0 }
 0x570   :  { %v9862_v30 = vadd.f32 %v214_v29, %v9642_v21  ;;  %v216_v47 = vpop.f32.mrb[11].mxu0 }
 0x571   :  { %279 = vst.msk [vmem:[#allocation2 + $0x48] sm:$0xff] %vm270_vm1, %v213_v28  ;;  %v217_v31 = vadd.f32 %v216_v47, %v9645_v22 }
 0x573   :  { %281 = vst.msk [vmem:[#allocation2 + $0x58] sm:$0xff] %vm270_vm1, %v217_v31 }
 0x575   :  { %v220_v50 = vpop.f32.mrb[12].mxu0 }
 0x576   :  { %v9868_v34 = vadd.f32 %v220_v50, %v9642_v21  ;;  %v222_v37 = vpop.f32.mrb[13].mxu0 }
 0x577   :  { %v223_v26 = vadd.f32 %v222_v37, %v9645_v22  ;;  %v224_v40 = vpop.f32.mrb[14].mxu0 }
 0x578   :  { %v9872_v41 = vadd.f32 %v224_v40, %v9642_v21  ;;  %v226_v53 = vpop.f32.mrb[15].mxu0 }
 0x579   :  { %283 = vst.msk [vmem:[#allocation2 + $0x68] sm:$0xff] %vm270_vm1, %v223_v26  ;;  %v227_v59 = vadd.f32 %v226_v53, %v9645_v22 }
 0x57b   :  { %285 = vst.msk [vmem:[#allocation2 + $0x78] sm:$0xff] %vm270_vm1, %v227_v59 }
 0x57d   :  { %v230_v33 = vpop.f32.mrb[16].mxu0 }
 0x57e   :  { %v9878_v43 = vadd.f32 %v230_v33, %v9642_v21  ;;  %v232_v45 = vpop.f32.mrb[17].mxu0 }
 0x57f   :  { %v233_v46 = vadd.f32 %v232_v45, %v9645_v22  ;;  %v234_v51 = vpop.f32.mrb[18].mxu0 }
 0x580   :  { %v9882_v52 = vadd.f32 %v234_v51, %v9642_v21  ;;  %v236_v56 = vpop.f32.mrb[19].mxu0 }
 0x581   :  { %287 = vst.msk [vmem:[#allocation2 + $0x88] sm:$0xff] %vm270_vm1, %v233_v46  ;;  %v237_v27 = vadd.f32 %v236_v56, %v9645_v22 }
 0x583   :  { %289 = vst.msk [vmem:[#allocation2 + $0x98] sm:$0xff] %vm270_vm1, %v237_v27 }
 0x585   :  { %v240_v2 = vpop.f32.mrb[20].mxu0 }
 0x586   :  { %v9906_v3 = vadd.f32 %v240_v2, %v9642_v21 }
 0x58f   :  { %v751_v57 = vpop.permute.xlu0 %750 }
 0x591   :  { %v753_v60 = vpop.permute.xlu1 %752 }
 0x597   :  { %v759_v61 = vpop.permute.xlu0 %758 }
 0x598   :  { %v9888_v44 = vsel %vm131_vm0, %v751_v57, %v759_v61 }
 0x599   :  { %v761_v62 = vpop.permute.xlu1 %760 }
 0x59a   :  { %v9891_v63 = vsel %vm131_vm0, %v753_v60, %v761_v62 }
 0x59b   :  { %v778_v0 = vpack.c.bf16 %v9891_v63, %v9888_v44 }
 0x59d   :  { %9040 = vmatmul.mubr.msk.bf16.vlgmr.msra.gmra.mrb[16].mxu1 %vm270_vm1, %v778_v0 }
 0x59e   :  { %998 = vmatpush1.bf16.msra.mxu1 %v9557_v7  ;;  %1029 = vmatprep.mubr.bf16.mxu1 %v14633_v1  ;;  %v242_v7 = vpop.f32.mrb[21].mxu0 }
 0x59f   :  { %999 = vmatprep.subr.bf16.mxu1 %v9566_v9  ;;  %v243_v4 = vadd.f32 %v242_v7, %v9645_v22  ;;  %v244_v9 = vpop.f32.mrb[22].mxu0 }
 0x5a1   :  { %291 = vst.msk [vmem:[#allocation2 + $0xa8] sm:$0xff] %vm270_vm1, %v243_v4 }
 0x5a2   :  { %1000 = vmatpush1.bf16.msra.mxu1 %v9573_v10  ;;  %v9910_v10 = vadd.f32 %v244_v9, %v9642_v21 }
 0x5a3   :  { %1001 = vmatprep.subr.bf16.mxu1 %v9581_v11  ;;  %v246_v11 = vpop.f32.mrb[23].mxu0 }
 0x5a6   :  { %1002 = vmatpush1.bf16.msra.mxu1 %v9594_v13  ;;  %v247_v13 = vadd.f32 %v246_v11, %v9645_v22 }
 0x5a7   :  { %1003 = vmatprep.subr.bf16.mxu1 %v9600_v14 }
 0x5a8   :  { %293 = vst.msk [vmem:[#allocation2 + $0xb8] sm:$0xff] %vm270_vm1, %v247_v13 }
 0x5aa   :  { %1004 = vmatpush1.bf16.msra.mxu1 %v9609_v15 }
 0x5ab   :  { %1427 = vmatprep.subr.bf16.mxu1 %v9549_v5 }
 0x670   :  { %v816_v14 = vpop.f32.mrb[16].mxu1 }
 0x671   :  { %v817_v5 = vadd.f32 %v816_v14, %v9680_v48  ;;  %v818_v15 = vpop.f32.mrb[17].mxu1 }
 0x672   :  { %v820_v12 = vpop.f32.mrb[18].mxu1  ;;  %v9919_v21 = vadd.f32 %v818_v15, %v9684_v49 }
 0x673   :  { %v821_v35 = vadd.f32 %v820_v12, %v9680_v48  ;;  %v822_v24 = vpop.f32.mrb[19].mxu1  ;;  %847 = vrot.lane.b32.xlu0 %v817_v5, %s9459_s5  ;;  %v831_v22 = vadd.f32 %v817_v5, %v9858_v23  ;;  %v891_v31 = vadd.f32 %v817_v5, %v9906_v3 }
 0x674   :  { %v9923_v28 = vadd.f32 %v822_v24, %v9684_v49  ;;  %v828_v24 = vld [vmem:[#allocation2 + $0xa8] sm:$0xff] }
 0x675   :  { %849 = vrot.lane.b32.xlu1 %v821_v35, %s9459_s5  ;;  %v832_v29 = vadd.f32 %v821_v35, %v9862_v30  ;;  %v9041_v47 = vmul.f32 -1.442695, %v831_v22  ;;  %v892_v37 = vadd.f32 %v821_v35, %v9910_v10  ;;  %v9043_v26 = vmul.f32 -1.442695, %v891_v31 }
 0x677   :  { %921 = vrot.lane.b32.xlu0 %v9919_v21, %s9459_s5  ;;  %v9042_v50 = vmul.f32 -1.442695, %v832_v29  ;;  %9247 = vpow2.f32 %v9041_v47  ;;  %v9044_v40 = vmul.f32 -1.442695, %v892_v37  ;;  %v830_v47 = vld [vmem:[#allocation2 + $0xb8] sm:$0xff] }
 0x679   :  { %923 = vrot.lane.b32.xlu1 %v9923_v28, %s9459_s5  ;;  %9249 = vpow2.f32 %v9042_v50 }
 0x67a   :  { %9251 = vpow2.f32 %v9043_v26 }
 0x67b   :  { %9253 = vpow2.f32 %v9044_v40 }
 0x681   :  { %v9248_v53 = vpop.eup %9247 }
 0x682   :  { %v839_v33 = vadd.f32 1.0, %v9248_v53 }
 0x683   :  { %v9250_v59 = vpop.eup %9249 }
 0x684   :  { %v9252_v45 = vpop.eup %9251  ;;  %v840_v46 = vadd.f32 1.0, %v9250_v59  ;;  %9255 = vrcp.f32 %v839_v33  ;;  %v905_v59 = vadd.f32 %v828_v24, %v9919_v21  ;;  %v906_v33 = vadd.f32 %v830_v47, %v9923_v28 }
 0x685   :  { %v9254_v51 = vpop.eup %9253  ;;  %v899_v56 = vadd.f32 1.0, %v9252_v45 }
 0x686   :  { %9257 = vrcp.f32 %v840_v46  ;;  %v900_v27 = vadd.f32 1.0, %v9254_v51  ;;  %v9045_v45 = vmul.f32 -1.442695, %v905_v59  ;;  %v9046_v46 = vmul.f32 -1.442695, %v906_v33 }
 0x687   :  { %9259 = vrcp.f32 %v899_v56 }
 0x688   :  { %9261 = vrcp.f32 %v900_v27 }
 0x68e   :  { %v9256_v57 = vpop.eup %9255 }
 0x690   :  { %v9258_v62 = vpop.eup %9257 }
 0x691   :  { %v9260_v7 = vpop.eup %9259 }
 0x692   :  { %v9262_v11 = vpop.eup %9261 }
 0x6e5   :  { %v848_v60 = vpop.permute.xlu0 %847 }
 0x6e6   :  { %v853_v61 = vmul.f32 %v9256_v57, %v848_v60 }
 0x6e7   :  { %v850_v0 = vpop.permute.xlu1 %849 }
 0x6e8   :  { %v854_v2 = vmul.f32 %v9258_v62, %v850_v0  ;;  %857 = vrot.lane.b32.xlu0 %v853_v61, %s9459_s5 }
 0x6e9   :  { %v922_v4 = vpop.permute.xlu0 %921 }
 0x6ea   :  { %v927_v9 = vmul.f32 %v9260_v7, %v922_v4  ;;  %859 = vrot.lane.b32.xlu1 %v854_v2, %s9459_s5  ;;  %v868_v4 = vsub.f32 1.0, %v9258_v62 }
 0x6eb   :  { %v924_v13 = vpop.permute.xlu1 %923 }
 0x6ec   :  { %v928_v14 = vmul.f32 %v9262_v11, %v924_v13  ;;  %931 = vrot.lane.b32.xlu0 %v927_v9, %s9459_s5 }
 0x6ee   :  { %933 = vrot.lane.b32.xlu1 %v928_v14, %s9459_s5 }
 0x6f0   :  { %881 = vrot.lane.b32.xlu0 %v9888_v44, %s9461_s13 }
 0x6f2   :  { %883 = vrot.lane.b32.xlu1 %v9891_v63, %s9461_s13 }
 0x75a   :  { %v858_v5 = vpop.permute.xlu0 %857 }
 0x75b   :  { %v863_v15 = vadd.f32 %v858_v5, %v9858_v23 }
 0x75c   :  { %v860_v12 = vpop.permute.xlu1 %859 }
 0x75d   :  { %9263 = vtanh.f32 %v863_v15  ;;  %v864_v35 = vadd.f32 %v860_v12, %v9862_v30 }
 0x75e   :  { %v932_v22 = vpop.permute.xlu0 %931 }
 0x75f   :  { %9265 = vtanh.f32 %v864_v35  ;;  %v937_v29 = vadd.f32 %v932_v22, %v828_v24 }
 0x760   :  { %v934_v31 = vpop.permute.xlu1 %933 }
 0x761   :  { %9267 = vtanh.f32 %v937_v29  ;;  %v938_v50 = vadd.f32 %v934_v31, %v830_v47 }
 0x762   :  { %v882_v61 = vpop.permute.xlu0 %881 }
 0x763   :  { %9269 = vtanh.f32 %v938_v50  ;;  %v887_v7 = vmul.f32 %v9256_v57, %v882_v61  ;;  %v9998_v61 = vld [vmem:[%s14622_s4 + $0x10] ss:$8 sps:$4 sm:$0xff]  }
 0x764   :  { %9271 = vpow2.f32 %v9045_v45  ;;  %v884_v0 = vpop.permute.xlu1 %883 }
 0x765   :  { %9273 = vpow2.f32 %v9046_v46  ;;  %v888_v9 = vmul.f32 %v9258_v62, %v884_v0  ;;  %v10004_v0 = vld [vmem:[%s14622_s4 + $0x24] ss:$8 sps:$4 sm:$0xff]  }
 0x767   :  { %v9264_v37 = vpop.eup %9263 }
 0x768   :  { %871 = vrot.lane.b32.xlu0 %v9264_v37, %s9460_s30 }
 0x769   :  { %v9266_v26 = vpop.eup %9265 }
 0x76a   :  { %873 = vrot.lane.b32.xlu1 %v9266_v26, %s9460_s30 }
 0x76b   :  { %v9268_v40 = vpop.eup %9267 }
 0x76c   :  { %945 = vrot.lane.b32.xlu0 %v9268_v40, %s9460_s30 }
 0x76d   :  { %v9270_v53 = vpop.eup %9269 }
 0x76e   :  { %947 = vrot.lane.b32.xlu1 %v9270_v53, %s9460_s30  ;;  %v9272_v51 = vpop.eup %9271 }
 0x76f   :  { %v9274_v56 = vpop.eup %9273  ;;  %v913_v27 = vadd.f32 1.0, %v9272_v51 }
 0x770   :  { %953 = vrot.lane.b32.xlu0 %v9888_v44, %s9460_s30  ;;  %v914_v60 = vadd.f32 1.0, %v9274_v56  ;;  %v867_v44 = vsub.f32 1.0, %v9256_v57 }
 0x771   :  { %9275 = vrcp.f32 %v913_v27  ;;  %v9985_v27 = vld [vmem:[%s14622_s4] ss:$8 sps:$4 sm:$0xff]  }
 0x772   :  { %955 = vrot.lane.b32.xlu1 %v9891_v63, %s9460_s30  ;;  %9277 = vrcp.f32 %v914_v60  ;;  %v9992_v60 = vld [vmem:[%s14622_s4 + $0x14] ss:$8 sps:$4 sm:$0xff]  }
 0x77b   :  { %v9276_v13 = vpop.eup %9275 }
 0x77c   :  { %v9278_v15 = vpop.eup %9277  ;;  %v941_v57 = vsub.f32 1.0, %v9276_v13 }
 0x77d   :  { %v942_v22 = vsub.f32 1.0, %v9278_v15 }
 0x7da   :  { %v872_v2 = vpop.permute.xlu0 %871 }
 0x7db   :  { %v877_v63 = vmul.f32 %v872_v2, %v867_v44  ;;  %v10010_v44 = vld [vmem:[%s14622_s4 + $0x20] ss:$8 sps:$4 sm:$0xff]   ;;  %v10016_v2 = vld [vmem:[%s14622_s4 + $0x34] ss:$8 sps:$4 sm:$0xff]  }
 0x7dc   :  { %v874_v21 = vpop.permute.xlu1 %873 }
 0x7dd   :  { %v9953_v28 = vadd.f32 %v887_v7, %v877_v63  ;;  %v878_v11 = vmul.f32 %v874_v21, %v868_v4  ;;  %v10022_v7 = vld [vmem:[%s14622_s4 + $0x30] ss:$8 sps:$4 sm:$0xff]   ;;  %v9446_v63 = vld [vmem:[%s14622_s4 + $0x4] ss:$8 sps:$4 sm:$0xff]  }
 0x7de   :  { %v946_v14 = vpop.permute.xlu0 %945 }
 0x7df   :  { %v9955_v5 = vadd.f32 %v888_v9, %v878_v11  ;;  %965 = vrot.lane.b32.xlu0 %v9953_v28, %s9460_s30  ;;  %v951_v24 = vmul.f32 %v946_v14, %v941_v57 }
 0x7e0   :  { %v948_v12 = vpop.permute.xlu1 %947 }
 0x7e1   :  { %v981_v35 = vpack.c.bf16 %v9955_v5, %v9953_v28  ;;  %967 = vrot.lane.b32.xlu1 %v9955_v5, %s9460_s30  ;;  %v952_v31 = vmul.f32 %v948_v12, %v942_v22 }
 0x7e2   :  { %v954_v62 = vpop.permute.xlu0 %953 }
 0x7e3   :  { %v959_v29 = vmul.f32 %v9276_v13, %v954_v62 }
 0x7e4   :  { %v956_v47 = vpop.permute.xlu1 %955 }
 0x7e5   :  { %v9963_v50 = vadd.f32 %v959_v29, %v951_v24  ;;  %v960_v37 = vmul.f32 %v9278_v15, %v956_v47 }
 0x7e7   :  { %v9965_v26 = vadd.f32 %v960_v37, %v952_v31  ;;  %973 = vrot.lane.b32.xlu0 %v9963_v50, %s9461_s13 }
 0x7e9   :  { %975 = vrot.lane.b32.xlu1 %v9965_v26, %s9461_s13 }
 0x851   :  { %v966_v53 = vpop.permute.xlu0 %965 }
 0x853   :  { %v968_v59 = vpop.permute.xlu1 %967 }
 0x859   :  { %v974_v33 = vpop.permute.xlu0 %973 }
 0x85a   :  { %v9974_v46 = vsel %vm131_vm0, %v966_v53, %v974_v33 }
 0x85b   :  { %v976_v45 = vpop.permute.xlu1 %975 }
 0x85c   :  { %v9977_v51 = vsel %vm131_vm0, %v968_v59, %v976_v45 }
 0x85d   :  { %v993_v56 = vpack.c.bf16 %v9977_v51, %v9974_v46 }
 0x85f   :  { %9047 = vmatmul.mubr.msk.bf16.vlgmr.msra.gmra.mrb[20].mxu1 %vm270_vm1, %v993_v56 }
 0x860   :  { %1428 = vmatpush1.bf16.msra.mxu1 %v9985_v27  ;;  %1459 = vmatprep.mubr.bf16.mxu1 %v14633_v1 }
 0x861   :  { %1429 = vmatprep.subr.bf16.mxu1 %v9992_v60 }
 0x864   :  { %1430 = vmatpush1.bf16.msra.mxu1 %v9998_v61 }
 0x865   :  { %1431 = vmatprep.subr.bf16.mxu1 %v10004_v0 }
 0x868   :  { %1432 = vmatpush1.bf16.msra.mxu1 %v10010_v44 }
 0x869   :  { %1433 = vmatprep.subr.bf16.mxu1 %v10016_v2 }
 0x86c   :  { %1434 = vmatpush1.bf16.msra.mxu1 %v10022_v7 }
 0x86d   :  { %1857 = vmatprep.subr.bf16.mxu1 %v9446_v63 }
 0x932   :  { %v1031_v4 = vpop.f32.mrb[20].mxu1 }
 0x933   :  { %v1032_v21 = vadd.f32 %v1031_v4, %v9680_v48  ;;  %v1033_v9 = vpop.f32.mrb[21].mxu1 }
 0x934   :  { %v1035_v11 = vpop.f32.mrb[22].mxu1  ;;  %v10032_v15 = vadd.f32 %v1033_v9, %v9684_v49 }
 0x935   :  { %v1036_v13 = vadd.f32 %v1035_v11, %v9680_v48  ;;  %v1037_v14 = vpop.f32.mrb[23].mxu1  ;;  %1062 = vrot.lane.b32.xlu0 %v1032_v21, %s9459_s5  ;;  %v1046_v57 = vadd.f32 %v1032_v21, %v9868_v34  ;;  %v1106_v22 = vadd.f32 %v1032_v21, %v9878_v43 }
 0x936   :  { %v10036_v12 = vadd.f32 %v1037_v14, %v9684_v49 }
 0x937   :  { %1064 = vrot.lane.b32.xlu1 %v1036_v13, %s9459_s5  ;;  %v1047_v62 = vadd.f32 %v1036_v13, %v9872_v41  ;;  %v9048_v24 = vmul.f32 -1.442695, %v1046_v57  ;;  %v1107_v47 = vadd.f32 %v1036_v13, %v9882_v52  ;;  %v9050_v31 = vmul.f32 -1.442695, %v1106_v22 }
 0x939   :  { %1136 = vrot.lane.b32.xlu0 %v10032_v15, %s9459_s5  ;;  %v9049_v29 = vmul.f32 -1.442695, %v1047_v62  ;;  %9279 = vpow2.f32 %v9048_v24  ;;  %v9051_v37 = vmul.f32 -1.442695, %v1107_v47 }
 0x93b   :  { %1138 = vrot.lane.b32.xlu1 %v10036_v12, %s9459_s5  ;;  %9281 = vpow2.f32 %v9049_v29 }
 0x93c   :  { %9283 = vpow2.f32 %v9050_v31 }
 0x93d   :  { %9285 = vpow2.f32 %v9051_v37 }
 0x943   :  { %v9280_v53 = vpop.eup %9279 }
 0x944   :  { %v1054_v33 = vadd.f32 1.0, %v9280_v53 }
 0x945   :  { %v9282_v59 = vpop.eup %9281 }
 0x946   :  { %v9284_v45 = vpop.eup %9283  ;;  %v1055_v56 = vadd.f32 1.0, %v9282_v59  ;;  %9287 = vrcp.f32 %v1054_v33 }
 0x947   :  { %v9286_v63 = vpop.eup %9285  ;;  %v1114_v4 = vadd.f32 1.0, %v9284_v45 }
 0x948   :  { %9289 = vrcp.f32 %v1055_v56  ;;  %v1115_v9 = vadd.f32 1.0, %v9286_v63  ;;  %v1043_v56 = vld [vmem:[#allocation2 + $0x88] sm:$0xff] }
 0x949   :  { %9291 = vrcp.f32 %v1114_v4 }
 0x94a   :  { %9293 = vrcp.f32 %v1115_v9  ;;  %v1045_v9 = vld [vmem:[#allocation2 + $0x98] sm:$0xff] }
 0x950   :  { %v9288_v21 = vpop.eup %9287 }
 0x952   :  { %v9290_v14 = vpop.eup %9289 }
 0x953   :  { %v9292_v24 = vpop.eup %9291 }
 0x954   :  { %v9294_v47 = vpop.eup %9293 }
 0x9a7   :  { %v1063_v11 = vpop.permute.xlu0 %1062 }
 0x9a8   :  { %v1068_v13 = vmul.f32 %v9288_v21, %v1063_v11 }
 0x9a9   :  { %v1065_v57 = vpop.permute.xlu1 %1064 }
 0x9aa   :  { %v1069_v62 = vmul.f32 %v9290_v14, %v1065_v57  ;;  %1072 = vrot.lane.b32.xlu0 %v1068_v13, %s9459_s5 }
 0x9ab   :  { %v1137_v22 = vpop.permute.xlu0 %1136 }
 0x9ac   :  { %v1142_v29 = vmul.f32 %v9292_v24, %v1137_v22  ;;  %1074 = vrot.lane.b32.xlu1 %v1069_v62, %s9459_s5 }
 0x9ad   :  { %v1139_v31 = vpop.permute.xlu1 %1138 }
 0x9ae   :  { %v1143_v37 = vmul.f32 %v9294_v47, %v1139_v31  ;;  %1146 = vrot.lane.b32.xlu0 %v1142_v29, %s9459_s5  ;;  %v1120_v29 = vadd.f32 %v1043_v56, %v10032_v15  ;;  %v1121_v47 = vadd.f32 %v1045_v9, %v10036_v12 }
 0x9b0   :  { %1148 = vrot.lane.b32.xlu1 %v1143_v37, %s9459_s5  ;;  %v9052_v31 = vmul.f32 -1.442695, %v1120_v29  ;;  %v9053_v37 = vmul.f32 -1.442695, %v1121_v47 }
 0x9b2   :  { %1096 = vrot.lane.b32.xlu0 %v9974_v46, %s9461_s13 }
 0x9b4   :  { %1098 = vrot.lane.b32.xlu1 %v9977_v51, %s9461_s13 }
 0xa1c   :  { %v1073_v53 = vpop.permute.xlu0 %1072 }
 0xa1d   :  { %v1078_v59 = vadd.f32 %v1073_v53, %v9868_v34 }
 0xa1e   :  { %v1075_v33 = vpop.permute.xlu1 %1074 }
 0xa1f   :  { %9295 = vtanh.f32 %v1078_v59  ;;  %v1079_v45 = vadd.f32 %v1075_v33, %v9872_v41 }
 0xa20   :  { %v1147_v63 = vpop.permute.xlu0 %1146 }
 0xa21   :  { %9297 = vtanh.f32 %v1079_v45  ;;  %v1152_v4 = vadd.f32 %v1147_v63, %v1043_v56 }
 0xa22   :  { %v1149_v11 = vpop.permute.xlu1 %1148 }
 0xa23   :  { %9299 = vtanh.f32 %v1152_v4  ;;  %v1153_v13 = vadd.f32 %v1149_v11, %v1045_v9 }
 0xa24   :  { %v1097_v63 = vpop.permute.xlu0 %1096 }
 0xa25   :  { %9301 = vtanh.f32 %v1153_v13  ;;  %v1102_v13 = vmul.f32 %v9288_v21, %v1097_v63 }
 0xa26   :  { %9303 = vpow2.f32 %v9052_v31  ;;  %v1099_v4 = vpop.permute.xlu1 %1098 }
 0xa27   :  { %9305 = vpow2.f32 %v9053_v37  ;;  %v1103_v56 = vmul.f32 %v9290_v14, %v1099_v4 }
 0xa29   :  { %v9296_v57 = vpop.eup %9295 }
 0xa2a   :  { %1086 = vrot.lane.b32.xlu0 %v9296_v57, %s9460_s30  ;;  %v1083_v57 = vsub.f32 1.0, %v9290_v14 }
 0xa2b   :  { %v9298_v62 = vpop.eup %9297 }
 0xa2c   :  { %1088 = vrot.lane.b32.xlu1 %v9298_v62, %s9460_s30 }
 0xa2d   :  { %v9300_v24 = vpop.eup %9299 }
 0xa2e   :  { %1160 = vrot.lane.b32.xlu0 %v9300_v24, %s9460_s30 }
 0xa2f   :  { %v9302_v22 = vpop.eup %9301 }
 0xa30   :  { %1162 = vrot.lane.b32.xlu1 %v9302_v22, %s9460_s30  ;;  %v9304_v53 = vpop.eup %9303 }
 0xa31   :  { %v9306_v59 = vpop.eup %9305  ;;  %v1128_v33 = vadd.f32 1.0, %v9304_v53 }
 0xa32   :  { %1168 = vrot.lane.b32.xlu0 %v9974_v46, %s9460_s30  ;;  %v1129_v45 = vadd.f32 1.0, %v9306_v59  ;;  %v1082_v46 = vsub.f32 1.0, %v9288_v21 }
 0xa33   :  { %9307 = vrcp.f32 %v1128_v33 }
 0xa34   :  { %1170 = vrot.lane.b32.xlu1 %v9977_v51, %s9460_s30  ;;  %9309 = vrcp.f32 %v1129_v45 }
 0xa3d   :  { %v9308_v62 = vpop.eup %9307 }
 0xa3e   :  { %v9310_v29 = vpop.eup %9309  ;;  %v1156_v21 = vsub.f32 1.0, %v9308_v62 }
 0xa3f   :  { %v1157_v53 = vsub.f32 1.0, %v9310_v29 }
 0xa9c   :  { %v1087_v11 = vpop.permute.xlu0 %1086 }
 0xa9d   :  { %v1092_v51 = vmul.f32 %v1087_v11, %v1082_v46 }
 0xa9e   :  { %v1089_v15 = vpop.permute.xlu1 %1088 }
 0xa9f   :  { %v10066_v12 = vadd.f32 %v1102_v13, %v1092_v51  ;;  %v1093_v9 = vmul.f32 %v1089_v15, %v1083_v57 }
 0xaa0   :  { %v1161_v24 = vpop.permute.xlu0 %1160 }
 0xaa1   :  { %v10068_v22 = vadd.f32 %v1103_v56, %v1093_v9  ;;  %1180 = vrot.lane.b32.xlu0 %v10066_v12, %s9460_s30  ;;  %v1166_v37 = vmul.f32 %v1161_v24, %v1156_v21 }
 0xaa2   :  { %v1163_v47 = vpop.permute.xlu1 %1162 }
 0xaa3   :  { %v1196_v31 = vpack.c.bf16 %v10068_v22, %v10066_v12  ;;  %1182 = vrot.lane.b32.xlu1 %v10068_v22, %s9460_s30  ;;  %v1167_v45 = vmul.f32 %v1163_v47, %v1157_v53  ;;  %v9181_v12 = vld [vmem:[%s14625_s6 + $0x10] sm:$0xff]  }
 0xaa4   :  { %v1169_v14 = vpop.permute.xlu0 %1168 }
 0xaa5   :  { %v1174_v59 = vmul.f32 %v9308_v62, %v1169_v14 }
 0xaa6   :  { %v1171_v33 = vpop.permute.xlu1 %1170 }
 0xaa7   :  { %v10076_v63 = vadd.f32 %v1174_v59, %v1166_v37  ;;  %v1175_v4 = vmul.f32 %v9310_v29, %v1171_v33 }
 0xaa9   :  { %v10078_v46 = vadd.f32 %v1175_v4, %v1167_v45  ;;  %1188 = vrot.lane.b32.xlu0 %v10076_v63, %s9461_s13 }
 0xaab   :  { %1190 = vrot.lane.b32.xlu1 %v10078_v46, %s9461_s13 }
 0xb13   :  { %v1181_v13 = vpop.permute.xlu0 %1180 }
 0xb15   :  { %v1183_v51 = vpop.permute.xlu1 %1182 }
 0xb1b   :  { %v1189_v57 = vpop.permute.xlu0 %1188 }
 0xb1c   :  { %v10087_v56 = vsel %vm131_vm0, %v1181_v13, %v1189_v57 }
 0xb1d   :  { %v1191_v15 = vpop.permute.xlu1 %1190 }
 0xb1e   :  { %v10090_v9 = vsel %vm131_vm0, %v1183_v51, %v1191_v15 }
 0xb1f   :  { %v1208_v62 = vpack.c.bf16 %v10090_v9, %v10087_v56 }
 0xb21   :  { %9054 = vmatmul.mubr.msk.bf16.vlgmr.msra.gmra.mrb[24].mxu0 %vm270_vm1, %v1208_v62 }
 0xb22   :  { %1643 = vmatpush1.bf16.msra.mxu0 %v9985_v27  ;;  %1674 = vmatprep.mubr.bf16.mxu0 %v14633_v1 }
 0xb23   :  { %1644 = vmatprep.subr.bf16.mxu0 %v9992_v60 }
 0xb26   :  { %1645 = vmatpush1.bf16.msra.mxu0 %v9998_v61 }
 0xb27   :  { %1646 = vmatprep.subr.bf16.mxu0 %v10004_v0 }
 0xb2a   :  { %1647 = vmatpush1.bf16.msra.mxu0 %v10010_v44 }
 0xb2b   :  { %1648 = vmatprep.subr.bf16.mxu0 %v10016_v2 }
 0xb2e   :  { %1649 = vmatpush1.bf16.msra.mxu0 %v10022_v7 }
 0xbf4   :  { %v1246_v24 = vpop.f32.mrb[24].mxu0 }
 0xbf5   :  { %v1247_v29 = vadd.f32 %v1246_v24, %v9680_v48  ;;  %v1248_v47 = vpop.f32.mrb[25].mxu0 }
 0xbf6   :  { %v1250_v21 = vpop.f32.mrb[26].mxu0  ;;  %v10107_v53 = vadd.f32 %v1248_v47, %v9684_v49 }
 0xbf7   :  { %v1251_v14 = vadd.f32 %v1250_v21, %v9680_v48  ;;  %v1252_v37 = vpop.f32.mrb[27].mxu0  ;;  %1277 = vrot.lane.b32.xlu0 %v1247_v29, %s9459_s5  ;;  %v1261_v33 = vadd.f32 %v1247_v29, %v9878_v43  ;;  %v1321_v13 = vadd.f32 %v1247_v29, %v9868_v34 }
 0xbf8   :  { %v10111_v59 = vadd.f32 %v1252_v37, %v9684_v49 }
 0xbf9   :  { %1279 = vrot.lane.b32.xlu1 %v1251_v14, %s9459_s5  ;;  %v1262_v45 = vadd.f32 %v1251_v14, %v9882_v52  ;;  %v9055_v4 = vmul.f32 -1.442695, %v1261_v33  ;;  %v1322_v57 = vadd.f32 %v1251_v14, %v9872_v41  ;;  %v9057_v15 = vmul.f32 -1.442695, %v1321_v13 }
 0xbfb   :  { %1351 = vrot.lane.b32.xlu0 %v10107_v53, %s9459_s5  ;;  %v9056_v51 = vmul.f32 -1.442695, %v1262_v45  ;;  %9311 = vpow2.f32 %v9055_v4  ;;  %v9058_v62 = vmul.f32 -1.442695, %v1322_v57 }
 0xbfd   :  { %1353 = vrot.lane.b32.xlu1 %v10111_v59, %s9459_s5  ;;  %9313 = vpow2.f32 %v9056_v51 }
 0xbfe   :  { %9315 = vpow2.f32 %v9057_v15 }
 0xbff   :  { %9317 = vpow2.f32 %v9058_v62 }
 0xc05   :  { %v9312_v24 = vpop.eup %9311 }
 0xc06   :  { %v1269_v21 = vadd.f32 1.0, %v9312_v24 }
 0xc07   :  { %v9314_v47 = vpop.eup %9313 }
 0xc08   :  { %v9316_v37 = vpop.eup %9315  ;;  %v1270_v42 = vadd.f32 1.0, %v9314_v47  ;;  %9319 = vrcp.f32 %v1269_v21  ;;  %v1258_v21 = vld [vmem:[#allocation2 + $0x68] sm:$0xff] }
 0xc09   :  { %v9318_v54 = vpop.eup %9317  ;;  %v1329_v40 = vadd.f32 1.0, %v9316_v37 }
 0xc0a   :  { %9321 = vrcp.f32 %v1270_v42  ;;  %v1330_v33 = vadd.f32 1.0, %v9318_v54 }
 0xc0b   :  { %9323 = vrcp.f32 %v1329_v40 }
 0xc0c   :  { %9325 = vrcp.f32 %v1330_v33 }
 0xc12   :  { %v9320_v34 = vpop.eup %9319 }
 0xc14   :  { %v9322_v14 = vpop.eup %9321 }
 0xc15   :  { %v9324_v13 = vpop.eup %9323 }
 0xc16   :  { %v9326_v15 = vpop.eup %9325 }
 0xc69   :  { %v1278_v41 = vpop.permute.xlu0 %1277 }
 0xc6a   :  { %v1283_v29 = vmul.f32 %v9320_v34, %v1278_v41  ;;  %v1260_v41 = vld [vmem:[#allocation2 + $0x78] sm:$0xff] }
 0xc6b   :  { %v1280_v45 = vpop.permute.xlu1 %1279 }
 0xc6c   :  { %v1284_v4 = vmul.f32 %v9322_v14, %v1280_v45  ;;  %1287 = vrot.lane.b32.xlu0 %v1283_v29, %s9459_s5 }
 0xc6d   :  { %v1352_v51 = vpop.permute.xlu0 %1351 }
 0xc6e   :  { %v1357_v57 = vmul.f32 %v9324_v13, %v1352_v51  ;;  %1289 = vrot.lane.b32.xlu1 %v1284_v4, %s9459_s5 }
 0xc6f   :  { %v1354_v62 = vpop.permute.xlu1 %1353 }
 0xc70   :  { %v1358_v24 = vmul.f32 %v9326_v15, %v1354_v62  ;;  %1361 = vrot.lane.b32.xlu0 %v1357_v57, %s9459_s5  ;;  %v1336_v57 = vadd.f32 %v1260_v41, %v10111_v59 }
 0xc72   :  { %1363 = vrot.lane.b32.xlu1 %v1358_v24, %s9459_s5  ;;  %v9060_v62 = vmul.f32 -1.442695, %v1336_v57 }
 0xc74   :  { %1311 = vrot.lane.b32.xlu0 %v10087_v56, %s9461_s13 }
 0xc76   :  { %1313 = vrot.lane.b32.xlu1 %v10090_v9, %s9461_s13 }
 0xcde   :  { %v1288_v42 = vpop.permute.xlu0 %1287 }
 0xcdf   :  { %v1293_v54 = vadd.f32 %v1288_v42, %v9878_v43 }
 0xce0   :  { %v1290_v40 = vpop.permute.xlu1 %1289 }
 0xce1   :  { %9327 = vtanh.f32 %v1293_v54  ;;  %v1294_v47 = vadd.f32 %v1290_v40, %v9882_v52  ;;  %v1335_v52 = vadd.f32 %v1258_v21, %v10107_v53 }
 0xce2   :  { %v1362_v37 = vpop.permute.xlu0 %1361 }
 0xce3   :  { %9329 = vtanh.f32 %v1294_v47  ;;  %v1367_v33 = vadd.f32 %v1362_v37, %v1258_v21  ;;  %v9059_v15 = vmul.f32 -1.442695, %v1335_v52 }
 0xce4   :  { %v1364_v29 = vpop.permute.xlu1 %1363 }
 0xce5   :  { %9331 = vtanh.f32 %v1367_v33  ;;  %v1368_v45 = vadd.f32 %v1364_v29, %v1260_v41 }
 0xce6   :  { %v1312_v47 = vpop.permute.xlu0 %1311 }
 0xce7   :  { %9333 = vtanh.f32 %v1368_v45  ;;  %v1317_v29 = vmul.f32 %v9320_v34, %v1312_v47  ;;  %v1298_v45 = vsub.f32 1.0, %v9322_v14 }
 0xce8   :  { %9335 = vpow2.f32 %v9059_v15  ;;  %v1314_v37 = vpop.permute.xlu1 %1313 }
 0xce9   :  { %9337 = vpow2.f32 %v9060_v62  ;;  %v1318_v21 = vmul.f32 %v9322_v14, %v1314_v37 }
 0xceb   :  { %v9328_v4 = vpop.eup %9327 }
 0xcec   :  { %1301 = vrot.lane.b32.xlu0 %v9328_v4, %s9460_s30 }
 0xced   :  { %v9330_v13 = vpop.eup %9329 }
 0xcee   :  { %1303 = vrot.lane.b32.xlu1 %v9330_v13, %s9460_s30 }
 0xcef   :  { %v9332_v43 = vpop.eup %9331 }
 0xcf0   :  { %1375 = vrot.lane.b32.xlu0 %v9332_v43, %s9460_s30 }
 0xcf1   :  { %v9334_v51 = vpop.eup %9333 }
 0xcf2   :  { %1377 = vrot.lane.b32.xlu1 %v9334_v51, %s9460_s30  ;;  %v9336_v24 = vpop.eup %9335 }
 0xcf3   :  { %v9338_v42 = vpop.eup %9337  ;;  %v1343_v54 = vadd.f32 1.0, %v9336_v24 }
 0xcf4   :  { %1383 = vrot.lane.b32.xlu0 %v10087_v56, %s9460_s30  ;;  %v1344_v40 = vadd.f32 1.0, %v9338_v42  ;;  %v1297_v56 = vsub.f32 1.0, %v9320_v34 }
 0xcf5   :  { %9339 = vrcp.f32 %v1343_v54 }
 0xcf6   :  { %1385 = vrot.lane.b32.xlu1 %v10090_v9, %s9460_s30  ;;  %9341 = vrcp.f32 %v1344_v40 }
 0xcff   :  { %v9340_v4 = vpop.eup %9339 }
 0xd00   :  { %v9342_v51 = vpop.eup %9341  ;;  %v1371_v34 = vsub.f32 1.0, %v9340_v4 }
 0xd01   :  { %v1372_v62 = vsub.f32 1.0, %v9342_v51 }
 0xd5e   :  { %v1302_v33 = vpop.permute.xlu0 %1301 }
 0xd5f   :  { %v1307_v9 = vmul.f32 %v1302_v33, %v1297_v56 }
 0xd60   :  { %v1304_v53 = vpop.permute.xlu1 %1303 }
 0xd61   :  { %v10141_v59 = vadd.f32 %v1317_v29, %v1307_v9  ;;  %v1308_v41 = vmul.f32 %v1304_v53, %v1298_v45 }
 0xd62   :  { %v1376_v13 = vpop.permute.xlu0 %1375 }
 0xd63   :  { %v10143_v43 = vadd.f32 %v1318_v21, %v1308_v41  ;;  %1395 = vrot.lane.b32.xlu0 %v10141_v59, %s9460_s30  ;;  %v1381_v15 = vmul.f32 %v1376_v13, %v1371_v34 }
 0xd64   :  { %v1378_v52 = vpop.permute.xlu1 %1377 }
 0xd65   :  { %1397 = vrot.lane.b32.xlu1 %v10143_v43, %s9460_s30  ;;  %v1382_v54 = vmul.f32 %v1378_v52, %v1372_v62 }
 0xd66   :  { %v1384_v14 = vpop.permute.xlu0 %1383 }
 0xd67   :  { %v1389_v24 = vmul.f32 %v9340_v4, %v1384_v14 }
 0xd68   :  { %v1386_v42 = vpop.permute.xlu1 %1385 }
 0xd69   :  { %v10151_v40 = vadd.f32 %v1389_v24, %v1381_v15  ;;  %v1390_v47 = vmul.f32 %v9342_v51, %v1386_v42 }
 0xd6b   :  { %v10153_v37 = vadd.f32 %v1390_v47, %v1382_v54  ;;  %1403 = vrot.lane.b32.xlu0 %v10151_v40, %s9461_s13 }
 0xd6d   :  { %v1417_v56 = vpack.c.bf16 %v10153_v37, %v10151_v40  ;;  %1405 = vrot.lane.b32.xlu1 %v10153_v37, %s9461_s13 }
 0xdd5   :  { %v1396_v33 = vpop.permute.xlu0 %1395 }
 0xdd7   :  { %v1398_v29 = vpop.permute.xlu1 %1397 }
 0xddd   :  { %v1404_v9 = vpop.permute.xlu0 %1403 }
 0xdde   :  { %v10162_v53 = vsel %vm131_vm0, %v1396_v33, %v1404_v9 }
 0xddf   :  { %v1406_v45 = vpop.permute.xlu1 %1405 }
 0xde0   :  { %v10165_v21 = vsel %vm131_vm0, %v1398_v29, %v1406_v45 }
 0xde1   :  { %v1423_v41 = vpack.c.bf16 %v10165_v21, %v10162_v53 }
 0xde3   :  { %9061 = vmatmul.mubr.msk.bf16.vlgmr.msra.gmra.mrb[24].mxu1 %vm270_vm1, %v1423_v41 }
 0xde4   :  { %1858 = vmatpush1.bf16.msra.mxu1 %v9985_v27  ;;  %1889 = vmatprep.mubr.bf16.mxu1 %v14633_v1 }
 0xde5   :  { %1859 = vmatprep.subr.bf16.mxu1 %v9992_v60 }
 0xde8   :  { %1860 = vmatpush1.bf16.msra.mxu1 %v9998_v61 }
 0xde9   :  { %1861 = vmatprep.subr.bf16.mxu1 %v10004_v0 }
 0xdec   :  { %1862 = vmatpush1.bf16.msra.mxu1 %v10010_v44 }
 0xded   :  { %1863 = vmatprep.subr.bf16.mxu1 %v10016_v2 }
 0xdf0   :  { %1864 = vmatpush1.bf16.msra.mxu1 %v10022_v7 }
 0xeb6   :  { %v1461_v4 = vpop.f32.mrb[24].mxu1 }
 0xeb7   :  { %v1462_v13 = vadd.f32 %v1461_v4, %v9680_v48  ;;  %v1463_v51 = vpop.f32.mrb[25].mxu1 }
 0xeb8   :  { %v1465_v52 = vpop.f32.mrb[26].mxu1  ;;  %v10182_v60 = vadd.f32 %v1463_v51, %v9684_v49 }
 0xeb9   :  { %v1466_v27 = vadd.f32 %v1465_v52, %v9680_v48  ;;  %v1467_v34 = vpop.f32.mrb[27].mxu1  ;;  %1492 = vrot.lane.b32.xlu0 %v1462_v13, %s9459_s5  ;;  %v1476_v0 = vadd.f32 %v1462_v13, %v9906_v3  ;;  %v1536_v7 = vadd.f32 %v1462_v13, %v9858_v23 }
 0xeba   :  { %v10186_v61 = vadd.f32 %v1467_v34, %v9684_v49 }
 0xebb   :  { %1494 = vrot.lane.b32.xlu1 %v1466_v27, %s9459_s5  ;;  %v1477_v44 = vadd.f32 %v1466_v27, %v9910_v10  ;;  %v9062_v2 = vmul.f32 -1.442695, %v1476_v0  ;;  %v1537_v15 = vadd.f32 %v1466_v27, %v9862_v30  ;;  %v9064_v62 = vmul.f32 -1.442695, %v1536_v7 }
 0xebd   :  { %1566 = vrot.lane.b32.xlu0 %v10182_v60, %s9459_s5  ;;  %v9063_v14 = vmul.f32 -1.442695, %v1477_v44  ;;  %9343 = vpow2.f32 %v9062_v2  ;;  %v9065_v24 = vmul.f32 -1.442695, %v1537_v15 }
 0xebf   :  { %1568 = vrot.lane.b32.xlu1 %v10186_v61, %s9459_s5  ;;  %9345 = vpow2.f32 %v9063_v14 }
 0xec0   :  { %9347 = vpow2.f32 %v9064_v62 }
 0xec1   :  { %9349 = vpow2.f32 %v9065_v24 }
 0xec7   :  { %v9344_v42 = vpop.eup %9343 }
 0xec8   :  { %v1484_v47 = vadd.f32 1.0, %v9344_v42  ;;  %v1473_v42 = vld [vmem:[#allocation2 + $0x48] sm:$0xff] }
 0xec9   :  { %v9346_v54 = vpop.eup %9345 }
 0xeca   :  { %v9348_v33 = vpop.eup %9347  ;;  %v1485_v29 = vadd.f32 1.0, %v9346_v54  ;;  %9351 = vrcp.f32 %v1484_v47 }
 0xecb   :  { %v9350_v9 = vpop.eup %9349  ;;  %v1544_v45 = vadd.f32 1.0, %v9348_v33  ;;  %v1475_v33 = vld [vmem:[#allocation2 + $0x58] sm:$0xff] }
 0xecc   :  { %9353 = vrcp.f32 %v1485_v29  ;;  %v1545_v41 = vadd.f32 1.0, %v9350_v9 }
 0xecd   :  { %9355 = vrcp.f32 %v1544_v45 }
 0xece   :  { %9357 = vrcp.f32 %v1545_v41 }
 0xed4   :  { %v9352_v23 = vpop.eup %9351 }
 0xed6   :  { %v9354_v13 = vpop.eup %9353 }
 0xed7   :  { %v9356_v27 = vpop.eup %9355 }
 0xed8   :  { %v9358_v44 = vpop.eup %9357 }
 0xf2b   :  { %v1493_v30 = vpop.permute.xlu0 %1492 }
 0xf2c   :  { %v1498_v4 = vmul.f32 %v9352_v23, %v1493_v30 }
 0xf2d   :  { %v1495_v51 = vpop.permute.xlu1 %1494 }
 0xf2e   :  { %v1499_v52 = vmul.f32 %v9354_v13, %v1495_v51  ;;  %1502 = vrot.lane.b32.xlu0 %v1498_v4, %s9459_s5  ;;  %v1551_v4 = vadd.f32 %v1475_v33, %v10186_v61 }
 0xf2f   :  { %v1567_v34 = vpop.permute.xlu0 %1566 }
 0xf30   :  { %v1572_v0 = vmul.f32 %v9356_v27, %v1567_v34  ;;  %1504 = vrot.lane.b32.xlu1 %v1499_v52, %s9459_s5  ;;  %v9067_v52 = vmul.f32 -1.442695, %v1551_v4 }
 0xf31   :  { %v1569_v2 = vpop.permute.xlu1 %1568 }
 0xf32   :  { %v1573_v7 = vmul.f32 %v9358_v44, %v1569_v2  ;;  %1576 = vrot.lane.b32.xlu0 %v1572_v0, %s9459_s5 }
 0xf34   :  { %1578 = vrot.lane.b32.xlu1 %v1573_v7, %s9459_s5 }
 0xf36   :  { %1526 = vrot.lane.b32.xlu0 %v10162_v53, %s9461_s13 }
 0xf38   :  { %1528 = vrot.lane.b32.xlu1 %v10165_v21, %s9461_s13 }
 0xfa0   :  { %v1503_v14 = vpop.permute.xlu0 %1502 }
 0xfa1   :  { %v1508_v15 = vadd.f32 %v1503_v14, %v9906_v3 }
 0xfa2   :  { %v1505_v62 = vpop.permute.xlu1 %1504 }
 0xfa3   :  { %9359 = vtanh.f32 %v1508_v15  ;;  %v1509_v24 = vadd.f32 %v1505_v62, %v9910_v10  ;;  %v1550_v10 = vadd.f32 %v1473_v42, %v10182_v60  ;;  %v1513_v62 = vsub.f32 1.0, %v9354_v13 }
 0xfa4   :  { %v1577_v54 = vpop.permute.xlu0 %1576 }
 0xfa5   :  { %9361 = vtanh.f32 %v1509_v24  ;;  %v1582_v47 = vadd.f32 %v1577_v54, %v1473_v42  ;;  %v9066_v51 = vmul.f32 -1.442695, %v1550_v10 }
 0xfa6   :  { %v1579_v29 = vpop.permute.xlu1 %1578 }
 0xfa7   :  { %9363 = vtanh.f32 %v1582_v47  ;;  %v1583_v9 = vadd.f32 %v1579_v29, %v1475_v33 }
 0xfa8   :  { %v1527_v2 = vpop.permute.xlu0 %1526 }
 0xfa9   :  { %9365 = vtanh.f32 %v1583_v9  ;;  %v1532_v15 = vmul.f32 %v9352_v23, %v1527_v2 }
 0xfaa   :  { %9367 = vpow2.f32 %v9066_v51  ;;  %v1529_v7 = vpop.permute.xlu1 %1528 }
 0xfab   :  { %9369 = vpow2.f32 %v9067_v52  ;;  %v1533_v24 = vmul.f32 %v9354_v13, %v1529_v7 }
 0xfad   :  { %v9360_v45 = vpop.eup %9359 }
 0xfae   :  { %1516 = vrot.lane.b32.xlu0 %v9360_v45, %s9460_s30 }
 0xfaf   :  { %v9362_v41 = vpop.eup %9361 }
 0xfb0   :  { %1518 = vrot.lane.b32.xlu1 %v9362_v41, %s9460_s30 }
 0xfb1   :  { %v9364_v3 = vpop.eup %9363 }
 0xfb2   :  { %1590 = vrot.lane.b32.xlu0 %v9364_v3, %s9460_s30 }
 0xfb3   :  { %v9366_v30 = vpop.eup %9365 }
 0xfb4   :  { %1592 = vrot.lane.b32.xlu1 %v9366_v30, %s9460_s30  ;;  %v9368_v27 = vpop.eup %9367 }
 0xfb5   :  { %v9370_v34 = vpop.eup %9369  ;;  %v1558_v0 = vadd.f32 1.0, %v9368_v27 }
 0xfb6   :  { %1598 = vrot.lane.b32.xlu0 %v10162_v53, %s9460_s30  ;;  %v1559_v44 = vadd.f32 1.0, %v9370_v34  ;;  %v1512_v53 = vsub.f32 1.0, %v9352_v23 }
 0xfb7   :  { %9371 = vrcp.f32 %v1558_v0 }
 0xfb8   :  { %1600 = vrot.lane.b32.xlu1 %v10165_v21, %s9460_s30  ;;  %9373 = vrcp.f32 %v1559_v44 }
 0xfc1   :  { %v9372_v54 = vpop.eup %9371 }
 0xfc2   :  { %v9374_v29 = vpop.eup %9373  ;;  %v1586_v23 = vsub.f32 1.0, %v9372_v54 }
 0xfc3   :  { %v1587_v3 = vsub.f32 1.0, %v9374_v29 }
0x1020   :  { %v1517_v14 = vpop.permute.xlu0 %1516 }
0x1021   :  { %v1522_v21 = vmul.f32 %v1517_v14, %v1512_v53 }
0x1022   :  { %v1519_v60 = vpop.permute.xlu1 %1518 }
0x1023   :  { %v10216_v61 = vadd.f32 %v1532_v15, %v1522_v21  ;;  %v1523_v42 = vmul.f32 %v1519_v60, %v1513_v62 }
0x1024   :  { %v1591_v47 = vpop.permute.xlu0 %1590 }
0x1025   :  { %v10218_v33 = vadd.f32 %v1533_v24, %v1523_v42  ;;  %1610 = vrot.lane.b32.xlu0 %v10216_v61, %s9460_s30  ;;  %v1596_v41 = vmul.f32 %v1591_v47, %v1586_v23 }
0x1026   :  { %v1593_v9 = vpop.permute.xlu1 %1592 }
0x1027   :  { %1612 = vrot.lane.b32.xlu1 %v10218_v33, %s9460_s30  ;;  %v1597_v4 = vmul.f32 %v1593_v9, %v1587_v3  ;;  %v1685_v9 = vld [vmem:[#allocation2 + $0xc0] sm:$0xff] }
0x1028   :  { %v1599_v13 = vpop.permute.xlu0 %1598  ;;  %v1687_v3 = vld [vmem:[#allocation2 + $0x20] sm:$0xff] }
0x1029   :  { %v1604_v30 = vmul.f32 %v9372_v54, %v1599_v13  ;;  %v1686_v13 = vld [vmem:[#allocation2 + $0xd0] sm:$0xff] }
0x102a   :  { %v1601_v10 = vpop.permute.xlu1 %1600 }
0x102b   :  { %v10226_v51 = vadd.f32 %v1604_v30, %v1596_v41  ;;  %v1605_v52 = vmul.f32 %v9374_v29, %v1601_v10 }
0x102d   :  { %v10228_v27 = vadd.f32 %v1605_v52, %v1597_v4  ;;  %1618 = vrot.lane.b32.xlu0 %v10226_v51, %s9461_s13  ;;  %v1689_v4 = vld [vmem:[#allocation2 + $0x30] sm:$0xff] }
0x102f   :  { %v1632_v34 = vpack.c.bf16 %v10228_v27, %v10226_v51  ;;  %1620 = vrot.lane.b32.xlu1 %v10228_v27, %s9461_s13  ;;  %v9082_v27 = vld [vmem:[%s14626_s7] ss:$0 sm:$0xff] }
0x1097   :  { %v1611_v0 = vpop.permute.xlu0 %1610 }
0x1099   :  { %v1613_v44 = vpop.permute.xlu1 %1612 }
0x109f   :  { %v1619_v2 = vpop.permute.xlu0 %1618 }
0x10a0   :  { %v10237_v53 = vsel %vm131_vm0, %v1611_v0, %v1619_v2 }
0x10a1   :  { %v1621_v7 = vpop.permute.xlu1 %1620 }
0x10a2   :  { %v10240_v14 = vsel %vm131_vm0, %v1613_v44, %v1621_v7 }
0x10a3   :  { %v1638_v15 = vpack.c.bf16 %v10240_v14, %v10237_v53 }
0x10a5   :  { %9068 = vmatmul.mubr.msk.bf16.vlgmr.msra.gmra.mrb[28].mxu0 %vm270_vm1, %v1638_v15 }
0x1178   :  { %v1676_v21 = vpop.f32.mrb[28].mxu0 }
0x1179   :  { %v1677_v62 = vadd.f32 %v1676_v21, %v9680_v48  ;;  %v1678_v60 = vpop.f32.mrb[29].mxu0 }
0x117a   :  { %v1680_v24 = vpop.f32.mrb[30].mxu0  ;;  %v10249_v47 = vadd.f32 %v1678_v60, %v9684_v49 }
0x117b   :  { %v1681_v42 = vadd.f32 %v1680_v24, %v9680_v48  ;;  %v1682_v54 = vpop.f32.mrb[31].mxu0  ;;  %1707 = vrot.lane.b32.xlu0 %v1677_v62, %s9459_s5  ;;  %v1691_v23 = vadd.f32 %v1685_v9, %v1677_v62  ;;  %v1751_v10 = vadd.f32 %v1687_v3, %v1677_v62 }
0x117c   :  { %v10253_v29 = vadd.f32 %v1682_v54, %v9684_v49 }
0x117d   :  { %1709 = vrot.lane.b32.xlu1 %v1681_v42, %s9459_s5  ;;  %v1692_v41 = vadd.f32 %v1686_v13, %v1681_v42  ;;  %v9069_v30 = vmul.f32 -1.442695, %v1691_v23  ;;  %v1752_v0 = vadd.f32 %v1689_v4, %v1681_v42  ;;  %v9071_v44 = vmul.f32 -1.442695, %v1751_v10 }
0x117f   :  { %1781 = vrot.lane.b32.xlu0 %v10249_v47, %s9459_s5  ;;  %v9070_v52 = vmul.f32 -1.442695, %v1692_v41  ;;  %9375 = vpow2.f32 %v9069_v30  ;;  %v9072_v2 = vmul.f32 -1.442695, %v1752_v0 }
0x1181   :  { %1783 = vrot.lane.b32.xlu1 %v10253_v29, %s9459_s5  ;;  %9377 = vpow2.f32 %v9070_v52 }
0x1182   :  { %9379 = vpow2.f32 %v9071_v44 }
0x1183   :  { %9381 = vpow2.f32 %v9072_v2 }
0x1189   :  { %v9376_v7 = vpop.eup %9375 }
0x118a   :  { %v1699_v21 = vadd.f32 1.0, %v9376_v7 }
0x118b   :  { %v9378_v15 = vpop.eup %9377 }
0x118c   :  { %v9380_v60 = vpop.eup %9379  ;;  %v1700_v24 = vadd.f32 1.0, %v9378_v15  ;;  %9383 = vrcp.f32 %v1699_v21 }
0x118d   :  { %v9382_v54 = vpop.eup %9381  ;;  %v1759_v45 = vadd.f32 1.0, %v9380_v60 }
0x118e   :  { %9385 = vrcp.f32 %v1700_v24  ;;  %v1760_v23 = vadd.f32 1.0, %v9382_v54  ;;  %v1688_v24 = vld [vmem:[#allocation2 + $0x28] sm:$0xff] }
0x118f   :  { %9387 = vrcp.f32 %v1759_v45 }
0x1190   :  { %9389 = vrcp.f32 %v1760_v23 }
0x1196   :  { %v9384_v62 = vpop.eup %9383 }
0x1198   :  { %v9386_v3 = vpop.eup %9385 }
0x1199   :  { %v9388_v4 = vpop.eup %9387 }
0x119a   :  { %v9390_v44 = vpop.eup %9389 }
0x11ed   :  { %v1708_v42 = vpop.permute.xlu0 %1707 }
0x11ee   :  { %v1713_v41 = vmul.f32 %v9384_v62, %v1708_v42  ;;  %v1690_v42 = vld [vmem:[#allocation2 + $0x38] sm:$0xff] }
0x11ef   :  { %v1710_v30 = vpop.permute.xlu1 %1709 }
0x11f0   :  { %v1714_v10 = vmul.f32 %v9386_v3, %v1710_v30  ;;  %1717 = vrot.lane.b32.xlu0 %v1713_v41, %s9459_s5 }
0x11f1   :  { %v1782_v52 = vpop.permute.xlu0 %1781 }
0x11f2   :  { %v1787_v0 = vmul.f32 %v9388_v4, %v1782_v52  ;;  %1719 = vrot.lane.b32.xlu1 %v1714_v10, %s9459_s5 }
0x11f3   :  { %v1784_v2 = vpop.permute.xlu1 %1783 }
0x11f4   :  { %v1788_v7 = vmul.f32 %v9390_v44, %v1784_v2  ;;  %1791 = vrot.lane.b32.xlu0 %v1787_v0, %s9459_s5  ;;  %v1766_v0 = vadd.f32 %v1690_v42, %v10253_v29 }
0x11f6   :  { %1793 = vrot.lane.b32.xlu1 %v1788_v7, %s9459_s5  ;;  %v9074_v2 = vmul.f32 -1.442695, %v1766_v0 }
0x11f8   :  { %1741 = vrot.lane.b32.xlu0 %v10237_v53, %s9461_s13 }
0x11fa   :  { %1743 = vrot.lane.b32.xlu1 %v10240_v14, %s9461_s13 }
0x1262   :  { %v1718_v45 = vpop.permute.xlu0 %1717 }
0x1263   :  { %v1723_v15 = vadd.f32 %v1718_v45, %v1685_v9 }
0x1264   :  { %v1720_v21 = vpop.permute.xlu1 %1719 }
0x1265   :  { %9391 = vtanh.f32 %v1723_v15  ;;  %v1724_v60 = vadd.f32 %v1720_v21, %v1686_v13  ;;  %v1765_v13 = vadd.f32 %v1688_v24, %v10249_v47 }
0x1266   :  { %v1792_v54 = vpop.permute.xlu0 %1791 }
0x1267   :  { %9393 = vtanh.f32 %v1724_v60  ;;  %v1797_v23 = vadd.f32 %v1792_v54, %v1688_v24  ;;  %v9073_v44 = vmul.f32 -1.442695, %v1765_v13 }
0x1268   :  { %v1794_v41 = vpop.permute.xlu1 %1793 }
0x1269   :  { %9395 = vtanh.f32 %v1797_v23  ;;  %v1798_v30 = vadd.f32 %v1794_v41, %v1690_v42 }
0x126a   :  { %v1742_v60 = vpop.permute.xlu0 %1741 }
0x126b   :  { %9397 = vtanh.f32 %v1798_v30  ;;  %v1747_v41 = vmul.f32 %v9384_v62, %v1742_v60  ;;  %v1728_v30 = vsub.f32 1.0, %v9386_v3 }
0x126c   :  { %9399 = vpow2.f32 %v9073_v44  ;;  %v1744_v54 = vpop.permute.xlu1 %1743 }
0x126d   :  { %9401 = vpow2.f32 %v9074_v2  ;;  %v1748_v24 = vmul.f32 %v9386_v3, %v1744_v54 }
0x126f   :  { %v9392_v10 = vpop.eup %9391 }
0x1270   :  { %1731 = vrot.lane.b32.xlu0 %v9392_v10, %s9460_s30 }
0x1271   :  { %v9394_v4 = vpop.eup %9393 }
0x1272   :  { %1733 = vrot.lane.b32.xlu1 %v9394_v4, %s9460_s30 }
0x1273   :  { %v9396_v52 = vpop.eup %9395 }
0x1274   :  { %1805 = vrot.lane.b32.xlu0 %v9396_v52, %s9460_s30 }
0x1275   :  { %v9398_v9 = vpop.eup %9397 }
0x1276   :  { %1807 = vrot.lane.b32.xlu1 %v9398_v9, %s9460_s30  ;;  %v9400_v7 = vpop.eup %9399 }
0x1277   :  { %v9402_v45 = vpop.eup %9401  ;;  %v1773_v15 = vadd.f32 1.0, %v9400_v7 }
0x1278   :  { %1813 = vrot.lane.b32.xlu0 %v10237_v53, %s9460_s30  ;;  %v1774_v21 = vadd.f32 1.0, %v9402_v45  ;;  %v1727_v53 = vsub.f32 1.0, %v9384_v62 }
0x1279   :  { %9403 = vrcp.f32 %v1773_v15 }
0x127a   :  { %1815 = vrot.lane.b32.xlu1 %v10240_v14, %s9460_s30  ;;  %9405 = vrcp.f32 %v1774_v21 }
0x1283   :  { %v9404_v10 = vpop.eup %9403 }
0x1284   :  { %v9406_v9 = vpop.eup %9405  ;;  %v1801_v62 = vsub.f32 1.0, %v9404_v10 }
0x1285   :  { %v1802_v2 = vsub.f32 1.0, %v9406_v9 }
0x12e2   :  { %v1732_v23 = vpop.permute.xlu0 %1731 }
0x12e3   :  { %v1737_v14 = vmul.f32 %v1732_v23, %v1727_v53 }
0x12e4   :  { %v1734_v47 = vpop.permute.xlu1 %1733 }
0x12e5   :  { %v10277_v29 = vadd.f32 %v1747_v41, %v1737_v14  ;;  %v1738_v42 = vmul.f32 %v1734_v47, %v1728_v30 }
0x12e6   :  { %v1806_v4 = vpop.permute.xlu0 %1805 }
0x12e7   :  { %v10279_v52 = vadd.f32 %v1748_v24, %v1738_v42  ;;  %1825 = vrot.lane.b32.xlu0 %v10277_v29, %s9460_s30  ;;  %v1811_v44 = vmul.f32 %v1806_v4, %v1801_v62 }
0x12e8   :  { %v1808_v13 = vpop.permute.xlu1 %1807 }
0x12e9   :  { %1827 = vrot.lane.b32.xlu1 %v10279_v52, %s9460_s30  ;;  %v1812_v15 = vmul.f32 %v1808_v13, %v1802_v2 }
0x12ea   :  { %v1814_v3 = vpop.permute.xlu0 %1813 }
0x12eb   :  { %v1819_v7 = vmul.f32 %v9404_v10, %v1814_v3 }
0x12ec   :  { %v1816_v45 = vpop.permute.xlu1 %1815 }
0x12ed   :  { %v10287_v21 = vadd.f32 %v1819_v7, %v1811_v44  ;;  %v1820_v60 = vmul.f32 %v9406_v9, %v1816_v45  ;;  %v1902_v7 = vld [vmem:[#allocation2] sm:$0xff] }
0x12ef   :  { %v10289_v54 = vadd.f32 %v1820_v60, %v1812_v15  ;;  %1833 = vrot.lane.b32.xlu0 %v10287_v21, %s9461_s13  ;;  %v1904_v15 = vld [vmem:[#allocation2 + $0x10] sm:$0xff] }
0x12f1   :  { %v1847_v53 = vpack.c.bf16 %v10289_v54, %v10287_v21  ;;  %1835 = vrot.lane.b32.xlu1 %v10289_v54, %s9461_s13 }
0x1359   :  { %v1826_v23 = vpop.permute.xlu0 %1825 }
0x135b   :  { %v1828_v41 = vpop.permute.xlu1 %1827 }
0x1361   :  { %v1834_v14 = vpop.permute.xlu0 %1833 }
0x1362   :  { %v10298_v47 = vsel %vm131_vm0, %v1826_v23, %v1834_v14 }
0x1363   :  { %v1836_v30 = vpop.permute.xlu1 %1835 }
0x1364   :  { %v10301_v24 = vsel %vm131_vm0, %v1828_v41, %v1836_v30 }
0x1365   :  { %v1853_v42 = vpack.c.bf16 %v10301_v24, %v10298_v47 }
0x1367   :  { %9075 = vmatmul.mubr.msk.bf16.vlgmr.msra.gmra.mrb[28].mxu1 %vm270_vm1, %v1853_v42 }
0x143a   :  { %v1891_v10 = vpop.f32.mrb[28].mxu1 }
0x143b   :  { %v1893_v4 = vpop.f32.mrb[29].mxu1  ;;  %v10311_v44 = vadd.f32 %v1891_v10, %v9680_v48 }
0x143c   :  { %v1894_v9 = vadd.f32 %v1893_v4, %v9684_v49  ;;  %v1895_v13 = vpop.f32.mrb[30].mxu1 }
0x143d   :  { %v1897_v62 = vpop.f32.mrb[31].mxu1  ;;  %v10314_v2 = vadd.f32 %v1895_v13, %v9680_v48  ;;  %v1966_v45 = vadd.f32 %v1902_v7, %v10311_v44 }
0x143e   :  { %v1898_v3 = vadd.f32 %v1897_v62, %v9684_v49  ;;  %1996 = vrot.lane.b32.xlu0 %v1894_v9, %s9459_s5  ;;  %v1903_v62 = vld [vmem:[#allocation2 + $0x8] sm:$0xff] }
0x143f   :  { %v1967_v21 = vadd.f32 %v1904_v15, %v10314_v2  ;;  %v9078_v60 = vmul.f32 -1.442695, %v1966_v45  ;;  %v1905_v15 = vld [vmem:[#allocation2 + $0x18] sm:$0xff]  ;;  %v1980_v8 = vadd.f32 %v1903_v62, %v1894_v9 }
0x1440   :  { %1998 = vrot.lane.b32.xlu1 %v1898_v3, %s9459_s5  ;;  %v1981_v36 = vadd.f32 %v1905_v15, %v1898_v3 }
0x1441   :  { %v9079_v54 = vmul.f32 -1.442695, %v1967_v21  ;;  %9407 = vpow2.f32 %v9078_v60 }
0x1442   :  { %v9081_v55 = vmul.f32 -1.442695, %v1981_v36 }
0x1443   :  { %9409 = vpow2.f32 %v9079_v54 }
0x144b   :  { %v9408_v49 = vpop.eup %9407 }
0x144c   :  { %v1974_v41 = vadd.f32 1.0, %v9408_v49 }
0x144d   :  { %v9410_v23 = vpop.eup %9409 }
0x144e   :  { %v1975_v14 = vadd.f32 1.0, %v9410_v23  ;;  %9411 = vrcp.f32 %v1974_v41  ;;  %v9179_v23 = vld [vmem:[%s14625_s6] sm:$0xff]   ;;  %v9180_v41 = vld [vmem:[%s14625_s6 + $0x8] sm:$0xff]  }
0x144f   :  { %9111 = vmatprep.subr.bf16.mxu0 %v9179_v23 }
0x1450   :  { %9413 = vrcp.f32 %v1975_v14  ;;  %9112 = vmatpush3.bf16.msra.mxu0 %v9179_v23 }
0x1451   :  { %9113 = vmatprep.subr.bf16.mxu0 %v9180_v41 }
0x1454   :  { %9114 = vmatpush3.bf16.msra.mxu0 %v9180_v41 }
0x1455   :  { %9115 = vmatprep.subr.bf16.mxu0 %v9181_v12 }
0x1458   :  { %v9412_v30 = vpop.eup %9411  ;;  %9116 = vmatpush3.bf16.msra.mxu0 %v9181_v12 }
0x145a   :  { %v9414_v10 = vpop.eup %9413 }
0x14b0   :  { %v1997_v42 = vpop.permute.xlu0 %1996 }
0x14b1   :  { %v2002_v48 = vmul.f32 %v9412_v30, %v1997_v42 }
0x14b2   :  { %v1999_v4 = vpop.permute.xlu1 %1998 }
0x14b3   :  { %v2003_v13 = vmul.f32 %v9414_v10, %v1999_v4  ;;  %2006 = vrot.lane.b32.xlu0 %v2002_v48, %s9459_s5 }
0x14b5   :  { %2008 = vrot.lane.b32.xlu1 %v2003_v13, %s9459_s5 }
0x1525   :  { %v2007_v7 = vpop.permute.xlu0 %2006 }
0x1526   :  { %v2012_v45 = vadd.f32 %v2007_v7, %v1903_v62 }
0x1527   :  { %v2009_v21 = vpop.permute.xlu1 %2008 }
0x1528   :  { %9415 = vtanh.f32 %v2012_v45  ;;  %v2013_v60 = vadd.f32 %v2009_v21, %v1905_v15 }
0x152a   :  { %9417 = vtanh.f32 %v2013_v60 }
0x1532   :  { %v9416_v54 = vpop.eup %9415 }
0x1533   :  { %2020 = vrot.lane.b32.xlu0 %v9416_v54, %s9460_s30 }
0x1534   :  { %v9418_v49 = vpop.eup %9417 }
0x1535   :  { %2022 = vrot.lane.b32.xlu1 %v9418_v49, %s9460_s30 }
0x1537   :  { %2028 = vrot.lane.b32.xlu0 %v10298_v47, %s9460_s30 }
0x1539   :  { %2030 = vrot.lane.b32.xlu1 %v10301_v24, %s9460_s30 }
0x153b   :  { %552 = vrot.lane.b32.xlu0 %v550_v39, %s9460_s30  ;;  %v9080_v39 = vmul.f32 -1.442695, %v1980_v8 }
0x153d   :  { %768 = vrot.lane.b32.xlu1 %v766_v25, %s9460_s30  ;;  %9419 = vpow2.f32 %v9080_v39 }
0x153e   :  { %9421 = vpow2.f32 %v9081_v55 }
0x1541   :  { %1849 = vrot.lane.b32.xlu1 %v1847_v53, %s9461_s13 }
0x1545   :  { %1198 = vrot.lane.b32.xlu1 %v1196_v31, %s9460_s30 }
0x1547   :  { %v9420_v58 = vpop.eup %9419 }
0x1548   :  { %v9422_v25 = vpop.eup %9421  ;;  %v1988_v53 = vadd.f32 1.0, %v9420_v58 }
0x1549   :  { %1419 = vrot.lane.b32.xlu1 %v1417_v56, %s9461_s13  ;;  %v1989_v14 = vadd.f32 1.0, %v9422_v25  ;;  %v9182_v56 = vld [vmem:[%s14625_s6 + $0x18] sm:$0xff]  }
0x154a   :  { %9423 = vrcp.f32 %v1988_v53  ;;  %9117 = vmatprep.subr.bf16.mxu0 %v9182_v56 }
0x154b   :  { %9425 = vrcp.f32 %v1989_v14  ;;  %9118 = vmatpush3.bf16.msra.mxu0 %v9182_v56 }
0x1554   :  { %v9424_v22 = vpop.eup %9423 }
0x1555   :  { %v9426_v31 = vpop.eup %9425  ;;  %v2016_v9 = vsub.f32 1.0, %v9424_v22 }
0x1556   :  { %v2017_v3 = vsub.f32 1.0, %v9426_v31 }
0x15a5   :  { %v2021_v30 = vpop.permute.xlu0 %2020 }
0x15a6   :  { %v2026_v10 = vmul.f32 %v2021_v30, %v2016_v9 }
0x15a7   :  { %v2023_v40 = vpop.permute.xlu1 %2022 }
0x15a8   :  { %v2027_v4 = vmul.f32 %v2023_v40, %v2017_v3 }
0x15a9   :  { %v2029_v37 = vpop.permute.xlu0 %2028 }
0x15aa   :  { %v2034_v42 = vmul.f32 %v9424_v22, %v2029_v37 }
0x15ab   :  { %v2031_v48 = vpop.permute.xlu1 %2030 }
0x15ac   :  { %v2035_v13 = vmul.f32 %v9426_v31, %v2031_v48  ;;  %v2036_v7 = vadd.f32 %v2034_v42, %v2026_v10  ;;  %v10391_v48 = vsub.s32 2, %v9630_v17 }
0x15ad   :  { %v553_v62 = vpop.permute.xlu0 %552 }
0x15ae   :  { %v2037_v45 = vadd.f32 %v2035_v13, %v2027_v4  ;;  %555 = vst.msk [vmem:[#allocation3] sm:$0xff] %vm131_vm0, %v553_v62 }
0x15af   :  { %v769_v15 = vpop.permute.xlu1 %768 }
0x15b0   :  { %v2044_v21 = vpack.c.bf16 %v2037_v45, %v2036_v7  ;;  %771 = vst.msk [vmem:[#allocation3 + $0x8] sm:$0xff] %vm131_vm0, %v769_v15  ;;  %v10403_v7 = vsub.s32 3, %v9630_v17 }
0x15b2   :  { %2046 = vrot.lane.b32.xlu0 %v2044_v21, %s9461_s13  ;;  %v10410_v21 = vsub.s32 4, %v9630_v17 }
0x15b3   :  { %v1850_v60 = vpop.permute.xlu1 %1849 }
0x15b4   :  { %1852 = vst.msk [vmem:[#allocation3 + $0x8] sm:$0xff] %vm561_vm2, %v1850_v60 }
0x15b6   :  { %983 = vrot.lane.b32.xlu0 %v981_v35, %s9460_s30 }
0x15b7   :  { %v1199_v54 = vpop.permute.xlu1 %1198 }
0x15b8   :  { %1201 = vst.msk [vmem:[#allocation3 + $0x18] sm:$0xff] %vm131_vm0, %v1199_v54 }
0x15ba   :  { %1634 = vrot.lane.b32.xlu0 %v1632_v34, %s9461_s13 }
0x15bb   :  { %v1420_v49 = vpop.permute.xlu1 %1419  ;;  %v2051_v5 = vld [vmem:[#allocation3 + $0x8] sm:$0xff] }
0x15bc   :  { %1422 = vst.msk [vmem:[#allocation3 + $0x18] sm:$0xff] %vm561_vm2, %v1420_v49  ;;  %v10417_v49 = vsub.s32 5, %v9630_v17 }
0x15c3   :  { %v2053_v51 = vld [vmem:[#allocation3 + $0x18] sm:$0xff] }
0x1624   :  { %v2047_v23 = vpop.permute.xlu0 %2046 }
0x1625   :  { %2049 = vst.msk [vmem:[#allocation3] sm:$0xff] %vm561_vm2, %v2047_v23 }
0x1628   :  { %v984_v41 = vpop.permute.xlu0 %983 }
0x1629   :  { %986 = vst.msk [vmem:[#allocation3 + $0x10] sm:$0xff] %vm131_vm0, %v984_v41 }
0x162c   :  { %v1635_v8 = vpop.permute.xlu0 %1634  ;;  %v2050_v28 = vld [vmem:[#allocation3] sm:$0xff] }
0x162d   :  { %1637 = vst.msk [vmem:[#allocation3 + $0x10] sm:$0xff] %vm561_vm2, %v1635_v8  ;;  %9119 = vmatprep.mubr.msk.bf16.mxu0 %vm270_vm1, %v2050_v28  ;;  %v10424_v8 = vsub.s32 6, %v9630_v17 }
0x162e   :  { %9120 = vmatmul.mubr.msk.bf16.vlgmr.msra.gmra.mrb[32].mxu0 %vm270_vm1, %v2051_v5 }
0x1634   :  { %v2052_v35 = vld [vmem:[#allocation3 + $0x10] sm:$0xff] }
0x1635   :  { %9123 = vmatprep.mubr.msk.bf16.mxu0 %vm270_vm1, %v2052_v35  ;;  %v9462_v35 = vmov 1966171168  }
0x1636   :  { %9124 = vmatmul.mubr.msk.bf16.gmra.mrb[36].mxu0 %vm270_vm1, %v2053_v51  ;;  %v2255_v51 = vunpack.c.l.s4 %v9462_v35 }
0x1701   :  { %v9121_v34 = vpop.f32.mrb[32].mxu0 }
0x1702   :  { %v2164_v36 = vadd.f32 %v9121_v34, %v9082_v27  ;;  %v2155_v39 = vpop.f32.mrb[33].mxu0  ;;  %v2256_v34 = vunpack.c.0.s8 %v2255_v51 }
0x1703   :  { %v2156_v55 = vadd.f32 %v9082_v27, %v2155_v39  ;;  %v9122_v58 = vpop.f32.mrb[34].mxu0  ;;  %v9095_v39 = vld [vmem:[%s14627_s8] ss:$0 sm:$0xff] }
0x1704   :  { %2221 = vst.msk [vmem:[#allocation4 + $0x10] sm:$0xff] %vm2218_vm3, %v2164_v36  ;;  %v2167_v25 = vadd.f32 %v9122_v58, %v9082_v27  ;;  %v2158_v53 = vpop.f32.mrb[35].mxu0  ;;  %v10438_v58 = vsub.s32 %v2256_v34, %v9630_v17 }
0x1705   :  { %2219 = vst.msk [vmem:[#allocation4] sm:$0xff] %vm2218_vm3, %v2156_v55  ;;  %v2159_v14 = vadd.f32 %v9082_v27, %v2158_v53 }
0x1706   :  { %2222 = vst.msk [vmem:[#allocation4 + $0x18] sm:$0xff] %vm2218_vm3, %v2167_v25 }
0x1707   :  { %2220 = vst.msk [vmem:[#allocation4 + $0x8] sm:$0xff] %vm2218_vm3, %v2159_v14 }
0x1709   :  { %v9125_v30 = vpop.f32.mrb[36].mxu0 }
0x170a   :  { %v2180_v12 = vadd.f32 %v9125_v30, %v9082_v27  ;;  %v2171_v22 = vpop.f32.mrb[37].mxu0 }
0x170b   :  { %v2172_v31 = vadd.f32 %v9082_v27, %v2171_v22  ;;  %v9126_v40 = vpop.f32.mrb[38].mxu0  ;;  %v10383_v37 = vld [vmem:[#allocation4 + $0x10] sm:$0xff] }
0x170c   :  { %2225 = vst.msk [vmem:[#allocation4 + $0x30] sm:$0xff] %vm2218_vm3, %v2180_v12  ;;  %v2183_v56 = vadd.f32 %v9126_v40, %v9082_v27  ;;  %v2174_v9 = vpop.f32.mrb[39].mxu0  ;;  %v2870_v3 = vrot.slane %v10383_v37, %v9639_v20  ;;  %v2863_v42 = vrot.slane %v10383_v37, %v9633_v18  ;;  %v2877_v13 = vrot.slane %v10383_v37, %v10391_v48  ;;  %v2239_v55 = vld [vmem:[#allocation4] sm:$0xff] }
0x170d   :  { %2223 = vst.msk [vmem:[#allocation4 + $0x20] sm:$0xff] %vm2218_vm3, %v2172_v31  ;;  %v2175_v10 = vadd.f32 %v9082_v27, %v2174_v9  ;;  %v10394_v4 = vld [vmem:[#allocation4 + $0x18] sm:$0xff]  ;;  %v2884_v45 = vrot.slane %v10383_v37, %v10403_v7  ;;  %v2891_v60 = vrot.slane %v10383_v37, %v10410_v21  ;;  %v2898_v23 = vrot.slane %v10383_v37, %v10417_v49  ;;  %v10454_v9 = vld [vmem:[%s14628_s10] sm:$0xff] }
0x170e   :  { %2226 = vst.msk [vmem:[#allocation4 + $0x38] sm:$0xff] %vm2218_vm3, %v2183_v56  ;;  %2872 = vbcast.lane.b32.xlu0 %v2870_v3, 256  ;;  %2865 = vbcast.lane.b32.xlu1 %v2863_v42, 256  ;;  %v2919_v62 = vrot.slane %v10394_v4, %v9633_v18  ;;  %v2926_v15 = vrot.slane %v10394_v4, %v9639_v20  ;;  %v2240_v53 = vld [vmem:[#allocation4 + $0x8] sm:$0xff] }
0x170f   :  { %2224 = vst.msk [vmem:[#allocation4 + $0x28] sm:$0xff] %vm2218_vm3, %v2175_v10  ;;  %v2933_v54 = vrot.slane %v10394_v4, %v10391_v48  ;;  %v2940_v41 = vrot.slane %v10394_v4, %v10403_v7  ;;  %v2905_v28 = vrot.slane %v10383_v37, %v10424_v8  ;;  %v2947_v5 = vrot.slane %v10394_v4, %v10410_v21 }
0x1710   :  { %v2954_v27 = vrot.slane %v10394_v4, %v10417_v49  ;;  %v2961_v36 = vrot.slane %v10394_v4, %v10424_v8  ;;  %v10440_v25 = vadd.f32 %v9095_v39, %v2239_v55  ;;  %v10444_v30 = vadd.f32 %v9095_v39, %v2240_v53 }
0x1712   :  { %2879 = vbcast.lane.b32.xlu0 %v2877_v13, 256  ;;  %2921 = vbcast.lane.b32.xlu1 %v2919_v62, 256  ;;  %v2260_v14 = vrot.slane %v10440_v25, %v10438_v58  ;;  %v2309_v22 = vrot.slane %v10444_v30, %v10438_v58  ;;  %v2302_v3 = vcombine.high %v10444_v30, %v10444_v30 }
0x1714   :  { %v2276_v12 = vrot.slane %v2260_v14, %v10438_v58  ;;  %v2325_v40 = vrot.slane %v2309_v22, %v10438_v58  ;;  %v2317_v56 = vcombine.high %v2309_v22, %v2309_v22  ;;  %v2268_v62 = vcombine.high %v2260_v14, %v2260_v14 }
0x1716   :  { %2886 = vbcast.lane.b32.xlu0 %v2884_v45, 256  ;;  %2928 = vbcast.lane.b32.xlu1 %v2926_v15, 256  ;;  %v2354_v31 = vrot.slane %v2276_v12, %v9633_v18  ;;  %v2386_v10 = vrot.slane %v2325_v40, %v9633_v18  ;;  %v2339_v13 = vrot.slane %v2317_v56, %v10438_v58 }
0x1717   :  { %v2316_v45 = vrot.slane %v2302_v3, %v10438_v58  ;;  %v2298_v34 = vcombine.high %v2276_v12, %v2276_v12 }
0x1718   :  { %v10459_v42 = vadd.f32 %v2354_v31, %v10454_v9  ;;  %v2349_v53 = vcombine.high %v2339_v13, %v2339_v13 }
0x1719   :  { %v2362_v31 = vrot.slane %v2298_v34, %v9633_v18 }
0x171a   :  { %2893 = vbcast.lane.b32.xlu0 %v2891_v60, 256  ;;  %2935 = vbcast.lane.b32.xlu1 %v2933_v54, 256  ;;  %14909 = vst [vmem:[#allocation6_spill] sm:$0xff] %v10459_v42  ;;  %v2447_v15 = vsel %vm2218_vm3, %v10459_v42, -inf  ;;  %v10467_v60 = vadd.f32 %v2386_v10, %v10454_v9  ;;  %v2390_v54 = vrot.slane %v2339_v13, %v9633_v18 }
0x171b   :  { %v2398_v3 = vrot.slane %v2349_v53, %v9633_v18 }
0x171c   :  { %14910 = vst [vmem:[#allocation7_spill] sm:$0xff] %v10467_v60  ;;  %v2471_v35 = vsel %vm2218_vm3, %v10467_v60, -inf  ;;  %v10477_v51 = vadd.f32 %v2390_v54, %v10454_v9 }
0x171e   :  { %2900 = vbcast.lane.b32.xlu0 %v2898_v23, 256  ;;  %2942 = vbcast.lane.b32.xlu1 %v2940_v41, 256  ;;  %v2347_v23 = vcombine.high %v2325_v40, %v2325_v40  ;;  %v2290_v41 = vrot.slane %v2268_v62, %v10438_v58  ;;  %14911 = vst [vmem:[#allocation8_spill] sm:$0xff] %v10477_v51  ;;  %v2474_v14 = vsel %vm2218_vm3, %v10477_v51, -inf }
0x171f   :  { %v2318_v40 = vcombine.high %v2316_v45, %v2316_v45  ;;  %v10500_v62 = vadd.f32 %v2362_v31, %v10454_v9 }
0x1721   :  { %14915 = vst [vmem:[#allocation12_spill] sm:$0xff] %v10500_v62 }
0x1722   :  { %2907 = vbcast.lane.b32.xlu0 %v2905_v28, 256  ;;  %2949 = vbcast.lane.b32.xlu1 %v2947_v5, 256  ;;  %v2253_v28 = vcombine.high %v10440_v25, %v10440_v25  ;;  %v2332_v5 = vrot.slane %v2316_v45, %v10438_v58 }
0x1724   :  { %v2267_v39 = vrot.slane %v2253_v28, %v10438_v58  ;;  %v2402_v55 = vrot.slane %v2332_v5, %v9633_v18 }
0x1726   :  { %2956 = vbcast.lane.b32.xlu1 %v2954_v27, 256  ;;  %v2394_v27 = vrot.slane %v2347_v23, %v9633_v18  ;;  %v2283_v56 = vrot.slane %v2267_v39, %v10438_v58  ;;  %v10497_v13 = vadd.f32 %v2402_v55, %v10454_v9  ;;  %v2300_v23 = vcombine.high %v2290_v41, %v2290_v41 }
0x1727   :  { %v2269_v28 = vcombine.high %v2267_v39, %v2267_v39  ;;  %v2453_v55 = vsel %vm2218_vm3, %v10500_v62, -inf }
0x1728   :  { %v10486_v22 = vadd.f32 %v2394_v27, %v10454_v9  ;;  %14914 = vst [vmem:[#allocation11_spill] sm:$0xff] %v10497_v13  ;;  %v2370_v54 = vrot.slane %v2283_v56, %v9633_v18  ;;  %v10509_v27 = vadd.f32 %v2398_v3, %v10454_v9 }
0x1729   :  { %v2297_v39 = vrot.slane %v2269_v28, %v10438_v58 }
0x172a   :  { %2963 = vbcast.lane.b32.xlu1 %v2961_v36, 256  ;;  %v2358_v36 = vrot.slane %v2290_v41, %v9633_v18  ;;  %14912 = vst [vmem:[#allocation9_spill] sm:$0xff] %v10486_v22  ;;  %v2477_v10 = vsel %vm2218_vm3, %v10486_v22, -inf  ;;  %14916 = vst [vmem:[#allocation13_spill] sm:$0xff] %v10509_v27  ;;  %v10515_v53 = vadd.f32 %v2370_v54, %v10454_v9 }
0x172b   :  { %v2366_v41 = vrot.slane %v2300_v23, %v9633_v18  ;;  %v2299_v54 = vcombine.high %v2283_v56, %v2283_v56 }
0x172c   :  { %v10490_v12 = vadd.f32 %v2358_v36, %v10454_v9  ;;  %v2348_v36 = vcombine.high %v2332_v5, %v2332_v5  ;;  %14917 = vst [vmem:[#allocation14_spill] sm:$0xff] %v10515_v53  ;;  %v2459_v3 = vsel %vm2218_vm3, %v10515_v53, -inf }
0x172e   :  { %14913 = vst [vmem:[#allocation10_spill] sm:$0xff] %v10490_v12  ;;  %v2450_v45 = vsel %vm2218_vm3, %v10490_v12, -inf  ;;  %v2410_v5 = vrot.slane %v2348_v36, %v9633_v18  ;;  %v2378_v36 = vrot.slane %v2299_v54, %v9633_v18 }
0x1730   :  { %v10534_v28 = vadd.f32 %v2410_v5, %v10454_v9  ;;  %v10551_v5 = vadd.f32 %v2378_v36, %v10454_v9 }
0x1732   :  { %14920 = vst [vmem:[#allocation17_spill] sm:$0xff] %v10534_v28  ;;  %v2489_v56 = vsel %vm2218_vm3, %v10534_v28, -inf  ;;  %14923 = vst [vmem:[#allocation20_spill] sm:$0xff] %v10551_v5 }
0x1741   :  { %2448 = vmax.xlane.f32.xlu0 %v2447_v15  ;;  %v2346_v15 = vrot.slane %v2318_v40, %v10438_v58 }
0x1743   :  { %v2406_v34 = vrot.slane %v2346_v15, %v9633_v18  ;;  %v2350_v40 = vcombine.high %v2346_v15, %v2346_v15 }
0x1745   :  { %2472 = vmax.xlane.f32.xlu0 %v2471_v35  ;;  %v2483_v35 = vsel %vm2218_vm3, %v10497_v13, -inf  ;;  %v10522_v31 = vadd.f32 %v2406_v34, %v10454_v9 }
0x1747   :  { %14918 = vst [vmem:[#allocation15_spill] sm:$0xff] %v10522_v31  ;;  %v2486_v23 = vsel %vm2218_vm3, %v10522_v31, -inf }
0x1749   :  { %2475 = vmax.xlane.f32.xlu0 %v2474_v14  ;;  %v2480_v14 = vsel %vm2218_vm3, %v10509_v27, -inf  ;;  %v14943_v27 = vlaneseq }
0x174d   :  { %2478 = vmax.xlane.f32.xlu0 %v2477_v10  ;;  %v10528_v10 = vadd.f32 %v2366_v41, %v10454_v9 }
0x174e   :  { %2451 = vmax.xlane.f32.xlu1 %v2450_v45  ;;  %v2374_v45 = vrot.slane %v2297_v39, %v9633_v18 }
0x174f   :  { %14919 = vst [vmem:[#allocation16_spill] sm:$0xff] %v10528_v10  ;;  %v2456_v15 = vsel %vm2218_vm3, %v10528_v10, -inf }
0x1750   :  { %v10540_v34 = vadd.f32 %v2374_v45, %v10454_v9 }
0x1751   :  { %2484 = vmax.xlane.f32.xlu0 %v2483_v35  ;;  %v2414_v35 = vrot.slane %v2350_v40, %v9633_v18 }
0x1752   :  { %2454 = vmax.xlane.f32.xlu1 %v2453_v55  ;;  %14921 = vst [vmem:[#allocation18_spill] sm:$0xff] %v10540_v34  ;;  %v2301_v55 = vcombine.high %v2297_v39, %v2297_v39 }
0x1753   :  { %v10546_v41 = vadd.f32 %v2414_v35, %v10454_v9 }
0x1754   :  { %v2382_v40 = vrot.slane %v2301_v55, %v9633_v18 }
0x1755   :  { %2481 = vmax.xlane.f32.xlu0 %v2480_v14  ;;  %14922 = vst [vmem:[#allocation19_spill] sm:$0xff] %v10546_v41  ;;  %v2462_v14 = vsel %vm2218_vm3, %v10540_v34, -inf  ;;  %v2492_v39 = vsel %vm2218_vm3, %v10546_v41, -inf }
0x1756   :  { %2460 = vmax.xlane.f32.xlu1 %v2459_v3  ;;  %v2465_v3 = vsel %vm2218_vm3, %v10551_v5, -inf  ;;  %v10559_v45 = vadd.f32 %v2382_v40, %v10454_v9 }
0x1758   :  { %14924 = vst [vmem:[#allocation21_spill] sm:$0xff] %v10559_v45  ;;  %v2468_v54 = vsel %vm2218_vm3, %v10559_v45, -inf }
0x1759   :  { %2487 = vmax.xlane.f32.xlu0 %v2486_v23  ;;  %v10564_v23 = vsub.s32 7, %v9630_v17 }
0x175a   :  { %2457 = vmax.xlane.f32.xlu1 %v2456_v15 }
0x175b   :  { %v2912_v35 = vrot.slane %v10383_v37, %v10564_v23  ;;  %v2968_v15 = vrot.slane %v10394_v4, %v10564_v23 }
0x175d   :  { %2490 = vmax.xlane.f32.xlu0 %v2489_v56 }
0x175e   :  { %2463 = vmax.xlane.f32.xlu1 %v2462_v14 }
0x1761   :  { %2493 = vmax.xlane.f32.xlu0 %v2492_v39 }
0x1762   :  { %2466 = vmax.xlane.f32.xlu1 %v2465_v3 }
0x1766   :  { %2469 = vmax.xlane.f32.xlu1 %v2468_v54 }
0x1777   :  { %2914 = vbcast.lane.b32.xlu0 %v2912_v35, 256  ;;  %2970 = vbcast.lane.b32.xlu1 %v2968_v15, 256 }
0x1780   :  { %v2873_v36 = vpop.permute.xlu0 %2872  ;;  %v2866_v55 = vpop.permute.xlu1 %2865 }
0x1784   :  { %v2880_v56 = vpop.permute.xlu0 %2879  ;;  %v2922_v14 = vpop.permute.xlu1 %2921 }
0x1788   :  { %v2887_v40 = vpop.permute.xlu0 %2886  ;;  %v2929_v39 = vpop.permute.xlu1 %2928 }
0x178c   :  { %v2894_v3 = vpop.permute.xlu0 %2893  ;;  %v2936_v0 = vpop.permute.xlu1 %2935 }
0x1790   :  { %v2901_v54 = vpop.permute.xlu0 %2900  ;;  %v2943_v57 = vpop.permute.xlu1 %2942 }
0x1794   :  { %v2908_v16 = vpop.permute.xlu0 %2907  ;;  %v2950_v11 = vpop.permute.xlu1 %2949 }
0x1798   :  { %v2957_v41 = vpop.permute.xlu1 %2956 }
0x179c   :  { %v2964_v15 = vpop.permute.xlu1 %2963 }
0x17ce   :  { %v10570_v1 = vpop.xlane.xlu0 %2448 }
0x17cf   :  { %14925 = vst [vmem:[#allocation22_spill] sm:$0xff] %v10570_v1  ;;  %v2988_v37 = vadd.f32 %v2866_v55, %v10570_v1 }
0x17d1   :  { %3031 = vperm.xlu0 %9151, %v2988_v37  }
0x17d2   :  { %v10573_v4 = vpop.xlane.xlu0 %2472 }
0x17d3   :  { %14926 = vst [vmem:[#allocation23_spill] sm:$0xff] %v10573_v4  ;;  %v2996_v53 = vadd.f32 %v2922_v14, %v10573_v4 }
0x17d6   :  { %v10575_v35 = vpop.xlane.xlu0 %2475 }
0x17d7   :  { %14927 = vst [vmem:[#allocation24_spill] sm:$0xff] %v10575_v35  ;;  %v2997_v45 = vadd.f32 %v2929_v39, %v10575_v35 }
0x17d9   :  { %3058 = vperm.xlu0 %9151, %v2997_v45  }
0x17da   :  { %v10578_v5 = vpop.xlane.xlu0 %2478 }
0x17db   :  { %14928 = vst [vmem:[#allocation25_spill] sm:$0xff] %v10578_v5  ;;  %v2998_v34 = vadd.f32 %v2936_v0, %v10578_v5  ;;  %v10581_v28 = vpop.xlane.xlu1 %2451 }
0x17dc   :  { %14929 = vst [vmem:[#allocation26_spill] sm:$0xff] %v10581_v28  ;;  %v2989_v31 = vadd.f32 %v2873_v36, %v10581_v28 }
0x17dd   :  { %3061 = vperm.xlu0 %9151, %v2998_v34  }
0x17de   :  { %3034 = vperm.xlu1 %9152, %v2989_v31   ;;  %v10584_v55 = vpop.xlane.xlu0 %2484 }
0x17df   :  { %14930 = vst [vmem:[#allocation27_spill] sm:$0xff] %v10584_v55  ;;  %v3000_v37 = vadd.f32 %v2950_v11, %v10584_v55  ;;  %v10587_v10 = vpop.xlane.xlu1 %2454 }
0x17e0   :  { %14931 = vst [vmem:[#allocation28_spill] sm:$0xff] %v10587_v10  ;;  %v2990_v36 = vadd.f32 %v2880_v56, %v10587_v10 }
0x17e1   :  { %3067 = vperm.xlu0 %9151, %v3000_v37  }
0x17e2   :  { %3055 = vperm.xlu1 %9152, %v2996_v53   ;;  %v10590_v45 = vpop.xlane.xlu0 %2481 }
0x17e3   :  { %14932 = vst [vmem:[#allocation29_spill] sm:$0xff] %v10590_v45  ;;  %v2999_v0 = vadd.f32 %v2943_v57, %v10590_v45  ;;  %v10593_v39 = vpop.xlane.xlu1 %2460 }
0x17e4   :  { %14933 = vst [vmem:[#allocation30_spill] sm:$0xff] %v10593_v39  ;;  %v2992_v14 = vadd.f32 %v2894_v3, %v10593_v39 }
0x17e5   :  { %3064 = vperm.xlu0 %9151, %v2999_v0  }
0x17e6   :  { %3037 = vperm.xlu1 %9152, %v2990_v36   ;;  %v10596_v31 = vpop.xlane.xlu0 %2487 }
0x17e7   :  { %14934 = vst [vmem:[#allocation31_spill] sm:$0xff] %v10596_v31  ;;  %v3001_v11 = vadd.f32 %v2957_v41, %v10596_v31  ;;  %v10599_v34 = vpop.xlane.xlu1 %2457 }
0x17e8   :  { %14935 = vst [vmem:[#allocation32_spill] sm:$0xff] %v10599_v34  ;;  %v2991_v56 = vadd.f32 %v2887_v40, %v10599_v34  ;;  %v10624_v40 = vld [vmem:[%s14629_s1] sm:$0xff] }
0x17e9   :  { %3070 = vperm.xlu0 %9151, %v3001_v11   ;;  %vm2854_vm5 = vcmp.gt.s32.totalorder %v10624_v40, 1  ;;  %vm3756_vm15 = vcmp.gt.s32.totalorder %v10624_v40, 2 }
0x17ea   :  { %3043 = vperm.xlu1 %9152, %v2992_v14   ;;  %v10602_v53 = vpop.xlane.xlu0 %2490 }
0x17eb   :  { %14936 = vst [vmem:[#allocation33_spill] sm:$0xff] %v10602_v53  ;;  %v3002_v57 = vadd.f32 %v2964_v15, %v10602_v53  ;;  %v10605_v37 = vpop.xlane.xlu1 %2463  ;;  %v10619_v15 = vld [vmem:[%s14629_s1 + $0x8] sm:$0xff] }
0x17ec   :  { %14937 = vst [vmem:[#allocation34_spill] sm:$0xff] %v10605_v37  ;;  %v2993_v41 = vadd.f32 %v2901_v54, %v10605_v37  ;;  %vm2855_vm4 = vcmp.gt.s32.totalorder %v10619_v15, 1  ;;  %v3758_v37 = vld [vmem:[#allocation4 + $0x20] sm:$0xff] }
0x17ed   :  { %3073 = vperm.xlu0 %9151, %v3002_v57   ;;  %v3772_v53 = vrot.slane %v3758_v37, %v9639_v20 }
0x17ee   :  { %3040 = vperm.xlu1 %9152, %v2991_v56   ;;  %v10608_v0 = vpop.xlane.xlu0 %2493 }
0x17ef   :  { %14938 = vst [vmem:[#allocation35_spill] sm:$0xff] %v10608_v0  ;;  %v10610_v36 = vpop.xlane.xlu1 %2466 }
0x17f0   :  { %14939 = vst [vmem:[#allocation36_spill] sm:$0xff] %v10610_v36  ;;  %v2994_v11 = vadd.f32 %v2908_v16, %v10610_v36  ;;  %v14941_v16 = vmov 0  }
0x17f1   :  { %v3004_v36 = vsel %vm2854_vm5, 1, %v14941_v16 }
0x17f2   :  { %3046 = vperm.xlu1 %9152, %v2993_v41   ;;  %v2915_v14 = vpop.permute.xlu0 %2914  ;;  %v3005_v41 = vsel %vm2855_vm4, 1, %v14941_v16  ;;  %vm3757_vm4 = vcmp.gt.s32.totalorder %v10619_v15, 2 }
0x17f3   :  { %v10613_v3 = vpop.xlane.xlu1 %2469 }
0x17f4   :  { %14940 = vst [vmem:[#allocation37_spill] sm:$0xff] %v10613_v3  ;;  %v2995_v54 = vadd.f32 %v2915_v14, %v10613_v3  ;;  %v3759_v14 = vld [vmem:[#allocation4 + $0x28] sm:$0xff] }
0x17f6   :  { %3049 = vperm.xlu1 %9152, %v2994_v11   ;;  %v3765_v11 = vrot.slane %v3758_v37, %v9633_v18 }
0x17f7   :  { %v2971_v57 = vpop.permute.xlu1 %2970 }
0x17f8   :  { %v3003_v56 = vadd.f32 %v2971_v57, %v10608_v0  ;;  %v3828_v57 = vrot.slane %v3759_v14, %v9639_v20  ;;  %v3821_v0 = vrot.slane %v3759_v14, %v9633_v18 }
0x17fa   :  { %3076 = vperm.xlu0 %9151, %v3003_v56   ;;  %3052 = vperm.xlu1 %9152, %v2995_v54   ;;  %v3835_v54 = vrot.slane %v3759_v14, %v10391_v48  ;;  %v3779_v56 = vrot.slane %v3758_v37, %v10391_v48 }
0x17fe   :  { %3010 = vperm.xlu0 %9151, %v3005_v41   ;;  %3007 = vperm.xlu1 %9152, %v3004_v36   ;;  %v3842_v36 = vrot.slane %v3759_v14, %v10403_v7  ;;  %v3786_v41 = vrot.slane %v3758_v37, %v10403_v7 }
0x1802   :  { %3767 = vbcast.lane.b32.xlu0 %v3765_v11, 256  ;;  %3774 = vbcast.lane.b32.xlu1 %v3772_v53, 256  ;;  %v3849_v53 = vrot.slane %v3759_v14, %v10410_v21  ;;  %v3793_v11 = vrot.slane %v3758_v37, %v10410_v21 }
0x1806   :  { %3830 = vbcast.lane.b32.xlu0 %v3828_v57, 256  ;;  %3823 = vbcast.lane.b32.xlu1 %v3821_v0, 256  ;;  %v3856_v0 = vrot.slane %v3759_v14, %v10417_v49  ;;  %v3800_v57 = vrot.slane %v3758_v37, %v10417_v49 }
0x180a   :  { %3837 = vbcast.lane.b32.xlu0 %v3835_v54, 256  ;;  %3781 = vbcast.lane.b32.xlu1 %v3779_v56, 256  ;;  %v3863_v54 = vrot.slane %v3759_v14, %v10424_v8  ;;  %v3807_v56 = vrot.slane %v3758_v37, %v10424_v8 }
0x180e   :  { %3844 = vbcast.lane.b32.xlu0 %v3842_v36, 256  ;;  %3788 = vbcast.lane.b32.xlu1 %v3786_v41, 256  ;;  %v3870_v36 = vrot.slane %v3759_v14, %v10564_v23  ;;  %v3814_v41 = vrot.slane %v3758_v37, %v10564_v23  ;;  %v10653_v14 = vand.u32 127, %v14943_v27 }
0x1810   :  { %v10657_v37 = vsub.s32 %v10653_v14, %v9630_v17 }
0x1812   :  { %3851 = vbcast.lane.b32.xlu0 %v3849_v53, 256  ;;  %3795 = vbcast.lane.b32.xlu1 %v3793_v11, 256  ;;  %v14942_v53 = vpack.c.bf16 %v10078_v46, %v10076_v63 }
0x1816   :  { %3858 = vbcast.lane.b32.xlu0 %v3856_v0, 256  ;;  %3802 = vbcast.lane.b32.xlu1 %v3800_v57, 256 }
0x181a   :  { %3865 = vbcast.lane.b32.xlu0 %v3863_v54, 256  ;;  %3809 = vbcast.lane.b32.xlu1 %v3807_v56, 256 }
0x181e   :  { %3872 = vbcast.lane.b32.xlu0 %v3870_v36, 256  ;;  %3816 = vbcast.lane.b32.xlu1 %v3814_v41, 256 }
0x1822   :  { %1204 = vrot.lane.b32.xlu1 %v14942_v53, %s9461_s13 }
0x1850   :  { %v3032_v11 = vpop.permute.xlu0 %3031 }
0x1851   :  { %v3081_v17 = vrot.slane %v3032_v11, %v10657_v37 }
0x1858   :  { %v3059_v0 = vpop.permute.xlu0 %3058 }
0x1859   :  { %v3117_v41 = vrot.slane %v3059_v0, %v10657_v37 }
0x185c   :  { %v3062_v57 = vpop.permute.xlu0 %3061 }
0x185d   :  { %v3035_v3 = vpop.permute.xlu1 %3034  ;;  %v3121_v27 = vrot.slane %v3062_v57, %v10657_v37 }
0x185e   :  { %v3085_v45 = vrot.slane %v3035_v3, %v10657_v37 }
0x1860   :  { %v3068_v34 = vpop.permute.xlu0 %3067  ;;  %v3142_v3 = vsel %vm2831_vm6, %v3085_v45, %v3081_v17 }
0x1861   :  { %v3056_v31 = vpop.permute.xlu1 %3055 }
0x1862   :  { %v3113_v63 = vrot.slane %v3056_v31, %v10657_v37 }
0x1864   :  { %v3065_v54 = vpop.permute.xlu0 %3064  ;;  %v3149_v13 = vsel %vm2831_vm6, %v3117_v41, %v3113_v63 }
0x1865   :  { %v3038_v39 = vpop.permute.xlu1 %3037  ;;  %v3125_v62 = vrot.slane %v3065_v54, %v10657_v37  ;;  %v3150_v0 = vsel %vm2833_vm7, %v3121_v27, %v3149_v13 }
0x1866   :  { %v3089_v55 = vrot.slane %v3038_v39, %v10657_v37 }
0x1867   :  { %v3151_v57 = vsel %vm2835_vm8, %v3125_v62, %v3150_v0 }
0x1868   :  { %v3071_v46 = vpop.permute.xlu0 %3070  ;;  %v3143_v63 = vsel %vm2833_vm7, %v3089_v55, %v3142_v3 }
0x1869   :  { %v3044_v56 = vpop.permute.xlu1 %3043  ;;  %v3133_v39 = vrot.slane %v3071_v46, %v10657_v37 }
0x186a   :  { %v3097_v13 = vrot.slane %v3044_v56, %v10657_v37 }
0x186c   :  { %v3074_v10 = vpop.permute.xlu0 %3073 }
0x186d   :  { %v3041_v36 = vpop.permute.xlu1 %3040  ;;  %v3137_v41 = vrot.slane %v3074_v10, %v10657_v37 }
0x186e   :  { %v3093_v31 = vrot.slane %v3041_v36, %v10657_v37  ;;  %v3129_v36 = vrot.slane %v3068_v34, %v10657_v37 }
0x1870   :  { %v3144_v11 = vsel %vm2835_vm8, %v3093_v31, %v3143_v63  ;;  %v3152_v46 = vsel %vm2837_vm9, %v3129_v36, %v3151_v57 }
0x1871   :  { %v3047_v53 = vpop.permute.xlu1 %3046  ;;  %v3145_v31 = vsel %vm2837_vm9, %v3097_v13, %v3144_v11  ;;  %v3153_v34 = vsel %vm2839_vm10, %v3133_v39, %v3152_v46 }
0x1872   :  { %v3101_v54 = vrot.slane %v3047_v53, %v10657_v37  ;;  %v3154_v10 = vsel %vm14837_vm11, %v3137_v41, %v3153_v34 }
0x1874   :  { %v3146_v56 = vsel %vm2839_vm10, %v3101_v54, %v3145_v31 }
0x1875   :  { %v3050_v22 = vpop.permute.xlu1 %3049 }
0x1876   :  { %v3105_v45 = vrot.slane %v3050_v22, %v10657_v37 }
0x1878   :  { %v3147_v22 = vsel %vm14837_vm11, %v3105_v45, %v3146_v56 }
0x1879   :  { %v3053_v27 = vpop.permute.xlu1 %3052  ;;  %v3077_v55 = vpop.permute.xlu0 %3076 }
0x187a   :  { %v3109_v17 = vrot.slane %v3053_v27, %v10657_v37  ;;  %v3141_v62 = vrot.slane %v3077_v55, %v10657_v37 }
0x187c   :  { %v3148_v3 = vsel %vm14836_vm12, %v3109_v17, %v3147_v22  ;;  %v3155_v63 = vsel %vm14836_vm12, %v3141_v62, %v3154_v10 }
0x187d   :  { %v3008_v53 = vpop.permute.xlu1 %3007  ;;  %v3011_v0 = vpop.permute.xlu0 %3010 }
0x187e   :  { %vm3012_vm13 = vcmp.eq.s32.totalorder %v3008_v53, 1  ;;  %vm3013_vm14 = vcmp.eq.s32.totalorder %v3011_v0, 1 }
0x187f   :  { %v10690_v57 = vsel %vm3012_vm13, %v3148_v3, %v10440_v25  ;;  %v10693_v11 = vsel %vm3013_vm14, %v3155_v63, %v10444_v30  ;;  %vm4659_vm14 = vcmp.gt.s32.totalorder %v10619_v15, 3 }
0x1880   :  { %v3162_v39 = vcombine.high %v10690_v57, %v10690_v57  ;;  %v3169_v54 = vrot.slane %v10690_v57, %v10438_v58  ;;  %v3211_v36 = vcombine.high %v10693_v11, %v10693_v11  ;;  %v3218_v13 = vrot.slane %v10693_v11, %v10438_v58 }
0x1881   :  { %v10703_v41 = vpop.permute.xlu1 %3774 }
0x1882   :  { %v3177_v45 = vcombine.high %v3169_v54, %v3169_v54  ;;  %v3226_v25 = vcombine.high %v3218_v13, %v3218_v13  ;;  %v3185_v27 = vrot.slane %v3169_v54, %v10438_v58  ;;  %v3234_v30 = vrot.slane %v3218_v13, %v10438_v58 }
0x1883   :  { %v3176_v55 = vrot.slane %v3162_v39, %v10438_v58  ;;  %v3225_v17 = vrot.slane %v3211_v36, %v10438_v58 }
0x1884   :  { %v3199_v62 = vrot.slane %v3177_v45, %v10438_v58  ;;  %v3248_v46 = vrot.slane %v3226_v25, %v10438_v58  ;;  %v3263_v34 = vrot.slane %v3185_v27, %v9633_v18  ;;  %v3256_v56 = vcombine.high %v3234_v30, %v3234_v30 }
0x1885   :  { %v10711_v31 = vpop.permute.xlu1 %3823  ;;  %v3295_v53 = vrot.slane %v3234_v30, %v9633_v18  ;;  %v3207_v0 = vcombine.high %v3185_v27, %v3185_v27  ;;  %v3241_v39 = vrot.slane %v3225_v17, %v10438_v58  ;;  %v3192_v54 = vrot.slane %v3176_v55, %v10438_v58 }
0x1886   :  { %v3267_v10 = vrot.slane %v3199_v62, %v9633_v18  ;;  %v3299_v22 = vrot.slane %v3248_v46, %v9633_v18  ;;  %v10718_v3 = vadd.f32 %v3263_v34, %v10454_v9  ;;  %v3303_v25 = vrot.slane %v3256_v56, %v9633_v18 }
0x1887   :  { %v10736_v30 = vadd.f32 %v3295_v53, %v10454_v9  ;;  %v3271_v34 = vrot.slane %v3207_v0, %v9633_v18  ;;  %v3279_v5 = vrot.slane %v3192_v54, %v9633_v18  ;;  %v3227_v35 = vcombine.high %v3225_v17, %v3225_v17 }
0x1888   :  { %14944 = vst [vmem:[#allocation38_spill] sm:$0xff] %v10718_v3  ;;  %v10721_v63 = vadd.f32 %v3267_v10, %v10454_v9  ;;  %v3356_v13 = vsel %vm2218_vm3, %v10718_v3, -inf  ;;  %v10730_v45 = vadd.f32 %v3299_v22, %v10454_v9  ;;  %v3311_v10 = vrot.slane %v3241_v39, %v9633_v18 }
0x1889   :  { %v10725_v36 = vpop.permute.xlu1 %3781  ;;  %3357 = vmax.xlane.f32.xlu1 %v3356_v13  ;;  %14947 = vst [vmem:[#allocation41_spill] sm:$0xff] %v10736_v30  ;;  %v10746_v56 = vadd.f32 %v3303_v25, %v10454_v9  ;;  %v3258_v13 = vcombine.high %v3248_v46, %v3248_v46  ;;  %v3380_v53 = vsel %vm2218_vm3, %v10736_v30, -inf  ;;  %v10751_v0 = vadd.f32 %v3271_v34, %v10454_v9 }
0x188a   :  { %14945 = vst [vmem:[#allocation39_spill] sm:$0xff] %v10721_v63  ;;  %14946 = vst [vmem:[#allocation40_spill] sm:$0xff] %v10730_v45  ;;  %v3359_v27 = vsel %vm2218_vm3, %v10721_v63, -inf  ;;  %v3383_v22 = vsel %vm2218_vm3, %v10730_v45, -inf  ;;  %v3178_v60 = vcombine.high %v3176_v55, %v3176_v55  ;;  %v10758_v25 = vadd.f32 %v3311_v10, %v10454_v9 }
0x188b   :  { %3360 = vmax.xlane.f32.xlu0 %v3359_v27  ;;  %14948 = vst [vmem:[#allocation42_spill] sm:$0xff] %v10746_v56  ;;  %14949 = vst [vmem:[#allocation43_spill] sm:$0xff] %v10751_v0  ;;  %v3209_v27 = vcombine.high %v3199_v62, %v3199_v62  ;;  %v3386_v42 = vsel %vm2218_vm3, %v10746_v56, -inf  ;;  %v3307_v17 = vrot.slane %v3258_v13, %v9633_v18  ;;  %v3362_v34 = vsel %vm2218_vm3, %v10751_v0, -inf }
0x188c   :  { %14950 = vst [vmem:[#allocation44_spill] sm:$0xff] %v10758_v25  ;;  %v3255_v46 = vrot.slane %v3227_v35, %v10438_v58  ;;  %v10765_v62 = vadd.f32 %v3279_v5, %v10454_v9  ;;  %v3392_v10 = vsel %vm2218_vm3, %v10758_v25, -inf  ;;  %v3257_v35 = vcombine.high %v3241_v39, %v3241_v39 }
0x188d   :  { %v10741_v51 = vpop.permute.xlu1 %3788  ;;  %3384 = vmax.xlane.f32.xlu1 %v3383_v22  ;;  %v3275_v55 = vrot.slane %v3209_v27, %v9633_v18  ;;  %v3206_v22 = vrot.slane %v3178_v60, %v10438_v58  ;;  %v10774_v13 = vadd.f32 %v3307_v17, %v10454_v9 }
0x188e   :  { %14951 = vst [vmem:[#allocation45_spill] sm:$0xff] %v10765_v62  ;;  %v3368_v5 = vsel %vm2218_vm3, %v10765_v62, -inf  ;;  %v3319_v39 = vrot.slane %v3257_v35, %v9633_v18 }
0x188f   :  { %3381 = vmax.xlane.f32.xlu0 %v3380_v53  ;;  %14952 = vst [vmem:[#allocation46_spill] sm:$0xff] %v10774_v13  ;;  %v10780_v27 = vadd.f32 %v3275_v55, %v10454_v9  ;;  %v3283_v60 = vrot.slane %v3206_v22, %v9633_v18  ;;  %v3389_v17 = vsel %vm2218_vm3, %v10774_v13, -inf }
0x1890   :  { %v10802_v13 = vadd.f32 %v3319_v39, %v10454_v9 }
0x1891   :  { %v10753_v4 = vpop.permute.xlu1 %3795  ;;  %3387 = vmax.xlane.f32.xlu1 %v3386_v42  ;;  %v3315_v42 = vrot.slane %v3255_v46, %v9633_v18  ;;  %14953 = vst [vmem:[#allocation47_spill] sm:$0xff] %v10780_v27  ;;  %v3365_v55 = vsel %vm2218_vm3, %v10780_v27, -inf  ;;  %v10794_v28 = vadd.f32 %v3283_v60, %v10454_v9 }
0x1892   :  { %14956 = vst [vmem:[#allocation50_spill] sm:$0xff] %v10802_v13 }
0x1893   :  { %3363 = vmax.xlane.f32.xlu0 %v3362_v34  ;;  %v3208_v34 = vcombine.high %v3192_v54, %v3192_v54  ;;  %v10788_v12 = vadd.f32 %v3315_v42, %v10454_v9  ;;  %14955 = vst [vmem:[#allocation49_spill] sm:$0xff] %v10794_v28  ;;  %v3371_v35 = vsel %vm2218_vm3, %v10794_v28, -inf }
0x1895   :  { %v10769_v53 = vpop.permute.xlu1 %3802  ;;  %3393 = vmax.xlane.f32.xlu1 %v3392_v10  ;;  %14954 = vst [vmem:[#allocation48_spill] sm:$0xff] %v10788_v12  ;;  %v3259_v10 = vcombine.high %v3255_v46, %v3255_v46  ;;  %v3287_v54 = vrot.slane %v3208_v34, %v9633_v18  ;;  %v3395_v42 = vsel %vm2218_vm3, %v10788_v12, -inf }
0x1897   :  { %3369 = vmax.xlane.f32.xlu0 %v3368_v5  ;;  %v3210_v5 = vcombine.high %v3206_v22, %v3206_v22  ;;  %v3323_v46 = vrot.slane %v3259_v10, %v9633_v18  ;;  %v10808_v60 = vadd.f32 %v3287_v54, %v10454_v9 }
0x1899   :  { %v10783_v1 = vpop.permute.xlu1 %3809  ;;  %3390 = vmax.xlane.f32.xlu1 %v3389_v17  ;;  %14957 = vst [vmem:[#allocation51_spill] sm:$0xff] %v10808_v60  ;;  %v3291_v22 = vrot.slane %v3210_v5, %v9633_v18  ;;  %v3398_v17 = vsel %vm2218_vm3, %v10802_v13, -inf  ;;  %v3374_v39 = vsel %vm2218_vm3, %v10808_v60, -inf }
0x189b   :  { %3366 = vmax.xlane.f32.xlu0 %v3365_v55  ;;  %v10814_v55 = vadd.f32 %v3323_v46, %v10454_v9  ;;  %v10820_v10 = vadd.f32 %v3291_v22, %v10454_v9  ;;  %v3906_v46 = vsel %vm3756_vm15, 1, %v14941_v16  ;;  %v14961_v9 = vpack.c.bf16 %v9965_v26, %v9963_v50 }
0x189c   :  { %v3907_v22 = vsel %vm3757_vm4, 1, %v14941_v16  ;;  %vm4658_vm15 = vcmp.gt.s32.totalorder %v10624_v40, 3 }
0x189d   :  { %v10797_v62 = vpop.permute.xlu1 %3816  ;;  %3396 = vmax.xlane.f32.xlu1 %v3395_v42  ;;  %14958 = vst [vmem:[#allocation52_spill] sm:$0xff] %v10814_v55  ;;  %14959 = vst [vmem:[#allocation53_spill] sm:$0xff] %v10820_v10  ;;  %v3401_v54 = vsel %vm2218_vm3, %v10814_v55, -inf  ;;  %v3377_v5 = vsel %vm2218_vm3, %v10820_v10, -inf  ;;  %v14960_v42 = vpack.c.bf16 %v10143_v43, %v10141_v59  ;;  %v3768_v59 = vpop.permute.xlu0 %3767  ;;  %v4808_v15 = vsel %vm4658_vm15, 1, %v14941_v16 }
0x189f   :  { %3372 = vmax.xlane.f32.xlu0 %v3371_v35  ;;  %v14962_v35 = vpack.c.bf16 %v10218_v33, %v10216_v61 }
0x18a1   :  { %v1205_v34 = vpop.permute.xlu1 %1204  ;;  %3399 = vmax.xlane.f32.xlu1 %v3398_v17  ;;  %v3831_v43 = vpop.permute.xlu0 %3830 }
0x18a2   :  { %1207 = vst.msk [vmem:[#allocation3 + $0x20] sm:$0xff] %vm561_vm2, %v1205_v34 }
0x18a3   :  { %3375 = vmax.xlane.f32.xlu0 %v3374_v39 }
0x18a5   :  { %3402 = vmax.xlane.f32.xlu1 %v3401_v54  ;;  %v3838_v34 = vpop.permute.xlu0 %3837 }
0x18a7   :  { %3378 = vmax.xlane.f32.xlu0 %v3377_v5 }
0x18a9   :  { %v3845_v17 = vpop.permute.xlu0 %3844 }
0x18ad   :  { %v3852_v39 = vpop.permute.xlu0 %3851 }
0x18b1   :  { %v3859_v54 = vpop.permute.xlu0 %3858 }
0x18b5   :  { %v3866_v5 = vpop.permute.xlu0 %3865 }
0x18b6   :  { %1413 = vrot.lane.b32.xlu1 %v14960_v42, %s9460_s30 }
0x18b9   :  { %v3873_v42 = vpop.permute.xlu0 %3872 }
0x18ba   :  { %3909 = vperm.xlu1 %9152, %v3906_v46  }
0x18bd   :  { %989 = vrot.lane.b32.xlu0 %v14961_v9, %s9461_s13 }
0x18c1   :  { %1628 = vrot.lane.b32.xlu0 %v14962_v35, %s9460_s30 }
0x18c5   :  { %3912 = vperm.xlu0 %9151, %v3907_v22  }
0x1916   :  { %v10842_v50 = vpop.xlane.xlu1 %3357 }
0x1917   :  { %14963 = vst [vmem:[#allocation54_spill] sm:$0xff] %v10842_v50  ;;  %v3890_v26 = vadd.f32 %v3768_v59, %v10842_v50 }
0x1918   :  { %v10845_v46 = vpop.xlane.xlu0 %3360 }
0x1919   :  { %14964 = vst [vmem:[#allocation55_spill] sm:$0xff] %v10845_v46  ;;  %v3891_v61 = vadd.f32 %v10703_v41, %v10845_v46  ;;  %3933 = vperm.xlu1 %9152, %v3890_v26  }
0x191a   :  { %v10849_v33 = vpop.xlane.xlu1 %3384 }
0x191b   :  { %14965 = vst [vmem:[#allocation56_spill] sm:$0xff] %v10849_v33  ;;  %3936 = vperm.xlu0 %9151, %v3891_v61   ;;  %v3899_v35 = vadd.f32 %v3831_v43, %v10849_v33 }
0x191c   :  { %v10851_v9 = vpop.xlane.xlu0 %3381 }
0x191d   :  { %14966 = vst [vmem:[#allocation57_spill] sm:$0xff] %v10851_v9  ;;  %v3898_v22 = vadd.f32 %v10711_v31, %v10851_v9 }
0x191e   :  { %v10856_v10 = vpop.xlane.xlu1 %3387 }
0x191f   :  { %14967 = vst [vmem:[#allocation58_spill] sm:$0xff] %v10856_v10  ;;  %3960 = vperm.xlu0 %9151, %v3899_v35   ;;  %3957 = vperm.xlu1 %9152, %v3898_v22   ;;  %v3900_v55 = vadd.f32 %v3838_v34, %v10856_v10 }
0x1920   :  { %v10858_v59 = vpop.xlane.xlu0 %3363 }
0x1921   :  { %14968 = vst [vmem:[#allocation59_spill] sm:$0xff] %v10858_v59  ;;  %v3892_v41 = vadd.f32 %v10725_v36, %v10858_v59 }
0x1922   :  { %v10863_v26 = vpop.xlane.xlu1 %3393 }
0x1923   :  { %14969 = vst [vmem:[#allocation60_spill] sm:$0xff] %v10863_v26  ;;  %3963 = vperm.xlu0 %9151, %v3900_v55   ;;  %3939 = vperm.xlu1 %9152, %v3892_v41   ;;  %v3902_v43 = vadd.f32 %v3852_v39, %v10863_v26 }
0x1924   :  { %v10865_v61 = vpop.xlane.xlu0 %3369 }
0x1925   :  { %14970 = vst [vmem:[#allocation61_spill] sm:$0xff] %v10865_v61  ;;  %v3894_v31 = vadd.f32 %v10753_v4, %v10865_v61 }
0x1926   :  { %v10870_v35 = vpop.xlane.xlu1 %3390 }
0x1927   :  { %14971 = vst [vmem:[#allocation62_spill] sm:$0xff] %v10870_v35  ;;  %3969 = vperm.xlu0 %9151, %v3902_v43   ;;  %3945 = vperm.xlu1 %9152, %v3894_v31   ;;  %v3901_v34 = vadd.f32 %v3845_v17, %v10870_v35 }
0x1928   :  { %v10872_v22 = vpop.xlane.xlu0 %3366 }
0x1929   :  { %14972 = vst [vmem:[#allocation63_spill] sm:$0xff] %v10872_v22  ;;  %v3893_v36 = vadd.f32 %v10741_v51, %v10872_v22 }
0x192a   :  { %v10877_v55 = vpop.xlane.xlu1 %3396 }
0x192b   :  { %14973 = vst [vmem:[#allocation64_spill] sm:$0xff] %v10877_v55  ;;  %3966 = vperm.xlu0 %9151, %v3901_v34   ;;  %3942 = vperm.xlu1 %9152, %v3893_v36   ;;  %v3903_v39 = vadd.f32 %v3859_v54, %v10877_v55 }
0x192c   :  { %v10879_v41 = vpop.xlane.xlu0 %3372 }
0x192d   :  { %14974 = vst [vmem:[#allocation65_spill] sm:$0xff] %v10879_v41  ;;  %v3895_v4 = vadd.f32 %v10769_v53, %v10879_v41 }
0x192e   :  { %v10884_v43 = vpop.xlane.xlu1 %3399 }
0x192f   :  { %14975 = vst [vmem:[#allocation66_spill] sm:$0xff] %v10884_v43  ;;  %3972 = vperm.xlu0 %9151, %v3903_v39   ;;  %3948 = vperm.xlu1 %9152, %v3895_v4   ;;  %v3904_v17 = vadd.f32 %v3866_v5, %v10884_v43 }
0x1930   :  { %v10886_v31 = vpop.xlane.xlu0 %3375 }
0x1931   :  { %14976 = vst [vmem:[#allocation67_spill] sm:$0xff] %v10886_v31  ;;  %v3896_v51 = vadd.f32 %v10783_v1, %v10886_v31  ;;  %v4660_v1 = vld [vmem:[#allocation4 + $0x30] sm:$0xff] }
0x1932   :  { %v10891_v34 = vpop.xlane.xlu1 %3402 }
0x1933   :  { %14977 = vst [vmem:[#allocation68_spill] sm:$0xff] %v10891_v34  ;;  %3975 = vperm.xlu0 %9151, %v3904_v17   ;;  %3951 = vperm.xlu1 %9152, %v3896_v51   ;;  %v3905_v54 = vadd.f32 %v3873_v42, %v10891_v34  ;;  %v4674_v42 = vrot.slane %v4660_v1, %v9639_v20  ;;  %v4661_v17 = vld [vmem:[#allocation4 + $0x38] sm:$0xff] }
0x1934   :  { %v10893_v36 = vpop.xlane.xlu0 %3378 }
0x1935   :  { %14978 = vst [vmem:[#allocation69_spill] sm:$0xff] %v10893_v36  ;;  %v3897_v53 = vadd.f32 %v10797_v62, %v10893_v36  ;;  %v4667_v62 = vrot.slane %v4660_v1, %v9633_v18  ;;  %v10923_v36 = vld [vmem:[#allocation2 + $0xe0] sm:$0xff] }
0x1936   :  { %v1414_v39 = vpop.permute.xlu1 %1413 }
0x1937   :  { %3978 = vperm.xlu0 %9151, %v3905_v54   ;;  %3954 = vperm.xlu1 %9152, %v3897_v53   ;;  %1416 = vst.msk [vmem:[#allocation3 + $0x20] sm:$0xff] %vm131_vm0, %v1414_v39  ;;  %v4730_v54 = vrot.slane %v4661_v17, %v9639_v20  ;;  %v4723_v53 = vrot.slane %v4661_v17, %v9633_v18 }
0x1938   :  { %v990_v5 = vpop.permute.xlu0 %989 }
0x1939   :  { %992 = vst.msk [vmem:[#allocation3 + $0x28] sm:$0xff] %vm561_vm2, %v990_v5  ;;  %v4737_v5 = vrot.slane %v4661_v17, %v10391_v48 }
0x193b   :  { %1922 = vrot.lane.b32.xlu0 %v10311_v44, %s9459_s5  ;;  %1924 = vrot.lane.b32.xlu1 %v10314_v2, %s9459_s5 }
0x193c   :  { %v1629_v4 = vpop.permute.xlu0 %1628 }
0x193d   :  { %1631 = vst.msk [vmem:[#allocation3 + $0x28] sm:$0xff] %vm131_vm0, %v1629_v4  ;;  %v4681_v4 = vrot.slane %v4660_v1, %v10391_v48 }
0x193e   :  { %v2054_v51 = vld [vmem:[#allocation3 + $0x20] sm:$0xff] }
0x193f   :  { %4669 = vbcast.lane.b32.xlu0 %v4667_v62, 256  ;;  %4676 = vbcast.lane.b32.xlu1 %v4674_v42, 256  ;;  %v4744_v62 = vrot.slane %v4661_v17, %v10403_v7  ;;  %v4688_v42 = vrot.slane %v4660_v1, %v10403_v7 }
0x1940   :  { %9127 = vmatprep.mubr.msk.bf16.mxu0 %vm270_vm1, %v2054_v51  ;;  %v4751_v51 = vrot.slane %v4661_v17, %v10410_v21 }
0x1943   :  { %4732 = vbcast.lane.b32.xlu0 %v4730_v54, 256  ;;  %4725 = vbcast.lane.b32.xlu1 %v4723_v53, 256  ;;  %v4695_v54 = vrot.slane %v4660_v1, %v10410_v21  ;;  %v4758_v53 = vrot.slane %v4661_v17, %v10417_v49 }
0x1944   :  { %v2055_v39 = vld [vmem:[#allocation3 + $0x28] sm:$0xff] }
0x1945   :  { %9128 = vmatmul.mubr.msk.bf16.gmra.mrb[40].mxu0 %vm270_vm1, %v2055_v39  ;;  %v4702_v39 = vrot.slane %v4660_v1, %v10417_v49 }
0x1947   :  { %4739 = vbcast.lane.b32.xlu0 %v4737_v5, 256  ;;  %4683 = vbcast.lane.b32.xlu1 %v4681_v4, 256  ;;  %v4765_v5 = vrot.slane %v4661_v17, %v10424_v8  ;;  %v4709_v4 = vrot.slane %v4660_v1, %v10424_v8 }
0x194b   :  { %4746 = vbcast.lane.b32.xlu0 %v4744_v62, 256  ;;  %4690 = vbcast.lane.b32.xlu1 %v4688_v42, 256  ;;  %v4772_v62 = vrot.slane %v4661_v17, %v10564_v23  ;;  %v4716_v42 = vrot.slane %v4660_v1, %v10564_v23 }
0x194f   :  { %4753 = vbcast.lane.b32.xlu0 %v4751_v51, 256  ;;  %4697 = vbcast.lane.b32.xlu1 %v4695_v54, 256  ;;  %v3910_v51 = vpop.permute.xlu1 %3909  ;;  %v3913_v54 = vpop.permute.xlu0 %3912 }
0x1950   :  { %vm3914_vm5 = vcmp.eq.s32.totalorder %v3910_v51, 1  ;;  %vm3915_vm13 = vcmp.eq.s32.totalorder %v3913_v54, 1 }
0x1953   :  { %4760 = vbcast.lane.b32.xlu0 %v4758_v53, 256  ;;  %4704 = vbcast.lane.b32.xlu1 %v4702_v39, 256  ;;  %v1906_v53 = vadd.f32 %v10923_v36, %v10311_v44 }
0x1955   :  { %v9076_v60 = vmul.f32 -1.442695, %v1906_v53 }
0x1957   :  { %4767 = vbcast.lane.b32.xlu0 %v4765_v5, 256  ;;  %4711 = vbcast.lane.b32.xlu1 %v4709_v4, 256  ;;  %9427 = vpow2.f32 %v9076_v60 }
0x195b   :  { %4774 = vbcast.lane.b32.xlu0 %v4772_v62, 256  ;;  %4718 = vbcast.lane.b32.xlu1 %v4716_v42, 256 }
0x1961   :  { %v9428_v1 = vpop.eup %9427 }
0x1962   :  { %v1914_v28 = vadd.f32 1.0, %v9428_v1 }
0x1964   :  { %9429 = vrcp.f32 %v1914_v28 }
0x1998   :  { %v3934_v39 = vpop.permute.xlu1 %3933 }
0x1999   :  { %v3983_v61 = vrot.slane %v3934_v39, %v10657_v37 }
0x199a   :  { %v3937_v34 = vpop.permute.xlu0 %3936 }
0x199b   :  { %v3987_v41 = vrot.slane %v3937_v34, %v10657_v37 }
0x199d   :  { %v4044_v1 = vsel %vm2831_vm6, %v3987_v41, %v3983_v61 }
0x199e   :  { %v3958_v31 = vpop.permute.xlu1 %3957  ;;  %v3961_v13 = vpop.permute.xlu0 %3960 }
0x199f   :  { %v4015_v12 = vrot.slane %v3958_v31, %v10657_v37  ;;  %v4019_v44 = vrot.slane %v3961_v13, %v10657_v37 }
0x19a1   :  { %v4051_v34 = vsel %vm2831_vm6, %v4019_v44, %v4015_v12 }
0x19a2   :  { %v3940_v5 = vpop.permute.xlu1 %3939  ;;  %v3964_v4 = vpop.permute.xlu0 %3963 }
0x19a3   :  { %v3991_v55 = vrot.slane %v3940_v5, %v10657_v37  ;;  %v4023_v53 = vrot.slane %v3964_v4, %v10657_v37 }
0x19a5   :  { %v4045_v31 = vsel %vm2833_vm7, %v3991_v55, %v4044_v1  ;;  %v4052_v13 = vsel %vm2833_vm7, %v4023_v53, %v4051_v34 }
0x19a6   :  { %v3946_v17 = vpop.permute.xlu1 %3945  ;;  %v3970_v43 = vpop.permute.xlu0 %3969 }
0x19a7   :  { %v3999_v28 = vrot.slane %v3946_v17, %v10657_v37  ;;  %v4031_v61 = vrot.slane %v3970_v43, %v10657_v37 }
0x19aa   :  { %v3943_v62 = vpop.permute.xlu1 %3942  ;;  %v3967_v42 = vpop.permute.xlu0 %3966 }
0x19ab   :  { %v3995_v25 = vrot.slane %v3943_v62, %v10657_v37  ;;  %v4027_v26 = vrot.slane %v3967_v42, %v10657_v37 }
0x19ad   :  { %v4046_v4 = vsel %vm2835_vm8, %v3995_v25, %v4045_v31  ;;  %v4053_v10 = vsel %vm2835_vm8, %v4027_v26, %v4052_v13  ;;  %v10963_v13 = vpop.eup %9429 }
0x19ae   :  { %v3949_v35 = vpop.permute.xlu1 %3948  ;;  %v3973_v60 = vpop.permute.xlu0 %3972  ;;  %v4047_v41 = vsel %vm2837_vm9, %v3999_v28, %v4046_v4  ;;  %v4054_v42 = vsel %vm2837_vm9, %v4031_v61, %v4053_v10 }
0x19af   :  { %v4003_v39 = vrot.slane %v3949_v35, %v10657_v37  ;;  %v4035_v62 = vrot.slane %v3973_v60, %v10657_v37 }
0x19b1   :  { %v4048_v26 = vsel %vm2839_vm10, %v4003_v39, %v4047_v41  ;;  %v4055_v35 = vsel %vm2839_vm10, %v4035_v62, %v4054_v42  ;;  %v10982_v41 = vld [vmem:[%s14628_s10] sm:$0xff] }
0x19b2   :  { %v3952_v5 = vpop.permute.xlu1 %3951  ;;  %v3976_v56 = vpop.permute.xlu0 %3975 }
0x19b3   :  { %v4007_v12 = vrot.slane %v3952_v5, %v10657_v37  ;;  %v4039_v55 = vrot.slane %v3976_v56, %v10657_v37 }
0x19b5   :  { %v4049_v43 = vsel %vm14837_vm11, %v4007_v12, %v4048_v26  ;;  %v4056_v60 = vsel %vm14837_vm11, %v4039_v55, %v4055_v35 }
0x19b6   :  { %v3955_v44 = vpop.permute.xlu1 %3954  ;;  %v3979_v25 = vpop.permute.xlu0 %3978 }
0x19b7   :  { %v4011_v53 = vrot.slane %v3955_v44, %v10657_v37  ;;  %v4043_v17 = vrot.slane %v3979_v25, %v10657_v37 }
0x19b9   :  { %v4050_v56 = vsel %vm14836_vm12, %v4011_v53, %v4049_v43  ;;  %v4057_v10 = vsel %vm14836_vm12, %v4043_v17, %v4056_v60 }
0x19ba   :  { %v10958_v1 = vsel %vm3914_vm5, %v4050_v56, %v10690_v57  ;;  %v10961_v34 = vsel %vm3915_vm13, %v4057_v10, %v10693_v11  ;;  %v1923_v31 = vpop.permute.xlu0 %1922 }
0x19bb   :  { %v4071_v5 = vrot.slane %v10958_v1, %v10438_v58  ;;  %v1928_v4 = vmul.f32 %v10963_v13, %v1923_v31  ;;  %v4120_v51 = vrot.slane %v10961_v34, %v10438_v58  ;;  %v4064_v54 = vcombine.high %v10958_v1, %v10958_v1 }
0x19bc   :  { %v4113_v44 = vcombine.high %v10961_v34, %v10961_v34 }
0x19bd   :  { %v4079_v39 = vcombine.high %v4071_v5, %v4071_v5  ;;  %v4087_v57 = vrot.slane %v4071_v5, %v10438_v58  ;;  %1932 = vrot.lane.b32.xlu1 %v1928_v4, %s9459_s5  ;;  %v4136_v11 = vrot.slane %v4120_v51, %v10438_v58  ;;  %v4078_v55 = vrot.slane %v4064_v54, %v10438_v58 }
0x19be   :  { %v4127_v17 = vrot.slane %v4113_v44, %v10438_v58  ;;  %v4670_v30 = vpop.permute.xlu0 %4669 }
0x19bf   :  { %v4101_v62 = vrot.slane %v4079_v39, %v10438_v58  ;;  %v4197_v61 = vrot.slane %v4136_v11, %v9633_v18  ;;  %v4109_v12 = vcombine.high %v4087_v57, %v4087_v57  ;;  %v4094_v53 = vrot.slane %v4078_v55, %v10438_v58 }
0x19c0   :  { %v4080_v43 = vcombine.high %v4078_v55, %v4078_v55  ;;  %v4129_v5 = vcombine.high %v4127_v17, %v4127_v17 }
0x19c1   :  { %v4169_v28 = vrot.slane %v4101_v62, %v9633_v18  ;;  %v10992_v26 = vadd.f32 %v10982_v41, %v4197_v61  ;;  %v4173_v35 = vrot.slane %v4109_v12, %v9633_v18  ;;  %v4181_v10 = vrot.slane %v4094_v53, %v9633_v18  ;;  %v11012_v12 = vld [vmem:[#allocation2 + $0xf0] sm:$0xff] }
0x19c2   :  { %v4111_v31 = vcombine.high %v4101_v62, %v4101_v62  ;;  %v4110_v61 = vcombine.high %v4094_v53, %v4094_v53  ;;  %v4733_v3 = vpop.permute.xlu0 %4732 }
0x19c3   :  { %v10985_v42 = vadd.f32 %v10982_v41, %v4169_v28  ;;  %14980 = vst [vmem:[#allocation71_spill] sm:$0xff] %v10992_v26  ;;  %v4282_v60 = vsel %vm2218_vm3, %v10992_v26, -inf  ;;  %v11000_v56 = vadd.f32 %v10982_v41, %v4173_v35  ;;  %v11006_v54 = vadd.f32 %v10982_v41, %v4181_v10 }
0x19c4   :  { %v4177_v39 = vrot.slane %v4111_v31, %v9633_v18  ;;  %v11010_v28 = vrot.slane %v4080_v43, %v10438_v58  ;;  %v1907_v35 = vadd.f32 %v11012_v12, %v10314_v2  ;;  %v4128_v43 = vcombine.high %v4120_v51, %v4120_v51 }
0x19c5   :  { %14979 = vst [vmem:[#allocation70_spill] sm:$0xff] %v10985_v42  ;;  %v4261_v25 = vsel %vm2218_vm3, %v10985_v42, -inf  ;;  %14981 = vst [vmem:[#allocation72_spill] sm:$0xff] %v11000_v56  ;;  %v4264_v4 = vsel %vm2218_vm3, %v11000_v56, -inf  ;;  %v4270_v62 = vsel %vm2218_vm3, %v11006_v54, -inf  ;;  %v4189_v10 = vrot.slane %v4110_v61, %v9633_v18  ;;  %v11422_v42 = vld [vmem:[%s14629_s1 + $0x8] sm:$0xff] }
0x19c6   :  { %4262 = vmax.xlane.f32.xlu0 %v4261_v25  ;;  %14982 = vst [vmem:[#allocation73_spill] sm:$0xff] %v11006_v54  ;;  %v11017_v55 = vadd.f32 %v10982_v41, %v4177_v39  ;;  %v4185_v44 = vrot.slane %v11010_v28, %v9633_v18  ;;  %v4157_v25 = vrot.slane %v4129_v5, %v10438_v58  ;;  %v4740_v63 = vpop.permute.xlu0 %4739  ;;  %vm5561_vm13 = vcmp.gt.s32.totalorder %v11422_v42, 4 }
0x19c7   :  { %v4165_v39 = vrot.slane %v4087_v57, %v9633_v18  ;;  %v11034_v2 = vadd.f32 %v10982_v41, %v4189_v10 }
0x19c8   :  { %14983 = vst [vmem:[#allocation74_spill] sm:$0xff] %v11017_v55  ;;  %v4267_v53 = vsel %vm2218_vm3, %v11017_v55, -inf  ;;  %v4161_v31 = vcombine.high %v4157_v25, %v4157_v25 }
0x19c9   :  { %14985 = vst [vmem:[#allocation76_spill] sm:$0xff] %v11034_v2  ;;  %v4276_v61 = vsel %vm2218_vm3, %v11034_v2, -inf }
0x19ca   :  { %4283 = vmax.xlane.f32.xlu0 %v4282_v60  ;;  %v11027_v60 = vadd.f32 %v10982_v41, %v4185_v44  ;;  %v4225_v51 = vrot.slane %v4161_v31, %v9633_v18  ;;  %v11039_v44 = vadd.f32 %v10982_v41, %v4165_v39  ;;  %v4143_v39 = vrot.slane %v4127_v17, %v10438_v58 }
0x19cc   :  { %14984 = vst [vmem:[#allocation75_spill] sm:$0xff] %v11027_v60  ;;  %v4273_v5 = vsel %vm2218_vm3, %v11027_v60, -inf  ;;  %14986 = vst [vmem:[#allocation77_spill] sm:$0xff] %v11039_v44  ;;  %v11044_v57 = vadd.f32 %v10982_v41, %v4225_v51  ;;  %v4258_v10 = vsel %vm2218_vm3, %v11039_v44, -inf }
0x19ce   :  { %4265 = vmax.xlane.f32.xlu0 %v4264_v4  ;;  %v9077_v4 = vmul.f32 -1.442695, %v1907_v35  ;;  %14987 = vst [vmem:[#allocation78_spill] sm:$0xff] %v11044_v57 }
0x19d0   :  { %9431 = vpow2.f32 %v9077_v4 }
0x19d2   :  { %4271 = vmax.xlane.f32.xlu0 %v4270_v62  ;;  %v4150_v62 = vrot.slane %v4128_v43, %v10438_v58  ;;  %v4303_v43 = vsel %vm2218_vm3, %v11044_v57, -inf }
0x19d4   :  { %v4201_v35 = vrot.slane %v4150_v62, %v9633_v18  ;;  %v4160_v27 = vcombine.high %v4150_v62, %v4150_v62  ;;  %v4217_v62 = vrot.slane %v4157_v25, %v9633_v18 }
0x19d6   :  { %4268 = vmax.xlane.f32.xlu0 %v4267_v53  ;;  %v4158_v53 = vcombine.high %v4136_v11, %v4136_v11  ;;  %v11052_v31 = vadd.f32 %v10982_v41, %v4201_v35  ;;  %v4209_v17 = vrot.slane %v4160_v27, %v9633_v18 }
0x19d8   :  { %14988 = vst [vmem:[#allocation79_spill] sm:$0xff] %v11052_v31  ;;  %v4205_v4 = vrot.slane %v4158_v53, %v9633_v18  ;;  %v4285_v11 = vsel %vm2218_vm3, %v11052_v31, -inf }
0x19da   :  { %4274 = vmax.xlane.f32.xlu0 %v4273_v5  ;;  %v9432_v5 = vpop.eup %9431  ;;  %v11059_v51 = vadd.f32 %v10982_v41, %v4205_v4  ;;  %v4159_v4 = vcombine.high %v4143_v39, %v4143_v39 }
0x19db   :  { %v1915_v22 = vadd.f32 1.0, %v9432_v5 }
0x19dc   :  { %14989 = vst [vmem:[#allocation80_spill] sm:$0xff] %v11059_v51  ;;  %v4288_v35 = vsel %vm2218_vm3, %v11059_v51, -inf  ;;  %v4221_v27 = vrot.slane %v4159_v4, %v9633_v18 }
0x19dd   :  { %9433 = vrcp.f32 %v1915_v22  ;;  %v4112_v22 = vcombine.high %v11010_v28, %v11010_v28 }
0x19de   :  { %4277 = vmax.xlane.f32.xlu0 %v4276_v61  ;;  %v4213_v61 = vrot.slane %v4143_v39, %v9633_v18  ;;  %v11087_v39 = vadd.f32 %v10982_v41, %v4221_v27 }
0x19e0   :  { %v11065_v53 = vadd.f32 %v10982_v41, %v4213_v61  ;;  %v1925_v61 = vpop.permute.xlu1 %1924  ;;  %14993 = vst [vmem:[#allocation84_spill] sm:$0xff] %v11087_v39  ;;  %v4300_v28 = vsel %vm2218_vm3, %v11087_v39, -inf }
0x19e1   :  { %4259 = vmax.xlane.f32.xlu1 %v4258_v10 }
0x19e2   :  { %4304 = vmax.xlane.f32.xlu0 %v4303_v43  ;;  %14990 = vst [vmem:[#allocation81_spill] sm:$0xff] %v11065_v53  ;;  %v4294_v10 = vsel %vm2218_vm3, %v11065_v53, -inf  ;;  %v11071_v43 = vadd.f32 %v10982_v41, %v4209_v17  ;;  %v4193_v17 = vrot.slane %v4112_v22, %v9633_v18 }
0x19e4   :  { %14991 = vst [vmem:[#allocation82_spill] sm:$0xff] %v11071_v43  ;;  %v4291_v5 = vsel %vm2218_vm3, %v11071_v43, -inf  ;;  %v11097_v4 = vadd.f32 %v10982_v41, %v4193_v17  ;;  %v11101_v27 = vpop.permute.xlu1 %4676  ;;  %v9448_v17 = vld [vmem:[%s14626_s7] ss:$0 sm:$0xff] }
0x19e5   :  { %4286 = vmax.xlane.f32.xlu1 %v4285_v11  ;;  %v11077_v11 = vadd.f32 %v10982_v41, %v4217_v62  ;;  %v4809_v62 = vsel %vm4659_vm14, 1, %v14941_v16  ;;  %vm6463_vm14 = vcmp.gt.s32.totalorder %v11422_v42, 5 }
0x19e6   :  { %14994 = vst [vmem:[#allocation85_spill] sm:$0xff] %v11097_v4 }
0x19e7   :  { %14992 = vst [vmem:[#allocation83_spill] sm:$0xff] %v11077_v11  ;;  %v4297_v25 = vsel %vm2218_vm3, %v11077_v11, -inf }
0x19e8   :  { %v4726_v22 = vpop.permute.xlu1 %4725 }
0x19e9   :  { %4289 = vmax.xlane.f32.xlu1 %v4288_v35  ;;  %v11082_v35 = vpop.eup %9433 }
0x19ed   :  { %4295 = vmax.xlane.f32.xlu1 %v4294_v10  ;;  %v1929_v10 = vmul.f32 %v11082_v35, %v1925_v61  ;;  %v4684_v61 = vpop.permute.xlu1 %4683 }
0x19f1   :  { %4292 = vmax.xlane.f32.xlu1 %v4291_v5  ;;  %v4279_v5 = vsel %vm2218_vm3, %v11097_v4, -inf }
0x19f5   :  { %4298 = vmax.xlane.f32.xlu1 %v4297_v25  ;;  %v4691_v25 = vpop.permute.xlu1 %4690 }
0x19f8   :  { %1934 = vrot.lane.b32.xlu0 %v1929_v10, %s9459_s5 }
0x19f9   :  { %4301 = vmax.xlane.f32.xlu1 %v4300_v28  ;;  %v4698_v0 = vpop.permute.xlu1 %4697 }
0x19fc   :  { %4814 = vperm.xlu0 %9151, %v4809_v62  }
0x19fd   :  { %4280 = vmax.xlane.f32.xlu1 %v4279_v5 }
0x1a0e   :  { %4811 = vperm.xlu1 %9152, %v4808_v15   ;;  %v4705_v15 = vpop.permute.xlu1 %4704 }
0x1a12   :  { %v4712_v9 = vpop.permute.xlu1 %4711 }
0x1a18   :  { %v9129_v10 = vpop.f32.mrb[40].mxu0 }
0x1a19   :  { %v2196_v28 = vadd.f32 %v9448_v17, %v9129_v10  ;;  %v2187_v62 = vpop.f32.mrb[41].mxu0  ;;  %v4719_v10 = vpop.permute.xlu1 %4718 }
0x1a1a   :  { %v2188_v59 = vadd.f32 %v9448_v17, %v2187_v62  ;;  %v9130_v5 = vpop.f32.mrb[42].mxu0 }
0x1a1b   :  { %2229 = vst.msk [vmem:[#allocation4 + $0x50] sm:$0xff] %vm2218_vm3, %v2196_v28  ;;  %v2199_v45 = vadd.f32 %v9448_v17, %v9130_v5  ;;  %v2190_v33 = vpop.f32.mrb[43].mxu0  ;;  %v4747_v28 = vpop.permute.xlu0 %4746 }
0x1a1c   :  { %2227 = vst.msk [vmem:[#allocation4 + $0x40] sm:$0xff] %vm2218_vm3, %v2188_v59  ;;  %v2191_v40 = vadd.f32 %v9448_v17, %v2190_v33 }
0x1a1d   :  { %2230 = vst.msk [vmem:[#allocation4 + $0x58] sm:$0xff] %vm2218_vm3, %v2199_v45 }
0x1a1e   :  { %2228 = vst.msk [vmem:[#allocation4 + $0x48] sm:$0xff] %vm2218_vm3, %v2191_v40 }
0x1a1f   :  { %v4754_v46 = vpop.permute.xlu0 %4753 }
0x1a23   :  { %v4761_v45 = vpop.permute.xlu0 %4760 }
0x1a27   :  { %v4768_v33 = vpop.permute.xlu0 %4767 }
0x1a2b   :  { %v11116_v59 = vpop.permute.xlu0 %4774 }
0x1a2f   :  { %v1933_v50 = vpop.permute.xlu1 %1932 }
0x1a30   :  { %v1938_v62 = vadd.f32 %v1933_v50, %v10923_v36 }
0x1a32   :  { %9435 = vtanh.f32 %v1938_v62 }
0x1a3c   :  { %v9436_v5 = vpop.eup %9435 }
0x1a3d   :  { %1946 = vrot.lane.b32.xlu1 %v9436_v5, %s9460_s30 }
0x1a41   :  { %1956 = vrot.lane.b32.xlu1 %v10298_v47, %s9461_s13 }
0x1a53   :  { %v11118_v17 = vpop.xlane.xlu0 %4262 }
0x1a54   :  { %14995 = vst [vmem:[#allocation86_spill] sm:$0xff] %v11118_v17 }
0x1a57   :  { %v11120_v40 = vpop.xlane.xlu0 %4283 }
0x1a58   :  { %14996 = vst [vmem:[#allocation87_spill] sm:$0xff] %v11120_v40  ;;  %v4800_v57 = vadd.f32 %v4726_v22, %v11120_v40  ;;  %v5562_v22 = vld [vmem:[#allocation4 + $0x40] sm:$0xff] }
0x1a5b   :  { %v11122_v4 = vpop.xlane.xlu0 %4265 }
0x1a5c   :  { %14997 = vst [vmem:[#allocation88_spill] sm:$0xff] %v11122_v4  ;;  %v4794_v51 = vadd.f32 %v4684_v61, %v11122_v4  ;;  %v5576_v61 = vrot.slane %v5562_v22, %v9639_v20 }
0x1a5f   :  { %v11124_v50 = vpop.xlane.xlu0 %4271 }
0x1a60   :  { %14998 = vst [vmem:[#allocation89_spill] sm:$0xff] %v11124_v50  ;;  %v4796_v55 = vadd.f32 %v4698_v0, %v11124_v50  ;;  %v4793_v0 = vadd.f32 %v11101_v27, %v11118_v17  ;;  %v5563_v27 = vld [vmem:[#allocation4 + $0x48] sm:$0xff] }
0x1a63   :  { %v11126_v36 = vpop.xlane.xlu0 %4268 }
0x1a64   :  { %14999 = vst [vmem:[#allocation90_spill] sm:$0xff] %v11126_v36  ;;  %v4795_v31 = vadd.f32 %v4691_v25, %v11126_v36  ;;  %v5625_v25 = vrot.slane %v5563_v27, %v9633_v18 }
0x1a67   :  { %v11128_v62 = vpop.xlane.xlu0 %4274 }
0x1a68   :  { %15000 = vst [vmem:[#allocation91_spill] sm:$0xff] %v11128_v62 }
0x1a6b   :  { %v11130_v5 = vpop.xlane.xlu0 %4277 }
0x1a6c   :  { %15001 = vst [vmem:[#allocation92_spill] sm:$0xff] %v11130_v5 }
0x1a6e   :  { %v11132_v39 = vpop.xlane.xlu1 %4259 }
0x1a6f   :  { %15002 = vst [vmem:[#allocation93_spill] sm:$0xff] %v11132_v39  ;;  %v11134_v47 = vpop.xlane.xlu0 %4304  ;;  %v4792_v11 = vadd.f32 %v4670_v30, %v11132_v39 }
0x1a70   :  { %15003 = vst [vmem:[#allocation94_spill] sm:$0xff] %v11134_v47 }
0x1a71   :  { %4835 = vperm.xlu1 %9152, %v4792_v11  }
0x1a72   :  { %v11137_v43 = vpop.xlane.xlu1 %4286 }
0x1a73   :  { %15004 = vst [vmem:[#allocation95_spill] sm:$0xff] %v11137_v43  ;;  %v1935_v53 = vpop.permute.xlu0 %1934 }
0x1a74   :  { %v1939_v2 = vadd.f32 %v1935_v53, %v11012_v12 }
0x1a75   :  { %4859 = vperm.xlu1 %9152, %v4800_v57   ;;  %v4798_v57 = vadd.f32 %v4712_v9, %v11130_v5 }
0x1a76   :  { %9437 = vtanh.f32 %v1939_v2  ;;  %v11141_v60 = vpop.xlane.xlu1 %4289  ;;  %v4797_v2 = vadd.f32 %v4705_v15, %v11128_v62  ;;  %v5583_v15 = vrot.slane %v5562_v22, %v10391_v48 }
0x1a77   :  { %15005 = vst [vmem:[#allocation96_spill] sm:$0xff] %v11141_v60 }
0x1a79   :  { %4841 = vperm.xlu1 %9152, %v4794_v51   ;;  %v4801_v51 = vadd.f32 %v4733_v3, %v11137_v43 }
0x1a7a   :  { %v11144_v54 = vpop.xlane.xlu1 %4295 }
0x1a7b   :  { %15006 = vst [vmem:[#allocation97_spill] sm:$0xff] %v11144_v54  ;;  %v4804_v9 = vadd.f32 %v4754_v46, %v11144_v54  ;;  %v5597_v46 = vrot.slane %v5562_v22, %v10410_v21 }
0x1a7d   :  { %4847 = vperm.xlu1 %9152, %v4796_v55  }
0x1a7e   :  { %v11147_v30 = vpop.xlane.xlu1 %4292 }
0x1a7f   :  { %15007 = vst [vmem:[#allocation98_spill] sm:$0xff] %v11147_v30  ;;  %v4803_v3 = vadd.f32 %v4747_v28, %v11147_v30  ;;  %v5604_v28 = vrot.slane %v5562_v22, %v10417_v49 }
0x1a80   :  { %v9438_v11 = vpop.eup %9437 }
0x1a81   :  { %1948 = vrot.lane.b32.xlu0 %v9438_v11, %s9460_s30  ;;  %4844 = vperm.xlu1 %9152, %v4795_v31  }
0x1a82   :  { %v11151_v12 = vpop.xlane.xlu1 %4298 }
0x1a83   :  { %15008 = vst [vmem:[#allocation99_spill] sm:$0xff] %v11151_v12 }
0x1a85   :  { %1958 = vrot.lane.b32.xlu0 %v10301_v24, %s9461_s13  ;;  %4850 = vperm.xlu1 %9152, %v4797_v2   ;;  %v4802_v24 = vadd.f32 %v4740_v63, %v11141_v60  ;;  %v5590_v63 = vrot.slane %v5562_v22, %v10403_v7  ;;  %v4807_v2 = vadd.f32 %v11116_v59, %v11134_v47 }
0x1a86   :  { %v11158_v55 = vpop.xlane.xlu1 %4301  ;;  %v15011_v59 = vpack.c.bf16 %v9849_v19, %v9847_v6  ;;  %v5674_v6 = vrot.slane %v5563_v27, %v10564_v23  ;;  %v15013_v19 = vpack.c.bf16 %v9733_v32, %v9725_v38 }
0x1a87   :  { %15009 = vst [vmem:[#allocation100_spill] sm:$0xff] %v11158_v55  ;;  %v4806_v11 = vadd.f32 %v4768_v33, %v11158_v55  ;;  %v5618_v33 = vrot.slane %v5562_v22, %v10564_v23 }
0x1a89   :  { %4838 = vperm.xlu0 %9151, %v4793_v0   ;;  %4853 = vperm.xlu1 %9152, %v4798_v57   ;;  %v5569_v0 = vrot.slane %v5562_v22, %v9633_v18  ;;  %v5632_v57 = vrot.slane %v5563_v27, %v9639_v20 }
0x1a8a   :  { %v11162_v31 = vpop.xlane.xlu1 %4280 }
0x1a8b   :  { %15010 = vst [vmem:[#allocation101_spill] sm:$0xff] %v11162_v31  ;;  %v4799_v53 = vadd.f32 %v4719_v10, %v11162_v31  ;;  %v4805_v10 = vadd.f32 %v4761_v45, %v11151_v12  ;;  %v5611_v45 = vrot.slane %v5562_v22, %v10424_v8  ;;  %v5653_v22 = vrot.slane %v5563_v27, %v10410_v21 }
0x1a8d   :  { %4862 = vperm.xlu0 %9151, %v4801_v51   ;;  %4856 = vperm.xlu1 %9152, %v4799_v53   ;;  %v5639_v51 = vrot.slane %v5563_v27, %v10391_v48  ;;  %v5646_v53 = vrot.slane %v5563_v27, %v10403_v7 }
0x1a91   :  { %4865 = vperm.xlu0 %9151, %v4802_v24   ;;  %5578 = vbcast.lane.b32.xlu1 %v5576_v61, 256  ;;  %v15012_v24 = vpack.c.bf16 %v10279_v52, %v10277_v29  ;;  %v5660_v61 = vrot.slane %v5563_v27, %v10417_v49 }
0x1a95   :  { %4871 = vperm.xlu0 %9151, %v4804_v9   ;;  %5627 = vbcast.lane.b32.xlu1 %v5625_v25, 256  ;;  %v5667_v9 = vrot.slane %v5563_v27, %v10424_v8  ;;  %v4812_v25 = vpop.permute.xlu1 %4811 }
0x1a96   :  { %vm4816_vm4 = vcmp.eq.s32.totalorder %v4812_v25, 1 }
0x1a99   :  { %4868 = vperm.xlu0 %9151, %v4803_v3   ;;  %5585 = vbcast.lane.b32.xlu1 %v5583_v15, 256 }
0x1a9d   :  { %4874 = vperm.xlu0 %9151, %v4805_v10   ;;  %5592 = vbcast.lane.b32.xlu1 %v5590_v63, 256  ;;  %v11204_v63 = vpop.permute.xlu0 %4814 }
0x1a9e   :  { %vm4817_vm5 = vcmp.eq.s32.totalorder %v11204_v63, 1 }
0x1aa1   :  { %4877 = vperm.xlu0 %9151, %v4806_v11   ;;  %5599 = vbcast.lane.b32.xlu1 %v5597_v46, 256 }
0x1aa5   :  { %4880 = vperm.xlu0 %9151, %v4807_v2   ;;  %5606 = vbcast.lane.b32.xlu1 %v5604_v28, 256 }
0x1aa9   :  { %5571 = vbcast.lane.b32.xlu0 %v5569_v0, 256  ;;  %5613 = vbcast.lane.b32.xlu1 %v5611_v45, 256 }
0x1aad   :  { %5634 = vbcast.lane.b32.xlu0 %v5632_v57, 256  ;;  %5620 = vbcast.lane.b32.xlu1 %v5618_v33, 256 }
0x1aaf   :  { %v11200_v29 = vpop.permute.xlu1 %1946 }
0x1ab1   :  { %5641 = vbcast.lane.b32.xlu0 %v5639_v51, 256  ;;  %774 = vrot.lane.b32.xlu1 %v15011_v59, %s9461_s13 }
0x1ab3   :  { %v11202_v52 = vpop.permute.xlu1 %1956 }
0x1ab5   :  { %5648 = vbcast.lane.b32.xlu0 %v5646_v53, 256  ;;  %1843 = vrot.lane.b32.xlu1 %v15012_v24, %s9460_s30 }
0x1ab9   :  { %5655 = vbcast.lane.b32.xlu0 %v5653_v22, 256 }
0x1abd   :  { %5662 = vbcast.lane.b32.xlu0 %v5660_v61, 256 }
0x1ac1   :  { %5669 = vbcast.lane.b32.xlu0 %v5667_v9, 256 }
0x1ac5   :  { %5676 = vbcast.lane.b32.xlu0 %v5674_v6, 256 }
0x1ac9   :  { %558 = vrot.lane.b32.xlu0 %v15013_v19, %s9461_s13 }
0x1af0   :  { %v4836_v3 = vpop.permute.xlu1 %4835 }
0x1af1   :  { %v4885_v38 = vrot.slane %v4836_v3, %v10657_v37 }
0x1af3   :  { %v11206_v46 = vpop.permute.xlu0 %1948 }
0x1af4   :  { %v4860_v15 = vpop.permute.xlu1 %4859 }
0x1af7   :  { %v11208_v2 = vpop.permute.xlu0 %1958 }
0x1af8   :  { %v4842_v10 = vpop.permute.xlu1 %4841 }
0x1af9   :  { %v4893_v57 = vrot.slane %v4842_v10, %v10657_v37 }
0x1afc   :  { %v4848_v11 = vpop.permute.xlu1 %4847 }
0x1afd   :  { %v4901_v59 = vrot.slane %v4848_v11, %v10657_v37 }
0x1b00   :  { %v4845_v27 = vpop.permute.xlu1 %4844 }
0x1b01   :  { %v4897_v33 = vrot.slane %v4845_v27, %v10657_v37 }
0x1b04   :  { %v4851_v28 = vpop.permute.xlu1 %4850 }
0x1b05   :  { %v4905_v22 = vrot.slane %v4851_v28, %v10657_v37 }
0x1b08   :  { %v4839_v0 = vpop.permute.xlu0 %4838  ;;  %v4854_v45 = vpop.permute.xlu1 %4853 }
0x1b09   :  { %v4889_v32 = vrot.slane %v4839_v0, %v10657_v37  ;;  %v4909_v19 = vrot.slane %v4854_v45, %v10657_v37 }
0x1b0b   :  { %v4946_v51 = vsel %vm2831_vm6, %v4889_v32, %v4885_v38 }
0x1b0c   :  { %v4947_v53 = vsel %vm2833_vm7, %v4893_v57, %v4946_v51  ;;  %v4863_v24 = vpop.permute.xlu0 %4862  ;;  %v4857_v9 = vpop.permute.xlu1 %4856 }
0x1b0d   :  { %v4948_v61 = vsel %vm2835_vm8, %v4897_v33, %v4947_v53  ;;  %v4913_v10 = vrot.slane %v4857_v9, %v10657_v37  ;;  %v4921_v9 = vrot.slane %v4863_v24, %v10657_v37 }
0x1b0e   :  { %v4949_v6 = vsel %vm2837_vm9, %v4901_v59, %v4948_v61 }
0x1b0f   :  { %v4950_v3 = vsel %vm2839_vm10, %v4905_v22, %v4949_v6 }
0x1b10   :  { %v4951_v27 = vsel %vm14837_vm11, %v4909_v19, %v4950_v3  ;;  %v4866_v0 = vpop.permute.xlu0 %4865  ;;  %v11225_v38 = vpop.permute.xlu1 %5578 }
0x1b11   :  { %v4952_v11 = vsel %vm14836_vm12, %v4913_v10, %v4951_v27  ;;  %v4925_v3 = vrot.slane %v4866_v0, %v10657_v37  ;;  %v4917_v27 = vrot.slane %v4860_v15, %v10657_v37 }
0x1b12   :  { %v11228_v28 = vsel %vm4816_vm4, %v4952_v11, %v10958_v1 }
0x1b13   :  { %v4973_v32 = vrot.slane %v11228_v28, %v10438_v58  ;;  %v4953_v24 = vsel %vm2831_vm6, %v4921_v9, %v4917_v27  ;;  %v4966_v55 = vcombine.high %v11228_v28, %v11228_v28 }
0x1b14   :  { %v4872_v57 = vpop.permute.xlu0 %4871  ;;  %v11232_v45 = vpop.permute.xlu1 %5627 }
0x1b15   :  { %v4989_v33 = vrot.slane %v4973_v32, %v10438_v58  ;;  %v4981_v51 = vcombine.high %v4973_v32, %v4973_v32  ;;  %v4933_v15 = vrot.slane %v4872_v57, %v10657_v37 }
0x1b17   :  { %v5067_v59 = vrot.slane %v4989_v33, %v9633_v18  ;;  %v11237_v25 = vrot.slane %v4981_v51, %v10438_v58 }
0x1b18   :  { %v4869_v53 = vpop.permute.xlu0 %4868  ;;  %v11239_v22 = vpop.permute.xlu1 %5585 }
0x1b19   :  { %v11242_v1 = vadd.f32 %v10982_v41, %v5067_v59  ;;  %v5071_v61 = vrot.slane %v11237_v25, %v9633_v18  ;;  %v4929_v11 = vrot.slane %v4869_v53, %v10657_v37  ;;  %v4954_v59 = vsel %vm2833_vm7, %v4925_v3, %v4953_v24 }
0x1b1b   :  { %15014 = vst [vmem:[#allocation102_spill] sm:$0xff] %v11242_v1  ;;  %v5160_v6 = vsel %vm2218_vm3, %v11242_v1, -inf  ;;  %v11250_v19 = vadd.f32 %v10982_v41, %v5071_v61  ;;  %v4955_v31 = vsel %vm2835_vm8, %v4929_v11, %v4954_v59 }
0x1b1c   :  { %v4875_v10 = vpop.permute.xlu0 %4874  ;;  %5161 = vmax.xlane.f32.xlu1 %v5160_v6  ;;  %v11255_v32 = vpop.permute.xlu1 %5592 }
0x1b1d   :  { %15015 = vst [vmem:[#allocation103_spill] sm:$0xff] %v11250_v19  ;;  %v5163_v51 = vsel %vm2218_vm3, %v11250_v19, -inf  ;;  %v4937_v0 = vrot.slane %v4875_v10, %v10657_v37 }
0x1b1e   :  { %5164 = vmax.xlane.f32.xlu0 %v5163_v51  ;;  %v4956_v51 = vsel %vm2837_vm9, %v4933_v15, %v4955_v31  ;;  %v4980_v31 = vrot.slane %v4966_v55, %v10438_v58 }
0x1b1f   :  { %v4957_v9 = vsel %vm2839_vm10, %v4937_v0, %v4956_v51  ;;  %v5011_v0 = vcombine.high %v4989_v33, %v4989_v33 }
0x1b20   :  { %v4878_v61 = vpop.permute.xlu0 %4877  ;;  %v11263_v6 = vpop.permute.xlu1 %5599  ;;  %v4996_v51 = vrot.slane %v4980_v31, %v10438_v58  ;;  %v4982_v5 = vcombine.high %v4980_v31, %v4980_v31 }
0x1b21   :  { %v4941_v53 = vrot.slane %v4878_v61, %v10657_v37 }
0x1b22   :  { %v5083_v47 = vrot.slane %v4996_v51, %v9633_v18 }
0x1b23   :  { %v4958_v10 = vsel %vm14837_vm11, %v4941_v53, %v4957_v9 }
0x1b24   :  { %v4881_v12 = vpop.permute.xlu0 %4880  ;;  %v11272_v27 = vpop.permute.xlu1 %5606 }
0x1b25   :  { %v4945_v3 = vrot.slane %v4881_v12, %v10657_v37 }
0x1b27   :  { %v4959_v57 = vsel %vm14836_vm12, %v4945_v3, %v4958_v10  ;;  %v5075_v10 = vrot.slane %v5011_v0, %v9633_v18 }
0x1b28   :  { %v11278_v11 = vsel %vm4817_vm5, %v4959_v57, %v10961_v34  ;;  %v11280_v24 = vpop.permute.xlu0 %5571  ;;  %v11285_v61 = vpop.permute.xlu1 %5613 }
0x1b29   :  { %v5015_v59 = vcombine.high %v11278_v11, %v11278_v11  ;;  %v5022_v12 = vrot.slane %v11278_v11, %v10438_v58 }
0x1b2b   :  { %v5038_v63 = vrot.slane %v5022_v12, %v10438_v58  ;;  %v5030_v15 = vcombine.high %v5022_v12, %v5022_v12  ;;  %v5029_v53 = vrot.slane %v5015_v59, %v10438_v58 }
0x1b2c   :  { %v11291_v34 = vpop.permute.xlu0 %5634  ;;  %v11294_v9 = vpop.permute.xlu1 %5620 }
0x1b2d   :  { %v5099_v55 = vrot.slane %v5038_v63, %v9633_v18  ;;  %v5052_v3 = vrot.slane %v5030_v15, %v10438_v58  ;;  %v5060_v57 = vcombine.high %v5038_v63, %v5038_v63  ;;  %v5045_v30 = vrot.slane %v5029_v53, %v10438_v58 }
0x1b2e   :  { %v11314_v63 = vadd.f32 %v10982_v41, %v5075_v10 }
0x1b2f   :  { %v11300_v33 = vadd.f32 %v10982_v41, %v5099_v55  ;;  %v5103_v12 = vrot.slane %v5052_v3, %v9633_v18  ;;  %v5107_v59 = vrot.slane %v5060_v57, %v9633_v18  ;;  %v5013_v55 = vcombine.high %v11237_v25, %v11237_v25 }
0x1b30   :  { %v11305_v54 = vpop.permute.xlu0 %5641  ;;  %v775_v62 = vpop.permute.xlu1 %774  ;;  %15018 = vst [vmem:[#allocation106_spill] sm:$0xff] %v11314_v63  ;;  %v5031_v57 = vcombine.high %v5029_v53, %v5029_v53  ;;  %v5115_v50 = vrot.slane %v5045_v30, %v9633_v18  ;;  %v5166_v25 = vsel %vm2218_vm3, %v11314_v63, -inf }
0x1b31   :  { %15016 = vst [vmem:[#allocation104_spill] sm:$0xff] %v11300_v33  ;;  %v5184_v15 = vsel %vm2218_vm3, %v11300_v33, -inf  ;;  %v11311_v0 = vadd.f32 %v10982_v41, %v5103_v12  ;;  %777 = vst.msk [vmem:[#allocation3 + $0x30] sm:$0xff] %vm561_vm2, %v775_v62  ;;  %v11322_v60 = vadd.f32 %v10982_v41, %v5107_v59  ;;  %v5062_v12 = vcombine.high %v5052_v3, %v5052_v3 }
0x1b32   :  { %5185 = vmax.xlane.f32.xlu0 %v5184_v15  ;;  %v11330_v62 = vadd.f32 %v10982_v41, %v5083_v47  ;;  %v5079_v53 = vrot.slane %v5013_v55, %v9633_v18  ;;  %v5010_v15 = vrot.slane %v4982_v5, %v10438_v58  ;;  %v11338_v59 = vadd.f32 %v10982_v41, %v5115_v50 }
0x1b33   :  { %15017 = vst [vmem:[#allocation105_spill] sm:$0xff] %v11311_v0  ;;  %v5187_v31 = vsel %vm2218_vm3, %v11311_v0, -inf  ;;  %15019 = vst [vmem:[#allocation107_spill] sm:$0xff] %v11322_v60  ;;  %v5190_v3 = vsel %vm2218_vm3, %v11322_v60, -inf  ;;  %v5059_v43 = vrot.slane %v5031_v57, %v10438_v58 }
0x1b34   :  { %v11325_v36 = vpop.permute.xlu0 %5648  ;;  %5188 = vmax.xlane.f32.xlu1 %v5187_v31  ;;  %v1844_v10 = vpop.permute.xlu1 %1843  ;;  %15020 = vst [vmem:[#allocation108_spill] sm:$0xff] %v11330_v62  ;;  %15021 = vst [vmem:[#allocation109_spill] sm:$0xff] %v11338_v59  ;;  %v5111_v31 = vrot.slane %v5062_v12, %v9633_v18  ;;  %v5172_v47 = vsel %vm2218_vm3, %v11330_v62, -inf  ;;  %v11347_v5 = vadd.f32 %v10982_v41, %v5079_v53  ;;  %v5196_v50 = vsel %vm2218_vm3, %v11338_v59, -inf }
0x1b35   :  { %1846 = vst.msk [vmem:[#allocation3 + $0x30] sm:$0xff] %vm131_vm0, %v1844_v10  ;;  %v5087_v55 = vrot.slane %v5010_v15, %v9633_v18  ;;  %v5012_v10 = vcombine.high %v4996_v51, %v4996_v51  ;;  %v5119_v57 = vrot.slane %v5059_v43, %v9633_v18  ;;  %v5063_v39 = vcombine.high %v5059_v43, %v5059_v43 }
0x1b36   :  { %5167 = vmax.xlane.f32.xlu0 %v5166_v25  ;;  %15022 = vst [vmem:[#allocation110_spill] sm:$0xff] %v11347_v5  ;;  %v11353_v12 = vadd.f32 %v10982_v41, %v5111_v31  ;;  %v5061_v25 = vcombine.high %v5045_v30, %v5045_v30  ;;  %v5169_v53 = vsel %vm2218_vm3, %v11347_v5, -inf }
0x1b37   :  { %v11361_v44 = vadd.f32 %v10982_v41, %v5087_v55  ;;  %v5091_v51 = vrot.slane %v5012_v10, %v9633_v18  ;;  %v11368_v30 = vadd.f32 %v10982_v41, %v5119_v57  ;;  %v5127_v43 = vrot.slane %v5063_v39, %v9633_v18 }
0x1b38   :  { %v11342_v56 = vpop.permute.xlu0 %5655  ;;  %5191 = vmax.xlane.f32.xlu1 %v5190_v3  ;;  %15023 = vst [vmem:[#allocation111_spill] sm:$0xff] %v11353_v12  ;;  %v5193_v31 = vsel %vm2218_vm3, %v11353_v12, -inf }
0x1b39   :  { %15024 = vst [vmem:[#allocation112_spill] sm:$0xff] %v11361_v44  ;;  %15025 = vst [vmem:[#allocation113_spill] sm:$0xff] %v11368_v30  ;;  %v5175_v55 = vsel %vm2218_vm3, %v11361_v44, -inf  ;;  %v5199_v10 = vsel %vm2218_vm3, %v11368_v30, -inf }
0x1b3a   :  { %5173 = vmax.xlane.f32.xlu0 %v5172_v47  ;;  %v5014_v47 = vcombine.high %v5010_v15, %v5010_v15  ;;  %v11376_v15 = vadd.f32 %v10982_v41, %v5091_v51 }
0x1b3c   :  { %v11356_v3 = vpop.permute.xlu0 %5662  ;;  %5197 = vmax.xlane.f32.xlu1 %v5196_v50  ;;  %v2056_v4 = vld [vmem:[#allocation3 + $0x30] sm:$0xff]  ;;  %v5123_v50 = vrot.slane %v5061_v25, %v9633_v18  ;;  %15026 = vst [vmem:[#allocation114_spill] sm:$0xff] %v11376_v15 }
0x1b3d   :  { %9131 = vmatprep.mubr.msk.bf16.mxu0 %vm270_vm1, %v2056_v4  ;;  %v5095_v4 = vrot.slane %v5014_v47, %v9633_v18 }
0x1b3e   :  { %5170 = vmax.xlane.f32.xlu0 %v5169_v53  ;;  %v11382_v57 = vadd.f32 %v10982_v41, %v5123_v50  ;;  %v5178_v53 = vsel %vm2218_vm3, %v11376_v15, -inf }
0x1b3f   :  { %v11390_v51 = vadd.f32 %v10982_v41, %v5095_v4  ;;  %v1943_v4 = vsub.f32 1.0, %v11082_v35 }
0x1b40   :  { %v11371_v26 = vpop.permute.xlu0 %5669  ;;  %5194 = vmax.xlane.f32.xlu1 %v5193_v31  ;;  %15027 = vst [vmem:[#allocation115_spill] sm:$0xff] %v11382_v57  ;;  %v5202_v47 = vsel %vm2218_vm3, %v11382_v57, -inf  ;;  %v11395_v31 = vadd.f32 %v10982_v41, %v5127_v43  ;;  %v11408_v41 = vld [vmem:[%s14629_s1] sm:$0xff]  ;;  %v1942_v43 = vsub.f32 1.0, %v10963_v13 }
0x1b41   :  { %15028 = vst [vmem:[#allocation116_spill] sm:$0xff] %v11390_v51  ;;  %v5181_v39 = vsel %vm2218_vm3, %v11390_v51, -inf  ;;  %vm6462_vm15 = vcmp.gt.s32.totalorder %v11408_v41, 5 }
0x1b42   :  { %5176 = vmax.xlane.f32.xlu0 %v5175_v55  ;;  %15029 = vst [vmem:[#allocation117_spill] sm:$0xff] %v11395_v31  ;;  %v5205_v55 = vsel %vm2218_vm3, %v11395_v31, -inf }
0x1b44   :  { %v11385_v25 = vpop.permute.xlu0 %5676  ;;  %5200 = vmax.xlane.f32.xlu1 %v5199_v10  ;;  %v1963_v10 = vmul.f32 %v11082_v35, %v11208_v2  ;;  %v11417_v2 = vld [vmem:[#allocation4 + $0x50] sm:$0xff] }
0x1b46   :  { %5179 = vmax.xlane.f32.xlu0 %v5178_v53  ;;  %v1962_v53 = vmul.f32 %v10963_v13, %v11202_v52  ;;  %v6478_v13 = vrot.slane %v11417_v2, %v9639_v20  ;;  %v5711_v52 = vsel %vm5561_vm13, 1, %v14941_v16  ;;  %vm7365_vm13 = vcmp.gt.s32.totalorder %v11422_v42, 6 }
0x1b48   :  { %v559_v50 = vpop.permute.xlu0 %558  ;;  %5203 = vmax.xlane.f32.xlu1 %v5202_v47  ;;  %v1953_v47 = vmul.f32 %v11206_v46, %v1943_v4  ;;  %v6471_v4 = vrot.slane %v11417_v2, %v9633_v18 }
0x1b49   :  { %562 = vst.msk [vmem:[#allocation3 + $0x38] sm:$0xff] %vm561_vm2, %v559_v50  ;;  %vm5560_vm2 = vcmp.gt.s32.totalorder %v11408_v41, 4  ;;  %v1952_v50 = vmul.f32 %v11200_v29, %v1942_v43  ;;  %v11428_v29 = vld [vmem:[#allocation4 + $0x58] sm:$0xff] }
0x1b4a   :  { %5182 = vmax.xlane.f32.xlu0 %v5181_v39  ;;  %v1965_v39 = vadd.f32 %v1963_v10, %v1953_v47  ;;  %v6527_v46 = vrot.slane %v11428_v29, %v9633_v18  ;;  %v6534_v10 = vrot.slane %v11428_v29, %v9639_v20 }
0x1b4b   :  { %v1964_v35 = vadd.f32 %v1962_v53, %v1952_v50 }
0x1b4c   :  { %5206 = vmax.xlane.f32.xlu1 %v5205_v55  ;;  %v5710_v55 = vsel %vm5560_vm2, 1, %v14941_v16  ;;  %vm7364_vm2 = vcmp.gt.s32.totalorder %v11408_v41, 6 }
0x1b4d   :  { %v2038_v40 = vpack.c.bf16 %v1965_v39, %v1964_v35 }
0x1b5d   :  { %5713 = vperm.xlu1 %9152, %v5710_v55  }
0x1b60   :  { %2040 = vrot.lane.b32.xlu0 %v2038_v40, %s9460_s30 }
0x1b61   :  { %6480 = vbcast.lane.b32.xlu1 %v6478_v13, 256 }
0x1b64   :  { %5716 = vperm.xlu0 %9151, %v5711_v52  }
0x1b65   :  { %6529 = vbcast.lane.b32.xlu1 %v6527_v46, 256 }
0x1b68   :  { %6473 = vbcast.lane.b32.xlu0 %v6471_v4, 256 }
0x1b6c   :  { %6536 = vbcast.lane.b32.xlu0 %v6534_v10, 256 }
0x1ba9   :  { %v11437_v43 = vpop.xlane.xlu1 %5161 }
0x1baa   :  { %15030 = vst [vmem:[#allocation118_spill] sm:$0xff] %v11437_v43  ;;  %v5694_v40 = vadd.f32 %v11280_v24, %v11437_v43 }
0x1bab   :  { %v11441_v53 = vpop.xlane.xlu0 %5164 }
0x1bac   :  { %15031 = vst [vmem:[#allocation119_spill] sm:$0xff] %v11441_v53  ;;  %v5695_v47 = vadd.f32 %v11225_v38, %v11441_v53  ;;  %5737 = vperm.xlu1 %9152, %v5694_v40  }
0x1bae   :  { %5740 = vperm.xlu0 %9151, %v5695_v47  }
0x1bbf   :  { %v11445_v50 = vpop.xlane.xlu0 %5185 }
0x1bc0   :  { %15032 = vst [vmem:[#allocation120_spill] sm:$0xff] %v11445_v50  ;;  %v5702_v39 = vadd.f32 %v11232_v45, %v11445_v50 }
0x1bc1   :  { %v11449_v55 = vpop.xlane.xlu1 %5188 }
0x1bc2   :  { %15033 = vst [vmem:[#allocation121_spill] sm:$0xff] %v11449_v55  ;;  %v5703_v35 = vadd.f32 %v11291_v34, %v11449_v55  ;;  %5761 = vperm.xlu1 %9152, %v5702_v39  }
0x1bc3   :  { %v11453_v13 = vpop.xlane.xlu0 %5167 }
0x1bc4   :  { %15034 = vst [vmem:[#allocation122_spill] sm:$0xff] %v11453_v13  ;;  %v5696_v24 = vadd.f32 %v11239_v22, %v11453_v13  ;;  %5764 = vperm.xlu0 %9151, %v5703_v35  }
0x1bc5   :  { %v11457_v38 = vpop.xlane.xlu1 %5191 }
0x1bc6   :  { %15035 = vst [vmem:[#allocation123_spill] sm:$0xff] %v11457_v38  ;;  %v5704_v52 = vadd.f32 %v11305_v54, %v11457_v38  ;;  %5743 = vperm.xlu1 %9152, %v5696_v24  }
0x1bc7   :  { %v11461_v46 = vpop.xlane.xlu0 %5173 }
0x1bc8   :  { %15036 = vst [vmem:[#allocation124_spill] sm:$0xff] %v11461_v46  ;;  %v5698_v45 = vadd.f32 %v11263_v6, %v11461_v46  ;;  %5767 = vperm.xlu0 %9151, %v5704_v52  }
0x1bc9   :  { %v11465_v34 = vpop.xlane.xlu1 %5197 }
0x1bca   :  { %15037 = vst [vmem:[#allocation125_spill] sm:$0xff] %v11465_v34  ;;  %v5706_v4 = vadd.f32 %v11342_v56, %v11465_v34  ;;  %5749 = vperm.xlu1 %9152, %v5698_v45  }
0x1bcb   :  { %v11469_v22 = vpop.xlane.xlu0 %5170 }
0x1bcc   :  { %15038 = vst [vmem:[#allocation126_spill] sm:$0xff] %v11469_v22  ;;  %v5697_v10 = vadd.f32 %v11255_v32, %v11469_v22  ;;  %5773 = vperm.xlu0 %9151, %v5706_v4   ;;  %v6541_v4 = vrot.slane %v11428_v29, %v10391_v48 }
0x1bcd   :  { %v11473_v54 = vpop.xlane.xlu1 %5194 }
0x1bce   :  { %15039 = vst [vmem:[#allocation127_spill] sm:$0xff] %v11473_v54  ;;  %v5705_v40 = vadd.f32 %v11325_v36, %v11473_v54  ;;  %5746 = vperm.xlu1 %9152, %v5697_v10  }
0x1bcf   :  { %v11477_v6 = vpop.xlane.xlu0 %5176 }
0x1bd0   :  { %15040 = vst [vmem:[#allocation128_spill] sm:$0xff] %v11477_v6  ;;  %v5699_v47 = vadd.f32 %v11272_v27, %v11477_v6  ;;  %5770 = vperm.xlu0 %9151, %v5705_v40   ;;  %v6499_v40 = vrot.slane %v11417_v2, %v10410_v21 }
0x1bd1   :  { %v11481_v56 = vpop.xlane.xlu1 %5200 }
0x1bd2   :  { %15041 = vst [vmem:[#allocation129_spill] sm:$0xff] %v11481_v56  ;;  %v5707_v39 = vadd.f32 %v11356_v3, %v11481_v56  ;;  %5752 = vperm.xlu1 %9152, %v5699_v47   ;;  %v6555_v47 = vrot.slane %v11428_v29, %v10410_v21 }
0x1bd3   :  { %v11485_v32 = vpop.xlane.xlu0 %5179 }
0x1bd4   :  { %15042 = vst [vmem:[#allocation130_spill] sm:$0xff] %v11485_v32  ;;  %v5700_v35 = vadd.f32 %v11285_v61, %v11485_v32  ;;  %5776 = vperm.xlu0 %9151, %v5707_v39   ;;  %v6506_v39 = vrot.slane %v11417_v2, %v10417_v49 }
0x1bd5   :  { %v11489_v36 = vpop.xlane.xlu1 %5203 }
0x1bd6   :  { %15043 = vst [vmem:[#allocation131_spill] sm:$0xff] %v11489_v36  ;;  %v5708_v24 = vadd.f32 %v11371_v26, %v11489_v36  ;;  %5755 = vperm.xlu1 %9152, %v5700_v35   ;;  %v6485_v26 = vrot.slane %v11417_v2, %v10391_v48  ;;  %v6562_v35 = vrot.slane %v11428_v29, %v10417_v49 }
0x1bd7   :  { %v11493_v27 = vpop.xlane.xlu0 %5182 }
0x1bd8   :  { %15044 = vst [vmem:[#allocation132_spill] sm:$0xff] %v11493_v27  ;;  %v5701_v52 = vadd.f32 %v11294_v9, %v11493_v27  ;;  %5779 = vperm.xlu0 %9151, %v5708_v24   ;;  %v6492_v9 = vrot.slane %v11417_v2, %v10403_v7  ;;  %v6513_v24 = vrot.slane %v11417_v2, %v10424_v8 }
0x1bd9   :  { %v11497_v3 = vpop.xlane.xlu1 %5206 }
0x1bda   :  { %15045 = vst [vmem:[#allocation133_spill] sm:$0xff] %v11497_v3  ;;  %v5709_v45 = vadd.f32 %v11385_v25, %v11497_v3  ;;  %5758 = vperm.xlu1 %9152, %v5701_v52   ;;  %v6548_v25 = vrot.slane %v11428_v29, %v10403_v7  ;;  %v6569_v52 = vrot.slane %v11428_v29, %v10424_v8 }
0x1bdb   :  { %v2041_v61 = vpop.permute.xlu0 %2040 }
0x1bdc   :  { %2043 = vst.msk [vmem:[#allocation3 + $0x38] sm:$0xff] %vm131_vm0, %v2041_v61  ;;  %5782 = vperm.xlu0 %9151, %v5709_v45  }
0x1bdd   :  { %v5714_v45 = vpop.permute.xlu1 %5713 }
0x1bde   :  { %6487 = vbcast.lane.b32.xlu1 %v6485_v26, 256  ;;  %vm5718_vm0 = vcmp.eq.s32.totalorder %v5714_v45, 1 }
0x1be0   :  { %6543 = vbcast.lane.b32.xlu0 %v6541_v4, 256 }
0x1be1   :  { %v11523_v26 = vpop.permute.xlu1 %6480 }
0x1be2   :  { %6494 = vbcast.lane.b32.xlu1 %v6492_v9, 256 }
0x1be3   :  { %v2057_v10 = vld [vmem:[#allocation3 + $0x38] sm:$0xff]  ;;  %v5717_v61 = vpop.permute.xlu0 %5716 }
0x1be4   :  { %9132 = vmatmul.mubr.msk.bf16.gmra.mrb[44].mxu0 %vm270_vm1, %v2057_v10  ;;  %6550 = vbcast.lane.b32.xlu0 %v6548_v25, 256  ;;  %vm5719_vm1 = vcmp.eq.s32.totalorder %v5717_v61, 1 }
0x1be5   :  { %v11527_v9 = vpop.permute.xlu1 %6529 }
0x1be6   :  { %6501 = vbcast.lane.b32.xlu1 %v6499_v40, 256 }
0x1be7   :  { %v11525_v4 = vpop.permute.xlu0 %6473 }
0x1be8   :  { %6557 = vbcast.lane.b32.xlu0 %v6555_v47, 256 }
0x1bea   :  { %6508 = vbcast.lane.b32.xlu1 %v6506_v39, 256 }
0x1beb   :  { %v11529_v25 = vpop.permute.xlu0 %6536 }
0x1bec   :  { %6564 = vbcast.lane.b32.xlu0 %v6562_v35, 256 }
0x1bee   :  { %6515 = vbcast.lane.b32.xlu1 %v6513_v24, 256 }
0x1bf0   :  { %6571 = vbcast.lane.b32.xlu0 %v6569_v52, 256 }
0x1c2b   :  { %v5738_v10 = vpop.permute.xlu1 %5737 }
0x1c2c   :  { %v5787_v36 = vrot.slane %v5738_v10, %v10657_v37 }
0x1c2d   :  { %v5741_v40 = vpop.permute.xlu0 %5740 }
0x1c2e   :  { %v5791_v51 = vrot.slane %v5741_v40, %v10657_v37 }
0x1c30   :  { %v5848_v44 = vsel %vm2831_vm6, %v5791_v51, %v5787_v36 }
0x1c41   :  { %v5762_v47 = vpop.permute.xlu1 %5761 }
0x1c42   :  { %v5819_v6 = vrot.slane %v5762_v47, %v10657_v37 }
0x1c43   :  { %v5765_v39 = vpop.permute.xlu0 %5764 }
0x1c44   :  { %v5823_v15 = vrot.slane %v5765_v39, %v10657_v37 }
0x1c45   :  { %v5744_v35 = vpop.permute.xlu1 %5743 }
0x1c46   :  { %v5795_v27 = vrot.slane %v5744_v35, %v10657_v37  ;;  %v5855_v35 = vsel %vm2831_vm6, %v5823_v15, %v5819_v6 }
0x1c47   :  { %v5768_v24 = vpop.permute.xlu0 %5767 }
0x1c48   :  { %v5827_v30 = vrot.slane %v5768_v24, %v10657_v37  ;;  %v5849_v40 = vsel %vm2833_vm7, %v5795_v27, %v5848_v44 }
0x1c49   :  { %v5750_v17 = vpop.permute.xlu1 %5749 }
0x1c4a   :  { %v5803_v24 = vrot.slane %v5750_v17, %v10657_v37 }
0x1c4b   :  { %v5774_v31 = vpop.permute.xlu0 %5773 }
0x1c4c   :  { %v5835_v44 = vrot.slane %v5774_v31, %v10657_v37 }
0x1c4d   :  { %v5747_v3 = vpop.permute.xlu1 %5746 }
0x1c4e   :  { %v5799_v32 = vrot.slane %v5747_v3, %v10657_v37  ;;  %v5856_v3 = vsel %vm2833_vm7, %v5827_v30, %v5855_v35 }
0x1c4f   :  { %v5771_v52 = vpop.permute.xlu0 %5770 }
0x1c50   :  { %v5831_v12 = vrot.slane %v5771_v52, %v10657_v37  ;;  %v5850_v10 = vsel %vm2835_vm8, %v5799_v32, %v5849_v40 }
0x1c51   :  { %v5753_v57 = vpop.permute.xlu1 %5752  ;;  %v5851_v27 = vsel %vm2837_vm9, %v5803_v24, %v5850_v10 }
0x1c52   :  { %v5807_v39 = vrot.slane %v5753_v57, %v10657_v37  ;;  %v5857_v36 = vsel %vm2835_vm8, %v5831_v12, %v5856_v3 }
0x1c53   :  { %v5777_v56 = vpop.permute.xlu0 %5776  ;;  %v5858_v17 = vsel %vm2837_vm9, %v5835_v44, %v5857_v36 }
0x1c54   :  { %v5839_v47 = vrot.slane %v5777_v56, %v10657_v37  ;;  %v5852_v57 = vsel %vm2839_vm10, %v5807_v39, %v5851_v27 }
0x1c55   :  { %v5756_v54 = vpop.permute.xlu1 %5755 }
0x1c56   :  { %v5811_v59 = vrot.slane %v5756_v54, %v10657_v37  ;;  %v5859_v12 = vsel %vm2839_vm10, %v5839_v47, %v5858_v17 }
0x1c57   :  { %v5780_v51 = vpop.permute.xlu0 %5779 }
0x1c58   :  { %v5843_v15 = vrot.slane %v5780_v51, %v10657_v37  ;;  %v5853_v54 = vsel %vm14837_vm11, %v5811_v59, %v5852_v57 }
0x1c59   :  { %v5759_v6 = vpop.permute.xlu1 %5758 }
0x1c5a   :  { %v5815_v30 = vrot.slane %v5759_v6, %v10657_v37  ;;  %v5860_v52 = vsel %vm14837_vm11, %v5843_v15, %v5859_v12  ;;  %v11584_v15 = vld [vmem:[%s14628_s10] sm:$0xff] }
0x1c5b   :  { %v5783_v32 = vpop.permute.xlu0 %5782 }
0x1c5c   :  { %v5854_v56 = vsel %vm14836_vm12, %v5815_v30, %v5853_v54  ;;  %v5847_v31 = vrot.slane %v5783_v32, %v10657_v37 }
0x1c5d   :  { %v11561_v40 = vsel %vm5718_vm0, %v5854_v56, %v11228_v28 }
0x1c5e   :  { %v5861_v35 = vsel %vm14836_vm12, %v5847_v31, %v5860_v52  ;;  %v5875_v10 = vrot.slane %v11561_v40, %v10438_v58  ;;  %v5868_v59 = vcombine.high %v11561_v40, %v11561_v40 }
0x1c5f   :  { %v11569_v45 = vsel %vm5719_vm1, %v5861_v35, %v11278_v11 }
0x1c60   :  { %v5917_v39 = vcombine.high %v11569_v45, %v11569_v45  ;;  %v5924_v3 = vrot.slane %v11569_v45, %v10438_v58  ;;  %v5891_v28 = vrot.slane %v5875_v10, %v10438_v58  ;;  %v5883_v61 = vcombine.high %v5875_v10, %v5875_v10 }
0x1c61   :  { %v5882_v27 = vrot.slane %v5868_v59, %v10438_v58 }
0x1c62   :  { %v5969_v24 = vrot.slane %v5891_v28, %v9633_v18  ;;  %v5905_v51 = vrot.slane %v5883_v61, %v10438_v58  ;;  %v5932_v36 = vcombine.high %v5924_v3, %v5924_v3  ;;  %v5940_v47 = vrot.slane %v5924_v3, %v10438_v58 }
0x1c63   :  { %v5913_v44 = vcombine.high %v5891_v28, %v5891_v28  ;;  %v5931_v11 = vrot.slane %v5917_v39, %v10438_v58  ;;  %v5898_v35 = vrot.slane %v5882_v27, %v10438_v58 }
0x1c64   :  { %v11587_v6 = vadd.f32 %v11584_v15, %v5969_v24  ;;  %v5973_v57 = vrot.slane %v5905_v51, %v9633_v18  ;;  %v5954_v30 = vrot.slane %v5932_v36, %v10438_v58  ;;  %v6001_v17 = vrot.slane %v5940_v47, %v9633_v18 }
0x1c65   :  { %v5962_v54 = vcombine.high %v5940_v47, %v5940_v47  ;;  %v5947_v32 = vrot.slane %v5931_v11, %v10438_v58  ;;  %v5977_v3 = vrot.slane %v5913_v44, %v9633_v18  ;;  %v5933_v47 = vcombine.high %v5931_v11, %v5931_v11 }
0x1c66   :  { %15046 = vst [vmem:[#allocation134_spill] sm:$0xff] %v11587_v6  ;;  %v6062_v12 = vsel %vm2218_vm3, %v11587_v6, -inf  ;;  %v11596_v56 = vadd.f32 %v11584_v15, %v5973_v57  ;;  %v6005_v31 = vrot.slane %v5954_v30, %v9633_v18  ;;  %v11607_v39 = vadd.f32 %v11584_v15, %v6001_v17 }
0x1c67   :  { %6063 = vmax.xlane.f32.xlu1 %v6062_v12  ;;  %v6009_v52 = vrot.slane %v5962_v54, %v9633_v18  ;;  %v6017_v28 = vrot.slane %v5947_v32, %v9633_v18  ;;  %v5964_v36 = vcombine.high %v5954_v30, %v5954_v30  ;;  %v5884_v57 = vcombine.high %v5882_v27, %v5882_v27 }
0x1c68   :  { %15047 = vst [vmem:[#allocation135_spill] sm:$0xff] %v11596_v56  ;;  %v6065_v10 = vsel %vm2218_vm3, %v11596_v56, -inf  ;;  %v11604_v59 = vadd.f32 %v11584_v15, %v6005_v31  ;;  %15049 = vst [vmem:[#allocation137_spill] sm:$0xff] %v11607_v39  ;;  %v6086_v54 = vsel %vm2218_vm3, %v11607_v39, -inf  ;;  %v11619_v17 = vadd.f32 %v11584_v15, %v5977_v3 }
0x1c69   :  { %6066 = vmax.xlane.f32.xlu0 %v6065_v10  ;;  %v11614_v24 = vadd.f32 %v11584_v15, %v6009_v52  ;;  %v5985_v44 = vrot.slane %v5898_v35, %v9633_v18  ;;  %v5915_v12 = vcombine.high %v5905_v51, %v5905_v51  ;;  %v11625_v52 = vadd.f32 %v11584_v15, %v6017_v28 }
0x1c6a   :  { %15048 = vst [vmem:[#allocation136_spill] sm:$0xff] %v11604_v59  ;;  %v6089_v61 = vsel %vm2218_vm3, %v11604_v59, -inf  ;;  %15051 = vst [vmem:[#allocation139_spill] sm:$0xff] %v11619_v17  ;;  %v6013_v11 = vrot.slane %v5964_v36, %v9633_v18  ;;  %v5961_v27 = vrot.slane %v5933_v47, %v10438_v58  ;;  %v6068_v30 = vsel %vm2218_vm3, %v11619_v17, -inf }
0x1c6b   :  { %15050 = vst [vmem:[#allocation138_spill] sm:$0xff] %v11614_v24  ;;  %6090 = vmax.xlane.f32.xlu1 %v6089_v61  ;;  %v6092_v31 = vsel %vm2218_vm3, %v11614_v24, -inf  ;;  %15052 = vst [vmem:[#allocation140_spill] sm:$0xff] %v11625_v52  ;;  %v11632_v10 = vadd.f32 %v11584_v15, %v5985_v44  ;;  %v5981_v51 = vrot.slane %v5915_v12, %v9633_v18  ;;  %v6098_v28 = vsel %vm2218_vm3, %v11625_v52, -inf }
0x1c6c   :  { %v5912_v3 = vrot.slane %v5884_v57, %v10438_v58  ;;  %v11639_v61 = vadd.f32 %v11584_v15, %v6013_v11  ;;  %v6021_v36 = vrot.slane %v5961_v27, %v9633_v18  ;;  %v5963_v47 = vcombine.high %v5947_v32, %v5947_v32 }
0x1c6d   :  { %6087 = vmax.xlane.f32.xlu0 %v6086_v54  ;;  %15053 = vst [vmem:[#allocation141_spill] sm:$0xff] %v11632_v10  ;;  %v6074_v54 = vsel %vm2218_vm3, %v11632_v10, -inf  ;;  %v11645_v44 = vadd.f32 %v11584_v15, %v5981_v51  ;;  %v5914_v57 = vcombine.high %v5898_v35, %v5898_v35  ;;  %v5965_v32 = vcombine.high %v5961_v27, %v5961_v27 }
0x1c6e   :  { %15054 = vst [vmem:[#allocation142_spill] sm:$0xff] %v11639_v61  ;;  %v5989_v12 = vrot.slane %v5912_v3, %v9633_v18  ;;  %v11651_v11 = vadd.f32 %v11584_v15, %v6021_v36  ;;  %v5916_v35 = vcombine.high %v5912_v3, %v5912_v3 }
0x1c6f   :  { %6093 = vmax.xlane.f32.xlu1 %v6092_v31  ;;  %15055 = vst [vmem:[#allocation143_spill] sm:$0xff] %v11645_v44  ;;  %v6095_v31 = vsel %vm2218_vm3, %v11639_v61, -inf  ;;  %v5993_v34 = vrot.slane %v5914_v57, %v9633_v18 }
0x1c70   :  { %15056 = vst [vmem:[#allocation144_spill] sm:$0xff] %v11651_v11  ;;  %v11657_v51 = vadd.f32 %v11584_v15, %v5989_v12  ;;  %v5997_v12 = vrot.slane %v5916_v35, %v9633_v18  ;;  %v6520_v35 = vrot.slane %v11417_v2, %v10564_v23 }
0x1c71   :  { %6069 = vmax.xlane.f32.xlu0 %v6068_v30  ;;  %v6025_v30 = vrot.slane %v5963_v47, %v9633_v18  ;;  %v6029_v47 = vrot.slane %v5965_v32, %v9633_v18 }
0x1c72   :  { %15057 = vst [vmem:[#allocation145_spill] sm:$0xff] %v11657_v51  ;;  %v6077_v27 = vsel %vm2218_vm3, %v11657_v51, -inf  ;;  %v11680_v32 = vadd.f32 %v11584_v15, %v5997_v12 }
0x1c73   :  { %6099 = vmax.xlane.f32.xlu1 %v6098_v28  ;;  %v6071_v28 = vsel %vm2218_vm3, %v11645_v44, -inf  ;;  %v11663_v36 = vadd.f32 %v11584_v15, %v6025_v30  ;;  %v11675_v57 = vadd.f32 %v11584_v15, %v6029_v47 }
0x1c74   :  { %15061 = vst [vmem:[#allocation149_spill] sm:$0xff] %v11680_v32 }
0x1c75   :  { %6075 = vmax.xlane.f32.xlu0 %v6074_v54  ;;  %v6101_v54 = vsel %vm2218_vm3, %v11651_v11, -inf  ;;  %15058 = vst [vmem:[#allocation146_spill] sm:$0xff] %v11663_v36  ;;  %v6104_v3 = vsel %vm2218_vm3, %v11663_v36, -inf  ;;  %15060 = vst [vmem:[#allocation148_spill] sm:$0xff] %v11675_v57 }
0x1c77   :  { %6096 = vmax.xlane.f32.xlu1 %v6095_v31  ;;  %v11669_v31 = vadd.f32 %v11584_v15, %v5993_v34  ;;  %v6107_v34 = vsel %vm2218_vm3, %v11675_v57, -inf }
0x1c79   :  { %6072 = vmax.xlane.f32.xlu0 %v6071_v28  ;;  %15059 = vst [vmem:[#allocation147_spill] sm:$0xff] %v11669_v31  ;;  %v6080_v30 = vsel %vm2218_vm3, %v11669_v31, -inf  ;;  %v6083_v28 = vsel %vm2218_vm3, %v11680_v32, -inf }
0x1c7b   :  { %6102 = vmax.xlane.f32.xlu1 %v6101_v54  ;;  %v6576_v54 = vrot.slane %v11428_v29, %v10564_v23  ;;  %v6488_v29 = vpop.permute.xlu1 %6487 }
0x1c7d   :  { %6078 = vmax.xlane.f32.xlu0 %v6077_v27  ;;  %v9452_v27 = vld [vmem:[%s14626_s7] ss:$0 sm:$0xff] }
0x1c7f   :  { %6105 = vmax.xlane.f32.xlu1 %v6104_v3 }
0x1c81   :  { %6081 = vmax.xlane.f32.xlu0 %v6080_v30 }
0x1c83   :  { %6108 = vmax.xlane.f32.xlu1 %v6107_v34 }
0x1c85   :  { %6084 = vmax.xlane.f32.xlu0 %v6083_v28 }
0x1c94   :  { %6522 = vbcast.lane.b32.xlu1 %v6520_v35, 256  ;;  %v6544_v35 = vpop.permute.xlu0 %6543 }
0x1c98   :  { %v6551_v46 = vpop.permute.xlu0 %6550 }
0x1c9b   :  { %6578 = vbcast.lane.b32.xlu0 %v6576_v54, 256  ;;  %v6495_v54 = vpop.permute.xlu1 %6494 }
0x1c9f   :  { %v6502_v60 = vpop.permute.xlu1 %6501 }
0x1ca3   :  { %v6509_v38 = vpop.permute.xlu1 %6508 }
0x1ca7   :  { %v6516_v5 = vpop.permute.xlu1 %6515 }
0x1cb7   :  { %v9133_v47 = vpop.f32.mrb[44].mxu0 }
0x1cb8   :  { %v2212_v12 = vadd.f32 %v9452_v27, %v9133_v47  ;;  %v2203_v3 = vpop.f32.mrb[45].mxu0  ;;  %v6558_v47 = vpop.permute.xlu0 %6557 }
0x1cb9   :  { %v2204_v30 = vadd.f32 %v9452_v27, %v2203_v3  ;;  %v9134_v34 = vpop.f32.mrb[46].mxu0 }
0x1cba   :  { %2233 = vst.msk [vmem:[#allocation4 + $0x70] sm:$0xff] %vm2218_vm3, %v2212_v12  ;;  %v2215_v28 = vadd.f32 %v9452_v27, %v9134_v34  ;;  %v2206_v62 = vpop.f32.mrb[47].mxu0 }
0x1cbb   :  { %2231 = vst.msk [vmem:[#allocation4 + $0x60] sm:$0xff] %vm2218_vm3, %v2204_v30  ;;  %v2207_v2 = vadd.f32 %v9452_v27, %v2206_v62 }
0x1cbc   :  { %2234 = vst.msk [vmem:[#allocation4 + $0x78] sm:$0xff] %vm2218_vm3, %v2215_v28  ;;  %v6565_v3 = vpop.permute.xlu0 %6564 }
0x1cbd   :  { %2232 = vst.msk [vmem:[#allocation4 + $0x68] sm:$0xff] %vm2218_vm3, %v2207_v2 }
0x1cc0   :  { %v6572_v22 = vpop.permute.xlu0 %6571 }
0x1cf4   :  { %v11697_v12 = vpop.xlane.xlu1 %6063 }
0x1cf5   :  { %15062 = vst [vmem:[#allocation150_spill] sm:$0xff] %v11697_v12  ;;  %v6596_v30 = vadd.f32 %v11525_v4, %v11697_v12 }
0x1cf6   :  { %v11701_v62 = vpop.xlane.xlu0 %6066 }
0x1cf7   :  { %15063 = vst [vmem:[#allocation151_spill] sm:$0xff] %v11701_v62  ;;  %v6597_v27 = vadd.f32 %v11523_v26, %v11701_v62  ;;  %6639 = vperm.xlu1 %9152, %v6596_v30  }
0x1cf8   :  { %v11705_v34 = vpop.xlane.xlu1 %6090 }
0x1cf9   :  { %15064 = vst [vmem:[#allocation152_spill] sm:$0xff] %v11705_v34  ;;  %6642 = vperm.xlu0 %9151, %v6597_v27   ;;  %v6605_v2 = vadd.f32 %v11529_v25, %v11705_v34 }
0x1cfa   :  { %v11707_v28 = vpop.xlane.xlu0 %6087 }
0x1cfb   :  { %15065 = vst [vmem:[#allocation153_spill] sm:$0xff] %v11707_v28  ;;  %v6604_v0 = vadd.f32 %v11527_v9, %v11707_v28 }
0x1cfc   :  { %v11713_v55 = vpop.xlane.xlu1 %6093 }
0x1cfd   :  { %15066 = vst [vmem:[#allocation154_spill] sm:$0xff] %v11713_v55  ;;  %6663 = vperm.xlu1 %9152, %v6604_v0   ;;  %6666 = vperm.xlu0 %9151, %v6605_v2   ;;  %v6606_v26 = vadd.f32 %v6544_v35, %v11713_v55 }
0x1cfe   :  { %v11715_v4 = vpop.xlane.xlu0 %6069 }
0x1cff   :  { %15067 = vst [vmem:[#allocation155_spill] sm:$0xff] %v11715_v4  ;;  %v6598_v30 = vadd.f32 %v6488_v29, %v11715_v4 }
0x1d00   :  { %v11719_v63 = vpop.xlane.xlu1 %6099 }
0x1d01   :  { %15068 = vst [vmem:[#allocation156_spill] sm:$0xff] %v11719_v63  ;;  %6645 = vperm.xlu1 %9152, %v6598_v30   ;;  %6669 = vperm.xlu0 %9151, %v6606_v26   ;;  %v6608_v25 = vadd.f32 %v6558_v47, %v11719_v63 }
0x1d02   :  { %v11721_v27 = vpop.xlane.xlu0 %6075 }
0x1d03   :  { %15069 = vst [vmem:[#allocation157_spill] sm:$0xff] %v11721_v27  ;;  %v6600_v9 = vadd.f32 %v6502_v60, %v11721_v27 }
0x1d04   :  { %v11725_v13 = vpop.xlane.xlu1 %6096 }
0x1d05   :  { %15070 = vst [vmem:[#allocation158_spill] sm:$0xff] %v11725_v13  ;;  %6651 = vperm.xlu1 %9152, %v6600_v9   ;;  %6675 = vperm.xlu0 %9151, %v6608_v25   ;;  %v6607_v35 = vadd.f32 %v6551_v46, %v11725_v13 }
0x1d06   :  { %v11727_v0 = vpop.xlane.xlu0 %6072 }
0x1d07   :  { %15071 = vst [vmem:[#allocation159_spill] sm:$0xff] %v11727_v0  ;;  %v6599_v29 = vadd.f32 %v6495_v54, %v11727_v0 }
0x1d08   :  { %v11731_v2 = vpop.xlane.xlu1 %6102 }
0x1d09   :  { %15072 = vst [vmem:[#allocation160_spill] sm:$0xff] %v11731_v2  ;;  %6648 = vperm.xlu1 %9152, %v6599_v29   ;;  %6672 = vperm.xlu0 %9151, %v6607_v35   ;;  %v6609_v47 = vadd.f32 %v6565_v3, %v11731_v2  ;;  %v6613_v3 = vsel %vm6463_vm14, 1, %v14941_v16  ;;  %v7366_v29 = vld [vmem:[#allocation4 + $0x60] sm:$0xff] }
0x1d0a   :  { %v11733_v26 = vpop.xlane.xlu0 %6078  ;;  %v7380_v33 = vrot.slane %v7366_v29, %v9639_v20 }
0x1d0b   :  { %15073 = vst [vmem:[#allocation161_spill] sm:$0xff] %v11733_v26  ;;  %v6601_v60 = vadd.f32 %v6509_v38, %v11733_v26 }
0x1d0c   :  { %v11737_v30 = vpop.xlane.xlu1 %6105 }
0x1d0d   :  { %15074 = vst [vmem:[#allocation162_spill] sm:$0xff] %v11737_v30  ;;  %6654 = vperm.xlu1 %9152, %v6601_v60   ;;  %6678 = vperm.xlu0 %9151, %v6609_v47   ;;  %v6610_v46 = vadd.f32 %v6572_v22, %v11737_v30  ;;  %v6612_v22 = vsel %vm6462_vm15, 1, %v14941_v16  ;;  %v11753_v60 = vld [vmem:[#allocation4 + $0x68] sm:$0xff] }
0x1d0e   :  { %v11739_v25 = vpop.xlane.xlu0 %6081 }
0x1d0f   :  { %15075 = vst [vmem:[#allocation163_spill] sm:$0xff] %v11739_v25  ;;  %v6602_v54 = vadd.f32 %v6516_v5, %v11739_v25  ;;  %v7373_v5 = vrot.slane %v7366_v29, %v9633_v18 }
0x1d10   :  { %v11744_v9 = vpop.xlane.xlu1 %6108 }
0x1d11   :  { %15076 = vst [vmem:[#allocation164_spill] sm:$0xff] %v11744_v9  ;;  %6657 = vperm.xlu1 %9152, %v6602_v54   ;;  %6681 = vperm.xlu0 %9151, %v6610_v46   ;;  %v7436_v46 = vrot.slane %v11753_v60, %v9639_v20 }
0x1d12   :  { %v11747_v35 = vpop.xlane.xlu0 %6084 }
0x1d13   :  { %15077 = vst [vmem:[#allocation165_spill] sm:$0xff] %v11747_v35 }
0x1d14   :  { %v6523_v38 = vpop.permute.xlu1 %6522 }
0x1d15   :  { %v6603_v47 = vadd.f32 %v6523_v38, %v11747_v35  ;;  %6618 = vperm.xlu0 %9151, %v6613_v3   ;;  %v7429_v38 = vrot.slane %v11753_v60, %v9633_v18 }
0x1d16   :  { %v6579_v54 = vpop.permute.xlu0 %6578 }
0x1d17   :  { %6660 = vperm.xlu1 %9152, %v6603_v47   ;;  %v6611_v3 = vadd.f32 %v6579_v54, %v11744_v9  ;;  %v7443_v47 = vrot.slane %v11753_v60, %v10391_v48  ;;  %v7401_v54 = vrot.slane %v7366_v29, %v10410_v21 }
0x1d19   :  { %7375 = vbcast.lane.b32.xlu0 %v7373_v5, 256  ;;  %v7387_v5 = vrot.slane %v7366_v29, %v10391_v48 }
0x1d1b   :  { %6615 = vperm.xlu1 %9152, %v6612_v22   ;;  %v7450_v22 = vrot.slane %v11753_v60, %v10403_v7 }
0x1d1d   :  { %7438 = vbcast.lane.b32.xlu0 %v7436_v46, 256  ;;  %v7394_v46 = vrot.slane %v7366_v29, %v10403_v7 }
0x1d1f   :  { %7382 = vbcast.lane.b32.xlu1 %v7380_v33, 256  ;;  %v7457_v33 = vrot.slane %v11753_v60, %v10410_v21 }
0x1d21   :  { %6684 = vperm.xlu0 %9151, %v6611_v3   ;;  %v7464_v3 = vrot.slane %v11753_v60, %v10417_v49 }
0x1d23   :  { %7431 = vbcast.lane.b32.xlu1 %v7429_v38, 256  ;;  %v7408_v38 = vrot.slane %v7366_v29, %v10417_v49 }
0x1d25   :  { %7445 = vbcast.lane.b32.xlu0 %v7443_v47, 256  ;;  %v7471_v47 = vrot.slane %v11753_v60, %v10424_v8 }
0x1d27   :  { %7389 = vbcast.lane.b32.xlu1 %v7387_v5, 256  ;;  %v7415_v5 = vrot.slane %v7366_v29, %v10424_v8 }
0x1d29   :  { %7452 = vbcast.lane.b32.xlu0 %v7450_v22, 256  ;;  %v7422_v22 = vrot.slane %v7366_v29, %v10564_v23 }
0x1d2b   :  { %7396 = vbcast.lane.b32.xlu1 %v7394_v46, 256 }
0x1d2d   :  { %7459 = vbcast.lane.b32.xlu0 %v7457_v33, 256 }
0x1d2f   :  { %7403 = vbcast.lane.b32.xlu1 %v7401_v54, 256 }
0x1d31   :  { %7466 = vbcast.lane.b32.xlu0 %v7464_v3, 256 }
0x1d33   :  { %7410 = vbcast.lane.b32.xlu1 %v7408_v38, 256 }
0x1d35   :  { %7473 = vbcast.lane.b32.xlu0 %v7471_v47, 256 }
0x1d37   :  { %7417 = vbcast.lane.b32.xlu1 %v7415_v5, 256 }
0x1d3b   :  { %7424 = vbcast.lane.b32.xlu1 %v7422_v22, 256 }
0x1d76   :  { %v6640_v46 = vpop.permute.xlu1 %6639 }
0x1d77   :  { %v6689_v29 = vrot.slane %v6640_v46, %v10657_v37 }
0x1d78   :  { %v6643_v33 = vpop.permute.xlu0 %6642 }
0x1d79   :  { %v6693_v47 = vrot.slane %v6643_v33, %v10657_v37 }
0x1d7b   :  { %v6750_v32 = vsel %vm2831_vm6, %v6693_v47, %v6689_v29 }
0x1d7c   :  { %v6667_v54 = vpop.permute.xlu0 %6666  ;;  %v6664_v50 = vpop.permute.xlu1 %6663 }
0x1d7d   :  { %v6725_v52 = vrot.slane %v6667_v54, %v10657_v37  ;;  %v6721_v46 = vrot.slane %v6664_v50, %v10657_v37 }
0x1d7f   :  { %v6757_v29 = vsel %vm2831_vm6, %v6725_v52, %v6721_v46 }
0x1d80   :  { %v6670_v1 = vpop.permute.xlu0 %6669  ;;  %v6646_v43 = vpop.permute.xlu1 %6645 }
0x1d81   :  { %v6697_v36 = vrot.slane %v6646_v43, %v10657_v37  ;;  %v6729_v47 = vrot.slane %v6670_v1, %v10657_v37 }
0x1d83   :  { %v6751_v35 = vsel %vm2833_vm7, %v6697_v36, %v6750_v32  ;;  %v6758_v50 = vsel %vm2833_vm7, %v6729_v47, %v6757_v29 }
0x1d84   :  { %v6676_v3 = vpop.permute.xlu0 %6675  ;;  %v6652_v19 = vpop.permute.xlu1 %6651 }
0x1d85   :  { %v6705_v25 = vrot.slane %v6652_v19, %v10657_v37 }
0x1d88   :  { %v6673_v53 = vpop.permute.xlu0 %6672  ;;  %v6649_v38 = vpop.permute.xlu1 %6648 }
0x1d89   :  { %v6701_v22 = vrot.slane %v6649_v38, %v10657_v37 }
0x1d8b   :  { %v6752_v2 = vsel %vm2835_vm8, %v6701_v22, %v6751_v35  ;;  %v6733_v35 = vrot.slane %v6673_v53, %v10657_v37  ;;  %v6737_v22 = vrot.slane %v6676_v3, %v10657_v37 }
0x1d8c   :  { %v6679_v57 = vpop.permute.xlu0 %6678  ;;  %v6655_v9 = vpop.permute.xlu1 %6654  ;;  %v6753_v36 = vsel %vm2837_vm9, %v6705_v25, %v6752_v2 }
0x1d8d   :  { %v6709_v31 = vrot.slane %v6655_v9, %v10657_v37  ;;  %v6759_v25 = vsel %vm2835_vm8, %v6733_v35, %v6758_v50  ;;  %v6741_v53 = vrot.slane %v6679_v57, %v10657_v37 }
0x1d8e   :  { %v6760_v46 = vsel %vm2837_vm9, %v6737_v22, %v6759_v25 }
0x1d8f   :  { %v6754_v9 = vsel %vm2839_vm10, %v6709_v31, %v6753_v36  ;;  %v6761_v47 = vsel %vm2839_vm10, %v6741_v53, %v6760_v46 }
0x1d90   :  { %v6682_v5 = vpop.permute.xlu0 %6681  ;;  %v6658_v30 = vpop.permute.xlu1 %6657 }
0x1d91   :  { %v6713_v33 = vrot.slane %v6658_v30, %v10657_v37  ;;  %v6745_v52 = vrot.slane %v6682_v5, %v10657_v37 }
0x1d93   :  { %v6755_v19 = vsel %vm14837_vm11, %v6713_v33, %v6754_v9  ;;  %v6762_v3 = vsel %vm14837_vm11, %v6745_v52, %v6761_v47 }
0x1d94   :  { %v6619_v11 = vpop.permute.xlu0 %6618 }
0x1d95   :  { %vm6621_vm5 = vcmp.eq.s32.totalorder %v6619_v11, 1 }
0x1d96   :  { %v6661_v43 = vpop.permute.xlu1 %6660 }
0x1d97   :  { %v6717_v38 = vrot.slane %v6661_v43, %v10657_v37 }
0x1d98   :  { %v11792_v32 = vpop.permute.xlu0 %7375 }
0x1d99   :  { %v6756_v54 = vsel %vm14836_vm12, %v6717_v38, %v6755_v19 }
0x1d9a   :  { %v6616_v30 = vpop.permute.xlu1 %6615 }
0x1d9b   :  { %vm6620_vm4 = vcmp.eq.s32.totalorder %v6616_v30, 1 }
0x1d9c   :  { %v11801_v1 = vsel %vm6620_vm4, %v6756_v54, %v11561_v40  ;;  %v11803_v2 = vpop.permute.xlu0 %7438 }
0x1d9d   :  { %v6777_v31 = vrot.slane %v11801_v1, %v10438_v58  ;;  %v6770_v40 = vcombine.high %v11801_v1, %v11801_v1 }
0x1d9f   :  { %v6785_v33 = vcombine.high %v6777_v31, %v6777_v31  ;;  %v6793_v43 = vrot.slane %v6777_v31, %v10438_v58  ;;  %v6784_v30 = vrot.slane %v6770_v40, %v10438_v58 }
0x1da0   :  { %v6685_v38 = vpop.permute.xlu0 %6684 }
0x1da1   :  { %v6749_v57 = vrot.slane %v6685_v38, %v10657_v37  ;;  %v6871_v36 = vrot.slane %v6793_v43, %v9633_v18  ;;  %v6807_v35 = vrot.slane %v6785_v33, %v10438_v58  ;;  %v6815_v54 = vcombine.high %v6793_v43, %v6793_v43 }
0x1da2   :  { %v6800_v33 = vrot.slane %v6784_v30, %v10438_v58 }
0x1da3   :  { %v6763_v5 = vsel %vm14836_vm12, %v6749_v57, %v6762_v3  ;;  %v11822_v9 = vadd.f32 %v11584_v15, %v6871_v36  ;;  %v6875_v19 = vrot.slane %v6807_v35, %v9633_v18  ;;  %v6879_v40 = vrot.slane %v6815_v54, %v9633_v18 }
0x1da4   :  { %v11827_v29 = vsel %vm6621_vm5, %v6763_v5, %v11569_v45  ;;  %v6887_v5 = vrot.slane %v6800_v33, %v9633_v18 }
0x1da5   :  { %v6819_v50 = vcombine.high %v11827_v29, %v11827_v29  ;;  %v6964_v25 = vsel %vm2218_vm3, %v11822_v9, -inf  ;;  %v11834_v11 = vadd.f32 %v11584_v15, %v6875_v19  ;;  %v6826_v53 = vrot.slane %v11827_v29, %v10438_v58 }
0x1da6   :  { %6965 = vmax.xlane.f32.xlu1 %v6964_v25  ;;  %v6786_v19 = vcombine.high %v6784_v30, %v6784_v30  ;;  %v11859_v54 = vadd.f32 %v11584_v15, %v6879_v40 }
0x1da7   :  { %v6967_v31 = vsel %vm2218_vm3, %v11834_v11, -inf  ;;  %v6842_v45 = vrot.slane %v6826_v53, %v10438_v58  ;;  %v6834_v22 = vcombine.high %v6826_v53, %v6826_v53  ;;  %v6833_v52 = vrot.slane %v6819_v50, %v10438_v58 }
0x1da8   :  { %6968 = vmax.xlane.f32.xlu0 %v6967_v31  ;;  %15080 = vst [vmem:[#allocation168_spill] sm:$0xff] %v11859_v54  ;;  %v6817_v53 = vcombine.high %v6807_v35, %v6807_v35 }
0x1da9   :  { %v6903_v43 = vrot.slane %v6842_v45, %v9633_v18  ;;  %v6856_v46 = vrot.slane %v6834_v22, %v10438_v58  ;;  %v6864_v38 = vcombine.high %v6842_v45, %v6842_v45  ;;  %v6849_v3 = vrot.slane %v6833_v52, %v10438_v58 }
0x1daa   :  { %v6835_v31 = vcombine.high %v6833_v52, %v6833_v52  ;;  %v6883_v35 = vrot.slane %v6817_v53, %v9633_v18  ;;  %v6814_v52 = vrot.slane %v6786_v19, %v10438_v58  ;;  %v6816_v53 = vcombine.high %v6800_v33, %v6800_v33 }
0x1dab   :  { %v11847_v47 = vadd.f32 %v11584_v15, %v6903_v43  ;;  %v6907_v57 = vrot.slane %v6856_v46, %v9633_v18  ;;  %v6911_v36 = vrot.slane %v6864_v38, %v9633_v18  ;;  %v6919_v30 = vrot.slane %v6849_v3, %v9633_v18 }
0x1dac   :  { %v6866_v43 = vcombine.high %v6856_v46, %v6856_v46  ;;  %v6970_v38 = vsel %vm2218_vm3, %v11859_v54, -inf  ;;  %v6891_v19 = vrot.slane %v6814_v52, %v9633_v18  ;;  %v6895_v63 = vrot.slane %v6816_v53, %v9633_v18 }
0x1dad   :  { %15078 = vst [vmem:[#allocation166_spill] sm:$0xff] %v11847_v47  ;;  %v6988_v50 = vsel %vm2218_vm3, %v11847_v47, -inf  ;;  %v11856_v25 = vadd.f32 %v11584_v15, %v6907_v57  ;;  %v11864_v22 = vadd.f32 %v11584_v15, %v6911_v36  ;;  %v11870_v57 = vadd.f32 %v11584_v15, %v6887_v5 }
0x1dae   :  { %6989 = vmax.xlane.f32.xlu0 %v6988_v50  ;;  %v11877_v36 = vadd.f32 %v11584_v15, %v6919_v30  ;;  %v6915_v46 = vrot.slane %v6866_v43, %v9633_v18  ;;  %v6863_v50 = vrot.slane %v6835_v31, %v10438_v58  ;;  %v6865_v31 = vcombine.high %v6849_v3, %v6849_v3 }
0x1daf   :  { %15079 = vst [vmem:[#allocation167_spill] sm:$0xff] %v11856_v25  ;;  %v6991_v45 = vsel %vm2218_vm3, %v11856_v25, -inf  ;;  %15081 = vst [vmem:[#allocation169_spill] sm:$0xff] %v11864_v22  ;;  %v6994_v40 = vsel %vm2218_vm3, %v11864_v22, -inf  ;;  %v6976_v5 = vsel %vm2218_vm3, %v11870_v57, -inf  ;;  %v6818_v33 = vcombine.high %v6814_v52, %v6814_v52 }
0x1db0   :  { %6992 = vmax.xlane.f32.xlu1 %v6991_v45  ;;  %15082 = vst [vmem:[#allocation170_spill] sm:$0xff] %v11870_v57  ;;  %15083 = vst [vmem:[#allocation171_spill] sm:$0xff] %v11877_v36  ;;  %v11884_v45 = vadd.f32 %v11584_v15, %v6883_v35  ;;  %v11890_v30 = vadd.f32 %v11584_v15, %v6915_v46  ;;  %v6923_v43 = vrot.slane %v6863_v50, %v9633_v18 }
0x1db1   :  { %v11896_v35 = vadd.f32 %v11584_v15, %v6891_v19  ;;  %v6927_v51 = vrot.slane %v6865_v31, %v9633_v18  ;;  %v6867_v3 = vcombine.high %v6863_v50, %v6863_v50  ;;  %v11908_v19 = vadd.f32 %v11584_v15, %v6895_v63 }
0x1db2   :  { %6971 = vmax.xlane.f32.xlu0 %v6970_v38  ;;  %15084 = vst [vmem:[#allocation172_spill] sm:$0xff] %v11884_v45  ;;  %v7000_v38 = vsel %vm2218_vm3, %v11877_v36, -inf  ;;  %15085 = vst [vmem:[#allocation173_spill] sm:$0xff] %v11890_v30  ;;  %v11902_v46 = vadd.f32 %v11584_v15, %v6923_v43  ;;  %v6899_v53 = vrot.slane %v6818_v33, %v9633_v18 }
0x1db3   :  { %15086 = vst [vmem:[#allocation174_spill] sm:$0xff] %v11896_v35  ;;  %15088 = vst [vmem:[#allocation176_spill] sm:$0xff] %v11908_v19  ;;  %v6931_v43 = vrot.slane %v6867_v3, %v9633_v18  ;;  %v6982_v50 = vsel %vm2218_vm3, %v11908_v19, -inf  ;;  %v7514_v3 = vsel %vm7364_vm2, 1, %v14941_v16 }
0x1db4   :  { %6995 = vmax.xlane.f32.xlu1 %v6994_v40  ;;  %v6973_v40 = vsel %vm2218_vm3, %v11884_v45, -inf  ;;  %15087 = vst [vmem:[#allocation175_spill] sm:$0xff] %v11902_v46  ;;  %v7003_v52 = vsel %vm2218_vm3, %v11902_v46, -inf  ;;  %v11920_v31 = vadd.f32 %v11584_v15, %v6899_v53  ;;  %v7478_v53 = vrot.slane %v11753_v60, %v10564_v23  ;;  %v7383_v60 = vpop.permute.xlu1 %7382 }
0x1db5   :  { %v11925_v33 = vadd.f32 %v11584_v15, %v6931_v43  ;;  %v11940_v43 = vld [vmem:[#allocation4 + $0x78] sm:$0xff] }
0x1db6   :  { %6977 = vmax.xlane.f32.xlu0 %v6976_v5  ;;  %v6997_v5 = vsel %vm2218_vm3, %v11890_v30, -inf  ;;  %15090 = vst [vmem:[#allocation178_spill] sm:$0xff] %v11920_v31  ;;  %v8331_v41 = vrot.slane %v11940_v43, %v9633_v18  ;;  %v8338_v42 = vrot.slane %v11940_v43, %v9639_v20 }
0x1db7   :  { %15091 = vst [vmem:[#allocation179_spill] sm:$0xff] %v11925_v33 }
0x1db8   :  { %7001 = vmax.xlane.f32.xlu1 %v7000_v38  ;;  %v6979_v38 = vsel %vm2218_vm3, %v11896_v35, -inf }
0x1dba   :  { %6974 = vmax.xlane.f32.xlu0 %v6973_v40  ;;  %v11914_v40 = vadd.f32 %v11584_v15, %v6927_v51  ;;  %v6985_v51 = vsel %vm2218_vm3, %v11920_v31, -inf }
0x1dbc   :  { %6998 = vmax.xlane.f32.xlu1 %v6997_v5  ;;  %15089 = vst [vmem:[#allocation177_spill] sm:$0xff] %v11914_v40  ;;  %v7006_v63 = vsel %vm2218_vm3, %v11914_v40, -inf  ;;  %v7009_v5 = vsel %vm2218_vm3, %v11925_v33, -inf }
0x1dbe   :  { %6980 = vmax.xlane.f32.xlu0 %v6979_v38  ;;  %v11933_v38 = vld [vmem:[#allocation4 + $0x70] sm:$0xff] }
0x1dc0   :  { %7004 = vmax.xlane.f32.xlu1 %v7003_v52  ;;  %v8282_v52 = vrot.slane %v11933_v38, %v9639_v20 }
0x1dc2   :  { %6983 = vmax.xlane.f32.xlu0 %v6982_v50  ;;  %v7515_v50 = vsel %vm7365_vm13, 1, %v14941_v16 }
0x1dc4   :  { %7007 = vmax.xlane.f32.xlu1 %v7006_v63  ;;  %v8275_v63 = vrot.slane %v11933_v38, %v9633_v18 }
0x1dc6   :  { %6986 = vmax.xlane.f32.xlu0 %v6985_v51  ;;  %v7432_v51 = vpop.permute.xlu1 %7431 }
0x1dc8   :  { %7010 = vmax.xlane.f32.xlu1 %v7009_v5 }
0x1dca   :  { %v7390_v5 = vpop.permute.xlu1 %7389 }
0x1dd9   :  { %7517 = vperm.xlu1 %9152, %v7514_v3   ;;  %v7397_v3 = vpop.permute.xlu1 %7396 }
0x1ddc   :  { %7480 = vbcast.lane.b32.xlu0 %v7478_v53, 256  ;;  %v7446_v53 = vpop.permute.xlu0 %7445 }
0x1ddd   :  { %8284 = vbcast.lane.b32.xlu1 %v8282_v52, 256  ;;  %v7404_v52 = vpop.permute.xlu1 %7403 }
0x1de0   :  { %7520 = vperm.xlu0 %9151, %v7515_v50   ;;  %v7453_v26 = vpop.permute.xlu0 %7452 }
0x1de1   :  { %8333 = vbcast.lane.b32.xlu1 %v8331_v41, 256  ;;  %v7411_v61 = vpop.permute.xlu1 %7410 }
0x1de4   :  { %8277 = vbcast.lane.b32.xlu0 %v8275_v63, 256  ;;  %v7460_v13 = vpop.permute.xlu0 %7459 }
0x1de5   :  { %v7418_v10 = vpop.permute.xlu1 %7417 }
0x1de8   :  { %8340 = vbcast.lane.b32.xlu0 %v8338_v42, 256  ;;  %v7467_v50 = vpop.permute.xlu0 %7466 }
0x1de9   :  { %v7425_v41 = vpop.permute.xlu1 %7424 }
0x1dec   :  { %v7474_v27 = vpop.permute.xlu0 %7473 }
0x1e33   :  { %v11949_v44 = vpop.xlane.xlu1 %6965 }
0x1e34   :  { %v7498_v63 = vadd.f32 %v11792_v32, %v11949_v44 }
0x1e35   :  { %v11953_v20 = vpop.xlane.xlu0 %6968 }
0x1e36   :  { %v7499_v42 = vadd.f32 %v7383_v60, %v11953_v20  ;;  %7541 = vperm.xlu1 %9152, %v7498_v63  }
0x1e38   :  { %7544 = vperm.xlu0 %9151, %v7499_v42  }
0x1e3b   :  { %v11956_v0 = vpop.xlane.xlu0 %6989 }
0x1e3c   :  { %v7506_v17 = vadd.f32 %v7432_v51, %v11956_v0 }
0x1e3d   :  { %v11959_v4 = vpop.xlane.xlu1 %6992 }
0x1e3e   :  { %15092 = vst [vmem:[#allocation180_spill] sm:$0xff] %v11959_v4  ;;  %v7507_v24 = vadd.f32 %v11803_v2, %v11959_v4  ;;  %7565 = vperm.xlu1 %9152, %v7506_v17  }
0x1e3f   :  { %v11963_v55 = vpop.xlane.xlu0 %6971 }
0x1e40   :  { %15093 = vst [vmem:[#allocation181_spill] sm:$0xff] %v11963_v55  ;;  %v7500_v32 = vadd.f32 %v7390_v5, %v11963_v55  ;;  %7568 = vperm.xlu0 %9151, %v7507_v24  }
0x1e41   :  { %v11966_v59 = vpop.xlane.xlu1 %6995 }
0x1e42   :  { %15094 = vst [vmem:[#allocation182_spill] sm:$0xff] %v11966_v59  ;;  %v7508_v60 = vadd.f32 %v7446_v53, %v11966_v59  ;;  %7547 = vperm.xlu1 %9152, %v7500_v32  }
0x1e43   :  { %v11969_v63 = vpop.xlane.xlu0 %6977 }
0x1e44   :  { %15095 = vst [vmem:[#allocation183_spill] sm:$0xff] %v11969_v63  ;;  %v7502_v51 = vadd.f32 %v7404_v52, %v11969_v63  ;;  %7571 = vperm.xlu0 %9151, %v7508_v60  }
0x1e45   :  { %v11972_v42 = vpop.xlane.xlu1 %7001 }
0x1e46   :  { %15096 = vst [vmem:[#allocation184_spill] sm:$0xff] %v11972_v42  ;;  %v7510_v2 = vadd.f32 %v7460_v13, %v11972_v42  ;;  %7553 = vperm.xlu1 %9152, %v7502_v51  }
0x1e47   :  { %v11975_v17 = vpop.xlane.xlu0 %6974 }
0x1e48   :  { %15097 = vst [vmem:[#allocation185_spill] sm:$0xff] %v11975_v17  ;;  %v7501_v5 = vadd.f32 %v7397_v3, %v11975_v17  ;;  %7577 = vperm.xlu0 %9151, %v7510_v2  }
0x1e49   :  { %v11978_v24 = vpop.xlane.xlu1 %6998 }
0x1e4a   :  { %15098 = vst [vmem:[#allocation186_spill] sm:$0xff] %v11978_v24  ;;  %v7509_v53 = vadd.f32 %v7453_v26, %v11978_v24  ;;  %7550 = vperm.xlu1 %9152, %v7501_v5  }
0x1e4b   :  { %v11981_v32 = vpop.xlane.xlu0 %6980 }
0x1e4c   :  { %15099 = vst [vmem:[#allocation187_spill] sm:$0xff] %v11981_v32  ;;  %v7503_v52 = vadd.f32 %v7411_v61, %v11981_v32  ;;  %7574 = vperm.xlu0 %9151, %v7509_v53  }
0x1e4d   :  { %v11984_v60 = vpop.xlane.xlu1 %7004 }
0x1e4e   :  { %15100 = vst [vmem:[#allocation188_spill] sm:$0xff] %v11984_v60  ;;  %v7511_v13 = vadd.f32 %v7467_v50, %v11984_v60  ;;  %7556 = vperm.xlu1 %9152, %v7503_v52  }
0x1e4f   :  { %v11987_v51 = vpop.xlane.xlu0 %6983 }
0x1e50   :  { %15101 = vst [vmem:[#allocation189_spill] sm:$0xff] %v11987_v51  ;;  %v7504_v3 = vadd.f32 %v7418_v10, %v11987_v51  ;;  %7580 = vperm.xlu0 %9151, %v7511_v13   ;;  %v8289_v10 = vrot.slane %v11933_v38, %v10391_v48  ;;  %v8345_v13 = vrot.slane %v11940_v43, %v10391_v48 }
0x1e51   :  { %v11990_v2 = vpop.xlane.xlu1 %7007  ;;  %v8317_v48 = vrot.slane %v11933_v38, %v10424_v8 }
0x1e52   :  { %15102 = vst [vmem:[#allocation190_spill] sm:$0xff] %v11990_v2  ;;  %v7512_v26 = vadd.f32 %v7474_v27, %v11990_v2  ;;  %7559 = vperm.xlu1 %9152, %v7504_v3   ;;  %v8296_v27 = vrot.slane %v11933_v38, %v10403_v7  ;;  %v8352_v3 = vrot.slane %v11940_v43, %v10403_v7 }
0x1e53   :  { %v11993_v5 = vpop.xlane.xlu0 %6986  ;;  %v8373_v7 = vrot.slane %v11940_v43, %v10424_v8 }
0x1e54   :  { %15103 = vst [vmem:[#allocation191_spill] sm:$0xff] %v11993_v5  ;;  %v7505_v61 = vadd.f32 %v7425_v41, %v11993_v5  ;;  %7583 = vperm.xlu0 %9151, %v7512_v26   ;;  %v8303_v41 = vrot.slane %v11933_v38, %v10410_v21  ;;  %v8310_v26 = vrot.slane %v11933_v38, %v10417_v49 }
0x1e55   :  { %v11996_v53 = vpop.xlane.xlu1 %7010 }
0x1e56   :  { %7562 = vperm.xlu1 %9152, %v7505_v61   ;;  %15104 = vst [vmem:[#allocation192_spill] sm:$0xff] %v11996_v53  ;;  %v8359_v61 = vrot.slane %v11940_v43, %v10410_v21 }
0x1e57   :  { %v7481_v50 = vpop.permute.xlu0 %7480 }
0x1e58   :  { %v7513_v52 = vadd.f32 %v7481_v50, %v11996_v53  ;;  %v8366_v50 = vrot.slane %v11940_v43, %v10417_v49 }
0x1e5a   :  { %8291 = vbcast.lane.b32.xlu1 %v8289_v10, 256  ;;  %7586 = vperm.xlu0 %9151, %v7513_v52   ;;  %v7518_v52 = vpop.permute.xlu1 %7517 }
0x1e5b   :  { %vm7522_vm0 = vcmp.eq.s32.totalorder %v7518_v52, 1 }
0x1e5e   :  { %8298 = vbcast.lane.b32.xlu1 %v8296_v27, 256  ;;  %8347 = vbcast.lane.b32.xlu0 %v8345_v13, 256  ;;  %v12019_v27 = vpop.permute.xlu1 %8284 }
0x1e5f   :  { %v7521_v10 = vpop.permute.xlu0 %7520 }
0x1e60   :  { %vm7523_vm1 = vcmp.eq.s32.totalorder %v7521_v10, 1 }
0x1e62   :  { %8305 = vbcast.lane.b32.xlu1 %v8303_v41, 256  ;;  %8354 = vbcast.lane.b32.xlu0 %v8352_v3, 256  ;;  %v12023_v21 = vpop.permute.xlu1 %8333 }
0x1e63   :  { %v12021_v13 = vpop.permute.xlu0 %8277 }
0x1e66   :  { %8312 = vbcast.lane.b32.xlu1 %v8310_v26, 256  ;;  %8361 = vbcast.lane.b32.xlu0 %v8359_v61, 256 }
0x1e67   :  { %v12025_v41 = vpop.permute.xlu0 %8340 }
0x1e6a   :  { %8319 = vbcast.lane.b32.xlu1 %v8317_v48, 256  ;;  %8368 = vbcast.lane.b32.xlu0 %v8366_v50, 256 }
0x1e6e   :  { %8375 = vbcast.lane.b32.xlu0 %v8373_v7, 256 }
0x1eb5   :  { %v7542_v3 = vpop.permute.xlu1 %7541 }
0x1eb6   :  { %v7591_v56 = vrot.slane %v7542_v3, %v10657_v37 }
0x1eb7   :  { %v7545_v26 = vpop.permute.xlu0 %7544 }
0x1eb8   :  { %v7595_v28 = vrot.slane %v7545_v26, %v10657_v37 }
0x1eba   :  { %v7652_v53 = vsel %vm2831_vm6, %v7595_v28, %v7591_v56 }
0x1ebd   :  { %v7566_v61 = vpop.permute.xlu1 %7565 }
0x1ebe   :  { %v7623_v19 = vrot.slane %v7566_v61, %v10657_v37 }
0x1ebf   :  { %v7569_v49 = vpop.permute.xlu0 %7568 }
0x1ec0   :  { %v7627_v31 = vrot.slane %v7569_v49, %v10657_v37 }
0x1ec1   :  { %v7548_v48 = vpop.permute.xlu1 %7547 }
0x1ec2   :  { %v7599_v6 = vrot.slane %v7548_v48, %v10657_v37  ;;  %v7659_v56 = vsel %vm2831_vm6, %v7627_v31, %v7623_v19 }
0x1ec3   :  { %v7572_v50 = vpop.permute.xlu0 %7571 }
0x1ec4   :  { %v7653_v5 = vsel %vm2833_vm7, %v7599_v6, %v7652_v53  ;;  %v7631_v40 = vrot.slane %v7572_v50, %v10657_v37 }
0x1ec5   :  { %v7554_v34 = vpop.permute.xlu1 %7553 }
0x1ec6   :  { %v7660_v6 = vsel %vm2833_vm7, %v7631_v40, %v7659_v56 }
0x1ec7   :  { %v7578_v39 = vpop.permute.xlu0 %7577 }
0x1ec9   :  { %v7551_v8 = vpop.permute.xlu1 %7550 }
0x1eca   :  { %v7603_v62 = vrot.slane %v7551_v8, %v10657_v37  ;;  %v7607_v8 = vrot.slane %v7554_v34, %v10657_v37  ;;  %v7639_v34 = vrot.slane %v7578_v39, %v10657_v37 }
0x1ecb   :  { %v7575_v7 = vpop.permute.xlu0 %7574 }
0x1ecc   :  { %v7654_v26 = vsel %vm2835_vm8, %v7603_v62, %v7653_v5  ;;  %v7635_v48 = vrot.slane %v7575_v7, %v10657_v37 }
0x1ecd   :  { %v7557_v12 = vpop.permute.xlu1 %7556  ;;  %v7655_v53 = vsel %vm2837_vm9, %v7607_v8, %v7654_v26 }
0x1ece   :  { %v7611_v3 = vrot.slane %v7557_v12, %v10657_v37  ;;  %v7661_v61 = vsel %vm2835_vm8, %v7635_v48, %v7660_v6 }
0x1ecf   :  { %v7581_v33 = vpop.permute.xlu0 %7580  ;;  %v7662_v31 = vsel %vm2837_vm9, %v7639_v34, %v7661_v61 }
0x1ed0   :  { %v7656_v62 = vsel %vm2839_vm10, %v7611_v3, %v7655_v53  ;;  %v7643_v5 = vrot.slane %v7581_v33, %v10657_v37 }
0x1ed1   :  { %v7560_v2 = vpop.permute.xlu1 %7559 }
0x1ed2   :  { %v7615_v51 = vrot.slane %v7560_v2, %v10657_v37  ;;  %v7663_v26 = vsel %vm2839_vm10, %v7643_v5, %v7662_v31 }
0x1ed3   :  { %v7584_v28 = vpop.permute.xlu0 %7583 }
0x1ed4   :  { %v7657_v2 = vsel %vm14837_vm11, %v7615_v51, %v7656_v62  ;;  %v7647_v19 = vrot.slane %v7584_v28, %v10657_v37 }
0x1ed5   :  { %v7563_v49 = vpop.permute.xlu1 %7562 }
0x1ed6   :  { %v7619_v12 = vrot.slane %v7563_v49, %v10657_v37  ;;  %v7664_v52 = vsel %vm14837_vm11, %v7647_v19, %v7663_v26 }
0x1ed8   :  { %v7658_v40 = vsel %vm14836_vm12, %v7619_v12, %v7657_v2 }
0x1ed9   :  { %v12054_v50 = vsel %vm7522_vm0, %v7658_v40, %v11801_v1  ;;  %v7587_v7 = vpop.permute.xlu0 %7586 }
0x1eda   :  { %v7672_v33 = vcombine.high %v12054_v50, %v12054_v50  ;;  %v7651_v39 = vrot.slane %v7587_v7, %v10657_v37  ;;  %v7679_v51 = vrot.slane %v12054_v50, %v10438_v58 }
0x1edc   :  { %v7665_v48 = vsel %vm14836_vm12, %v7651_v39, %v7664_v52  ;;  %v7695_v3 = vrot.slane %v7679_v51, %v10438_v58  ;;  %v7687_v1 = vcombine.high %v7679_v51, %v7679_v51  ;;  %v7686_v56 = vrot.slane %v7672_v33, %v10438_v58 }
0x1edd   :  { %v12066_v8 = vsel %vm7523_vm1, %v7665_v48, %v11827_v29 }
0x1ede   :  { %v7721_v28 = vcombine.high %v12066_v8, %v12066_v8  ;;  %v7728_v6 = vrot.slane %v12066_v8, %v10438_v58  ;;  %v7773_v53 = vrot.slane %v7695_v3, %v9633_v18  ;;  %v7709_v10 = vrot.slane %v7687_v1, %v10438_v58 }
0x1edf   :  { %v7717_v49 = vcombine.high %v7695_v3, %v7695_v3  ;;  %v7702_v34 = vrot.slane %v7686_v56, %v10438_v58 }
0x1ee0   :  { %v12076_v61 = vadd.f32 %v11584_v15, %v7773_v53  ;;  %v7777_v62 = vrot.slane %v7709_v10, %v9633_v18  ;;  %v7736_v29 = vcombine.high %v7728_v6, %v7728_v6  ;;  %v7744_v5 = vrot.slane %v7728_v6, %v10438_v58 }
0x1ee1   :  { %v7735_v12 = vrot.slane %v7721_v28, %v10438_v58  ;;  %v7781_v26 = vrot.slane %v7717_v49, %v9633_v18  ;;  %v7789_v1 = vrot.slane %v7702_v34, %v9633_v18  ;;  %v7688_v28 = vcombine.high %v7686_v56, %v7686_v56 }
0x1ee2   :  { %v7866_v2 = vsel %vm2218_vm3, %v12076_v61, -inf  ;;  %v12085_v19 = vadd.f32 %v11584_v15, %v7777_v62  ;;  %v7758_v40 = vrot.slane %v7736_v29, %v10438_v58  ;;  %v7805_v31 = vrot.slane %v7744_v5, %v9633_v18  ;;  %v9453_v15 = vld [vmem:[%s14628_s10] sm:$0xff] }
0x1ee3   :  { %7867 = vmax.xlane.f32.xlu1 %v7866_v2  ;;  %v7766_v7 = vcombine.high %v7744_v5, %v7744_v5  ;;  %v7751_v33 = vrot.slane %v7735_v12, %v10438_v58  ;;  %v12103_v6 = vadd.f32 %v9453_v15, %v7781_v26  ;;  %v7719_v62 = vcombine.high %v7709_v10, %v7709_v10 }
0x1ee4   :  { %v7869_v39 = vsel %vm2218_vm3, %v12085_v19, -inf  ;;  %v7809_v51 = vrot.slane %v7758_v40, %v9633_v18  ;;  %v12097_v52 = vadd.f32 %v9453_v15, %v7805_v31  ;;  %v7768_v49 = vcombine.high %v7758_v40, %v7758_v40 }
0x1ee5   :  { %7870 = vmax.xlane.f32.xlu0 %v7869_v39  ;;  %v7813_v48 = vrot.slane %v7766_v7, %v9633_v18  ;;  %v7821_v53 = vrot.slane %v7751_v33, %v9633_v18  ;;  %v7737_v31 = vcombine.high %v7735_v12, %v7735_v12  ;;  %v12112_v7 = vadd.f32 %v9453_v15, %v7789_v1 }
0x1ee6   :  { %v12100_v3 = vadd.f32 %v9453_v15, %v7809_v51  ;;  %v7890_v5 = vsel %vm2218_vm3, %v12097_v52, -inf  ;;  %v7817_v56 = vrot.slane %v7768_v49, %v9633_v18  ;;  %v7785_v26 = vrot.slane %v7719_v62, %v9633_v18 }
0x1ee7   :  { %v12110_v2 = vadd.f32 %v9453_v15, %v7813_v48  ;;  %v7716_v40 = vrot.slane %v7688_v28, %v10438_v58  ;;  %v7872_v39 = vsel %vm2218_vm3, %v12103_v6, -inf  ;;  %v12121_v51 = vadd.f32 %v9453_v15, %v7821_v53 }
0x1ee8   :  { %v7893_v29 = vsel %vm2218_vm3, %v12100_v3, -inf  ;;  %v7765_v12 = vrot.slane %v7737_v31, %v10438_v58  ;;  %v12124_v48 = vadd.f32 %v9453_v15, %v7817_v56  ;;  %v12126_v1 = vadd.f32 %v9453_v15, %v7785_v26 }
0x1ee9   :  { %7894 = vmax.xlane.f32.xlu1 %v7893_v29  ;;  %7891 = vmax.xlane.f32.xlu0 %v7890_v5  ;;  %v7896_v10 = vsel %vm2218_vm3, %v12110_v2, -inf  ;;  %v7793_v49 = vrot.slane %v7716_v40, %v9633_v18  ;;  %v7767_v62 = vcombine.high %v7751_v33, %v7751_v33  ;;  %v7902_v28 = vsel %vm2218_vm3, %v12121_v51, -inf }
0x1eea   :  { %v7878_v29 = vsel %vm2218_vm3, %v12112_v7, -inf  ;;  %v7825_v53 = vrot.slane %v7765_v12, %v9633_v18  ;;  %v7718_v5 = vcombine.high %v7702_v34, %v7702_v34  ;;  %v7899_v58 = vsel %vm2218_vm3, %v12124_v48, -inf }
0x1eeb   :  { %v7875_v31 = vsel %vm2218_vm3, %v12126_v1, -inf  ;;  %v12138_v56 = vadd.f32 %v9453_v15, %v7793_v49  ;;  %v7829_v33 = vrot.slane %v7767_v62, %v9633_v18  ;;  %v7720_v46 = vcombine.high %v7716_v40, %v7716_v40 }
0x1eec   :  { %v12141_v26 = vadd.f32 %v9453_v15, %v7825_v53 }
0x1eed   :  { %7897 = vmax.xlane.f32.xlu1 %v7896_v10  ;;  %7873 = vmax.xlane.f32.xlu0 %v7872_v39  ;;  %v7797_v10 = vrot.slane %v7718_v5, %v9633_v18  ;;  %v7769_v39 = vcombine.high %v7765_v12, %v7765_v12  ;;  %v7881_v34 = vsel %vm2218_vm3, %v12138_v56, -inf  ;;  %v7801_v53 = vrot.slane %v7720_v46, %v9633_v18 }
0x1eee   :  { %v8324_v46 = vrot.slane %v11933_v38, %v10564_v23 }
0x1eef   :  { %v12150_v49 = vadd.f32 %v9453_v15, %v7797_v10  ;;  %v7833_v62 = vrot.slane %v7769_v39, %v9633_v18  ;;  %v8348_v10 = vpop.permute.xlu0 %8347 }
0x1ef1   :  { %7903 = vmax.xlane.f32.xlu1 %v7902_v28  ;;  %7879 = vmax.xlane.f32.xlu0 %v7878_v29  ;;  %v12146_v28 = vadd.f32 %v9453_v15, %v7829_v33  ;;  %v7905_v29 = vsel %vm2218_vm3, %v12141_v26, -inf  ;;  %v7884_v12 = vsel %vm2218_vm3, %v12150_v49, -inf  ;;  %v12158_v5 = vadd.f32 %v9453_v15, %v7833_v62 }
0x1ef2   :  { %v8380_v33 = vrot.slane %v11940_v43, %v10564_v23 }
0x1ef3   :  { %v7908_v40 = vsel %vm2218_vm3, %v12146_v28, -inf }
0x1ef5   :  { %7900 = vmax.xlane.f32.xlu1 %v7899_v58  ;;  %7876 = vmax.xlane.f32.xlu0 %v7875_v31  ;;  %v12160_v58 = vadd.f32 %v9453_v15, %v7801_v53  ;;  %v7911_v31 = vsel %vm2218_vm3, %v12158_v5, -inf  ;;  %v8292_v15 = vpop.permute.xlu1 %8291 }
0x1ef7   :  { %v7887_v18 = vsel %vm2218_vm3, %v12160_v58, -inf }
0x1ef9   :  { %7906 = vmax.xlane.f32.xlu1 %v7905_v29  ;;  %7882 = vmax.xlane.f32.xlu0 %v7881_v34  ;;  %v8299_v39 = vpop.permute.xlu1 %8298  ;;  %v8355_v34 = vpop.permute.xlu0 %8354 }
0x1efd   :  { %7909 = vmax.xlane.f32.xlu1 %v7908_v40  ;;  %7885 = vmax.xlane.f32.xlu0 %v7884_v12  ;;  %v8306_v29 = vpop.permute.xlu1 %8305  ;;  %v8362_v62 = vpop.permute.xlu0 %8361 }
0x1f01   :  { %7912 = vmax.xlane.f32.xlu1 %v7911_v31  ;;  %7888 = vmax.xlane.f32.xlu0 %v7887_v18  ;;  %v8313_v53 = vpop.permute.xlu1 %8312  ;;  %v8369_v40 = vpop.permute.xlu0 %8368 }
0x1f05   :  { %v8320_v12 = vpop.permute.xlu1 %8319  ;;  %v8376_v60 = vpop.permute.xlu0 %8375 }
0x1f12   :  { %8326 = vbcast.lane.b32.xlu1 %v8324_v46, 256 }
0x1f17   :  { %8382 = vbcast.lane.b32.xlu0 %v8380_v33, 256 }
0x1f70   :  { %v12170_v31 = vpop.xlane.xlu1 %7867 }
0x1f71   :  { %v8400_v38 = vadd.f32 %v12021_v13, %v12170_v31  ;;  %vm7914_vm4 = vcmp.ge.f32.partialorder %v12076_v61, %v12170_v31 }
0x1f72   :  { %v12174_v18 = vpop.xlane.xlu0 %7870 }
0x1f73   :  { %v8401_v23 = vadd.f32 %v12019_v27, %v12174_v18  ;;  %8443 = vperm.xlu1 %9152, %v8400_v38   ;;  %vm7915_vm5 = vcmp.ge.f32.partialorder %v12085_v19, %v12174_v18 }
0x1f75   :  { %8446 = vperm.xlu0 %9151, %v8401_v23  }
0x1f76   :  { %v12178_v43 = vpop.xlane.xlu0 %7891  ;;  %v12180_v46 = vpop.xlane.xlu1 %7894 }
0x1f77   :  { %v8408_v33 = vadd.f32 %v12023_v21, %v12178_v43  ;;  %v8409_v35 = vadd.f32 %v12025_v41, %v12180_v46  ;;  %vm7922_vm2 = vcmp.ge.f32.partialorder %v12097_v52, %v12178_v43  ;;  %vm7923_vm13 = vcmp.ge.f32.partialorder %v12100_v3, %v12180_v46 }
0x1f78   :  { %v7938_v46 = vsel %vm7922_vm2, %v10653_v14, 8 }
0x1f79   :  { %8467 = vperm.xlu1 %9152, %v8408_v33   ;;  %8470 = vperm.xlu0 %9151, %v8409_v35  }
0x1f7a   :  { %v12186_v13 = vpop.xlane.xlu0 %7873  ;;  %v12188_v32 = vpop.xlane.xlu1 %7897 }
0x1f7b   :  { %v8402_v27 = vadd.f32 %v8292_v15, %v12186_v13  ;;  %v8410_v38 = vadd.f32 %v8348_v10, %v12188_v32 }
0x1f7d   :  { %8449 = vperm.xlu1 %9152, %v8402_v27   ;;  %8473 = vperm.xlu0 %9151, %v8410_v38  }
0x1f7e   :  { %v12192_v23 = vpop.xlane.xlu0 %7879  ;;  %v12194_v30 = vpop.xlane.xlu1 %7903 }
0x1f7f   :  { %v8404_v21 = vadd.f32 %v8306_v29, %v12192_v23  ;;  %v8412_v41 = vadd.f32 %v8362_v62, %v12194_v30  ;;  %vm7918_vm2 = vcmp.ge.f32.partialorder %v12112_v7, %v12192_v23 }
0x1f81   :  { %8455 = vperm.xlu1 %9152, %v8404_v21   ;;  %8479 = vperm.xlu0 %9151, %v8412_v41  }
0x1f82   :  { %v12198_v35 = vpop.xlane.xlu0 %7876  ;;  %v12200_v33 = vpop.xlane.xlu1 %7900 }
0x1f83   :  { %v8403_v15 = vadd.f32 %v8299_v39, %v12198_v35  ;;  %v8411_v10 = vadd.f32 %v8355_v34, %v12200_v33 }
0x1f85   :  { %8452 = vperm.xlu1 %9152, %v8403_v15   ;;  %8476 = vperm.xlu0 %9151, %v8411_v10  }
0x1f86   :  { %v12204_v27 = vpop.xlane.xlu0 %7882  ;;  %v12206_v38 = vpop.xlane.xlu1 %7906 }
0x1f87   :  { %v8405_v29 = vadd.f32 %v8313_v53, %v12204_v27  ;;  %v8413_v62 = vadd.f32 %v8369_v40, %v12206_v38 }
0x1f89   :  { %8458 = vperm.xlu1 %9152, %v8405_v29   ;;  %8482 = vperm.xlu0 %9151, %v8413_v62   ;;  %v9454_v62 = vld [vmem:[%s14629_s1 + $0x8] sm:$0xff] }
0x1f8a   :  { %v12210_v21 = vpop.xlane.xlu0 %7885  ;;  %v12212_v41 = vpop.xlane.xlu1 %7909  ;;  %vm8267_vm14 = vcmp.gt.s32.totalorder %v9454_v62, 7 }
0x1f8b   :  { %v8406_v39 = vadd.f32 %v8320_v12, %v12210_v21  ;;  %v8414_v34 = vadd.f32 %v8376_v60, %v12212_v41  ;;  %v9455_v60 = vld [vmem:[%s14629_s1] sm:$0xff]  ;;  %v8417_v12 = vsel %vm8267_vm14, 1, %v14941_v16  ;;  %vm7916_vm14 = vcmp.ge.f32.partialorder %v12103_v6, %v12186_v13 }
0x1f8c   :  { %vm8266_vm15 = vcmp.gt.s32.totalorder %v9455_v60, 7 }
0x1f8d   :  { %8461 = vperm.xlu1 %9152, %v8406_v39   ;;  %8485 = vperm.xlu0 %9151, %v8414_v34   ;;  %v8416_v39 = vsel %vm8266_vm15, 1, %v14941_v16  ;;  %vm7924_vm15 = vcmp.ge.f32.partialorder %v12110_v2, %v12188_v32  ;;  %v7932_v32 = vsel %vm7916_vm14, %v10653_v14, 8  ;;  %vm7920_vm14 = vcmp.ge.f32.partialorder %v12150_v49, %v12210_v21 }
0x1f8e   :  { %v12216_v15 = vpop.xlane.xlu0 %7888  ;;  %v12218_v10 = vpop.xlane.xlu1 %7912  ;;  %v7940_v2 = vsel %vm7924_vm15, %v10653_v14, 8  ;;  %vm7928_vm15 = vcmp.ge.f32.partialorder %v12146_v28, %v12212_v41 }
0x1f8f   :  { %v7944_v49 = vsel %vm7928_vm15, %v10653_v14, 8 }
0x1f92   :  { %v8383_v24 = vpop.permute.xlu0 %8382  ;;  %v8327_v53 = vpop.permute.xlu1 %8326 }
0x1f93   :  { %v8415_v40 = vadd.f32 %v8383_v24, %v12218_v10  ;;  %v8407_v29 = vadd.f32 %v8327_v53, %v12216_v15 }
0x1f95   :  { %8488 = vperm.xlu0 %9151, %v8415_v40   ;;  %8464 = vperm.xlu1 %9152, %v8407_v29  }
0x1f99   :  { %8422 = vperm.xlu0 %9151, %v8417_v12   ;;  %8419 = vperm.xlu1 %9152, %v8416_v39  }
0x1ff2   :  { %v8444_v24 = vpop.permute.xlu1 %8443 }
0x1ff3   :  { %v8493_v59 = vrot.slane %v8444_v24, %v10657_v37 }
0x1ff4   :  { %v8447_v34 = vpop.permute.xlu0 %8446 }
0x1ff5   :  { %v8497_v40 = vrot.slane %v8447_v34, %v10657_v37 }
0x1ff7   :  { %v8554_v47 = vsel %vm2831_vm6, %v8497_v40, %v8493_v59 }
0x1ff8   :  { %v8471_v53 = vpop.permute.xlu0 %8470  ;;  %v8468_v45 = vpop.permute.xlu1 %8467 }
0x1ff9   :  { %v8529_v29 = vrot.slane %v8471_v53, %v10657_v37  ;;  %v8525_v16 = vrot.slane %v8468_v45, %v10657_v37 }
0x1ffb   :  { %v8561_v34 = vsel %vm2831_vm6, %v8529_v29, %v8525_v16 }
0x1ffc   :  { %v8474_v17 = vpop.permute.xlu0 %8473  ;;  %v8450_v36 = vpop.permute.xlu1 %8449 }
0x1ffd   :  { %v8533_v12 = vrot.slane %v8474_v17, %v10657_v37  ;;  %v8501_v39 = vrot.slane %v8450_v36, %v10657_v37 }
0x1fff   :  { %v8562_v36 = vsel %vm2833_vm7, %v8533_v12, %v8561_v34  ;;  %v8555_v45 = vsel %vm2833_vm7, %v8501_v39, %v8554_v47  ;;  %v7930_v47 = vsel %vm7914_vm4, %v10653_v14, 8  ;;  %v9096_v12 = vld [vmem:[%s14630_s9] ss:$0 sm:$0xff]  ;;  %v7939_v34 = vsel %vm7923_vm13, %v10653_v14, 8 }
0x2000   :  { %v8480_v62 = vpop.permute.xlu0 %8479  ;;  %v8456_v42 = vpop.permute.xlu1 %8455  ;;  %v12272_v39 = vsel %vm2218_vm3, %v7930_v47, 2147483647  ;;  %v12301_v6 = vsel %vm2218_vm3, %v7939_v34, 2147483647  ;;  %vm7917_vm4 = vcmp.ge.f32.partialorder %v12126_v1, %v12198_v35  ;;  %vm7926_vm13 = vcmp.ge.f32.partialorder %v12121_v51, %v12194_v30 }
0x2001   :  { %v8541_v24 = vrot.slane %v8480_v62, %v10657_v37  ;;  %v8509_v53 = vrot.slane %v8456_v42, %v10657_v37  ;;  %v7933_v47 = vsel %vm7917_vm4, %v10653_v14, 8  ;;  %v7942_v7 = vsel %vm7926_vm13, %v10653_v14, 8 }
0x2002   :  { %vm7921_vm4 = vcmp.ge.f32.partialorder %v12160_v58, %v12216_v15 }
0x2003   :  { %v7937_v34 = vsel %vm7921_vm4, %v10653_v14, 8 }
0x2004   :  { %v8477_v57 = vpop.permute.xlu0 %8476  ;;  %v8453_v63 = vpop.permute.xlu1 %8452 }
0x2005   :  { %v8537_v54 = vrot.slane %v8477_v57, %v10657_v37  ;;  %v8505_v55 = vrot.slane %v8453_v63, %v10657_v37 }
0x2007   :  { %v8563_v57 = vsel %vm2835_vm8, %v8537_v54, %v8562_v36  ;;  %v8556_v63 = vsel %vm2835_vm8, %v8505_v55, %v8555_v45  ;;  %v7931_v54 = vsel %vm7915_vm5, %v10653_v14, 8  ;;  %vm7925_vm5 = vcmp.ge.f32.partialorder %v12124_v48, %v12200_v33 }
0x2008   :  { %v8483_v22 = vpop.permute.xlu0 %8482  ;;  %v8459_v60 = vpop.permute.xlu1 %8458  ;;  %v8557_v62 = vsel %vm2837_vm9, %v8509_v53, %v8556_v63  ;;  %v12275_v52 = vsel %vm2218_vm3, %v7931_v54, 2147483647  ;;  %v7941_v1 = vsel %vm7925_vm5, %v10653_v14, 8  ;;  %vm7929_vm5 = vcmp.ge.f32.partialorder %v12158_v5, %v12218_v10 }
0x2009   :  { %v8545_v17 = vrot.slane %v8483_v22, %v10657_v37  ;;  %v8513_v59 = vrot.slane %v8459_v60, %v10657_v37  ;;  %v8564_v60 = vsel %vm2837_vm9, %v8541_v24, %v8563_v57  ;;  %v7945_v58 = vsel %vm7929_vm5, %v10653_v14, 8 }
0x200c   :  { %v8486_v25 = vpop.permute.xlu0 %8485  ;;  %v8462_v4 = vpop.permute.xlu1 %8461 }
0x200d   :  { %v8549_v61 = vrot.slane %v8486_v25, %v10657_v37  ;;  %v8517_v19 = vrot.slane %v8462_v4, %v10657_v37  ;;  %v8565_v4 = vsel %vm2839_vm10, %v8545_v17, %v8564_v60  ;;  %v8558_v25 = vsel %vm2839_vm10, %v8513_v59, %v8557_v62 }
0x200e   :  { %v7948_v17 = vshra.s32 %v12272_v39, 16  ;;  %v7963_v59 = vshra.s32 %v12275_v52, 16  ;;  %v7934_v60 = vsel %vm7918_vm2, %v10653_v14, 8 }
0x200f   :  { %v8566_v42 = vsel %vm14837_vm11, %v8549_v61, %v8565_v4  ;;  %v8559_v40 = vsel %vm14837_vm11, %v8517_v19, %v8558_v25  ;;  %v8083_v19 = vshra.s32 %v12301_v6, 16  ;;  %v12356_v4 = vsel %vm2218_vm3, %v7934_v60, 2147483647 }
0x2010   :  { %v12309_v13 = vcvt.s32.f32 %v7948_v17  ;;  %v12311_v53 = vcvt.s32.f32 %v7963_v59  ;;  %v12359_v25 = vsel %vm2218_vm3, %v7942_v7, 2147483647  ;;  %v12415_v17 = vsel %vm2218_vm3, %v7945_v58, 2147483647 }
0x2011   :  { %v12331_v35 = vcvt.s32.f32 %v8083_v19 }
0x2014   :  { %v8489_v31 = vpop.permute.xlu0 %8488  ;;  %v8465_v18 = vpop.permute.xlu1 %8464 }
0x2015   :  { %v8553_v55 = vrot.slane %v8489_v31, %v10657_v37  ;;  %v8521_v22 = vrot.slane %v8465_v18, %v10657_v37  ;;  %v12316_v31 = vsel %vm2218_vm3, %v7932_v32, 2147483647  ;;  %v12319_v18 = vsel %vm2218_vm3, %v7940_v2, 2147483647 }
0x2016   :  { %v7978_v33 = vshra.s32 %v12316_v31, 16  ;;  %v8098_v54 = vshra.s32 %v12319_v18, 16  ;;  %v8173_v32 = vshra.s32 %v12415_v17, 16 }
0x2017   :  { %v8567_v3 = vsel %vm14836_vm12, %v8553_v55, %v8566_v42  ;;  %v8560_v43 = vsel %vm14836_vm12, %v8521_v22, %v8559_v40  ;;  %v12336_v55 = vsel %vm2218_vm3, %v7933_v47, 2147483647  ;;  %v12339_v22 = vsel %vm2218_vm3, %v7941_v1, 2147483647 }
0x2018   :  { %v8423_v29 = vpop.permute.xlu0 %8422  ;;  %v8420_v16 = vpop.permute.xlu1 %8419  ;;  %v12349_v30 = vcvt.s32.f32 %v7978_v33  ;;  %v12351_v51 = vcvt.s32.f32 %v8098_v54  ;;  %v7993_v23 = vshra.s32 %v12336_v55, 16  ;;  %v8113_v62 = vshra.s32 %v12339_v22, 16 }
0x2019   :  { %vm8425_vm0 = vcmp.eq.s32.totalorder %v8423_v29, 1  ;;  %vm8424_vm1 = vcmp.eq.s32.totalorder %v8420_v16, 1  ;;  %v8128_v40 = vshra.s32 %v12359_v25, 16 }
0x201a   :  { %v8571_v36 = vsel %vm8425_vm0, %v8567_v3, %v12066_v8  ;;  %v8570_v45 = vsel %vm8424_vm1, %v8560_v43, %v12054_v50  ;;  %v12298_v8 = vsel %vm2218_vm3, %v7938_v46, 2147483647  ;;  %vm7919_vm0 = vcmp.ge.f32.partialorder %v12138_v56, %v12204_v27 }
0x201b   :  { %v12287_v57 = vadd.f32 %v9096_v12, %v8571_v36  ;;  %v12289_v63 = vadd.f32 %v9096_v12, %v8570_v45  ;;  %v8068_v61 = vshra.s32 %v12298_v8, 16  ;;  %vm7927_vm1 = vcmp.ge.f32.partialorder %v12141_v26, %v12206_v38 }
0x201c   :  { %v7935_v42 = vsel %vm7919_vm0, %v10653_v14, 8  ;;  %v7943_v56 = vsel %vm7927_vm1, %v10653_v14, 8  ;;  %v12369_v26 = vcvt.s32.f32 %v7993_v23  ;;  %v12371_v27 = vcvt.s32.f32 %v8113_v62 }
0x201d   :  { %v8586_v24 = vsel %vm2218_vm3, %v12287_v57, -inf  ;;  %v8583_v50 = vsel %vm2218_vm3, %v12289_v63, -inf  ;;  %v12329_v48 = vcvt.s32.f32 %v8068_v61  ;;  %v8008_v38 = vshra.s32 %v12356_v4, 16 }
0x201e   :  { %8587 = vmax.xlane.f32.xlu0 %v8586_v24  ;;  %8584 = vmax.xlane.f32.xlu1 %v8583_v50  ;;  %v12376_v29 = vsel %vm2218_vm3, %v7935_v42, 2147483647  ;;  %v12379_v16 = vsel %vm2218_vm3, %v7943_v56, 2147483647  ;;  %v7936_v12 = vsel %vm7920_vm14, %v10653_v14, 8  ;;  %v12391_v21 = vcvt.s32.f32 %v8128_v40 }
0x201f   :  { %v12389_v28 = vcvt.s32.f32 %v8008_v38  ;;  %v8023_v41 = vshra.s32 %v12376_v29, 16  ;;  %v8143_v3 = vshra.s32 %v12379_v16, 16  ;;  %v12396_v43 = vsel %vm2218_vm3, %v7936_v12, 2147483647 }
0x2020   :  { %v12399_v46 = vsel %vm2218_vm3, %v7944_v49, 2147483647  ;;  %v8038_v10 = vshra.s32 %v12396_v43, 16  ;;  %v12412_v45 = vsel %vm2218_vm3, %v7937_v34, 2147483647  ;;  %v12429_v61 = vcvt.s32.f32 %v8173_v32 }
0x2021   :  { %v12405_v5 = vcvt.s32.f32 %v8023_v41  ;;  %v12407_v15 = vcvt.s32.f32 %v8143_v3  ;;  %v8158_v36 = vshra.s32 %v12399_v46, 16  ;;  %v8053_v50 = vshra.s32 %v12412_v45, 16 }
0x2022   :  { %7951 = vmin.xlane.f32.xlu0 %v12309_v13  ;;  %7966 = vmin.xlane.f32.xlu1 %v12311_v53  ;;  %v12419_v59 = vcvt.s32.f32 %v8038_v10  ;;  %v7962_v42 = vand.u32 65535, %v12275_v52  ;;  %v8067_v49 = vand.u32 65535, %v12298_v8  ;;  %v8082_v41 = vand.u32 65535, %v12301_v6 }
0x2023   :  { %v12421_v24 = vcvt.s32.f32 %v8158_v36  ;;  %v12427_v2 = vcvt.s32.f32 %v8053_v50  ;;  %v7977_v8 = vand.u32 65535, %v12316_v31  ;;  %v8097_v6 = vand.u32 65535, %v12319_v18 }
0x2024   :  { %v7964_v52 = vcvt.s32.f32 %v7962_v42  ;;  %v7992_v31 = vand.u32 65535, %v12336_v55  ;;  %v8112_v18 = vand.u32 65535, %v12339_v22  ;;  %v8007_v55 = vand.u32 65535, %v12356_v4 }
0x2025   :  { %v8127_v22 = vand.u32 65535, %v12359_v25  ;;  %v8022_v4 = vand.u32 65535, %v12376_v29  ;;  %v8142_v25 = vand.u32 65535, %v12379_v16  ;;  %v8037_v29 = vand.u32 65535, %v12396_v43 }
0x2026   :  { %8071 = vmin.xlane.f32.xlu0 %v12329_v48  ;;  %8086 = vmin.xlane.f32.xlu1 %v12331_v35  ;;  %v8157_v16 = vand.u32 65535, %v12399_v46  ;;  %v8052_v43 = vand.u32 65535, %v12412_v45  ;;  %v8172_v46 = vand.u32 65535, %v12415_v17  ;;  %v15105_v45 = vld [vmem:[#allocation166_spill] sm:$0xff] }
0x202a   :  { %7981 = vmin.xlane.f32.xlu0 %v12349_v30  ;;  %8101 = vmin.xlane.f32.xlu1 %v12351_v51 }
0x202e   :  { %7996 = vmin.xlane.f32.xlu0 %v12369_v26  ;;  %8116 = vmin.xlane.f32.xlu1 %v12371_v27 }
0x2032   :  { %8011 = vmin.xlane.f32.xlu0 %v12389_v28  ;;  %8131 = vmin.xlane.f32.xlu1 %v12391_v21 }
0x2036   :  { %8026 = vmin.xlane.f32.xlu0 %v12405_v5  ;;  %8146 = vmin.xlane.f32.xlu1 %v12407_v15 }
0x203a   :  { %8041 = vmin.xlane.f32.xlu0 %v12419_v59  ;;  %8161 = vmin.xlane.f32.xlu1 %v12421_v24 }
0x203e   :  { %8056 = vmin.xlane.f32.xlu0 %v12427_v2  ;;  %8176 = vmin.xlane.f32.xlu1 %v12429_v61 }
0x20ab   :  { %v8588_v19 = vpop.xlane.xlu0 %8587  ;;  %v8585_v47 = vpop.xlane.xlu1 %8584 }
0x20ac   :  { %vm8590_vm2 = vcmp.ge.f32.partialorder %v12287_v57, %v8588_v19  ;;  %vm8589_vm13 = vcmp.ge.f32.partialorder %v12289_v63, %v8585_v47  ;;  %v7947_v63 = vand.u32 65535, %v12272_v39 }
0x20ad   :  { %v8592_v1 = vsel %vm8590_vm2, %v10653_v14, 8  ;;  %v8591_v33 = vsel %vm8589_vm13, %v10653_v14, 8 }
0x20ae   :  { %v12438_v54 = vsel %vm2218_vm3, %v8592_v1, 2147483647  ;;  %v12441_v60 = vsel %vm2218_vm3, %v8591_v33, 2147483647  ;;  %v7949_v39 = vcvt.s32.f32 %v7947_v63 }
0x20af   :  { %v12443_v7 = vpop.xlane.xlu0 %7951  ;;  %v12445_v23 = vpop.xlane.xlu1 %7966  ;;  %v8610_v62 = vshra.s32 %v12438_v54, 16  ;;  %v8595_v57 = vshra.s32 %v12441_v60, 16 }
0x20b0   :  { %vm7953_vm0 = vcmp.eq.f32.partialorder %v12309_v13, %v12443_v7  ;;  %vm7968_vm1 = vcmp.eq.f32.partialorder %v12311_v53, %v12445_v23  ;;  %v8069_v13 = vcvt.s32.f32 %v8067_v49  ;;  %v8084_v53 = vcvt.s32.f32 %v8082_v41 }
0x20b1   :  { %v12451_v56 = vcvt.s32.f32 %v8610_v62  ;;  %v12453_v38 = vcvt.s32.f32 %v8595_v57  ;;  %v7954_v3 = vsel %vm7953_vm0, %v7949_v39, inf  ;;  %v7969_v34 = vsel %vm7968_vm1, %v7964_v52, inf }
0x20b3   :  { %v12455_v40 = vpop.xlane.xlu0 %8071  ;;  %8613 = vmin.xlane.f32.xlu1 %v12451_v56  ;;  %8598 = vmin.xlane.f32.xlu0 %v12453_v38  ;;  %v12459_v12 = vpop.xlane.xlu1 %8086 }
0x20b4   :  { %vm8073_vm14 = vcmp.eq.f32.partialorder %v12329_v48, %v12455_v40  ;;  %vm8088_vm15 = vcmp.eq.f32.partialorder %v12331_v35, %v12459_v12  ;;  %v7979_v48 = vcvt.s32.f32 %v7977_v8  ;;  %v8099_v35 = vcvt.s32.f32 %v8097_v6 }
0x20b5   :  { %v8074_v36 = vsel %vm8073_vm14, %v8069_v13, inf  ;;  %v8089_v50 = vsel %vm8088_vm15, %v8084_v53, inf  ;;  %v8159_v8 = vcvt.s32.f32 %v8157_v16 }
0x20b7   :  { %v12467_v58 = vpop.xlane.xlu0 %7981  ;;  %7955 = vmin.xlane.f32.xlu0 %v7954_v3  ;;  %7970 = vmin.xlane.f32.xlu1 %v7969_v34  ;;  %v12469_v10 = vpop.xlane.xlu1 %8101 }
0x20b8   :  { %vm7983_vm4 = vcmp.eq.f32.partialorder %v12349_v30, %v12467_v58  ;;  %vm8103_vm5 = vcmp.eq.f32.partialorder %v12351_v51, %v12469_v10  ;;  %v7994_v30 = vcvt.s32.f32 %v7992_v31  ;;  %v8114_v51 = vcvt.s32.f32 %v8112_v18  ;;  %v15107_v31 = vld [vmem:[#allocation167_spill] sm:$0xff] }
0x20b9   :  { %v7984_v47 = vsel %vm7983_vm4, %v7979_v48, inf  ;;  %v8104_v1 = vsel %vm8103_vm5, %v8099_v35, inf  ;;  %v15106_v35 = vld [vmem:[#allocation180_spill] sm:$0xff] }
0x20bb   :  { %v12477_v32 = vpop.xlane.xlu0 %7996  ;;  %8075 = vmin.xlane.f32.xlu0 %v8074_v36  ;;  %8090 = vmin.xlane.f32.xlu1 %v8089_v50  ;;  %v12479_v19 = vpop.xlane.xlu1 %8116 }
0x20bc   :  { %vm7998_vm2 = vcmp.eq.f32.partialorder %v12369_v26, %v12477_v32  ;;  %vm8118_vm13 = vcmp.eq.f32.partialorder %v12371_v27, %v12479_v19  ;;  %v8009_v26 = vcvt.s32.f32 %v8007_v55  ;;  %v8129_v27 = vcvt.s32.f32 %v8127_v22  ;;  %v15110_v55 = vld [vmem:[#allocation182_spill] sm:$0xff]  ;;  %v15111_v22 = vld [vmem:[#allocation169_spill] sm:$0xff] }
0x20bd   :  { %v7999_v57 = vsel %vm7998_vm2, %v7994_v30, inf  ;;  %v8119_v63 = vsel %vm8118_vm13, %v8114_v51, inf }
0x20bf   :  { %v12487_v33 = vpop.xlane.xlu0 %8011  ;;  %7985 = vmin.xlane.f32.xlu0 %v7984_v47  ;;  %8105 = vmin.xlane.f32.xlu1 %v8104_v1  ;;  %v12489_v62 = vpop.xlane.xlu1 %8131 }
0x20c0   :  { %vm8013_vm0 = vcmp.eq.f32.partialorder %v12389_v28, %v12487_v33  ;;  %vm8133_vm1 = vcmp.eq.f32.partialorder %v12391_v21, %v12489_v62  ;;  %v8024_v28 = vcvt.s32.f32 %v8022_v4  ;;  %v8144_v21 = vcvt.s32.f32 %v8142_v25  ;;  %v15115_v4 = vld [vmem:[#allocation171_spill] sm:$0xff] }
0x20c1   :  { %v8014_v52 = vsel %vm8013_vm0, %v8009_v26, inf  ;;  %v8134_v49 = vsel %vm8133_vm1, %v8129_v27, inf  ;;  %vm7012_vm0 = vcmp.ge.f32.partialorder %v11822_v9, %v11949_v44  ;;  %vm7013_vm1 = vcmp.ge.f32.partialorder %v11834_v11, %v11953_v20  ;;  %v15108_v11 = vld [vmem:[#allocation181_spill] sm:$0xff]  ;;  %v15109_v20 = vld [vmem:[#allocation168_spill] sm:$0xff]  ;;  %v15113_v26 = vld [vmem:[#allocation170_spill] sm:$0xff] }
0x20c2   :  { %v7028_v17 = vsel %vm7012_vm0, %v10653_v14, 8  ;;  %v15114_v27 = vld [vmem:[#allocation184_spill] sm:$0xff]  ;;  %v8594_v25 = vand.u32 65535, %v12441_v60  ;;  %v15116_v60 = vld [vmem:[#allocation185_spill] sm:$0xff] }
0x20c3   :  { %v12497_v42 = vpop.xlane.xlu0 %8026  ;;  %8000 = vmin.xlane.f32.xlu0 %v7999_v57  ;;  %8120 = vmin.xlane.f32.xlu1 %v8119_v63  ;;  %v12499_v39 = vpop.xlane.xlu1 %8146  ;;  %v12543_v18 = vsel %vm2218_vm3, %v7028_v17, 2147483647  ;;  %v15112_v63 = vld [vmem:[#allocation183_spill] sm:$0xff]  ;;  %v15124_v17 = vld [vmem:[#allocation189_spill] sm:$0xff] }
0x20c4   :  { %vm8028_vm14 = vcmp.eq.f32.partialorder %v12405_v5, %v12497_v42  ;;  %vm8148_vm15 = vcmp.eq.f32.partialorder %v12407_v15, %v12499_v39  ;;  %v8039_v15 = vcvt.s32.f32 %v8037_v29  ;;  %v7046_v47 = vshra.s32 %v12543_v18, 16 }
0x20c5   :  { %v8029_v34 = vsel %vm8028_vm14, %v8024_v28, inf  ;;  %v8149_v13 = vsel %vm8148_vm15, %v8144_v21, inf  ;;  %vm7020_vm14 = vcmp.ge.f32.partialorder %v15105_v45, %v11956_v0  ;;  %vm7021_vm15 = vcmp.ge.f32.partialorder %v15107_v31, %v15106_v35  ;;  %v15123_v45 = vld [vmem:[#allocation175_spill] sm:$0xff]  ;;  %v15127_v35 = vld [vmem:[#allocation177_spill] sm:$0xff] }
0x20c6   :  { %v7037_v0 = vsel %vm7021_vm15, %v10653_v14, 8 }
0x20c7   :  { %v12507_v41 = vpop.xlane.xlu0 %8041  ;;  %8015 = vmin.xlane.f32.xlu0 %v8014_v52  ;;  %8135 = vmin.xlane.f32.xlu1 %v8134_v49  ;;  %v12509_v3 = vpop.xlane.xlu1 %8161  ;;  %v12561_v57 = vsel %vm2218_vm3, %v7037_v0, 2147483647  ;;  %v8609_v52 = vand.u32 65535, %v12438_v54  ;;  %v12569_v49 = vcvt.s32.f32 %v7046_v47  ;;  %v15118_v54 = vld [vmem:[#allocation186_spill] sm:$0xff]  ;;  %v15128_v47 = vld [vmem:[#allocation191_spill] sm:$0xff] }
0x20c8   :  { %vm8043_vm4 = vcmp.eq.f32.partialorder %v12419_v59, %v12507_v41  ;;  %vm8163_vm5 = vcmp.eq.f32.partialorder %v12421_v24, %v12509_v3  ;;  %v8054_v59 = vcvt.s32.f32 %v8052_v43  ;;  %v8174_v24 = vcvt.s32.f32 %v8172_v46  ;;  %v15119_v43 = vld [vmem:[#allocation173_spill] sm:$0xff] }
0x20c9   :  { %v8044_v6 = vsel %vm8043_vm4, %v8039_v15, inf  ;;  %v8164_v36 = vsel %vm8163_vm5, %v8159_v8, inf  ;;  %vm7014_vm4 = vcmp.ge.f32.partialorder %v15109_v20, %v15108_v11  ;;  %vm7022_vm5 = vcmp.ge.f32.partialorder %v15111_v22, %v15110_v55  ;;  %v15117_v8 = vld [vmem:[#allocation172_spill] sm:$0xff] }
0x20ca   :  { %v7030_v51 = vsel %vm7014_vm4, %v10653_v14, 8  ;;  %v7181_v29 = vshra.s32 %v12561_v57, 16  ;;  %v7038_v16 = vsel %vm7022_vm5, %v10653_v14, 8  ;;  %vm7015_vm0 = vcmp.ge.f32.partialorder %v15117_v8, %v15116_v60 }
0x20cb   :  { %8030 = vmin.xlane.f32.xlu0 %v8029_v34  ;;  %8150 = vmin.xlane.f32.xlu1 %v8149_v13  ;;  %v12521_v5 = vpop.xlane.xlu0 %8056  ;;  %v12523_v53 = vpop.xlane.xlu1 %8176  ;;  %v12580_v15 = vsel %vm2218_vm3, %v7030_v51, 2147483647  ;;  %v7031_v11 = vsel %vm7015_vm0, %v10653_v14, 8  ;;  %vm15147_vm0 = vcmask 1047559  }
0x20cc   :  { %vm8058_vm2 = vcmp.eq.f32.partialorder %v12427_v2, %v12521_v5  ;;  %vm8178_vm13 = vcmp.eq.f32.partialorder %v12429_v61, %v12523_v53  ;;  %v7029_v2 = vsel %vm7013_vm1, %v10653_v14, 8  ;;  %v7036_v61 = vsel %vm7020_vm14, %v10653_v14, 8 }
0x20cd   :  { %v8059_v50 = vsel %vm8058_vm2, %v8054_v59, inf  ;;  %v8179_v48 = vsel %vm8178_vm13, %v8174_v24, inf  ;;  %v12546_v44 = vsel %vm2218_vm3, %v7029_v2, 2147483647  ;;  %v12549_v9 = vsel %vm2218_vm3, %v7036_v61, 2147483647 }
0x20ce   :  { %v7061_v1 = vshra.s32 %v12546_v44, 16  ;;  %v7166_v30 = vshra.s32 %v12549_v9, 16  ;;  %vm7016_vm2 = vcmp.ge.f32.partialorder %v15113_v26, %v15112_v63  ;;  %vm7024_vm13 = vcmp.ge.f32.partialorder %v15115_v4, %v15114_v27  ;;  %v15120_v24 = vld [vmem:[#allocation187_spill] sm:$0xff]  ;;  %v15125_v2 = vld [vmem:[#allocation176_spill] sm:$0xff]  ;;  %v15126_v61 = vld [vmem:[#allocation190_spill] sm:$0xff] }
0x20cf   :  { %8045 = vmin.xlane.f32.xlu0 %v8044_v6  ;;  %8165 = vmin.xlane.f32.xlu1 %v8164_v36  ;;  %v7032_v34 = vsel %vm7016_vm2, %v10653_v14, 8  ;;  %v7040_v13 = vsel %vm7024_vm13, %v10653_v14, 8  ;;  %vm7023_vm1 = vcmp.ge.f32.partialorder %v15119_v43, %v15118_v54  ;;  %v8596_v36 = vcvt.s32.f32 %v8594_v25 }
0x20d0   :  { %v12571_v28 = vcvt.s32.f32 %v7061_v1  ;;  %v12573_v21 = vcvt.s32.f32 %v7166_v30  ;;  %v8611_v59 = vcvt.s32.f32 %v8609_v52  ;;  %vm7018_vm2 = vcmp.ge.f32.partialorder %v15125_v2, %v15124_v17  ;;  %v15129_v1 = vld [vmem:[#allocation178_spill] sm:$0xff]  ;;  %v15130_v30 = vld [vmem:[#allocation192_spill] sm:$0xff] }
0x20d1   :  { %vm7026_vm13 = vcmp.ge.f32.partialorder %v15127_v35, %v15126_v61  ;;  %v7039_v20 = vsel %vm7023_vm1, %v10653_v14, 8  ;;  %vm7019_vm12 = vcmp.ge.f32.partialorder %v15129_v1, %v15128_v47  ;;  %v12614_v63 = vcvt.s32.f32 %v7181_v29  ;;  %vm15148_vm1 = vmmov %vm15147_vm0 }
0x20d2   :  { %v12617_v26 = vsel %vm2218_vm3, %v7038_v16, 2147483647  ;;  %v7034_v27 = vsel %vm7018_vm2, %v10653_v14, 8  ;;  %v7042_v4 = vsel %vm7026_vm13, %v10653_v14, 8  ;;  %v12628_v25 = vsel %vm2218_vm3, %v7032_v34, 2147483647 }
0x20d3   :  { %8060 = vmin.xlane.f32.xlu0 %v8059_v50  ;;  %8180 = vmin.xlane.f32.xlu1 %v8179_v48  ;;  %v15121_v50 = vld [vmem:[#allocation174_spill] sm:$0xff]  ;;  %v15122_v48 = vld [vmem:[#allocation188_spill] sm:$0xff]  ;;  %15132 = vst [vmem:[#allocation166_spill] sm:$0xff] %v12628_v25  ;;  %v12631_v52 = vsel %vm2218_vm3, %v7040_v13, 2147483647  ;;  %v7035_v29 = vsel %vm7019_vm12, %v10653_v14, 8 }
0x20d4   :  { %vm7017_vm14 = vcmp.ge.f32.partialorder %v15121_v50, %v15120_v24  ;;  %vm7025_vm15 = vcmp.ge.f32.partialorder %v15123_v45, %v15122_v48  ;;  %15133 = vst [vmem:[#allocation180_spill] sm:$0xff] %v12631_v52  ;;  %v12636_v60 = vsel %vm2218_vm3, %v7031_v11, 2147483647  ;;  %v12639_v8 = vsel %vm2218_vm3, %v7039_v20, 2147483647 }
0x20d5   :  { %v7041_v51 = vsel %vm7025_vm15, %v10653_v14, 8  ;;  %15134 = vst [vmem:[#allocation167_spill] sm:$0xff] %v12636_v60  ;;  %15135 = vst [vmem:[#allocation181_spill] sm:$0xff] %v12639_v8  ;;  %v7076_v34 = vshra.s32 %v12580_v15, 16  ;;  %v7196_v54 = vshra.s32 %v12617_v26, 16  ;;  %v7106_v24 = vshra.s32 %v12628_v25, 16 }
0x20d6   :  { %v12649_v43 = vsel %vm2218_vm3, %v7041_v51, 2147483647  ;;  %v7226_v50 = vshra.s32 %v12631_v52, 16  ;;  %v12658_v48 = vsel %vm2218_vm3, %v7034_v27, 2147483647  ;;  %v7091_v17 = vshra.s32 %v12636_v60, 16 }
0x20d7   :  { %15137 = vst [vmem:[#allocation182_spill] sm:$0xff] %v12649_v43  ;;  %15138 = vst [vmem:[#allocation169_spill] sm:$0xff] %v12658_v48  ;;  %v12661_v45 = vsel %vm2218_vm3, %v7042_v4, 2147483647  ;;  %v7211_v2 = vshra.s32 %v12639_v8, 16  ;;  %v12675_v11 = vcvt.s32.f32 %v7076_v34  ;;  %v12677_v20 = vcvt.s32.f32 %v7196_v54 }
0x20d8   :  { %15139 = vst [vmem:[#allocation183_spill] sm:$0xff] %v12661_v45  ;;  %v12666_v61 = vsel %vm2218_vm3, %v7035_v29, 2147483647  ;;  %v7136_v47 = vshra.s32 %v12658_v48, 16  ;;  %v7256_v1 = vshra.s32 %v12661_v45, 16  ;;  %v12687_v51 = vcvt.s32.f32 %v7226_v50 }
0x20d9   :  { %15140 = vst [vmem:[#allocation170_spill] sm:$0xff] %v12666_v61  ;;  %15142 = vst [vmem:[#allocation171_spill] sm:$0xff] %v12677_v20  ;;  %v7151_v27 = vshra.s32 %v12666_v61, 16  ;;  %v7958_v29 = vcvt.f32.s32 %v12443_v7  ;;  %v12693_v34 = vcvt.s32.f32 %v7091_v17  ;;  %v12695_v54 = vcvt.s32.f32 %v7211_v2 }
0x20da   :  { %v8078_v45 = vcvt.f32.s32 %v12455_v40  ;;  %v8093_v48 = vcvt.f32.s32 %v12459_v12  ;;  %v7988_v61 = vcvt.f32.s32 %v12467_v58  ;;  %v12707_v7 = vcvt.s32.f32 %v7136_v47 }
0x20db   :  { %15143 = vst [vmem:[#allocation185_spill] sm:$0xff] %v12693_v34  ;;  %15144 = vst [vmem:[#allocation172_spill] sm:$0xff] %v12695_v54  ;;  %v8003_v40 = vcvt.f32.s32 %v12477_v32  ;;  %v8123_v12 = vcvt.f32.s32 %v12479_v19  ;;  %v7959_v58 = vshll.u32 %v7958_v29, 16  ;;  %v8153_v32 = vcvt.f32.s32 %v12499_v39 }
0x20dc   :  { %v8079_v47 = vshll.u32 %v8078_v45, 16  ;;  %v8094_v52 = vshll.u32 %v8093_v48, 16  ;;  %v7989_v25 = vshll.u32 %v7988_v61, 16  ;;  %v8048_v61 = vcvt.f32.s32 %v12507_v41 }
0x20dd   :  { %v8124_v29 = vshll.u32 %v8123_v12, 16 }
0x2140   :  { %v12586_v46 = vpop.xlane.xlu0 %8598  ;;  %v12588_v6 = vpop.xlane.xlu1 %8613 }
0x2141   :  { %vm8600_vm4 = vcmp.eq.f32.partialorder %v12453_v38, %v12586_v46  ;;  %vm8615_vm5 = vcmp.eq.f32.partialorder %v12451_v56, %v12588_v6  ;;  %v15131_v38 = vld [vmem:[#allocation179_spill] sm:$0xff]  ;;  %v7033_v56 = vsel %vm7017_vm14, %v10653_v14, 8 }
0x2142   :  { %v8601_v31 = vsel %vm8600_vm4, %v8596_v36, inf  ;;  %v8616_v0 = vsel %vm8615_vm5, %v8611_v59, inf  ;;  %vm7027_vm11 = vcmp.ge.f32.partialorder %v15131_v38, %v15130_v30  ;;  %v12646_v13 = vsel %vm2218_vm3, %v7033_v56, 2147483647 }
0x2143   :  { %8602 = vmin.xlane.f32.xlu0 %v8601_v31  ;;  %8617 = vmin.xlane.f32.xlu1 %v8616_v0  ;;  %v7043_v16 = vsel %vm7027_vm11, %v10653_v14, 8  ;;  %15136 = vst [vmem:[#allocation168_spill] sm:$0xff] %v12646_v13  ;;  %v7121_v31 = vshra.s32 %v12646_v13, 16  ;;  %v7241_v0 = vshra.s32 %v12649_v43, 16  ;;  %v12685_v56 = vcvt.s32.f32 %v7106_v24 }
0x2144   :  { %v12610_v55 = vpop.xlane.xlu0 %7955  ;;  %v12612_v22 = vpop.xlane.xlu1 %7970  ;;  %v12669_v35 = vsel %vm2218_vm3, %v7043_v16, 2147483647  ;;  %v7973_v16 = vcvt.f32.s32 %v12445_v23  ;;  %v12709_v23 = vcvt.s32.f32 %v7256_v1  ;;  %v8018_v43 = vcvt.f32.s32 %v12487_v33 }
0x2145   :  { %15141 = vst [vmem:[#allocation184_spill] sm:$0xff] %v12669_v35  ;;  %v7271_v4 = vshra.s32 %v12669_v35, 16  ;;  %v12699_v24 = vcvt.s32.f32 %v7121_v31  ;;  %v12701_v50 = vcvt.s32.f32 %v7241_v0  ;;  %v8108_v35 = vcvt.f32.s32 %v12469_v10 }
0x2146   :  { %v12713_v31 = vcvt.s32.f32 %v7151_v27  ;;  %v7974_v10 = vshll.u32 %v7973_v16, 16  ;;  %v8138_v13 = vcvt.f32.s32 %v12489_v62  ;;  %v8033_v1 = vcvt.f32.s32 %v12497_v42 }
0x2147   :  { %7049 = vmin.xlane.f32.xlu0 %v12569_v49  ;;  %7064 = vmin.xlane.f32.xlu1 %v12571_v28  ;;  %v12715_v0 = vcvt.s32.f32 %v7271_v4  ;;  %v8109_v19 = vshll.u32 %v8108_v35, 16  ;;  %v7957_v8 = vcvt.f32.s32 %v12610_v55  ;;  %v7972_v27 = vcvt.f32.s32 %v12612_v22 }
0x2148   :  { %v12651_v36 = vpop.xlane.xlu0 %8075  ;;  %v12653_v59 = vpop.xlane.xlu1 %8090  ;;  %v8004_v4 = vshll.u32 %v8003_v40, 16  ;;  %v8019_v45 = vshll.u32 %v8018_v43, 16  ;;  %v8139_v39 = vshll.u32 %v8138_v13, 16  ;;  %v8168_v55 = vcvt.f32.s32 %v12509_v3 }
0x2149   :  { %v8077_v33 = vcvt.f32.s32 %v12651_v36  ;;  %v8092_v62 = vcvt.f32.s32 %v12653_v59  ;;  %v8034_v35 = vshll.u32 %v8033_v1, 16  ;;  %v8154_v22 = vshll.u32 %v8153_v32, 16 }
0x214a   :  { %v7960_v12 = vadd.s32 %v7959_v58, %v7957_v8  ;;  %v7975_v36 = vadd.s32 %v7974_v10, %v7972_v27  ;;  %v8049_v1 = vshll.u32 %v8048_v61, 16  ;;  %v8169_v32 = vshll.u32 %v8168_v55, 16 }
0x214b   :  { %7169 = vmin.xlane.f32.xlu0 %v12573_v21  ;;  %7184 = vmin.xlane.f32.xlu1 %v12614_v63  ;;  %v8095_v60 = vadd.s32 %v8094_v52, %v8092_v62  ;;  %v8183_v8 = vcvt.f32.s32 %v12523_v53  ;;  %vm15145_vm11 = vcmask 1046534  }
0x214c   :  { %v12681_v30 = vpop.xlane.xlu0 %7985  ;;  %v12683_v38 = vpop.xlane.xlu1 %8105  ;;  %v8189_v58 = vrot.slane %v7960_v12, %v10657_v37  ;;  %v8193_v52 = vrot.slane %v7975_v36, %v10657_v37  ;;  %vm15146_vm12 = vmmov %vm15145_vm11 }
0x214d   :  { %v7987_v16 = vcvt.f32.s32 %v12681_v30  ;;  %v8107_v40 = vcvt.f32.s32 %v12683_v38  ;;  %v8063_v38 = vcvt.f32.s32 %v12521_v5 }
0x214f   :  { %7079 = vmin.xlane.f32.xlu0 %v12675_v11  ;;  %7199 = vmin.xlane.f32.xlu1 %v12677_v20  ;;  %v8064_v55 = vshll.u32 %v8063_v38, 16 }
0x2150   :  { %v8001_v17 = vpop.xlane.xlu0 %8000  ;;  %v8121_v2 = vpop.xlane.xlu1 %8120 }
0x2151   :  { %v8122_v59 = vcvt.f32.s32 %v8121_v2  ;;  %v8110_v2 = vadd.s32 %v8109_v19, %v8107_v40 }
0x2153   :  { %7094 = vmin.xlane.f32.xlu0 %v12693_v34  ;;  %7214 = vmin.xlane.f32.xlu1 %v12695_v54  ;;  %v8002_v34 = vcvt.f32.s32 %v8001_v17  ;;  %v8080_v54 = vadd.s32 %v8079_v47, %v8077_v33  ;;  %v7990_v17 = vadd.s32 %v7989_v25, %v7987_v16  ;;  %v8125_v47 = vadd.s32 %v8124_v29, %v8122_v59 }
0x2154   :  { %v8016_v48 = vpop.xlane.xlu0 %8015  ;;  %v8136_v42 = vpop.xlane.xlu1 %8135  ;;  %v8225_v33 = vrot.slane %v8095_v60, %v10657_v37  ;;  %v8184_v16 = vshll.u32 %v8183_v8, 16 }
0x2155   :  { %v8017_v43 = vcvt.f32.s32 %v8016_v48  ;;  %v8137_v13 = vcvt.f32.s32 %v8136_v42  ;;  %v8005_v10 = vadd.s32 %v8004_v4, %v8002_v34  ;;  %v8221_v27 = vrot.slane %v8080_v54, %v10657_v37 }
0x2156   :  { %v8197_v34 = vrot.slane %v7990_v17, %v10657_v37  ;;  %v8229_v4 = vrot.slane %v8110_v2, %v10657_v37  ;;  %v8233_v60 = vrot.slane %v8125_v47, %v10657_v37 }
0x2157   :  { %7109 = vmin.xlane.f32.xlu0 %v12685_v56  ;;  %7229 = vmin.xlane.f32.xlu1 %v12687_v51  ;;  %v8020_v62 = vadd.s32 %v8019_v45, %v8017_v43  ;;  %v8140_v48 = vadd.s32 %v8139_v39, %v8137_v13  ;;  %v8201_v54 = vrot.slane %v8005_v10, %v10657_v37 }
0x2158   :  { %v8031_v41 = vpop.xlane.xlu0 %8030  ;;  %v8151_v3 = vpop.xlane.xlu1 %8150  ;;  %v8250_v39 = vsel %vm2831_vm6, %v8193_v52, %v8189_v58 }
0x2159   :  { %v8032_v20 = vcvt.f32.s32 %v8031_v41  ;;  %v8152_v30 = vcvt.f32.s32 %v8151_v3  ;;  %v8251_v41 = vsel %vm2833_vm7, %v8197_v34, %v8250_v39 }
0x215b   :  { %7124 = vmin.xlane.f32.xlu0 %v12699_v24  ;;  %7244 = vmin.xlane.f32.xlu1 %v12701_v50  ;;  %v8035_v25 = vadd.s32 %v8034_v35, %v8032_v20  ;;  %v8155_v19 = vadd.s32 %v8154_v22, %v8152_v30  ;;  %v8257_v20 = vsel %vm2831_vm6, %v8225_v33, %v8221_v27 }
0x215c   :  { %v8046_v5 = vpop.xlane.xlu0 %8045  ;;  %v8166_v53 = vpop.xlane.xlu1 %8165  ;;  %v8205_v35 = vrot.slane %v8020_v62, %v10657_v37  ;;  %v8237_v22 = vrot.slane %v8140_v48, %v10657_v37  ;;  %v8258_v3 = vsel %vm2833_vm7, %v8229_v4, %v8257_v20  ;;  %v8252_v30 = vsel %vm2835_vm8, %v8201_v54, %v8251_v41 }
0x215d   :  { %v8047_v42 = vcvt.f32.s32 %v8046_v5  ;;  %v8167_v61 = vcvt.f32.s32 %v8166_v53  ;;  %v8209_v36 = vrot.slane %v8035_v25, %v10657_v37  ;;  %v8241_v59 = vrot.slane %v8155_v19, %v10657_v37 }
0x215e   :  { %v8259_v38 = vsel %vm2835_vm8, %v8233_v60, %v8258_v3  ;;  %v8253_v2 = vsel %vm2837_vm9, %v8205_v35, %v8252_v30  ;;  %v8605_v53 = vcvt.f32.s32 %v12586_v46  ;;  %v8620_v25 = vcvt.f32.s32 %v12588_v6 }
0x215f   :  { %v8050_v29 = vadd.s32 %v8049_v1, %v8047_v42  ;;  %v8170_v45 = vadd.s32 %v8169_v32, %v8167_v61  ;;  %7139 = vmin.xlane.f32.xlu0 %v12707_v7  ;;  %7259 = vmin.xlane.f32.xlu1 %v12709_v23  ;;  %v8260_v58 = vsel %vm2837_vm9, %v8237_v22, %v8259_v38  ;;  %v7060_v30 = vand.u32 65535, %v12546_v44 }
0x2160   :  { %v8061_v40 = vpop.xlane.xlu0 %8060  ;;  %v8181_v12 = vpop.xlane.xlu1 %8180  ;;  %v8254_v52 = vsel %vm2839_vm10, %v8209_v36, %v8253_v2  ;;  %v8261_v10 = vsel %vm2839_vm10, %v8241_v59, %v8260_v58  ;;  %v8606_v61 = vshll.u32 %v8605_v53, 16  ;;  %v7180_v44 = vand.u32 65535, %v12561_v57  ;;  %v15152_v53 = vld [vmem:[#allocation167_spill] sm:$0xff] }
0x2161   :  { %v8062_v43 = vcvt.f32.s32 %v8061_v40  ;;  %v8182_v13 = vcvt.f32.s32 %v8181_v12  ;;  %v8213_v1 = vrot.slane %v8050_v29, %v10657_v37  ;;  %v8245_v32 = vrot.slane %v8170_v45, %v10657_v37 }
0x2163   :  { %v8065_v8 = vadd.s32 %v8064_v55, %v8062_v43  ;;  %v8185_v17 = vadd.s32 %v8184_v16, %v8182_v13  ;;  %7154 = vmin.xlane.f32.xlu0 %v12713_v31  ;;  %7274 = vmin.xlane.f32.xlu1 %v12715_v0  ;;  %v8255_v33 = vsel %vm15145_vm11, %v8213_v1, %v8254_v52  ;;  %v8621_v55 = vshll.u32 %v8620_v25, 16  ;;  %v15153_v25 = vld [vmem:[#allocation181_spill] sm:$0xff] }
0x2164   :  { %v8262_v62 = vsel %vm15146_vm12, %v8245_v32, %v8261_v10  ;;  %v7045_v32 = vand.u32 65535, %v12543_v18  ;;  %v7062_v52 = vcvt.s32.f32 %v7060_v30  ;;  %v7165_v18 = vand.u32 65535, %v12549_v9 }
0x2165   :  { %v8217_v47 = vrot.slane %v8065_v8, %v10657_v37  ;;  %v8249_v27 = vrot.slane %v8185_v17, %v10657_v37 }
0x2166   :  { %v7047_v58 = vcvt.s32.f32 %v7045_v32 }
0x2167   :  { %v8256_v48 = vsel %vm15147_vm0, %v8217_v47, %v8255_v33  ;;  %v8263_v5 = vsel %vm15148_vm1, %v8249_v27, %v8262_v62  ;;  %v7075_v27 = vand.u32 65535, %v12580_v15  ;;  %v7195_v33 = vand.u32 65535, %v12617_v26 }
0x2168   :  { %8264 = vst.msk [vmem:[#allocation5 + $0x70] sm:$0xff] %vm2218_vm3, %v8256_v48  ;;  %8265 = vst.msk [vmem:[#allocation5 + $0x78] sm:$0xff] %vm2218_vm3, %v8263_v5  ;;  %v7090_v15 = vand.u32 65535, %v15152_v53  ;;  %v7210_v26 = vand.u32 65535, %v15153_v25 }
0x2169   :  { %v7197_v5 = vcvt.s32.f32 %v7195_v33  ;;  %v15162_v33 = vld [vmem:[#allocation170_spill] sm:$0xff] }
0x216f   :  { %v8634_v45 = vld [vmem:[#allocation5 + $0x70] sm:$0xff]  ;;  %v8635_v46 = vld [vmem:[#allocation5 + $0x78] sm:$0xff] }
0x21d0   :  { %v8603_v19 = vpop.xlane.xlu0 %8602  ;;  %v8618_v42 = vpop.xlane.xlu1 %8617 }
0x21d1   :  { %v8604_v16 = vcvt.f32.s32 %v8603_v19  ;;  %v8619_v34 = vcvt.f32.s32 %v8618_v42 }
0x21d3   :  { %v12775_v4 = vadd.s32 %v8606_v61, %v8604_v16  ;;  %v12777_v54 = vadd.s32 %v8621_v55, %v8619_v34  ;;  %v15154_v61 = vld [vmem:[#allocation185_spill] sm:$0xff]  ;;  %v15155_v55 = vld [vmem:[#allocation172_spill] sm:$0xff]  ;;  %v7092_v34 = vcvt.s32.f32 %v7090_v15 }
0x21d4   :  { %v12779_v60 = vpop.xlane.xlu0 %7049  ;;  %v12781_v29 = vpop.xlane.xlu1 %7064 }
0x21d5   :  { %15149 = vst [vmem:[#allocation186_spill] sm:$0xff] %v12775_v4  ;;  %15150 = vst [vmem:[#allocation173_spill] sm:$0xff] %v12777_v54  ;;  %vm8636_vm14 = vcmp.eq.s32.totalorder %v10653_v14, %v12775_v4  ;;  %vm8637_vm15 = vcmp.eq.s32.totalorder %v10653_v14, %v12777_v54  ;;  %vm7051_vm4 = vcmp.eq.f32.partialorder %v12569_v49, %v12779_v60  ;;  %v7167_v49 = vcvt.s32.f32 %v7165_v18 }
0x21d6   :  { %v8638_v6 = vsel %vm8636_vm14, %v8634_v45, 0  ;;  %v8639_v39 = vsel %vm8637_vm15, %v8635_v46, 0  ;;  %vm7066_vm5 = vcmp.eq.f32.partialorder %v12571_v28, %v12781_v29  ;;  %v7052_v10 = vsel %vm7051_vm4, %v7047_v58, inf  ;;  %v15156_v46 = vld [vmem:[#allocation166_spill] sm:$0xff] }
0x21d7   :  { %v8640_v20 = vsel %vm2218_vm3, %v8638_v6, 0  ;;  %v8653_v35 = vsel %vm2218_vm3, %v8639_v39, 0  ;;  %v7067_v47 = vsel %vm7066_vm5, %v7062_v52, inf  ;;  %v7182_v28 = vcvt.s32.f32 %v7180_v44  ;;  %v15157_v39 = vld [vmem:[#allocation180_spill] sm:$0xff]  ;;  %v15160_v52 = vld [vmem:[#allocation169_spill] sm:$0xff]  ;;  %v15161_v44 = vld [vmem:[#allocation183_spill] sm:$0xff] }
0x21d8   :  { %v12789_v22 = vpop.xlane.xlu0 %7169  ;;  %v12791_v40 = vpop.xlane.xlu1 %7184  ;;  %v8642_v12 = vshrl.u32 %v8640_v20, 16  ;;  %v8655_v36 = vshrl.u32 %v8653_v35, 16  ;;  %v8641_v13 = vand.u32 65535, %v8640_v20  ;;  %v8654_v41 = vand.u32 65535, %v8653_v35 }
0x21d9   :  { %vm7171_vm2 = vcmp.eq.f32.partialorder %v12573_v21, %v12789_v22  ;;  %vm7186_vm13 = vcmp.eq.f32.partialorder %v12614_v63, %v12791_v40  ;;  %v15151_v21 = vld [vmem:[#allocation171_spill] sm:$0xff]  ;;  %v7077_v63 = vcvt.s32.f32 %v7075_v27  ;;  %v7212_v45 = vcvt.s32.f32 %v7210_v26 }
0x21da   :  { %v8644_v59 = vcvt.s32.f32 %v8642_v12  ;;  %v8657_v43 = vcvt.s32.f32 %v8655_v36  ;;  %v8643_v38 = vcvt.s32.f32 %v8641_v13  ;;  %v8656_v8 = vcvt.s32.f32 %v8654_v41  ;;  %v15159_v41 = vld [vmem:[#allocation182_spill] sm:$0xff] }
0x21db   :  { %v7172_v57 = vsel %vm7171_vm2, %v7167_v49, inf  ;;  %v7187_v48 = vsel %vm7186_vm13, %v7182_v28, inf  ;;  %v7105_v6 = vand.u32 65535, %v15156_v46  ;;  %v7225_v20 = vand.u32 65535, %v15157_v39 }
0x21dc   :  { %v12793_v3 = vpop.xlane.xlu0 %7079  ;;  %8647 = vadd.xlane.f32.xlu0 %v8644_v59  ;;  %8660 = vadd.xlane.f32.xlu1 %v8657_v43  ;;  %v12795_v1 = vpop.xlane.xlu1 %7199  ;;  %v15158_v43 = vld [vmem:[#allocation168_spill] sm:$0xff]  ;;  %v7240_v32 = vand.u32 65535, %v15159_v41  ;;  %v7135_v18 = vand.u32 65535, %v15160_v52  ;;  %v15168_v41 = vld [vmem:[#allocation150_spill] sm:$0xff]  ;;  %v15173_v52 = vld [vmem:[#allocation137_spill] sm:$0xff] }
0x21dd   :  { %vm7081_vm11 = vcmp.eq.f32.partialorder %v12675_v11, %v12793_v3  ;;  %vm7201_vm12 = vcmp.eq.f32.partialorder %v15151_v21, %v12795_v1  ;;  %v7107_v36 = vcvt.s32.f32 %v7105_v6  ;;  %v7227_v59 = vcvt.s32.f32 %v7225_v20 }
0x21de   :  { %v7082_v19 = vsel %vm7081_vm11, %v7077_v63, inf  ;;  %v7202_v42 = vsel %vm7201_vm12, %v7197_v5, inf  ;;  %v7120_v13 = vand.u32 65535, %v15158_v43 }
0x21e0   :  { %8645 = vadd.xlane.f32.xlu0 %v8643_v38  ;;  %8658 = vadd.xlane.f32.xlu1 %v8656_v8  ;;  %v12803_v17 = vpop.xlane.xlu0 %7094  ;;  %v12805_v2 = vpop.xlane.xlu1 %7214 }
0x21e1   :  { %vm7096_vm0 = vcmp.eq.f32.partialorder %v15154_v61, %v12803_v17  ;;  %vm7216_vm1 = vcmp.eq.f32.partialorder %v15155_v55, %v12805_v2  ;;  %v9456_v61 = vld [vmem:[%s14629_s1 + $0x8] sm:$0xff] }
0x21e2   :  { %v7097_v35 = vsel %vm7096_vm0, %v7092_v34, inf  ;;  %v7217_v12 = vsel %vm7216_vm1, %v7212_v45, inf  ;;  %v12868_v55 = vadd.s32 4294967295, %v9456_v61 }
0x21e4   :  { %7053 = vmin.xlane.f32.xlu0 %v7052_v10  ;;  %7068 = vmin.xlane.f32.xlu1 %v7067_v47  ;;  %v12815_v62 = vpop.xlane.xlu0 %7109  ;;  %v12817_v9 = vpop.xlane.xlu1 %7229  ;;  %v7255_v10 = vand.u32 65535, %v15161_v44  ;;  %15164 = vst [vmem:[#allocation187_spill] sm:$0xff] %v12868_v55  ;;  %v15174_v44 = vld [vmem:[#allocation152_spill] sm:$0xff] }
0x21e5   :  { %vm7111_vm14 = vcmp.eq.f32.partialorder %v12685_v56, %v12815_v62  ;;  %vm7231_vm15 = vcmp.eq.f32.partialorder %v12687_v51, %v12817_v9  ;;  %v7122_v56 = vcvt.s32.f32 %v7120_v13  ;;  %v7242_v51 = vcvt.s32.f32 %v7240_v32  ;;  %v15169_v32 = vld [vmem:[#allocation134_spill] sm:$0xff] }
0x21e6   :  { %v7112_v8 = vsel %vm7111_vm14, %v7107_v36, inf  ;;  %v7232_v58 = vsel %vm7231_vm15, %v7227_v59, inf  ;;  %v7257_v27 = vcvt.s32.f32 %v7255_v10  ;;  %vm8667_vm14 = vcmp.gt.s32.totalorder %v12868_v55, 6  ;;  %v15175_v10 = vld [vmem:[#allocation136_spill] sm:$0xff] }
0x21e7   :  { %vm6110_vm15 = vcmp.ge.f32.partialorder %v15169_v32, %v15168_v41 }
0x21e8   :  { %7173 = vmin.xlane.f32.xlu0 %v7172_v57  ;;  %7188 = vmin.xlane.f32.xlu1 %v7187_v48  ;;  %v12829_v11 = vpop.xlane.xlu0 %7124  ;;  %v12831_v16 = vpop.xlane.xlu1 %7244  ;;  %v7150_v57 = vand.u32 65535, %v15162_v33  ;;  %v15163_v48 = vld [vmem:[#allocation184_spill] sm:$0xff] }
0x21e9   :  { %vm7126_vm4 = vcmp.eq.f32.partialorder %v12699_v24, %v12829_v11  ;;  %vm7246_vm5 = vcmp.eq.f32.partialorder %v12701_v50, %v12831_v16  ;;  %v7137_v50 = vcvt.s32.f32 %v7135_v18  ;;  %v7270_v21 = vand.u32 65535, %v15163_v48 }
0x21ea   :  { %v7127_v47 = vsel %vm7126_vm4, %v7122_v56, inf  ;;  %v7247_v49 = vsel %vm7246_vm5, %v7242_v51, inf  ;;  %v15172_v51 = vld [vmem:[#allocation153_spill] sm:$0xff]  ;;  %v6126_v18 = vsel %vm6110_vm15, %v10653_v14, 8  ;;  %vm6119_vm5 = vcmp.ge.f32.partialorder %v15175_v10, %v15174_v44 }
0x21eb   :  { %vm6118_vm4 = vcmp.ge.f32.partialorder %v15173_v52, %v15172_v51  ;;  %v6135_v33 = vsel %vm6119_vm5, %v10653_v14, 8  ;;  %v12906_v48 = vsel %vm2218_vm3, %v6126_v18, 2147483647  ;;  %v7131_v41 = vcvt.f32.s32 %v12829_v11 }
0x21ec   :  { %7083 = vmin.xlane.f32.xlu0 %v7082_v19  ;;  %7203 = vmin.xlane.f32.xlu1 %v7202_v42  ;;  %v12841_v30 = vpop.xlane.xlu0 %7139  ;;  %v12843_v38 = vpop.xlane.xlu1 %7259  ;;  %v6144_v61 = vshra.s32 %v12906_v48, 16  ;;  %v7251_v32 = vcvt.f32.s32 %v12831_v16  ;;  %vm15188_vm15 = vcmask 1047559  }
0x21ed   :  { %vm7141_vm2 = vcmp.eq.f32.partialorder %v12707_v7, %v12841_v30  ;;  %vm7261_vm13 = vcmp.eq.f32.partialorder %v12709_v23, %v12843_v38  ;;  %v7152_v7 = vcvt.s32.f32 %v7150_v57  ;;  %v7272_v23 = vcvt.s32.f32 %v7270_v21  ;;  %v15176_v21 = vld [vmem:[#allocation154_spill] sm:$0xff] }
0x21ee   :  { %v7142_v63 = vsel %vm7141_vm2, %v7137_v50, inf  ;;  %v7262_v5 = vsel %vm7261_vm13, %v7257_v27, inf  ;;  %v6134_v27 = vsel %vm6118_vm4, %v10653_v14, 8  ;;  %v7266_v11 = vcvt.f32.s32 %v12843_v38  ;;  %vm15189_vm4 = vmmov %vm15188_vm15 }
0x21ef   :  { %v7252_v16 = vshll.u32 %v7251_v32, 16 }
0x21f0   :  { %7098 = vmin.xlane.f32.xlu0 %v7097_v35  ;;  %7218 = vmin.xlane.f32.xlu1 %v7217_v12  ;;  %v12855_v24 = vpop.xlane.xlu0 %7154  ;;  %v12857_v28 = vpop.xlane.xlu1 %7274  ;;  %v15166_v35 = vld [vmem:[#allocation151_spill] sm:$0xff] }
0x21f1   :  { %vm7156_vm11 = vcmp.eq.f32.partialorder %v12713_v31, %v12855_v24  ;;  %vm7276_vm12 = vcmp.eq.f32.partialorder %v12715_v0, %v12857_v28  ;;  %v9457_v31 = vld [vmem:[%s14629_s1] sm:$0xff]  ;;  %v15167_v12 = vld [vmem:[#allocation135_spill] sm:$0xff]  ;;  %s9463_s1 = smov 7  }
0x21f2   :  { %v7157_v53 = vsel %vm7156_vm11, %v7152_v7, inf  ;;  %v7277_v15 = vsel %vm7276_vm12, %v7272_v23, inf  ;;  %v12873_v0 = vadd.s32 4294967295, %v9457_v31  ;;  %vm6111_vm0 = vcmp.ge.f32.partialorder %v15167_v12, %v15166_v35  ;;  %v15178_v23 = vld [vmem:[#allocation155_spill] sm:$0xff] }
0x21f3   :  { %v12925_v31 = vsel %vm2218_vm3, %v6135_v33, 2147483647 }
0x21f4   :  { %7113 = vmin.xlane.f32.xlu0 %v7112_v8  ;;  %7233 = vmin.xlane.f32.xlu1 %v7232_v58  ;;  %15165 = vst [vmem:[#allocation174_spill] sm:$0xff] %v12873_v0  ;;  %vm8666_vm1 = vcmp.gt.s32.totalorder %v12873_v0, 6  ;;  %v6127_v8 = vsel %vm6111_vm0, %v10653_v14, 8  ;;  %vm15184_vm0 = vcmask 1046534  }
0x21f5   :  { %v12900_v50 = vsel %vm2218_vm3, %v6127_v8, 2147483647 }
0x21f6   :  { %v6159_v57 = vshra.s32 %v12900_v50, 16 }
0x21f8   :  { %7128 = vmin.xlane.f32.xlu0 %v7127_v47  ;;  %7248 = vmin.xlane.f32.xlu1 %v7247_v49 }
0x21fc   :  { %7143 = vmin.xlane.f32.xlu0 %v7142_v63  ;;  %7263 = vmin.xlane.f32.xlu1 %v7262_v5  ;;  %v15177_v63 = vld [vmem:[#allocation138_spill] sm:$0xff] }
0x21fd   :  { %vm6120_vm2 = vcmp.ge.f32.partialorder %v15177_v63, %v15176_v21  ;;  %v7132_v21 = vshll.u32 %v7131_v41, 16 }
0x2200   :  { %7158 = vmin.xlane.f32.xlu0 %v7157_v53  ;;  %7278 = vmin.xlane.f32.xlu1 %v7277_v15  ;;  %v15179_v53 = vld [vmem:[#allocation139_spill] sm:$0xff]  ;;  %v7056_v15 = vcvt.f32.s32 %v12779_v60  ;;  %v7206_v60 = vcvt.f32.s32 %v12795_v1 }
0x2201   :  { %vm6112_vm13 = vcmp.ge.f32.partialorder %v15179_v53, %v15178_v23 }
0x2202   :  { %v7057_v35 = vshll.u32 %v7056_v15, 16 }
0x2269   :  { %v8648_v25 = vpop.xlane.xlu0 %8647  ;;  %v8661_v26 = vpop.xlane.xlu1 %8660 }
0x226a   :  { %v8650_v19 = vcvt.f32.s32 %v8648_v25  ;;  %v8663_v42 = vcvt.f32.s32 %v8661_v26  ;;  %v7071_v25 = vcvt.f32.s32 %v12781_v29  ;;  %v12919_v26 = vsel %vm2218_vm3, %v6134_v27, 2147483647 }
0x226b   :  { %v12932_v29 = vcvt.s32.f32 %v6159_v57  ;;  %v7146_v57 = vcvt.f32.s32 %v12841_v30  ;;  %v15181_v30 = vld [vmem:[#allocation143_spill] sm:$0xff] }
0x226c   :  { %v8651_v46 = vshll.u32 %v8650_v19, 16  ;;  %v8664_v6 = vshll.u32 %v8663_v42, 16  ;;  %v7176_v19 = vcvt.f32.s32 %v12789_v22  ;;  %v7191_v42 = vcvt.f32.s32 %v12791_v40 }
0x226d   :  { %v8646_v34 = vpop.xlane.xlu0 %8645  ;;  %v8659_v45 = vpop.xlane.xlu1 %8658  ;;  %v7101_v22 = vcvt.f32.s32 %v12803_v17  ;;  %v7221_v40 = vcvt.f32.s32 %v12805_v2  ;;  %v7072_v12 = vshll.u32 %v7071_v25, 16  ;;  %v7207_v17 = vshll.u32 %v7206_v60, 16  ;;  %v15180_v60 = vld [vmem:[#allocation159_spill] sm:$0xff] }
0x226e   :  { %v8649_v39 = vcvt.f32.s32 %v8646_v34  ;;  %v8662_v20 = vcvt.f32.s32 %v8659_v45  ;;  %v12928_v34 = vsel %vm6120_vm2, %v10653_v14, 8  ;;  %v7086_v45 = vcvt.f32.s32 %v12793_v3 }
0x226f   :  { %v7236_v3 = vcvt.f32.s32 %v12817_v9  ;;  %v7177_v1 = vshll.u32 %v7176_v19, 16  ;;  %v7102_v52 = vshll.u32 %v7101_v22, 16  ;;  %v7222_v18 = vshll.u32 %v7221_v40, 16 }
0x2270   :  { %v8652_v36 = vadd.s32 %v8651_v46, %v8649_v39  ;;  %v8665_v59 = vadd.s32 %v8664_v6, %v8662_v20  ;;  %v12935_v46 = vsel %vm6112_vm13, %v10653_v14, 8  ;;  %v6264_v20 = vshra.s32 %v12919_v26, 16 }
0x2271   :  { %v12879_v43 = vpop.xlane.xlu0 %7053  ;;  %v12881_v13 = vpop.xlane.xlu1 %7068  ;;  %v7087_v8 = vshll.u32 %v7086_v45, 16  ;;  %v7237_v9 = vshll.u32 %v7236_v3, 16  ;;  %vm6113_vm11 = vcmp.ge.f32.partialorder %v15181_v30, %v15180_v60  ;;  %v7147_v38 = vshll.u32 %v7146_v57, 16  ;;  %v15182_v60 = vld [vmem:[#allocation157_spill] sm:$0xff] }
0x2272   :  { %v12887_v58 = vsel %vm8666_vm1, %v8652_v36, %v12775_v4  ;;  %v12890_v56 = vsel %vm8667_vm14, %v8665_v59, %v12777_v54  ;;  %v7116_v36 = vcvt.f32.s32 %v12815_v62  ;;  %v7192_v59 = vshll.u32 %v7191_v42, 16  ;;  %v15183_v30 = vld [vmem:[#allocation141_spill] sm:$0xff]  ;;  %vm15185_vm1 = vmmov %vm15184_vm0 }
0x2273   :  { %15170 = vst [vmem:[#allocation188_spill] sm:$0xff] %v12887_v58  ;;  %15171 = vst [vmem:[#allocation175_spill] sm:$0xff] %v12890_v56  ;;  %8684 = vperm.xlu0 %9151, %v12887_v58   ;;  %8687 = vperm.xlu1 %9152, %v12890_v56   ;;  %v7055_v2 = vcvt.f32.s32 %v12879_v43  ;;  %v7070_v51 = vcvt.f32.s32 %v12881_v13  ;;  %v7267_v22 = vshll.u32 %v7266_v11, 16  ;;  %vm6114_vm12 = vcmp.ge.f32.partialorder %v15183_v30, %v15182_v60 }
0x2274   :  { %v7117_v33 = vshll.u32 %v7116_v36, 16 }
0x2275   :  { %v7174_v47 = vpop.xlane.xlu0 %7173  ;;  %v7189_v49 = vpop.xlane.xlu1 %7188  ;;  %v7058_v23 = vadd.s32 %v7057_v35, %v7055_v2  ;;  %v7073_v13 = vadd.s32 %v7072_v12, %v7070_v51 }
0x2276   :  { %v7175_v44 = vcvt.f32.s32 %v7174_v47  ;;  %v7190_v10 = vcvt.f32.s32 %v7189_v49 }
0x2277   :  { %v7291_v12 = vrot.slane %v7073_v13, %v10657_v37 }
0x2278   :  { %v7178_v47 = vadd.s32 %v7177_v1, %v7175_v44  ;;  %v7193_v49 = vadd.s32 %v7192_v59, %v7190_v10 }
0x2279   :  { %v12910_v5 = vpop.xlane.xlu0 %7083  ;;  %v12912_v7 = vpop.xlane.xlu1 %7203 }
0x227a   :  { %v7085_v63 = vcvt.f32.s32 %v12910_v5  ;;  %v7205_v43 = vcvt.f32.s32 %v12912_v7  ;;  %v7161_v5 = vcvt.f32.s32 %v12855_v24  ;;  %v7281_v7 = vcvt.f32.s32 %v12857_v28 }
0x227b   :  { %v7319_v59 = vrot.slane %v7178_v47, %v10657_v37  ;;  %v7323_v41 = vrot.slane %v7193_v49, %v10657_v37 }
0x227c   :  { %v7088_v35 = vadd.s32 %v7087_v8, %v7085_v63  ;;  %v7162_v8 = vshll.u32 %v7161_v5, 16 }
0x227d   :  { %v7099_v6 = vpop.xlane.xlu0 %7098  ;;  %v7219_v39 = vpop.xlane.xlu1 %7218 }
0x227e   :  { %v7100_v53 = vcvt.f32.s32 %v7099_v6  ;;  %v7220_v15 = vcvt.f32.s32 %v7219_v39  ;;  %v7208_v6 = vadd.s32 %v7207_v17, %v7205_v43  ;;  %v7287_v39 = vrot.slane %v7058_v23, %v10657_v37 }
0x227f   :  { %v7282_v17 = vshll.u32 %v7281_v7, 16 }
0x2280   :  { %v7103_v3 = vadd.s32 %v7102_v52, %v7100_v53  ;;  %v7223_v1 = vadd.s32 %v7222_v18, %v7220_v15  ;;  %v7327_v57 = vrot.slane %v7208_v6, %v10657_v37 }
0x2281   :  { %v7114_v27 = vpop.xlane.xlu0 %7113  ;;  %v7234_v62 = vpop.xlane.xlu1 %7233 }
0x2282   :  { %v7115_v25 = vcvt.f32.s32 %v7114_v27  ;;  %v7235_v19 = vcvt.f32.s32 %v7234_v62  ;;  %v7295_v62 = vrot.slane %v7088_v35, %v10657_v37  ;;  %v7299_v52 = vrot.slane %v7103_v3, %v10657_v37 }
0x2283   :  { %v7331_v18 = vrot.slane %v7223_v1, %v10657_v37  ;;  %v12982_v35 = vsel %vm2218_vm3, %v12935_v46, 2147483647  ;;  %v12995_v46 = vcvt.s32.f32 %v6264_v20  ;;  %v6279_v20 = vshra.s32 %v12925_v31, 16 }
0x2284   :  { %v7118_v32 = vadd.s32 %v7117_v33, %v7115_v25  ;;  %v7238_v2 = vadd.s32 %v7237_v9, %v7235_v19  ;;  %v7348_v33 = vsel %vm2831_vm6, %v7291_v12, %v7287_v39  ;;  %v7355_v9 = vsel %vm2831_vm6, %v7323_v41, %v7319_v59  ;;  %v15186_v41 = vld [vmem:[#allocation158_spill] sm:$0xff] }
0x2285   :  { %v7129_v42 = vpop.xlane.xlu0 %7128  ;;  %v7249_v45 = vpop.xlane.xlu1 %7248  ;;  %v7349_v49 = vsel %vm2833_vm7, %v7295_v62, %v7348_v33  ;;  %v7356_v25 = vsel %vm2833_vm7, %v7327_v57, %v7355_v9  ;;  %v15191_v62 = vld [vmem:[#allocation145_spill] sm:$0xff]  ;;  %v15193_v57 = vld [vmem:[#allocation140_spill] sm:$0xff] }
0x2286   :  { %v7130_v40 = vcvt.f32.s32 %v7129_v42  ;;  %v7250_v36 = vcvt.f32.s32 %v7249_v45  ;;  %v7350_v45 = vsel %vm2835_vm8, %v7299_v52, %v7349_v49 }
0x2288   :  { %v7133_v10 = vadd.s32 %v7132_v21, %v7130_v40  ;;  %v7253_v24 = vadd.s32 %v7252_v16, %v7250_v36  ;;  %v7303_v21 = vrot.slane %v7118_v32, %v10657_v37  ;;  %v7335_v16 = vrot.slane %v7238_v2, %v10657_v37  ;;  %v15187_v32 = vld [vmem:[#allocation142_spill] sm:$0xff] }
0x2289   :  { %v7144_v51 = vpop.xlane.xlu0 %7143  ;;  %v7264_v44 = vpop.xlane.xlu1 %7263  ;;  %v6129_v36 = vsel %vm6113_vm11, %v10653_v14, 8  ;;  %vm6121_vm14 = vcmp.ge.f32.partialorder %v15187_v32, %v15186_v41 }
0x228a   :  { %v7145_v27 = vcvt.f32.s32 %v7144_v51  ;;  %v7265_v28 = vcvt.f32.s32 %v7264_v44  ;;  %v7307_v13 = vrot.slane %v7133_v10, %v10657_v37  ;;  %v7339_v53 = vrot.slane %v7253_v24, %v10657_v37 }
0x228b   :  { %v7351_v5 = vsel %vm2837_vm9, %v7303_v21, %v7350_v45  ;;  %v6174_v44 = vshra.s32 %v12982_v35, 16  ;;  %v13006_v10 = vcvt.s32.f32 %v6144_v61  ;;  %v13010_v24 = vsel %vm2218_vm3, %v6129_v36, 2147483647  ;;  %v15192_v61 = vld [vmem:[#allocation156_spill] sm:$0xff]  ;;  %v15201_v36 = vld [vmem:[#allocation146_spill] sm:$0xff] }
0x228c   :  { %v7148_v11 = vadd.s32 %v7147_v38, %v7145_v27  ;;  %v7268_v63 = vadd.s32 %v7267_v22, %v7265_v28  ;;  %v7357_v38 = vsel %vm2835_vm8, %v7331_v18, %v7356_v25  ;;  %v7352_v6 = vsel %vm2839_vm10, %v7307_v13, %v7351_v5  ;;  %v15197_v13 = vld [vmem:[#allocation144_spill] sm:$0xff] }
0x228d   :  { %v7159_v43 = vpop.xlane.xlu0 %7158  ;;  %v7279_v23 = vpop.xlane.xlu1 %7278  ;;  %v7358_v7 = vsel %vm2837_vm9, %v7335_v16, %v7357_v38  ;;  %v6130_v27 = vsel %vm6114_vm12, %v10653_v14, 8  ;;  %v13016_v28 = vsel %vm2218_vm3, %v12928_v34, 2147483647  ;;  %vm6122_vm2 = vcmp.ge.f32.partialorder %v15193_v57, %v15192_v61  ;;  %v15194_v16 = vld [vmem:[#allocation163_spill] sm:$0xff]  ;;  %v15198_v38 = vld [vmem:[#allocation165_spill] sm:$0xff] }
0x228e   :  { %v7160_v15 = vcvt.f32.s32 %v7159_v43  ;;  %v7280_v47 = vcvt.f32.s32 %v7279_v23  ;;  %v7311_v19 = vrot.slane %v7148_v11, %v10657_v37  ;;  %v7343_v42 = vrot.slane %v7268_v63, %v10657_v37  ;;  %v15195_v43 = vld [vmem:[#allocation147_spill] sm:$0xff]  ;;  %v15196_v23 = vld [vmem:[#allocation160_spill] sm:$0xff] }
0x228f   :  { %v7359_v39 = vsel %vm2839_vm10, %v7339_v53, %v7358_v7  ;;  %v13024_v52 = vcvt.s32.f32 %v6174_v44  ;;  %v6189_v18 = vshra.s32 %v13010_v24, 16  ;;  %v13027_v11 = vcvt.s32.f32 %v6279_v20 }
0x2290   :  { %v7163_v22 = vadd.s32 %v7162_v8, %v7160_v15  ;;  %v7283_v40 = vadd.s32 %v7282_v17, %v7280_v47  ;;  %v7353_v1 = vsel %vm15184_vm0, %v7311_v19, %v7352_v6  ;;  %v7360_v59 = vsel %vm15185_vm1, %v7343_v42, %v7359_v39  ;;  %v15190_v17 = vld [vmem:[#allocation161_spill] sm:$0xff] }
0x2291   :  { %v6137_v8 = vsel %vm6121_vm14, %v10653_v14, 8  ;;  %vm6115_vm5 = vcmp.ge.f32.partialorder %v15191_v62, %v15190_v17  ;;  %v6294_v63 = vshra.s32 %v13016_v28, 16  ;;  %v13031_v34 = vsel %vm2218_vm3, %v6130_v27, 2147483647 }
0x2292   :  { %v7315_v12 = vrot.slane %v7163_v22, %v10657_v37  ;;  %v7347_v3 = vrot.slane %v7283_v40, %v10657_v37  ;;  %6162 = vmin.xlane.f32.xlu0 %v12932_v29  ;;  %v6131_v33 = vsel %vm6115_vm5, %v10653_v14, 8  ;;  %v13036_v9 = vsel %vm2218_vm3, %v6137_v8, 2147483647  ;;  %v15199_v22 = vld [vmem:[#allocation149_spill] sm:$0xff]  ;;  %v15200_v40 = vld [vmem:[#allocation162_spill] sm:$0xff] }
0x2293   :  { %v6138_v21 = vsel %vm6122_vm2, %v10653_v14, 8  ;;  %vm6116_vm13 = vcmp.ge.f32.partialorder %v15195_v43, %v15194_v16  ;;  %vm6123_vm11 = vcmp.ge.f32.partialorder %v15197_v13, %v15196_v23  ;;  %v13044_v53 = vcvt.s32.f32 %v6189_v18 }
0x2294   :  { %v7354_v2 = vsel %vm15188_vm15, %v7315_v12, %v7353_v1  ;;  %v7361_v51 = vsel %vm15189_vm4, %v7347_v3, %v7360_v59  ;;  %v6204_v15 = vshra.s32 %v13031_v34, 16  ;;  %v13047_v47 = vcvt.s32.f32 %v6294_v63  ;;  %v15202_v1 = vld [vmem:[#allocation164_spill] sm:$0xff] }
0x2295   :  { %7362 = vst.msk [vmem:[#allocation5 + $0x60] sm:$0xff] %vm2218_vm3, %v7354_v2  ;;  %7363 = vst.msk [vmem:[#allocation5 + $0x68] sm:$0xff] %vm2218_vm3, %v7361_v51  ;;  %v6309_v49 = vshra.s32 %v13036_v9, 16  ;;  %v13051_v25 = vsel %vm2218_vm3, %v6131_v33, 2147483647  ;;  %v6132_v19 = vsel %vm6116_vm13, %v10653_v14, 8  ;;  %vm6117_vm12 = vcmp.ge.f32.partialorder %v15199_v22, %v15198_v38 }
0x2296   :  { %6267 = vmin.xlane.f32.xlu0 %v12995_v46  ;;  %v13056_v42 = vsel %vm2218_vm3, %v6138_v21, 2147483647  ;;  %v6139_v45 = vsel %vm6123_vm11, %v10653_v14, 8  ;;  %vm6124_vm0 = vcmp.ge.f32.partialorder %v15201_v36, %v15200_v40  ;;  %v13064_v5 = vcvt.s32.f32 %v6204_v15  ;;  %v15203_v59 = vld [vmem:[#allocation148_spill] sm:$0xff] }
0x2297   :  { %6147 = vmin.xlane.f32.xlu1 %v13006_v10  ;;  %v6219_v7 = vshra.s32 %v13051_v25, 16  ;;  %v13067_v6 = vcvt.s32.f32 %v6309_v49  ;;  %v6324_v39 = vshra.s32 %v13056_v42, 16  ;;  %v13071_v12 = vsel %vm2218_vm3, %v6132_v19, 2147483647 }
0x2298   :  { %v6133_v3 = vsel %vm6117_vm12, %v10653_v14, 8  ;;  %v13076_v60 = vsel %vm2218_vm3, %v6139_v45, 2147483647  ;;  %v6140_v30 = vsel %vm6124_vm0, %v10653_v14, 8  ;;  %vm6125_vm1 = vcmp.ge.f32.partialorder %v15203_v59, %v15202_v1 }
0x2299   :  { %v13082_v41 = vcvt.s32.f32 %v6219_v7  ;;  %v6234_v32 = vshra.s32 %v13071_v12, 16  ;;  %v13085_v2 = vcvt.s32.f32 %v6324_v39  ;;  %v6339_v51 = vshra.s32 %v13076_v60, 16 }
0x229a   :  { %6177 = vmin.xlane.f32.xlu0 %v13024_v52  ;;  %v13089_v44 = vsel %vm2218_vm3, %v6133_v3, 2147483647  ;;  %v13093_v20 = vsel %vm2218_vm3, %v6140_v30, 2147483647  ;;  %v6141_v27 = vsel %vm6125_vm1, %v10653_v14, 8  ;;  %v6158_v1 = vand.u32 65535, %v12900_v50 }
0x229b   :  { %6282 = vmin.xlane.f32.xlu1 %v13027_v11  ;;  %v13097_v8 = vcvt.s32.f32 %v6234_v32  ;;  %v6249_v17 = vshra.s32 %v13089_v44, 16  ;;  %v13100_v62 = vcvt.s32.f32 %v6339_v51  ;;  %v6354_v61 = vshra.s32 %v13093_v20, 16 }
0x229c   :  { %v13105_v57 = vsel %vm2218_vm3, %v6141_v27, 2147483647  ;;  %v8681_v23 = vld [vmem:[#allocation5 + $0x60] sm:$0xff]  ;;  %v8682_v13 = vld [vmem:[#allocation5 + $0x68] sm:$0xff]  ;;  %v6160_v32 = vcvt.s32.f32 %v6158_v1  ;;  %v6143_v51 = vand.u32 65535, %v12906_v48 }
0x229d   :  { %v13108_v18 = vcvt.s32.f32 %v6249_v17  ;;  %v13110_v63 = vcvt.s32.f32 %v6354_v61  ;;  %v6369_v33 = vshra.s32 %v13105_v57, 16 }
0x229e   :  { %6192 = vmin.xlane.f32.xlu0 %v13044_v53 }
0x229f   :  { %6297 = vmin.xlane.f32.xlu1 %v13047_v47  ;;  %v13115_v21 = vcvt.s32.f32 %v6369_v33  ;;  %v6145_v33 = vcvt.s32.f32 %v6143_v51 }
0x22a2   :  { %6207 = vmin.xlane.f32.xlu0 %v13064_v5 }
0x22a3   :  { %6312 = vmin.xlane.f32.xlu1 %v13067_v6 }
0x22a6   :  { %6222 = vmin.xlane.f32.xlu0 %v13082_v41 }
0x22a7   :  { %6327 = vmin.xlane.f32.xlu1 %v13085_v2 }
0x22aa   :  { %6237 = vmin.xlane.f32.xlu0 %v13097_v8 }
0x22ab   :  { %6342 = vmin.xlane.f32.xlu1 %v13100_v62 }
0x22ae   :  { %6252 = vmin.xlane.f32.xlu0 %v13108_v18 }
0x22af   :  { %6357 = vmin.xlane.f32.xlu1 %v13110_v63 }
0x22b3   :  { %6372 = vmin.xlane.f32.xlu1 %v13115_v21 }
0x22f2   :  { %v8685_v16 = vpop.permute.xlu0 %8684  ;;  %v8688_v43 = vpop.permute.xlu1 %8687 }
0x22f3   :  { %vm8689_vm14 = vcmp.eq.s32.totalorder %v10653_v14, %v8685_v16  ;;  %vm8690_vm15 = vcmp.eq.s32.totalorder %v10653_v14, %v8688_v43  ;;  %v6263_v16 = vand.u32 65535, %v12919_v26  ;;  %v6278_v43 = vand.u32 65535, %v12925_v31 }
0x22f4   :  { %v8691_v15 = vsel %vm8689_vm14, %v8681_v23, 0  ;;  %v8692_v49 = vsel %vm8690_vm15, %v8682_v13, 0  ;;  %v6293_v26 = vand.u32 65535, %v13016_v28  ;;  %v6308_v28 = vand.u32 65535, %v13036_v9 }
0x22f5   :  { %v8693_v19 = vsel %vm2218_vm3, %v8691_v15, 0  ;;  %v8706_v45 = vsel %vm2218_vm3, %v8692_v49, 0  ;;  %v6280_v13 = vcvt.s32.f32 %v6278_v43  ;;  %v6173_v15 = vand.u32 65535, %v12982_v35 }
0x22f6   :  { %v8695_v38 = vshrl.u32 %v8693_v19, 16  ;;  %v8708_v22 = vshrl.u32 %v8706_v45, 16  ;;  %v8694_v7 = vand.u32 65535, %v8693_v19  ;;  %v8707_v39 = vand.u32 65535, %v8706_v45 }
0x22f7   :  { %v6175_v19 = vcvt.s32.f32 %v6173_v15  ;;  %v6295_v45 = vcvt.s32.f32 %v6293_v26  ;;  %v6188_v35 = vand.u32 65535, %v13010_v24  ;;  %v6203_v24 = vand.u32 65535, %v13031_v34 }
0x22f8   :  { %v8697_v40 = vcvt.s32.f32 %v8695_v38  ;;  %v8710_v36 = vcvt.s32.f32 %v8708_v22  ;;  %v8696_v3 = vcvt.s32.f32 %v8694_v7  ;;  %v8709_v30 = vcvt.s32.f32 %v8707_v39 }
0x22f9   :  { %v6323_v9 = vand.u32 65535, %v13056_v42  ;;  %v6218_v34 = vand.u32 65535, %v13051_v25  ;;  %v6338_v42 = vand.u32 65535, %v13076_v60  ;;  %v6233_v25 = vand.u32 65535, %v13071_v12 }
0x22fa   :  { %8700 = vadd.xlane.f32.xlu0 %v8697_v40  ;;  %8713 = vadd.xlane.f32.xlu1 %v8710_v36  ;;  %v6190_v40 = vcvt.s32.f32 %v6188_v35  ;;  %v6310_v36 = vcvt.s32.f32 %v6308_v28  ;;  %v6353_v60 = vand.u32 65535, %v13093_v20  ;;  %v6248_v12 = vand.u32 65535, %v13089_v44 }
0x22fb   :  { %v6220_v51 = vcvt.s32.f32 %v6218_v34  ;;  %v6235_v43 = vcvt.s32.f32 %v6233_v25  ;;  %v6368_v20 = vand.u32 65535, %v13105_v57  ;;  %v15211_v34 = vld [vmem:[#allocation104_spill] sm:$0xff]  ;;  %v15214_v25 = vld [vmem:[#allocation121_spill] sm:$0xff] }
0x22fd   :  { %v6370_v15 = vcvt.s32.f32 %v6368_v20  ;;  %v15216_v20 = vld [vmem:[#allocation126_spill] sm:$0xff] }
0x22fe   :  { %8698 = vadd.xlane.f32.xlu0 %v8696_v3  ;;  %8711 = vadd.xlane.f32.xlu1 %v8709_v30  ;;  %v6205_v3 = vcvt.s32.f32 %v6203_v24  ;;  %v6325_v30 = vcvt.s32.f32 %v6323_v9  ;;  %v15206_v24 = vld [vmem:[#allocation119_spill] sm:$0xff] }
0x22ff   :  { %v15207_v9 = vld [vmem:[#allocation103_spill] sm:$0xff] }
0x231f   :  { %v13123_v59 = vpop.xlane.xlu0 %6162 }
0x2320   :  { %vm6164_vm4 = vcmp.eq.f32.partialorder %v12932_v29, %v13123_v59  ;;  %v6265_v29 = vcvt.s32.f32 %v6263_v16 }
0x2321   :  { %v6165_v27 = vsel %vm6164_vm4, %v6160_v32, inf }
0x2322   :  { %6166 = vmin.xlane.f32.xlu1 %v6165_v27  ;;  %v6340_v27 = vcvt.s32.f32 %v6338_v42 }
0x2323   :  { %v13128_v17 = vpop.xlane.xlu0 %6267 }
0x2324   :  { %v13130_v61 = vpop.xlane.xlu1 %6147  ;;  %vm6269_vm2 = vcmp.eq.f32.partialorder %v12995_v46, %v13128_v17 }
0x2325   :  { %vm6149_vm5 = vcmp.eq.f32.partialorder %v13006_v10, %v13130_v61  ;;  %v6270_v31 = vsel %vm6269_vm2, %v6265_v29, inf }
0x2326   :  { %v6150_v50 = vsel %vm6149_vm5, %v6145_v33, inf }
0x2327   :  { %v13136_v23 = vpop.xlane.xlu0 %6177  ;;  %6151 = vmin.xlane.f32.xlu0 %v6150_v50  ;;  %v6355_v50 = vcvt.s32.f32 %v6353_v60  ;;  %v15215_v60 = vld [vmem:[#allocation105_spill] sm:$0xff] }
0x2328   :  { %v13140_v48 = vpop.xlane.xlu1 %6282  ;;  %vm6179_vm11 = vcmp.eq.f32.partialorder %v13024_v52, %v13136_v23 }
0x2329   :  { %vm6284_vm13 = vcmp.eq.f32.partialorder %v13027_v11, %v13140_v48  ;;  %v6180_v11 = vsel %vm6179_vm11, %v6175_v19, inf }
0x232a   :  { %v6285_v10 = vsel %vm6284_vm13, %v6280_v13, inf  ;;  %v6250_v13 = vcvt.s32.f32 %v6248_v12 }
0x232b   :  { %v13146_v49 = vpop.xlane.xlu0 %6192  ;;  %6271 = vmin.xlane.f32.xlu0 %v6270_v31  ;;  %6286 = vmin.xlane.f32.xlu1 %v6285_v10 }
0x232c   :  { %v13150_v46 = vpop.xlane.xlu1 %6297  ;;  %vm6194_vm0 = vcmp.eq.f32.partialorder %v13044_v53, %v13146_v49 }
0x232d   :  { %vm6299_vm12 = vcmp.eq.f32.partialorder %v13047_v47, %v13150_v46  ;;  %v6195_v47 = vsel %vm6194_vm0, %v6190_v40, inf  ;;  %vm8719_vm0 = vcmp.gt.s32.totalorder %v12873_v0, 5  ;;  %v6289_v0 = vcvt.f32.s32 %v13140_v48 }
0x232e   :  { %v6300_v38 = vsel %vm6299_vm12, %v6295_v45, inf }
0x232f   :  { %v13156_v22 = vpop.xlane.xlu0 %6207  ;;  %6181 = vmin.xlane.f32.xlu0 %v6180_v11  ;;  %6301 = vmin.xlane.f32.xlu1 %v6300_v38 }
0x2330   :  { %v13160_v52 = vpop.xlane.xlu1 %6312  ;;  %vm6209_vm14 = vcmp.eq.f32.partialorder %v13064_v5, %v13156_v22 }
0x2331   :  { %vm6314_vm1 = vcmp.eq.f32.partialorder %v13067_v6, %v13160_v52  ;;  %v6210_v6 = vsel %vm6209_vm14, %v6205_v3, inf  ;;  %vm5209_vm14 = vcmp.ge.f32.partialorder %v15207_v9, %v15206_v24 }
0x2332   :  { %v6315_v7 = vsel %vm6314_vm1, %v6310_v36, inf  ;;  %vm8720_vm1 = vcmp.gt.s32.totalorder %v12868_v55, 5  ;;  %v5225_v3 = vsel %vm5209_vm14, %v10653_v14, 8 }
0x2333   :  { %v13166_v39 = vpop.xlane.xlu0 %6222  ;;  %6196 = vmin.xlane.f32.xlu0 %v6195_v47  ;;  %6316 = vmin.xlane.f32.xlu1 %v6315_v7  ;;  %v15208_v47 = vld [vmem:[#allocation118_spill] sm:$0xff] }
0x2334   :  { %v13170_v53 = vpop.xlane.xlu1 %6327  ;;  %vm6224_vm4 = vcmp.eq.f32.partialorder %v13082_v41, %v13166_v39  ;;  %v15209_v7 = vld [vmem:[#allocation102_spill] sm:$0xff]  ;;  %v6229_v48 = vcvt.f32.s32 %v13166_v39 }
0x2335   :  { %vm6329_vm15 = vcmp.eq.f32.partialorder %v13085_v2, %v13170_v53  ;;  %v6225_v2 = vsel %vm6224_vm4, %v6220_v51, inf  ;;  %v15213_v51 = vld [vmem:[#allocation106_spill] sm:$0xff] }
0x2336   :  { %v6330_v1 = vsel %vm6329_vm15, %v6325_v30, inf  ;;  %vm5208_vm15 = vcmp.ge.f32.partialorder %v15209_v7, %v15208_v47  ;;  %v15210_v30 = vld [vmem:[#allocation120_spill] sm:$0xff]  ;;  %v15228_v47 = vld [vmem:[#allocation129_spill] sm:$0xff] }
0x2337   :  { %v13176_v32 = vpop.xlane.xlu0 %6237  ;;  %6211 = vmin.xlane.f32.xlu0 %v6210_v6  ;;  %6331 = vmin.xlane.f32.xlu1 %v6330_v1  ;;  %vm5216_vm4 = vcmp.ge.f32.partialorder %v15211_v34, %v15210_v30  ;;  %v5224_v42 = vsel %vm5208_vm15, %v10653_v14, 8  ;;  %v15212_v1 = vld [vmem:[#allocation122_spill] sm:$0xff]  ;;  %v15229_v7 = vld [vmem:[#allocation113_spill] sm:$0xff] }
0x2338   :  { %v13180_v5 = vpop.xlane.xlu1 %6342  ;;  %vm6239_vm2 = vcmp.eq.f32.partialorder %v13097_v8, %v13176_v32  ;;  %v5232_v6 = vsel %vm5216_vm4, %v10653_v14, 8  ;;  %vm5221_vm15 = vcmp.ge.f32.partialorder %v15229_v7, %v15228_v47 }
0x2339   :  { %vm6344_vm5 = vcmp.eq.f32.partialorder %v13100_v62, %v13180_v5  ;;  %v6240_v62 = vsel %vm6239_vm2, %v6235_v43, inf  ;;  %vm5217_vm2 = vcmp.ge.f32.partialorder %v15215_v60, %v15214_v25 }
0x233a   :  { %v6345_v33 = vsel %vm6344_vm5, %v6340_v27, inf  ;;  %vm5210_vm5 = vcmp.ge.f32.partialorder %v15213_v51, %v15212_v1  ;;  %v13224_v27 = vsel %vm2218_vm3, %v5225_v3, 2147483647  ;;  %v5233_v12 = vsel %vm5217_vm2, %v10653_v14, 8  ;;  %v15231_v1 = vld [vmem:[#allocation114_spill] sm:$0xff] }
0x233b   :  { %6226 = vmin.xlane.f32.xlu0 %v6225_v2  ;;  %6346 = vmin.xlane.f32.xlu1 %v6345_v33  ;;  %v13188_v16 = vpop.xlane.xlu0 %6252  ;;  %v13229_v2 = vsel %vm2218_vm3, %v5224_v42, 2147483647  ;;  %v5226_v33 = vsel %vm5210_vm5, %v10653_v14, 8  ;;  %v5257_v43 = vshra.s32 %v13224_v27, 16 }
0x233c   :  { %v13190_v41 = vpop.xlane.xlu1 %6357  ;;  %vm6254_vm11 = vcmp.eq.f32.partialorder %v13108_v18, %v13188_v16 }
0x233d   :  { %vm6359_vm13 = vcmp.eq.f32.partialorder %v13110_v63, %v13190_v41  ;;  %v6255_v44 = vsel %vm6254_vm11, %v6250_v13, inf }
0x233e   :  { %v6360_v29 = vsel %vm6359_vm13, %v6355_v50, inf  ;;  %v13234_v50 = vsel %vm2218_vm3, %v5232_v6, 2147483647  ;;  %v15230_v6 = vld [vmem:[#allocation130_spill] sm:$0xff] }
0x233f   :  { %6241 = vmin.xlane.f32.xlu0 %v6240_v62  ;;  %6361 = vmin.xlane.f32.xlu1 %v6360_v29  ;;  %v15217_v62 = vld [vmem:[#allocation110_spill] sm:$0xff]  ;;  %v5242_v29 = vshra.s32 %v13229_v2, 16  ;;  %v5362_v13 = vshra.s32 %v13234_v50, 16  ;;  %vm5214_vm4 = vcmp.ge.f32.partialorder %v15231_v1, %v15230_v6 }
0x2340   :  { %v13198_v8 = vpop.xlane.xlu1 %6372  ;;  %vm5211_vm13 = vcmp.ge.f32.partialorder %v15217_v62, %v15216_v20  ;;  %v15235_v20 = vld [vmem:[#allocation116_spill] sm:$0xff]  ;;  %v5237_v62 = vsel %vm5221_vm15, %v10653_v14, 8 }
0x2341   :  { %vm6374_vm12 = vcmp.eq.f32.partialorder %v13115_v21, %v13198_v8  ;;  %v13267_v3 = vcvt.s32.f32 %v5362_v13  ;;  %v15237_v13 = vld [vmem:[#allocation117_spill] sm:$0xff] }
0x2342   :  { %v6375_v26 = vsel %vm6374_vm12, %v6370_v15, inf  ;;  %v13242_v15 = vsel %vm2218_vm3, %v5226_v33, 2147483647  ;;  %v15232_v33 = vld [vmem:[#allocation131_spill] sm:$0xff] }
0x2343   :  { %6256 = vmin.xlane.f32.xlu0 %v6255_v44  ;;  %6376 = vmin.xlane.f32.xlu1 %v6375_v26  ;;  %v15218_v44 = vld [vmem:[#allocation123_spill] sm:$0xff]  ;;  %v5272_v24 = vshra.s32 %v13242_v15, 16 }
0x2344   :  { %v15219_v26 = vld [vmem:[#allocation107_spill] sm:$0xff] }
0x2345   :  { %vm5218_vm11 = vcmp.ge.f32.partialorder %v15219_v26, %v15218_v44 }
0x2346   :  { %v5234_v9 = vsel %vm5218_vm11, %v10653_v14, 8  ;;  %vm15250_vm11 = vcmask 1046534  }
0x2387   :  { %v8701_v57 = vpop.xlane.xlu0 %8700  ;;  %v8714_v63 = vpop.xlane.xlu1 %8713 }
0x2388   :  { %v8703_v31 = vcvt.f32.s32 %v8701_v57  ;;  %v8716_v10 = vcvt.f32.s32 %v8714_v63  ;;  %v13246_v57 = vcvt.s32.f32 %v5257_v43  ;;  %v13249_v63 = vsel %vm2218_vm3, %v5233_v12, 2147483647  ;;  %v15233_v43 = vld [vmem:[#allocation115_spill] sm:$0xff]  ;;  %v15234_v12 = vld [vmem:[#allocation132_spill] sm:$0xff] }
0x2389   :  { %v5377_v30 = vshra.s32 %v13249_v63, 16  ;;  %vm5222_vm5 = vcmp.ge.f32.partialorder %v15233_v43, %v15232_v33  ;;  %vm5215_vm2 = vcmp.ge.f32.partialorder %v15235_v20, %v15234_v12 }
0x238a   :  { %v8704_v35 = vshll.u32 %v8703_v31, 16  ;;  %v8717_v28 = vshll.u32 %v8716_v10, 16  ;;  %v15220_v31 = vld [vmem:[#allocation124_spill] sm:$0xff] }
0x238b   :  { %v8699_v19 = vpop.xlane.xlu0 %8698  ;;  %v8712_v45 = vpop.xlane.xlu1 %8711  ;;  %v15221_v10 = vld [vmem:[#allocation108_spill] sm:$0xff]  ;;  %v13314_v47 = vcvt.s32.f32 %v5377_v30 }
0x238c   :  { %v8702_v18 = vcvt.f32.s32 %v8699_v19  ;;  %v8715_v11 = vcvt.f32.s32 %v8712_v45  ;;  %vm5212_vm12 = vcmp.ge.f32.partialorder %v15221_v10, %v15220_v31  ;;  %v15222_v19 = vld [vmem:[#allocation125_spill] sm:$0xff]  ;;  %v13291_v31 = vcvt.s32.f32 %v5272_v24 }
0x238d   :  { %v15223_v45 = vld [vmem:[#allocation109_spill] sm:$0xff]  ;;  %v5228_v34 = vsel %vm5212_vm12, %v10653_v14, 8  ;;  %v13294_v10 = vsel %vm2218_vm3, %v5234_v9, 2147483647  ;;  %vm15251_vm12 = vmmov %vm15250_vm11 }
0x238e   :  { %v8705_v38 = vadd.s32 %v8704_v35, %v8702_v18  ;;  %v8718_v21 = vadd.s32 %v8717_v28, %v8715_v11  ;;  %v5227_v35 = vsel %vm5211_vm13, %v10653_v14, 8  ;;  %v15224_v28 = vld [vmem:[#allocation127_spill] sm:$0xff]  ;;  %v15226_v11 = vld [vmem:[#allocation128_spill] sm:$0xff]  ;;  %v5392_v7 = vshra.s32 %v13294_v10, 16 }
0x238f   :  { %v15225_v18 = vld [vmem:[#allocation111_spill] sm:$0xff]  ;;  %v13275_v51 = vsel %vm2218_vm3, %v5227_v35, 2147483647  ;;  %v13300_v35 = vsel %vm2218_vm3, %v5228_v34, 2147483647 }
0x2390   :  { %v13205_v40 = vsel %vm8719_vm0, %v8705_v38, %v12887_v58  ;;  %v13208_v36 = vsel %vm8720_vm1, %v8718_v21, %v12890_v56  ;;  %vm5220_vm0 = vcmp.ge.f32.partialorder %v15223_v45, %v15222_v19  ;;  %vm5219_vm1 = vcmp.ge.f32.partialorder %v15225_v18, %v15224_v28  ;;  %v15227_v38 = vld [vmem:[#allocation112_spill] sm:$0xff]  ;;  %15238 = vst [vmem:[#allocation190_spill] sm:$0xff] %v13300_v35 }
0x2391   :  { %15204 = vst [vmem:[#allocation189_spill] sm:$0xff] %v13205_v40  ;;  %15205 = vst [vmem:[#allocation176_spill] sm:$0xff] %v13208_v36  ;;  %8737 = vperm.xlu0 %9151, %v13205_v40   ;;  %8740 = vperm.xlu1 %9152, %v13208_v36   ;;  %vm5213_vm14 = vcmp.ge.f32.partialorder %v15227_v38, %v15226_v11  ;;  %v13261_v21 = vcvt.s32.f32 %v5242_v29  ;;  %v5236_v42 = vsel %vm5220_vm0, %v10653_v14, 8  ;;  %v5235_v25 = vsel %vm5219_vm1, %v10653_v14, 8  ;;  %v15236_v29 = vld [vmem:[#allocation133_spill] sm:$0xff] }
0x2392   :  { %v5229_v60 = vsel %vm5213_vm14, %v10653_v14, 8  ;;  %vm5223_vm13 = vcmp.ge.f32.partialorder %v15237_v13, %v15236_v29  ;;  %v5230_v19 = vsel %vm5214_vm4, %v10653_v14, 8  ;;  %v5287_v45 = vshra.s32 %v13275_v51, 16 }
0x2393   :  { %v13303_v28 = vsel %vm2218_vm3, %v5236_v42, 2147483647  ;;  %v5238_v18 = vsel %vm5222_vm5, %v10653_v14, 8  ;;  %v5231_v11 = vsel %vm5215_vm2, %v10653_v14, 8  ;;  %v13308_v38 = vsel %vm2218_vm3, %v5235_v25, 2147483647 }
0x2394   :  { %15239 = vst [vmem:[#allocation177_spill] sm:$0xff] %v13303_v28  ;;  %v13311_v24 = vsel %vm2218_vm3, %v5229_v60, 2147483647  ;;  %v5239_v9 = vsel %vm5223_vm13, %v10653_v14, 8  ;;  %v13318_v34 = vsel %vm2218_vm3, %v5237_v62, 2147483647  ;;  %v13339_v20 = vcvt.s32.f32 %v5287_v45 }
0x2395   :  { %15240 = vst [vmem:[#allocation191_spill] sm:$0xff] %v13311_v24  ;;  %15241 = vst [vmem:[#allocation178_spill] sm:$0xff] %v13318_v34  ;;  %v5302_v1 = vshra.s32 %v13300_v35, 16  ;;  %v5422_v25 = vshra.s32 %v13303_v28, 16  ;;  %v13328_v60 = vsel %vm2218_vm3, %v5230_v19, 2147483647  ;;  %v13345_v13 = vcvt.s32.f32 %v5392_v7 }
0x2396   :  { %15242 = vst [vmem:[#allocation192_spill] sm:$0xff] %v13328_v60  ;;  %v5407_v30 = vshra.s32 %v13308_v38, 16  ;;  %v5317_v33 = vshra.s32 %v13311_v24, 16  ;;  %v13334_v43 = vsel %vm2218_vm3, %v5231_v11, 2147483647  ;;  %v5437_v62 = vshra.s32 %v13318_v34, 16 }
0x2397   :  { %15243 = vst [vmem:[#allocation179_spill] sm:$0xff] %v13334_v43  ;;  %v13337_v12 = vsel %vm2218_vm3, %v5238_v18, 2147483647  ;;  %v13343_v29 = vsel %vm2218_vm3, %v5239_v9, 2147483647  ;;  %v5332_v19 = vshra.s32 %v13328_v60, 16  ;;  %v13353_v56 = vcvt.s32.f32 %v5302_v1 }
0x2398   :  { %15244 = vst [vmem:[#allocation171_spill] sm:$0xff] %v13337_v12  ;;  %15245 = vst [vmem:[#allocation167_spill] sm:$0xff] %v13343_v29  ;;  %v13355_v18 = vcvt.s32.f32 %v5422_v25  ;;  %v5347_v45 = vshra.s32 %v13334_v43, 16  ;;  %v5452_v54 = vshra.s32 %v13337_v12, 16  ;;  %v6169_v9 = vcvt.f32.s32 %v13123_v59 }
0x2399   :  { %15246 = vst [vmem:[#allocation181_spill] sm:$0xff] %v13353_v56  ;;  %v13361_v7 = vcvt.s32.f32 %v5407_v30  ;;  %v13363_v4 = vcvt.s32.f32 %v5317_v33  ;;  %v5467_v36 = vshra.s32 %v13343_v29, 16  ;;  %v6274_v40 = vcvt.f32.s32 %v13128_v17 }
0x239a   :  { %15247 = vst [vmem:[#allocation185_spill] sm:$0xff] %v13355_v18  ;;  %v6154_v1 = vcvt.f32.s32 %v13130_v61  ;;  %v6184_v25 = vcvt.f32.s32 %v13136_v23  ;;  %v13369_v55 = vcvt.s32.f32 %v5437_v62  ;;  %v6199_v59 = vcvt.f32.s32 %v13146_v49 }
0x239b   :  { %15248 = vst [vmem:[#allocation172_spill] sm:$0xff] %v13361_v7  ;;  %15249 = vst [vmem:[#allocation166_spill] sm:$0xff] %v13363_v4  ;;  %v6304_v43 = vcvt.f32.s32 %v13150_v46  ;;  %v13374_v30 = vcvt.s32.f32 %v5332_v19  ;;  %v6214_v33 = vcvt.f32.s32 %v13156_v22  ;;  %v6319_v29 = vcvt.f32.s32 %v13160_v52 }
0x239c   :  { %v13379_v12 = vcvt.s32.f32 %v5347_v45  ;;  %v13381_v23 = vcvt.s32.f32 %v5452_v54  ;;  %v6170_v62 = vshll.u32 %v6169_v9, 16  ;;  %v6334_v49 = vcvt.f32.s32 %v13170_v53 }
0x239d   :  { %v13386_v46 = vcvt.s32.f32 %v5467_v36  ;;  %v6275_v22 = vshll.u32 %v6274_v40, 16  ;;  %v6155_v19 = vshll.u32 %v6154_v1, 16  ;;  %v6185_v52 = vshll.u32 %v6184_v25, 16 }
0x239e   :  { %v6244_v60 = vcvt.f32.s32 %v13176_v32  ;;  %v6290_v34 = vshll.u32 %v6289_v0, 16  ;;  %v6200_v24 = vshll.u32 %v6199_v59, 16  ;;  %v6305_v45 = vshll.u32 %v6304_v43, 16 }
0x239f   :  { %v6320_v9 = vshll.u32 %v6319_v29, 16  ;;  %v6230_v40 = vshll.u32 %v6229_v48, 16  ;;  %v6335_v1 = vshll.u32 %v6334_v49, 16  ;;  %v6349_v25 = vcvt.f32.s32 %v13180_v5 }
0x23a0   :  { %v6259_v0 = vcvt.f32.s32 %v13188_v16  ;;  %v6245_v32 = vshll.u32 %v6244_v60, 16  ;;  %vm15252_vm0 = vcmask 1047559  }
0x23a1   :  { %v6350_v60 = vshll.u32 %v6349_v25, 16  ;;  %vm15253_vm1 = vmmov %vm15252_vm0 }
0x23a2   :  { %v6260_v28 = vshll.u32 %v6259_v0, 16 }
0x23af   :  { %v13286_v44 = vpop.xlane.xlu1 %6166 }
0x23b0   :  { %5260 = vmin.xlane.f32.xlu0 %v13246_v57 }
0x23b4   :  { %5365 = vmin.xlane.f32.xlu0 %v13267_v3  ;;  %v13289_v26 = vpop.xlane.xlu0 %6151 }
0x23b5   :  { %5245 = vmin.xlane.f32.xlu1 %v13261_v21  ;;  %v6153_v54 = vcvt.f32.s32 %v13289_v26  ;;  %v6168_v26 = vcvt.f32.s32 %v13286_v44 }
0x23b7   :  { %v6156_v29 = vadd.s32 %v6155_v19, %v6153_v54 }
0x23b8   :  { %5275 = vmin.xlane.f32.xlu0 %v13291_v31  ;;  %v13321_v42 = vpop.xlane.xlu0 %6271  ;;  %v13323_v6 = vpop.xlane.xlu1 %6286 }
0x23b9   :  { %5380 = vmin.xlane.f32.xlu1 %v13314_v47  ;;  %v6273_v39 = vcvt.f32.s32 %v13321_v42  ;;  %v6288_v53 = vcvt.f32.s32 %v13323_v6  ;;  %v6364_v6 = vcvt.f32.s32 %v13190_v41  ;;  %v6171_v41 = vadd.s32 %v6170_v62, %v6168_v26 }
0x23bb   :  { %v6276_v48 = vadd.s32 %v6275_v22, %v6273_v39  ;;  %v6291_v49 = vadd.s32 %v6290_v34, %v6288_v53  ;;  %v6385_v34 = vrot.slane %v6156_v29, %v10657_v37 }
0x23bc   :  { %5290 = vmin.xlane.f32.xlu0 %v13339_v20  ;;  %v13349_v58 = vpop.xlane.xlu0 %6181  ;;  %v13351_v11 = vpop.xlane.xlu1 %6301 }
0x23bd   :  { %5395 = vmin.xlane.f32.xlu1 %v13345_v13  ;;  %v6183_v43 = vcvt.f32.s32 %v13349_v58  ;;  %v6303_v42 = vcvt.f32.s32 %v13351_v11  ;;  %v6379_v58 = vcvt.f32.s32 %v13198_v8  ;;  %v6417_v19 = vrot.slane %v6276_v48, %v10657_v37 }
0x23be   :  { %v6421_v54 = vrot.slane %v6291_v49, %v10657_v37 }
0x23bf   :  { %v6186_v11 = vadd.s32 %v6185_v52, %v6183_v43 }
0x23c0   :  { %5305 = vmin.xlane.f32.xlu0 %v13353_v56  ;;  %v6197_v17 = vpop.xlane.xlu0 %6196  ;;  %v6317_v61 = vpop.xlane.xlu1 %6316  ;;  %v6215_v56 = vshll.u32 %v6214_v33, 16 }
0x23c1   :  { %5410 = vmin.xlane.f32.xlu1 %v13361_v7  ;;  %v6198_v59 = vcvt.f32.s32 %v6197_v17  ;;  %v6318_v33 = vcvt.f32.s32 %v6317_v61  ;;  %v6306_v17 = vadd.s32 %v6305_v45, %v6303_v42  ;;  %v6365_v61 = vshll.u32 %v6364_v6, 16 }
0x23c2   :  { %v6380_v45 = vshll.u32 %v6379_v58, 16 }
0x23c3   :  { %v6201_v22 = vadd.s32 %v6200_v24, %v6198_v59  ;;  %v6389_v24 = vrot.slane %v6171_v41, %v10657_v37  ;;  %v6425_v0 = vrot.slane %v6306_v17, %v10657_v37 }
0x23c4   :  { %5320 = vmin.xlane.f32.xlu0 %v13363_v4  ;;  %v6212_v36 = vpop.xlane.xlu0 %6211  ;;  %v6332_v7 = vpop.xlane.xlu1 %6331 }
0x23c5   :  { %5425 = vmin.xlane.f32.xlu1 %v13355_v18  ;;  %v6213_v4 = vcvt.f32.s32 %v6212_v36  ;;  %v6333_v5 = vcvt.f32.s32 %v6332_v7  ;;  %v6321_v7 = vadd.s32 %v6320_v9, %v6318_v33  ;;  %v6393_v9 = vrot.slane %v6186_v11, %v10657_v37 }
0x23c7   :  { %v6216_v39 = vadd.s32 %v6215_v56, %v6213_v4  ;;  %v6336_v53 = vadd.s32 %v6335_v1, %v6333_v5  ;;  %v6397_v4 = vrot.slane %v6201_v22, %v10657_v37  ;;  %v6429_v56 = vrot.slane %v6321_v7, %v10657_v37 }
0x23c8   :  { %5335 = vmin.xlane.f32.xlu0 %v13374_v30  ;;  %v6227_v16 = vpop.xlane.xlu0 %6226  ;;  %v6347_v18 = vpop.xlane.xlu1 %6346 }
0x23c9   :  { %v6228_v44 = vcvt.f32.s32 %v6227_v16  ;;  %v6348_v35 = vcvt.f32.s32 %v6347_v18  ;;  %5440 = vmin.xlane.f32.xlu1 %v13369_v55  ;;  %v6401_v43 = vrot.slane %v6216_v39, %v10657_v37  ;;  %v6433_v42 = vrot.slane %v6336_v53, %v10657_v37 }
0x23cb   :  { %v6231_v25 = vadd.s32 %v6230_v40, %v6228_v44  ;;  %v6351_v8 = vadd.s32 %v6350_v60, %v6348_v35  ;;  %v6446_v40 = vsel %vm2831_vm6, %v6389_v24, %v6385_v34  ;;  %v6453_v35 = vsel %vm2831_vm6, %v6421_v54, %v6417_v19 }
0x23cc   :  { %5350 = vmin.xlane.f32.xlu0 %v13379_v12  ;;  %v6242_v18 = vpop.xlane.xlu0 %6241  ;;  %v6362_v36 = vpop.xlane.xlu1 %6361  ;;  %v6454_v5 = vsel %vm2833_vm7, %v6425_v0, %v6453_v35 }
0x23cd   :  { %v6243_v62 = vcvt.f32.s32 %v6242_v18  ;;  %v6363_v52 = vcvt.f32.s32 %v6362_v36  ;;  %5455 = vmin.xlane.f32.xlu1 %v13381_v23  ;;  %v6405_v59 = vrot.slane %v6231_v25, %v10657_v37  ;;  %v6437_v33 = vrot.slane %v6351_v8, %v10657_v37 }
0x23ce   :  { %v6455_v58 = vsel %vm2835_vm8, %v6429_v56, %v6454_v5  ;;  %v5376_v5 = vand.u32 65535, %v13249_v63 }
0x23cf   :  { %v6246_v1 = vadd.s32 %v6245_v32, %v6243_v62  ;;  %v6366_v26 = vadd.s32 %v6365_v61, %v6363_v52  ;;  %v6447_v32 = vsel %vm2833_vm7, %v6393_v9, %v6446_v40  ;;  %v6456_v61 = vsel %vm2837_vm9, %v6433_v42, %v6455_v58 }
0x23d0   :  { %v6257_v6 = vpop.xlane.xlu0 %6256  ;;  %v6377_v29 = vpop.xlane.xlu1 %6376  ;;  %v6448_v44 = vsel %vm2835_vm8, %v6397_v4, %v6447_v32  ;;  %v6457_v22 = vsel %vm2839_vm10, %v6437_v33, %v6456_v61  ;;  %v5361_v32 = vand.u32 65535, %v13234_v50  ;;  %v5391_v50 = vand.u32 65535, %v13294_v10 }
0x23d1   :  { %v6258_v48 = vcvt.f32.s32 %v6257_v6  ;;  %v6378_v49 = vcvt.f32.s32 %v6377_v29  ;;  %5470 = vmin.xlane.f32.xlu1 %v13386_v46  ;;  %v6409_v16 = vrot.slane %v6246_v1, %v10657_v37  ;;  %v6441_v60 = vrot.slane %v6366_v26, %v10657_v37 }
0x23d2   :  { %v6449_v17 = vsel %vm2837_vm9, %v6401_v43, %v6448_v44  ;;  %v5256_v43 = vand.u32 65535, %v13224_v27  ;;  %v5241_v29 = vand.u32 65535, %v13229_v2  ;;  %v5271_v44 = vand.u32 65535, %v13242_v15 }
0x23d3   :  { %v6261_v41 = vadd.s32 %v6260_v28, %v6258_v48  ;;  %v6381_v11 = vadd.s32 %v6380_v45, %v6378_v49  ;;  %v6450_v34 = vsel %vm2839_vm10, %v6405_v59, %v6449_v17  ;;  %v6458_v39 = vsel %vm15251_vm12, %v6441_v60, %v6457_v22 }
0x23d4   :  { %v6451_v54 = vsel %vm15250_vm11, %v6409_v16, %v6450_v34  ;;  %v5258_v6 = vcvt.s32.f32 %v5256_v43  ;;  %v5243_v49 = vcvt.s32.f32 %v5241_v29  ;;  %v5378_v60 = vcvt.s32.f32 %v5376_v5  ;;  %v15263_v43 = vld [vmem:[#allocation171_spill] sm:$0xff] }
0x23d5   :  { %v6413_v7 = vrot.slane %v6261_v41, %v10657_v37  ;;  %v6445_v19 = vrot.slane %v6381_v11, %v10657_v37  ;;  %v5273_v41 = vcvt.s32.f32 %v5271_v44  ;;  %v5393_v11 = vcvt.s32.f32 %v5391_v50  ;;  %v15265_v44 = vld [vmem:[#allocation167_spill] sm:$0xff] }
0x23d6   :  { %v5286_v15 = vand.u32 65535, %v13275_v51  ;;  %v5406_v10 = vand.u32 65535, %v13308_v38  ;;  %v5466_v50 = vand.u32 65535, %v15265_v44 }
0x23d7   :  { %v6452_v53 = vsel %vm15252_vm0, %v6413_v7, %v6451_v54  ;;  %v6459_v28 = vsel %vm15253_vm1, %v6445_v19, %v6458_v39  ;;  %v15254_v7 = vld [vmem:[#allocation190_spill] sm:$0xff]  ;;  %v15255_v19 = vld [vmem:[#allocation177_spill] sm:$0xff]  ;;  %v15256_v54 = vld [vmem:[#allocation172_spill] sm:$0xff] }
0x23d8   :  { %6460 = vst.msk [vmem:[#allocation5 + $0x50] sm:$0xff] %vm2218_vm3, %v6452_v53  ;;  %6461 = vst.msk [vmem:[#allocation5 + $0x58] sm:$0xff] %vm2218_vm3, %v6459_v28  ;;  %v5288_v34 = vcvt.s32.f32 %v5286_v15  ;;  %v5408_v22 = vcvt.s32.f32 %v5406_v10  ;;  %v5301_v51 = vand.u32 65535, %v15254_v7  ;;  %v5421_v38 = vand.u32 65535, %v15255_v19  ;;  %v15257_v28 = vld [vmem:[#allocation181_spill] sm:$0xff] }
0x23df   :  { %v8734_v25 = vld [vmem:[#allocation5 + $0x50] sm:$0xff]  ;;  %v8735_v8 = vld [vmem:[#allocation5 + $0x58] sm:$0xff] }
0x2410   :  { %v8738_v18 = vpop.permute.xlu0 %8737  ;;  %v8741_v36 = vpop.permute.xlu1 %8740 }
0x2411   :  { %vm8742_vm14 = vcmp.eq.s32.totalorder %v10653_v14, %v8738_v18  ;;  %vm8743_vm15 = vcmp.eq.s32.totalorder %v10653_v14, %v8741_v36  ;;  %v5303_v18 = vcvt.s32.f32 %v5301_v51  ;;  %v5423_v36 = vcvt.s32.f32 %v5421_v38  ;;  %v15266_v38 = vld [vmem:[#allocation174_spill] sm:$0xff] }
0x2412   :  { %v8744_v62 = vsel %vm8742_vm14, %v8734_v25, 0  ;;  %v8745_v52 = vsel %vm8743_vm15, %v8735_v8, 0  ;;  %v15258_v25 = vld [vmem:[#allocation191_spill] sm:$0xff] }
0x2413   :  { %v8746_v45 = vsel %vm2218_vm3, %v8744_v62, 0  ;;  %v8759_v24 = vsel %vm2218_vm3, %v8745_v52, 0  ;;  %v5316_v8 = vand.u32 65535, %v15258_v25  ;;  %v15259_v62 = vld [vmem:[#allocation178_spill] sm:$0xff] }
0x2414   :  { %v8748_v9 = vshrl.u32 %v8746_v45, 16  ;;  %v8761_v0 = vshrl.u32 %v8759_v24, 16  ;;  %v8747_v1 = vand.u32 65535, %v8746_v45  ;;  %v8760_v26 = vand.u32 65535, %v8759_v24  ;;  %v15260_v45 = vld [vmem:[#allocation185_spill] sm:$0xff]  ;;  %v15272_v25 = vld [vmem:[#allocation86_spill] sm:$0xff] }
0x2415   :  { %v5436_v52 = vand.u32 65535, %v15259_v62  ;;  %v15274_v62 = vld [vmem:[#allocation87_spill] sm:$0xff] }
0x2416   :  { %v8750_v4 = vcvt.s32.f32 %v8748_v9  ;;  %v8763_v56 = vcvt.s32.f32 %v8761_v0  ;;  %v8749_v40 = vcvt.s32.f32 %v8747_v1  ;;  %v8762_v35 = vcvt.s32.f32 %v8760_v26 }
0x2417   :  { %v5318_v1 = vcvt.s32.f32 %v5316_v8  ;;  %v5438_v26 = vcvt.s32.f32 %v5436_v52  ;;  %v15273_v8 = vld [vmem:[#allocation70_spill] sm:$0xff]  ;;  %v15275_v52 = vld [vmem:[#allocation71_spill] sm:$0xff] }
0x2418   :  { %8753 = vadd.xlane.f32.xlu0 %v8750_v4  ;;  %8766 = vadd.xlane.f32.xlu1 %v8763_v56  ;;  %v15261_v4 = vld [vmem:[#allocation166_spill] sm:$0xff] }
0x241c   :  { %8751 = vadd.xlane.f32.xlu0 %v8749_v40  ;;  %8764 = vadd.xlane.f32.xlu1 %v8762_v35  ;;  %v15262_v40 = vld [vmem:[#allocation192_spill] sm:$0xff] }
0x241d   :  { %v5331_v35 = vand.u32 65535, %v15262_v40 }
0x241f   :  { %v5333_v5 = vcvt.s32.f32 %v5331_v35 }
0x243d   :  { %v13443_v42 = vpop.xlane.xlu0 %5260 }
0x243e   :  { %vm5262_vm4 = vcmp.eq.f32.partialorder %v13246_v57, %v13443_v42  ;;  %v5363_v57 = vcvt.s32.f32 %v5361_v32 }
0x243f   :  { %v5263_v59 = vsel %vm5262_vm4, %v5258_v6, inf  ;;  %v5451_v6 = vand.u32 65535, %v15263_v43 }
0x2440   :  { %5264 = vmin.xlane.f32.xlu1 %v5263_v59 }
0x2441   :  { %v13448_v33 = vpop.xlane.xlu0 %5365 }
0x2442   :  { %v13450_v48 = vpop.xlane.xlu1 %5245  ;;  %vm5367_vm2 = vcmp.eq.f32.partialorder %v13267_v3, %v13448_v33 }
0x2443   :  { %vm5247_vm5 = vcmp.eq.f32.partialorder %v13261_v21, %v13450_v48  ;;  %v5368_v63 = vsel %vm5367_vm2, %v5363_v57, inf  ;;  %v15264_v57 = vld [vmem:[#allocation179_spill] sm:$0xff] }
0x2444   :  { %v5248_v27 = vsel %vm5247_vm5, %v5243_v49, inf }
0x2445   :  { %v13456_v16 = vpop.xlane.xlu0 %5275  ;;  %5249 = vmin.xlane.f32.xlu0 %v5248_v27  ;;  %v5453_v27 = vcvt.s32.f32 %v5451_v6 }
0x2446   :  { %v13460_v2 = vpop.xlane.xlu1 %5380  ;;  %vm5277_vm11 = vcmp.eq.f32.partialorder %v13291_v31, %v13456_v16 }
0x2447   :  { %vm5382_vm13 = vcmp.eq.f32.partialorder %v13314_v47, %v13460_v2  ;;  %v5278_v47 = vsel %vm5277_vm11, %v5273_v41, inf  ;;  %v5468_v41 = vcvt.s32.f32 %v5466_v50 }
0x2448   :  { %v5383_v21 = vsel %vm5382_vm13, %v5378_v60, inf  ;;  %v5346_v60 = vand.u32 65535, %v15264_v57  ;;  %v15283_v57 = vld [vmem:[#allocation74_spill] sm:$0xff] }
0x2449   :  { %v13466_v58 = vpop.xlane.xlu0 %5290  ;;  %5369 = vmin.xlane.f32.xlu0 %v5368_v63  ;;  %5384 = vmin.xlane.f32.xlu1 %v5383_v21 }
0x244a   :  { %v13470_v3 = vpop.xlane.xlu1 %5395  ;;  %vm5292_vm0 = vcmp.eq.f32.partialorder %v13339_v20, %v13466_v58  ;;  %v5348_v21 = vcvt.s32.f32 %v5346_v60 }
0x244b   :  { %vm5397_vm12 = vcmp.eq.f32.partialorder %v13345_v13, %v13470_v3  ;;  %v5293_v13 = vsel %vm5292_vm0, %v5288_v34, inf  ;;  %vm8772_vm0 = vcmp.gt.s32.totalorder %v15266_v38, 4  ;;  %v5387_v38 = vcvt.f32.s32 %v13460_v2 }
0x244c   :  { %v5398_v17 = vsel %vm5397_vm12, %v5393_v11, inf }
0x244d   :  { %v13476_v61 = vpop.xlane.xlu0 %5305  ;;  %5279 = vmin.xlane.f32.xlu0 %v5278_v47  ;;  %5399 = vmin.xlane.f32.xlu1 %v5398_v17 }
0x244e   :  { %v13480_v31 = vpop.xlane.xlu1 %5410  ;;  %vm5307_vm14 = vcmp.eq.f32.partialorder %v15257_v28, %v13476_v61 }
0x244f   :  { %vm5412_vm1 = vcmp.eq.f32.partialorder %v15256_v54, %v13480_v31  ;;  %v5308_v24 = vsel %vm5307_vm14, %v5303_v18, inf  ;;  %v15267_v54 = vld [vmem:[#allocation187_spill] sm:$0xff]  ;;  %v15270_v18 = vld [vmem:[#allocation176_spill] sm:$0xff]  ;;  %vm4307_vm14 = vcmp.ge.f32.partialorder %v15273_v8, %v15272_v25  ;;  %v15294_v8 = vld [vmem:[#allocation97_spill] sm:$0xff] }
0x2450   :  { %v5413_v39 = vsel %vm5412_vm1, %v5408_v22, inf  ;;  %vm8773_vm1 = vcmp.gt.s32.totalorder %v15267_v54, 4 }
0x2451   :  { %v13486_v53 = vpop.xlane.xlu0 %5320  ;;  %5294 = vmin.xlane.f32.xlu0 %v5293_v13  ;;  %5414 = vmin.xlane.f32.xlu1 %v5413_v39  ;;  %v15268_v39 = vld [vmem:[#allocation189_spill] sm:$0xff] }
0x2452   :  { %v13490_v20 = vpop.xlane.xlu1 %5425  ;;  %vm5322_vm4 = vcmp.eq.f32.partialorder %v15261_v4, %v13486_v53  ;;  %v15277_v4 = vld [vmem:[#allocation77_spill] sm:$0xff]  ;;  %v5327_v2 = vcvt.f32.s32 %v13486_v53 }
0x2453   :  { %vm5427_vm15 = vcmp.eq.f32.partialorder %v15260_v45, %v13490_v20  ;;  %v5323_v29 = vsel %vm5322_vm4, %v5318_v1, inf  ;;  %v4323_v45 = vsel %vm4307_vm14, %v10653_v14, 8  ;;  %v15278_v1 = vld [vmem:[#allocation88_spill] sm:$0xff] }
0x2454   :  { %v5428_v9 = vsel %vm5427_vm15, %v5423_v36, inf  ;;  %vm4314_vm15 = vcmp.ge.f32.partialorder %v15275_v52, %v15274_v62  ;;  %v13543_v40 = vsel %vm2218_vm3, %v4323_v45, 2147483647  ;;  %v15295_v62 = vld [vmem:[#allocation81_spill] sm:$0xff] }
0x2455   :  { %v13496_v0 = vpop.xlane.xlu0 %5335  ;;  %5309 = vmin.xlane.f32.xlu0 %v5308_v24  ;;  %5429 = vmin.xlane.f32.xlu1 %v5428_v9  ;;  %v4330_v24 = vsel %vm4314_vm15, %v10653_v14, 8  ;;  %v15276_v9 = vld [vmem:[#allocation93_spill] sm:$0xff]  ;;  %vm4318_vm15 = vcmp.ge.f32.partialorder %v15295_v62, %v15294_v8 }
0x2456   :  { %v13500_v56 = vpop.xlane.xlu1 %5440  ;;  %vm5337_vm2 = vcmp.eq.f32.partialorder %v13374_v30, %v13496_v0  ;;  %vm4306_vm4 = vcmp.ge.f32.partialorder %v15277_v4, %v15276_v9  ;;  %v13547_v43 = vsel %vm2218_vm3, %v4330_v24, 2147483647  ;;  %v15296_v4 = vld [vmem:[#allocation98_spill] sm:$0xff] }
0x2457   :  { %vm5442_vm5 = vcmp.eq.f32.partialorder %v13369_v55, %v13500_v56  ;;  %v5338_v55 = vsel %vm5337_vm2, %v5333_v5, inf  ;;  %v4322_v35 = vsel %vm4306_vm4, %v10653_v14, 8  ;;  %v4355_v5 = vshra.s32 %v13543_v40, 16 }
0x2458   :  { %v5443_v59 = vsel %vm5442_vm5, %v5438_v26, inf  ;;  %v15279_v26 = vld [vmem:[#allocation72_spill] sm:$0xff]  ;;  %v4460_v60 = vshra.s32 %v13547_v43, 16  ;;  %v13557_v44 = vsel %vm2218_vm3, %v4322_v35, 2147483647  ;;  %v15299_v35 = vld [vmem:[#allocation83_spill] sm:$0xff] }
0x2459   :  { %5324 = vmin.xlane.f32.xlu0 %v5323_v29  ;;  %5444 = vmin.xlane.f32.xlu1 %v5443_v59  ;;  %v13508_v49 = vpop.xlane.xlu0 %5350  ;;  %vm4308_vm5 = vcmp.ge.f32.partialorder %v15279_v26, %v15278_v1  ;;  %v15280_v29 = vld [vmem:[#allocation95_spill] sm:$0xff]  ;;  %v15297_v1 = vld [vmem:[#allocation82_spill] sm:$0xff] }
0x245a   :  { %v13510_v32 = vpop.xlane.xlu1 %5455  ;;  %vm5352_vm11 = vcmp.eq.f32.partialorder %v13379_v12, %v13508_v49  ;;  %v4324_v6 = vsel %vm4308_vm5, %v10653_v14, 8  ;;  %v15281_v59 = vld [vmem:[#allocation79_spill] sm:$0xff]  ;;  %vm4317_vm4 = vcmp.ge.f32.partialorder %v15297_v1, %v15296_v4 }
0x245b   :  { %vm5457_vm13 = vcmp.eq.f32.partialorder %v13381_v23, %v13510_v32  ;;  %v5353_v11 = vsel %vm5352_vm11, %v5348_v21, inf  ;;  %vm4315_vm2 = vcmp.ge.f32.partialorder %v15281_v59, %v15280_v29  ;;  %v15285_v21 = vld [vmem:[#allocation73_spill] sm:$0xff]  ;;  %v15298_v26 = vld [vmem:[#allocation99_spill] sm:$0xff]  ;;  %v15301_v29 = vld [vmem:[#allocation84_spill] sm:$0xff] }
0x245c   :  { %v5458_v63 = vsel %vm5457_vm13, %v5453_v27, inf  ;;  %v15282_v27 = vld [vmem:[#allocation90_spill] sm:$0xff]  ;;  %v4331_v50 = vsel %vm4315_vm2, %v10653_v14, 8  ;;  %vm4319_vm5 = vcmp.ge.f32.partialorder %v15299_v35, %v15298_v26 }
0x245d   :  { %5339 = vmin.xlane.f32.xlu0 %v5338_v55  ;;  %5459 = vmin.xlane.f32.xlu1 %v5458_v63  ;;  %vm4309_vm13 = vcmp.ge.f32.partialorder %v15283_v57, %v15282_v27  ;;  %v13561_v55 = vsel %vm2218_vm3, %v4324_v6, 2147483647  ;;  %v15284_v63 = vld [vmem:[#allocation89_spill] sm:$0xff]  ;;  %v15300_v6 = vld [vmem:[#allocation100_spill] sm:$0xff]  ;;  %v4334_v27 = vsel %vm4318_vm15, %v10653_v14, 8 }
0x245e   :  { %v13518_v30 = vpop.xlane.xlu1 %5470  ;;  %vm4310_vm11 = vcmp.ge.f32.partialorder %v15285_v21, %v15284_v63  ;;  %vm4320_vm2 = vcmp.ge.f32.partialorder %v15301_v29, %v15300_v6  ;;  %v15302_v57 = vld [vmem:[#allocation101_spill] sm:$0xff] }
0x245f   :  { %vm5472_vm12 = vcmp.eq.f32.partialorder %v13386_v46, %v13518_v30 }
0x2460   :  { %v5473_v15 = vsel %vm5472_vm12, %v5468_v41, inf  ;;  %v4325_v41 = vsel %vm4309_vm13, %v10653_v14, 8 }
0x2461   :  { %5354 = vmin.xlane.f32.xlu0 %v5353_v11  ;;  %5474 = vmin.xlane.f32.xlu1 %v5473_v15  ;;  %v15286_v11 = vld [vmem:[#allocation96_spill] sm:$0xff]  ;;  %v13589_v52 = vsel %vm2218_vm3, %v4325_v41, 2147483647 }
0x2462   :  { %v15287_v15 = vld [vmem:[#allocation80_spill] sm:$0xff] }
0x2463   :  { %vm4316_vm12 = vcmp.ge.f32.partialorder %v15287_v15, %v15286_v11  ;;  %v4333_v11 = vsel %vm4317_vm4, %v10653_v14, 8  ;;  %v4385_v15 = vshra.s32 %v13589_v52, 16 }
0x2464   :  { %v4332_v25 = vsel %vm4316_vm12, %v10653_v14, 8 }
0x2465   :  { %v13614_v41 = vsel %vm2218_vm3, %v4332_v25, 2147483647  ;;  %v13644_v25 = vsel %vm2218_vm3, %v4334_v27, 2147483647  ;;  %v13665_v6 = vcvt.s32.f32 %v4385_v15 }
0x2466   :  { %15308 = vst [vmem:[#allocation184_spill] sm:$0xff] %v13644_v25  ;;  %v4520_v29 = vshra.s32 %v13644_v25, 16 }
0x2468   :  { %v13695_v54 = vcvt.s32.f32 %v4520_v29 }
0x246a   :  { %15314 = vst [vmem:[#allocation137_spill] sm:$0xff] %v13695_v54 }
0x24a5   :  { %v8754_v10 = vpop.xlane.xlu0 %8753  ;;  %v8767_v23 = vpop.xlane.xlu1 %8766 }
0x24a6   :  { %v8756_v47 = vcvt.f32.s32 %v8754_v10  ;;  %v8769_v17 = vcvt.f32.s32 %v8767_v23  ;;  %v13568_v10 = vcvt.s32.f32 %v4355_v5  ;;  %v15288_v23 = vld [vmem:[#allocation91_spill] sm:$0xff] }
0x24a8   :  { %v8757_v7 = vshll.u32 %v8756_v47, 16  ;;  %v8770_v51 = vshll.u32 %v8769_v17, 16  ;;  %v15289_v47 = vld [vmem:[#allocation75_spill] sm:$0xff]  ;;  %v15290_v17 = vld [vmem:[#allocation92_spill] sm:$0xff] }
0x24a9   :  { %v8752_v34 = vpop.xlane.xlu0 %8751  ;;  %v8765_v22 = vpop.xlane.xlu1 %8764 }
0x24aa   :  { %v8755_v12 = vcvt.f32.s32 %v8752_v34  ;;  %v8768_v19 = vcvt.f32.s32 %v8765_v22  ;;  %v15291_v34 = vld [vmem:[#allocation76_spill] sm:$0xff]  ;;  %v15292_v22 = vld [vmem:[#allocation94_spill] sm:$0xff] }
0x24ac   :  { %v8758_v13 = vadd.s32 %v8757_v7, %v8755_v12  ;;  %v8771_v46 = vadd.s32 %v8770_v51, %v8768_v19  ;;  %v15293_v7 = vld [vmem:[#allocation78_spill] sm:$0xff]  ;;  %v4340_v51 = vshra.s32 %v13557_v44, 16  ;;  %v13578_v12 = vcvt.s32.f32 %v4460_v60  ;;  %v15303_v60 = vld [vmem:[#allocation85_spill] sm:$0xff] }
0x24ad   :  { %vm4321_vm14 = vcmp.ge.f32.partialorder %v15293_v7, %v15292_v22  ;;  %v4370_v19 = vshra.s32 %v13561_v55, 16  ;;  %vm4313_vm13 = vcmp.ge.f32.partialorder %v15303_v60, %v15302_v57 }
0x24ae   :  { %v13525_v28 = vsel %vm8772_vm0, %v8758_v13, %v15268_v39  ;;  %v13528_v36 = vsel %vm8773_vm1, %v8771_v46, %v15270_v18  ;;  %vm4311_vm0 = vcmp.ge.f32.partialorder %v15289_v47, %v15288_v23  ;;  %vm4312_vm1 = vcmp.ge.f32.partialorder %v15291_v34, %v15290_v17 }
0x24af   :  { %15269 = vst [vmem:[#allocation180_spill] sm:$0xff] %v13525_v28  ;;  %15271 = vst [vmem:[#allocation168_spill] sm:$0xff] %v13528_v36  ;;  %8790 = vperm.xlu0 %9151, %v13525_v28   ;;  %8793 = vperm.xlu1 %9152, %v13528_v36   ;;  %v13582_v13 = vsel %vm2218_vm3, %v4331_v50, 2147483647  ;;  %v4326_v46 = vsel %vm4310_vm11, %v10653_v14, 8  ;;  %v4327_v45 = vsel %vm4311_vm0, %v10653_v14, 8  ;;  %v13600_v59 = vcvt.s32.f32 %v4340_v51 }
0x24b0   :  { %v4328_v24 = vsel %vm4312_vm1, %v10653_v14, 8  ;;  %v4337_v9 = vsel %vm4321_vm14, %v10653_v14, 8  ;;  %v4475_v5 = vshra.s32 %v13582_v13, 16  ;;  %v13611_v21 = vcvt.s32.f32 %v4370_v19 }
0x24b1   :  { %v13620_v23 = vsel %vm2218_vm3, %v4326_v46, 2147483647  ;;  %v13623_v47 = vsel %vm2218_vm3, %v4327_v45, 2147483647  ;;  %v4335_v17 = vsel %vm4319_vm5, %v10653_v14, 8  ;;  %v4336_v34 = vsel %vm4320_vm2, %v10653_v14, 8 }
0x24b2   :  { %15304 = vst [vmem:[#allocation182_spill] sm:$0xff] %v13620_v23  ;;  %15305 = vst [vmem:[#allocation169_spill] sm:$0xff] %v13623_v47  ;;  %v13634_v22 = vsel %vm2218_vm3, %v4328_v24, 2147483647  ;;  %v13637_v7 = vsel %vm2218_vm3, %v4337_v9, 2147483647  ;;  %v13640_v19 = vcvt.s32.f32 %v4475_v5  ;;  %v5372_v28 = vcvt.f32.s32 %v13448_v33 }
0x24b3   :  { %15306 = vst [vmem:[#allocation183_spill] sm:$0xff] %v13634_v22  ;;  %15307 = vst [vmem:[#allocation170_spill] sm:$0xff] %v13637_v7  ;;  %v4329_v51 = vsel %vm4313_vm13, %v10653_v14, 8  ;;  %v4490_v46 = vshra.s32 %v13614_v41, 16  ;;  %v4400_v45 = vshra.s32 %v13620_v23, 16  ;;  %v4415_v9 = vshra.s32 %v13623_v47, 16 }
0x24b4   :  { %v13653_v24 = vsel %vm2218_vm3, %v4333_v11, 2147483647  ;;  %v4430_v4 = vshra.s32 %v13634_v22, 16  ;;  %v13659_v1 = vsel %vm2218_vm3, %v4335_v17, 2147483647  ;;  %v4565_v35 = vshra.s32 %v13637_v7, 16 }
0x24b5   :  { %15309 = vst [vmem:[#allocation151_spill] sm:$0xff] %v13659_v1  ;;  %v13662_v26 = vsel %vm2218_vm3, %v4336_v34, 2147483647  ;;  %v13669_v5 = vsel %vm2218_vm3, %v4329_v51, 2147483647  ;;  %v13671_v27 = vcvt.s32.f32 %v4490_v46  ;;  %v4505_v57 = vshra.s32 %v13653_v24, 16 }
0x24b6   :  { %15310 = vst [vmem:[#allocation135_spill] sm:$0xff] %v13662_v26  ;;  %15311 = vst [vmem:[#allocation150_spill] sm:$0xff] %v13669_v5  ;;  %v13679_v17 = vcvt.s32.f32 %v4400_v45  ;;  %v13681_v34 = vcvt.s32.f32 %v4415_v9  ;;  %v4535_v15 = vshra.s32 %v13659_v1, 16  ;;  %v4550_v39 = vshra.s32 %v13662_v26, 16 }
0x24b7   :  { %v5267_v51 = vcvt.f32.s32 %v13443_v42  ;;  %v13687_v46 = vcvt.s32.f32 %v4430_v4  ;;  %v4445_v18 = vshra.s32 %v13669_v5, 16  ;;  %v13690_v36 = vcvt.s32.f32 %v4565_v35 }
0x24b8   :  { %15312 = vst [vmem:[#allocation134_spill] sm:$0xff] %v13679_v17  ;;  %15313 = vst [vmem:[#allocation153_spill] sm:$0xff] %v13681_v34  ;;  %v5252_v45 = vcvt.f32.s32 %v13450_v48  ;;  %v5282_v9 = vcvt.f32.s32 %v13456_v16  ;;  %v5297_v42 = vcvt.f32.s32 %v13466_v58  ;;  %v5402_v7 = vcvt.f32.s32 %v13470_v3 }
0x24b9   :  { %v13700_v4 = vcvt.s32.f32 %v4505_v57  ;;  %v5312_v5 = vcvt.f32.s32 %v13476_v61  ;;  %v5417_v35 = vcvt.f32.s32 %v13480_v31  ;;  %v13705_v26 = vcvt.s32.f32 %v4535_v15 }
0x24ba   :  { %v13707_v16 = vcvt.s32.f32 %v4550_v39  ;;  %v5268_v29 = vshll.u32 %v5267_v51, 16  ;;  %v5432_v58 = vcvt.f32.s32 %v13490_v20  ;;  %v13712_v3 = vcvt.s32.f32 %v4445_v18 }
0x24bb   :  { %15315 = vst [vmem:[#allocation152_spill] sm:$0xff] %v13700_v4  ;;  %v5373_v61 = vshll.u32 %v5372_v28, 16  ;;  %v5253_v57 = vshll.u32 %v5252_v45, 16  ;;  %v5283_v31 = vshll.u32 %v5282_v9, 16  ;;  %v5342_v22 = vcvt.f32.s32 %v13496_v0 }
0x24bc   :  { %v5388_v1 = vshll.u32 %v5387_v38, 16  ;;  %v5298_v47 = vshll.u32 %v5297_v42, 16  ;;  %v5403_v15 = vshll.u32 %v5402_v7, 16  ;;  %v5418_v51 = vshll.u32 %v5417_v35, 16 }
0x24bd   :  { %v5328_v28 = vshll.u32 %v5327_v2, 16  ;;  %v5433_v45 = vshll.u32 %v5432_v58, 16  ;;  %v5447_v9 = vcvt.f32.s32 %v13500_v56  ;;  %v5357_v0 = vcvt.f32.s32 %v13508_v49 }
0x24be   :  { %v5343_v38 = vshll.u32 %v5342_v22, 16  ;;  %vm15316_vm11 = vcmask 1046534   ;;  %vm15318_vm0 = vcmask 1047559  }
0x24bf   :  { %v5448_v22 = vshll.u32 %v5447_v9, 16  ;;  %v5358_v25 = vshll.u32 %v5357_v0, 16  ;;  %vm15317_vm12 = vmmov %vm15316_vm11 }
0x24c0   :  { %vm15319_vm1 = vmmov %vm15318_vm0 }
0x24cd   :  { %v13606_v50 = vpop.xlane.xlu1 %5264 }
0x24ce   :  { %4358 = vmin.xlane.f32.xlu0 %v13568_v10 }
0x24d2   :  { %4463 = vmin.xlane.f32.xlu0 %v13578_v12  ;;  %v13609_v63 = vpop.xlane.xlu0 %5249 }
0x24d3   :  { %4343 = vmin.xlane.f32.xlu1 %v13600_v59  ;;  %v5251_v39 = vcvt.f32.s32 %v13609_v63  ;;  %v5266_v63 = vcvt.f32.s32 %v13606_v50 }
0x24d6   :  { %4373 = vmin.xlane.f32.xlu0 %v13611_v21  ;;  %v13647_v8 = vpop.xlane.xlu0 %5369  ;;  %v13649_v62 = vpop.xlane.xlu1 %5384 }
0x24d7   :  { %4478 = vmin.xlane.f32.xlu1 %v13640_v19  ;;  %v5371_v53 = vcvt.f32.s32 %v13647_v8  ;;  %v5386_v20 = vcvt.f32.s32 %v13649_v62  ;;  %v5462_v62 = vcvt.f32.s32 %v13510_v32  ;;  %v5269_v32 = vadd.s32 %v5268_v29, %v5266_v63 }
0x24d9   :  { %v5374_v2 = vadd.s32 %v5373_v61, %v5371_v53  ;;  %v5389_v58 = vadd.s32 %v5388_v1, %v5386_v20 }
0x24da   :  { %4388 = vmin.xlane.f32.xlu0 %v13665_v6  ;;  %v13675_v60 = vpop.xlane.xlu0 %5279  ;;  %v13677_v11 = vpop.xlane.xlu1 %5399 }
0x24db   :  { %4493 = vmin.xlane.f32.xlu1 %v13671_v27  ;;  %v5281_v7 = vcvt.f32.s32 %v13675_v60  ;;  %v5401_v8 = vcvt.f32.s32 %v13677_v11  ;;  %v5477_v60 = vcvt.f32.s32 %v13518_v30 }
0x24dd   :  { %v5284_v11 = vadd.s32 %v5283_v31, %v5281_v7 }
0x24de   :  { %4403 = vmin.xlane.f32.xlu0 %v13679_v17  ;;  %v5295_v33 = vpop.xlane.xlu0 %5294  ;;  %v5415_v48 = vpop.xlane.xlu1 %5414  ;;  %v5313_v17 = vshll.u32 %v5312_v5, 16  ;;  %v5254_v5 = vadd.s32 %v5253_v57, %v5251_v39  ;;  %v5515_v57 = vrot.slane %v5374_v2, %v10657_v37  ;;  %v5519_v39 = vrot.slane %v5389_v58, %v10657_v37 }
0x24df   :  { %4508 = vmin.xlane.f32.xlu1 %v13700_v4  ;;  %v5296_v42 = vcvt.f32.s32 %v5295_v33  ;;  %v5416_v35 = vcvt.f32.s32 %v5415_v48  ;;  %v5404_v33 = vadd.s32 %v5403_v15, %v5401_v8  ;;  %v5463_v48 = vshll.u32 %v5462_v62, 16 }
0x24e0   :  { %v5483_v1 = vrot.slane %v5254_v5, %v10657_v37  ;;  %v5478_v15 = vshll.u32 %v5477_v60, 16 }
0x24e1   :  { %v5299_v61 = vadd.s32 %v5298_v47, %v5296_v42  ;;  %v5487_v47 = vrot.slane %v5269_v32, %v10657_v37  ;;  %v5523_v0 = vrot.slane %v5404_v33, %v10657_v37 }
0x24e2   :  { %4418 = vmin.xlane.f32.xlu0 %v13681_v34  ;;  %v5310_v18 = vpop.xlane.xlu0 %5309  ;;  %v5430_v4 = vpop.xlane.xlu1 %5429 }
0x24e3   :  { %4523 = vmin.xlane.f32.xlu1 %v13695_v54  ;;  %v5311_v34 = vcvt.f32.s32 %v5310_v18  ;;  %v5431_v56 = vcvt.f32.s32 %v5430_v4  ;;  %v5419_v4 = vadd.s32 %v5418_v51, %v5416_v35  ;;  %v5491_v51 = vrot.slane %v5284_v11, %v10657_v37 }
0x24e5   :  { %v5314_v53 = vadd.s32 %v5313_v17, %v5311_v34  ;;  %v5434_v20 = vadd.s32 %v5433_v45, %v5431_v56  ;;  %v5495_v17 = vrot.slane %v5299_v61, %v10657_v37  ;;  %v5527_v34 = vrot.slane %v5419_v4, %v10657_v37 }
0x24e6   :  { %4433 = vmin.xlane.f32.xlu0 %v13687_v46  ;;  %v5325_v49 = vpop.xlane.xlu0 %5324  ;;  %v5445_v54 = vpop.xlane.xlu1 %5444 }
0x24e7   :  { %v5326_v50 = vcvt.f32.s32 %v5325_v49  ;;  %v5446_v23 = vcvt.f32.s32 %v5445_v54  ;;  %4538 = vmin.xlane.f32.xlu1 %v13705_v26  ;;  %v5499_v7 = vrot.slane %v5314_v53, %v10657_v37  ;;  %v5531_v8 = vrot.slane %v5434_v20, %v10657_v37 }
0x24e9   :  { %v5329_v9 = vadd.s32 %v5328_v28, %v5326_v50  ;;  %v5449_v30 = vadd.s32 %v5448_v22, %v5446_v23  ;;  %v5544_v28 = vsel %vm2831_vm6, %v5487_v47, %v5483_v1  ;;  %v5551_v23 = vsel %vm2831_vm6, %v5519_v39, %v5515_v57 }
0x24ea   :  { %4448 = vmin.xlane.f32.xlu0 %v13712_v3  ;;  %v5340_v54 = vpop.xlane.xlu0 %5339  ;;  %v5460_v18 = vpop.xlane.xlu1 %5459  ;;  %v5552_v56 = vsel %vm2833_vm7, %v5523_v0, %v5551_v23 }
0x24eb   :  { %v5341_v29 = vcvt.f32.s32 %v5340_v54  ;;  %v5461_v31 = vcvt.f32.s32 %v5460_v18  ;;  %4553 = vmin.xlane.f32.xlu1 %v13707_v16  ;;  %v5503_v42 = vrot.slane %v5329_v9, %v10657_v37  ;;  %v5535_v35 = vrot.slane %v5449_v30, %v10657_v37 }
0x24ec   :  { %v5553_v60 = vsel %vm2835_vm8, %v5527_v34, %v5552_v56  ;;  %v4474_v56 = vand.u32 65535, %v13582_v13 }
0x24ed   :  { %v5344_v45 = vadd.s32 %v5343_v38, %v5341_v29  ;;  %v5464_v63 = vadd.s32 %v5463_v48, %v5461_v31  ;;  %v5545_v38 = vsel %vm2833_vm7, %v5491_v51, %v5544_v28  ;;  %v5554_v48 = vsel %vm2837_vm9, %v5531_v8, %v5553_v60 }
0x24ee   :  { %v5355_v62 = vpop.xlane.xlu0 %5354  ;;  %v5475_v5 = vpop.xlane.xlu1 %5474  ;;  %v5546_v50 = vsel %vm2835_vm8, %v5495_v17, %v5545_v38  ;;  %v5555_v61 = vsel %vm2839_vm10, %v5535_v35, %v5554_v48  ;;  %v4459_v38 = vand.u32 65535, %v13547_v43  ;;  %v4489_v43 = vand.u32 65535, %v13614_v41 }
0x24ef   :  { %v5356_v2 = vcvt.f32.s32 %v5355_v62  ;;  %v5476_v58 = vcvt.f32.s32 %v5475_v5  ;;  %4568 = vmin.xlane.f32.xlu1 %v13690_v36  ;;  %v5507_v49 = vrot.slane %v5344_v45, %v10657_v37  ;;  %v5539_v22 = vrot.slane %v5464_v63, %v10657_v37 }
0x24f0   :  { %v5547_v33 = vsel %vm2837_vm9, %v5499_v7, %v5546_v50  ;;  %v4354_v7 = vand.u32 65535, %v13543_v40  ;;  %v4339_v5 = vand.u32 65535, %v13557_v44  ;;  %v4369_v50 = vand.u32 65535, %v13561_v55 }
0x24f1   :  { %v5359_v32 = vadd.s32 %v5358_v25, %v5356_v2  ;;  %v5479_v11 = vadd.s32 %v5478_v15, %v5476_v58  ;;  %v5548_v1 = vsel %vm2839_vm10, %v5503_v42, %v5547_v33  ;;  %v5556_v53 = vsel %vm15317_vm12, %v5539_v22, %v5555_v61 }
0x24f2   :  { %v5549_v39 = vsel %vm15316_vm11, %v5507_v49, %v5548_v1  ;;  %v4356_v62 = vcvt.s32.f32 %v4354_v7  ;;  %v4341_v58 = vcvt.s32.f32 %v4339_v5  ;;  %v4476_v22 = vcvt.s32.f32 %v4474_v56  ;;  %v15329_v7 = vld [vmem:[#allocation135_spill] sm:$0xff] }
0x24f3   :  { %v5511_v4 = vrot.slane %v5359_v32, %v10657_v37  ;;  %v5543_v57 = vrot.slane %v5479_v11, %v10657_v37  ;;  %v4371_v32 = vcvt.s32.f32 %v4369_v50  ;;  %v4491_v11 = vcvt.s32.f32 %v4489_v43  ;;  %v15331_v50 = vld [vmem:[#allocation170_spill] sm:$0xff] }
0x24f4   :  { %v4384_v55 = vand.u32 65535, %v13589_v52  ;;  %v4504_v41 = vand.u32 65535, %v13653_v24  ;;  %v4564_v43 = vand.u32 65535, %v15331_v50  ;;  %v15348_v50 = vld [vmem:[#allocation63_spill] sm:$0xff] }
0x24f5   :  { %v5550_v20 = vsel %vm15318_vm0, %v5511_v4, %v5549_v39  ;;  %v5557_v25 = vsel %vm15319_vm1, %v5543_v57, %v5556_v53  ;;  %v15320_v4 = vld [vmem:[#allocation182_spill] sm:$0xff]  ;;  %v15321_v57 = vld [vmem:[#allocation184_spill] sm:$0xff] }
0x24f6   :  { %5558 = vst.msk [vmem:[#allocation5 + $0x40] sm:$0xff] %vm2218_vm3, %v5550_v20  ;;  %5559 = vst.msk [vmem:[#allocation5 + $0x48] sm:$0xff] %vm2218_vm3, %v5557_v25  ;;  %v4386_v1 = vcvt.s32.f32 %v4384_v55  ;;  %v4506_v61 = vcvt.s32.f32 %v4504_v41  ;;  %v4399_v52 = vand.u32 65535, %v15320_v4  ;;  %v4519_v24 = vand.u32 65535, %v15321_v57  ;;  %v15322_v39 = vld [vmem:[#allocation152_spill] sm:$0xff]  ;;  %v15323_v25 = vld [vmem:[#allocation134_spill] sm:$0xff] }
0x24fd   :  { %v8787_v9 = vld [vmem:[#allocation5 + $0x40] sm:$0xff]  ;;  %v8788_v30 = vld [vmem:[#allocation5 + $0x48] sm:$0xff] }
0x252e   :  { %v8791_v54 = vpop.permute.xlu0 %8790  ;;  %v8794_v18 = vpop.permute.xlu1 %8793 }
0x252f   :  { %vm8795_vm14 = vcmp.eq.s32.totalorder %v10653_v14, %v8791_v54  ;;  %vm8796_vm15 = vcmp.eq.s32.totalorder %v10653_v14, %v8794_v18  ;;  %v4401_v54 = vcvt.s32.f32 %v4399_v52  ;;  %v4521_v18 = vcvt.s32.f32 %v4519_v24  ;;  %v15332_v24 = vld [vmem:[#allocation174_spill] sm:$0xff] }
0x2530   :  { %v8797_v29 = vsel %vm8795_vm14, %v8787_v9, 0  ;;  %v8798_v31 = vsel %vm8796_vm15, %v8788_v30, 0  ;;  %v15324_v9 = vld [vmem:[#allocation169_spill] sm:$0xff] }
0x2531   :  { %v8799_v15 = vsel %vm2218_vm3, %v8797_v29, 0  ;;  %v8812_v47 = vsel %vm2218_vm3, %v8798_v31, 0  ;;  %v4414_v30 = vand.u32 65535, %v15324_v9  ;;  %v15325_v29 = vld [vmem:[#allocation151_spill] sm:$0xff] }
0x2532   :  { %v8801_v51 = vshrl.u32 %v8799_v15, 16  ;;  %v8814_v0 = vshrl.u32 %v8812_v47, 16  ;;  %v8800_v45 = vand.u32 65535, %v8799_v15  ;;  %v8813_v63 = vand.u32 65535, %v8812_v47  ;;  %v15326_v15 = vld [vmem:[#allocation137_spill] sm:$0xff]  ;;  %v15338_v9 = vld [vmem:[#allocation55_spill] sm:$0xff] }
0x2533   :  { %v4534_v31 = vand.u32 65535, %v15325_v29  ;;  %v15340_v29 = vld [vmem:[#allocation54_spill] sm:$0xff] }
0x2534   :  { %v8803_v17 = vcvt.s32.f32 %v8801_v51  ;;  %v8816_v34 = vcvt.s32.f32 %v8814_v0  ;;  %v8802_v28 = vcvt.s32.f32 %v8800_v45  ;;  %v8815_v23 = vcvt.s32.f32 %v8813_v63 }
0x2535   :  { %v4416_v45 = vcvt.s32.f32 %v4414_v30  ;;  %v4536_v63 = vcvt.s32.f32 %v4534_v31  ;;  %v15339_v30 = vld [vmem:[#allocation39_spill] sm:$0xff]  ;;  %v15341_v31 = vld [vmem:[#allocation38_spill] sm:$0xff] }
0x2536   :  { %8806 = vadd.xlane.f32.xlu0 %v8803_v17  ;;  %8819 = vadd.xlane.f32.xlu1 %v8816_v34  ;;  %v15327_v17 = vld [vmem:[#allocation153_spill] sm:$0xff] }
0x253a   :  { %8804 = vadd.xlane.f32.xlu0 %v8802_v28  ;;  %8817 = vadd.xlane.f32.xlu1 %v8815_v23  ;;  %v15328_v28 = vld [vmem:[#allocation183_spill] sm:$0xff] }
0x253b   :  { %v4429_v23 = vand.u32 65535, %v15328_v28  ;;  %v15345_v28 = vld [vmem:[#allocation40_spill] sm:$0xff] }
0x253d   :  { %v4431_v56 = vcvt.s32.f32 %v4429_v23 }
0x255b   :  { %v13769_v8 = vpop.xlane.xlu0 %4358 }
0x255c   :  { %vm4360_vm4 = vcmp.eq.f32.partialorder %v13568_v10, %v13769_v8  ;;  %v4461_v10 = vcvt.s32.f32 %v4459_v38 }
0x255d   :  { %v4361_v42 = vsel %vm4360_vm4, %v4356_v62, inf  ;;  %v4549_v62 = vand.u32 65535, %v15329_v7  ;;  %v15346_v7 = vld [vmem:[#allocation59_spill] sm:$0xff] }
0x255e   :  { %4362 = vmin.xlane.f32.xlu1 %v4361_v42 }
0x255f   :  { %v13774_v35 = vpop.xlane.xlu0 %4463 }
0x2560   :  { %v13776_v2 = vpop.xlane.xlu1 %4343  ;;  %vm4465_vm2 = vcmp.eq.f32.partialorder %v13578_v12, %v13774_v35 }
0x2561   :  { %vm4345_vm5 = vcmp.eq.f32.partialorder %v13600_v59, %v13776_v2  ;;  %v4466_v13 = vsel %vm4465_vm2, %v4461_v10, inf  ;;  %v15330_v10 = vld [vmem:[#allocation150_spill] sm:$0xff] }
0x2562   :  { %v4346_v40 = vsel %vm4345_vm5, %v4341_v58, inf }
0x2563   :  { %v13782_v49 = vpop.xlane.xlu0 %4373  ;;  %4347 = vmin.xlane.f32.xlu0 %v4346_v40  ;;  %v4551_v40 = vcvt.s32.f32 %v4549_v62  ;;  %v15347_v62 = vld [vmem:[#allocation43_spill] sm:$0xff] }
0x2564   :  { %v13786_v44 = vpop.xlane.xlu1 %4478  ;;  %vm4375_vm11 = vcmp.eq.f32.partialorder %v13611_v21, %v13782_v49 }
0x2565   :  { %vm4480_vm13 = vcmp.eq.f32.partialorder %v13640_v19, %v13786_v44  ;;  %v4376_v19 = vsel %vm4375_vm11, %v4371_v32, inf  ;;  %v4566_v32 = vcvt.s32.f32 %v4564_v43  ;;  %v15349_v43 = vld [vmem:[#allocation47_spill] sm:$0xff] }
0x2566   :  { %v4481_v59 = vsel %vm4480_vm13, %v4476_v22, inf  ;;  %v4444_v22 = vand.u32 65535, %v15330_v10 }
0x2567   :  { %v13792_v60 = vpop.xlane.xlu0 %4388  ;;  %4467 = vmin.xlane.f32.xlu0 %v4466_v13  ;;  %4482 = vmin.xlane.f32.xlu1 %v4481_v59 }
0x2568   :  { %v13796_v12 = vpop.xlane.xlu1 %4493  ;;  %vm4390_vm0 = vcmp.eq.f32.partialorder %v13665_v6, %v13792_v60  ;;  %v4446_v59 = vcvt.s32.f32 %v4444_v22 }
0x2569   :  { %vm4495_vm12 = vcmp.eq.f32.partialorder %v13671_v27, %v13796_v12  ;;  %v4391_v27 = vsel %vm4390_vm0, %v4386_v1, inf  ;;  %vm8825_vm0 = vcmp.gt.s32.totalorder %v15332_v24, 3  ;;  %v4485_v24 = vcvt.f32.s32 %v13786_v44 }
0x256a   :  { %v4496_v33 = vsel %vm4495_vm12, %v4491_v11, inf }
0x256b   :  { %v13802_v48 = vpop.xlane.xlu0 %4403  ;;  %4377 = vmin.xlane.f32.xlu0 %v4376_v19  ;;  %4497 = vmin.xlane.f32.xlu1 %v4496_v33 }
0x256c   :  { %v13806_v21 = vpop.xlane.xlu1 %4508  ;;  %vm4405_vm14 = vcmp.eq.f32.partialorder %v15323_v25, %v13802_v48 }
0x256d   :  { %vm4510_vm1 = vcmp.eq.f32.partialorder %v15322_v39, %v13806_v21  ;;  %v4406_v47 = vsel %vm4405_vm14, %v4401_v54, inf  ;;  %v15333_v39 = vld [vmem:[#allocation187_spill] sm:$0xff]  ;;  %v15336_v54 = vld [vmem:[#allocation168_spill] sm:$0xff]  ;;  %vm3405_vm14 = vcmp.ge.f32.partialorder %v15339_v30, %v15338_v9  ;;  %v15360_v30 = vld [vmem:[#allocation65_spill] sm:$0xff] }
0x256e   :  { %v4511_v53 = vsel %vm4510_vm1, %v4506_v61, inf  ;;  %vm8826_vm1 = vcmp.gt.s32.totalorder %v15333_v39, 3 }
0x256f   :  { %v13812_v20 = vpop.xlane.xlu0 %4418  ;;  %4392 = vmin.xlane.f32.xlu0 %v4391_v27  ;;  %4512 = vmin.xlane.f32.xlu1 %v4511_v53  ;;  %v15334_v53 = vld [vmem:[#allocation180_spill] sm:$0xff] }
0x2570   :  { %v13816_v6 = vpop.xlane.xlu1 %4523  ;;  %vm4420_vm4 = vcmp.eq.f32.partialorder %v15327_v17, %v13812_v20  ;;  %v4425_v44 = vcvt.f32.s32 %v13812_v20 }
0x2571   :  { %vm4525_vm15 = vcmp.eq.f32.partialorder %v15326_v15, %v13816_v6  ;;  %v4421_v5 = vsel %vm4420_vm4, %v4416_v45, inf  ;;  %v3421_v15 = vsel %vm3405_vm14, %v10653_v14, 8 }
0x2572   :  { %v4526_v51 = vsel %vm4525_vm15, %v4521_v18, inf  ;;  %vm3404_vm15 = vcmp.ge.f32.partialorder %v15341_v31, %v15340_v29  ;;  %v13867_v45 = vsel %vm2218_vm3, %v3421_v15, 2147483647  ;;  %v15361_v29 = vld [vmem:[#allocation49_spill] sm:$0xff] }
0x2573   :  { %v13822_v0 = vpop.xlane.xlu0 %4433  ;;  %4407 = vmin.xlane.f32.xlu0 %v4406_v47  ;;  %4527 = vmin.xlane.f32.xlu1 %v4526_v51  ;;  %v15342_v47 = vld [vmem:[#allocation57_spill] sm:$0xff]  ;;  %v3420_v17 = vsel %vm3404_vm15, %v10653_v14, 8  ;;  %vm3409_vm15 = vcmp.ge.f32.partialorder %v15361_v29, %v15360_v30 }
0x2574   :  { %v13826_v34 = vpop.xlane.xlu1 %4538  ;;  %vm4435_vm2 = vcmp.eq.f32.partialorder %v13687_v46, %v13822_v0  ;;  %v15343_v51 = vld [vmem:[#allocation41_spill] sm:$0xff] }
0x2575   :  { %vm4540_vm5 = vcmp.eq.f32.partialorder %v13705_v26, %v13826_v34  ;;  %v4436_v26 = vsel %vm4435_vm2, %v4431_v56, inf  ;;  %vm3412_vm4 = vcmp.ge.f32.partialorder %v15343_v51, %v15342_v47  ;;  %vm3406_vm2 = vcmp.ge.f32.partialorder %v15347_v62, %v15346_v7  ;;  %v15362_v51 = vld [vmem:[#allocation66_spill] sm:$0xff]  ;;  %v15365_v7 = vld [vmem:[#allocation51_spill] sm:$0xff]  ;;  %v15366_v62 = vld [vmem:[#allocation68_spill] sm:$0xff] }
0x2576   :  { %v4541_v42 = vsel %vm4540_vm5, %v4536_v63, inf  ;;  %v15344_v63 = vld [vmem:[#allocation56_spill] sm:$0xff]  ;;  %v3428_v23 = vsel %vm3412_vm4, %v10653_v14, 8 }
0x2577   :  { %4422 = vmin.xlane.f32.xlu0 %v4421_v5  ;;  %4542 = vmin.xlane.f32.xlu1 %v4541_v42  ;;  %v13834_v58 = vpop.xlane.xlu0 %4448  ;;  %vm3413_vm5 = vcmp.ge.f32.partialorder %v15345_v28, %v15344_v63  ;;  %v3453_v5 = vshra.s32 %v13867_v45, 16  ;;  %v13876_v42 = vsel %vm2218_vm3, %v3420_v17, 2147483647  ;;  %v13881_v10 = vsel %vm2218_vm3, %v3428_v23, 2147483647  ;;  %v15363_v17 = vld [vmem:[#allocation50_spill] sm:$0xff] }
0x2578   :  { %v13836_v38 = vpop.xlane.xlu1 %4553  ;;  %vm4450_vm11 = vcmp.eq.f32.partialorder %v13712_v3, %v13834_v58  ;;  %v3429_v56 = vsel %vm3413_vm5, %v10653_v14, 8  ;;  %v3438_v22 = vshra.s32 %v13876_v42, 16  ;;  %vm3418_vm4 = vcmp.ge.f32.partialorder %v15363_v17, %v15362_v51  ;;  %v15364_v23 = vld [vmem:[#allocation67_spill] sm:$0xff] }
0x2579   :  { %vm4555_vm13 = vcmp.eq.f32.partialorder %v13707_v16, %v13836_v38  ;;  %v4451_v11 = vsel %vm4450_vm11, %v4446_v59, inf  ;;  %v15350_v59 = vld [vmem:[#allocation58_spill] sm:$0xff]  ;;  %vm3410_vm5 = vcmp.ge.f32.partialorder %v15365_v7, %v15364_v23 }
0x257a   :  { %v4556_v13 = vsel %vm4555_vm13, %v4551_v40, inf  ;;  %v3422_v40 = vsel %vm3406_vm2, %v10653_v14, 8  ;;  %vm3407_vm13 = vcmp.ge.f32.partialorder %v15349_v43, %v15348_v50  ;;  %v15369_v50 = vld [vmem:[#allocation53_spill] sm:$0xff] }
0x257b   :  { %4437 = vmin.xlane.f32.xlu0 %v4436_v26  ;;  %4557 = vmin.xlane.f32.xlu1 %v4556_v13  ;;  %v13886_v26 = vcvt.s32.f32 %v3453_v5  ;;  %v13889_v13 = vsel %vm2218_vm3, %v3429_v56, 2147483647  ;;  %v15367_v5 = vld [vmem:[#allocation52_spill] sm:$0xff] }
0x257c   :  { %v13844_v46 = vpop.xlane.xlu1 %4568  ;;  %vm3419_vm2 = vcmp.ge.f32.partialorder %v15367_v5, %v15366_v62 }
0x257d   :  { %vm4570_vm12 = vcmp.eq.f32.partialorder %v13690_v36, %v13844_v46 }
0x257e   :  { %v4571_v55 = vsel %vm4570_vm12, %v4566_v32, inf  ;;  %v15351_v32 = vld [vmem:[#allocation42_spill] sm:$0xff] }
0x257f   :  { %4452 = vmin.xlane.f32.xlu0 %v4451_v11  ;;  %4572 = vmin.xlane.f32.xlu1 %v4571_v55  ;;  %vm3414_vm11 = vcmp.ge.f32.partialorder %v15351_v32, %v15350_v59  ;;  %v15352_v11 = vld [vmem:[#allocation60_spill] sm:$0xff] }
0x2580   :  { %v15353_v55 = vld [vmem:[#allocation44_spill] sm:$0xff] }
0x2581   :  { %vm3416_vm12 = vcmp.ge.f32.partialorder %v15353_v55, %v15352_v11  ;;  %v3434_v55 = vsel %vm3418_vm4, %v10653_v14, 8 }
0x2582   :  { %v3432_v9 = vsel %vm3416_vm12, %v10653_v14, 8  ;;  %v13974_v51 = vsel %vm2218_vm3, %v3434_v55, 2147483647 }
0x2583   :  { %v13941_v11 = vsel %vm2218_vm3, %v3432_v9, 2147483647  ;;  %15374 = vst [vmem:[#allocation143_spill] sm:$0xff] %v13974_v51 }
0x2584   :  { %15370 = vst [vmem:[#allocation138_spill] sm:$0xff] %v13941_v11 }
0x25c3   :  { %v8807_v41 = vpop.xlane.xlu0 %8806  ;;  %v8820_v16 = vpop.xlane.xlu1 %8819 }
0x25c4   :  { %v8809_v19 = vcvt.f32.s32 %v8807_v41  ;;  %v8822_v33 = vcvt.f32.s32 %v8820_v16  ;;  %v3558_v41 = vshra.s32 %v13881_v10, 16  ;;  %v13897_v16 = vsel %vm2218_vm3, %v3422_v40, 2147483647 }
0x25c5   :  { %v3468_v31 = vshra.s32 %v13897_v16, 16  ;;  %v3425_v40 = vsel %vm3409_vm15, %v10653_v14, 8 }
0x25c6   :  { %v8810_v4 = vshll.u32 %v8809_v19, 16  ;;  %v8823_v52 = vshll.u32 %v8822_v33, 16  ;;  %v15354_v19 = vld [vmem:[#allocation61_spill] sm:$0xff]  ;;  %v13919_v63 = vcvt.s32.f32 %v3558_v41  ;;  %v13964_v30 = vsel %vm2218_vm3, %v3425_v40, 2147483647 }
0x25c7   :  { %v8805_v1 = vpop.xlane.xlu0 %8804  ;;  %v8818_v61 = vpop.xlane.xlu1 %8817  ;;  %v15355_v33 = vld [vmem:[#allocation45_spill] sm:$0xff]  ;;  %v13945_v41 = vcvt.s32.f32 %v3468_v31  ;;  %15373 = vst [vmem:[#allocation159_spill] sm:$0xff] %v13964_v30  ;;  %v3513_v62 = vshra.s32 %v13964_v30, 16 }
0x25c8   :  { %v8808_v3 = vcvt.f32.s32 %v8805_v1  ;;  %v8821_v57 = vcvt.f32.s32 %v8818_v61  ;;  %v15356_v1 = vld [vmem:[#allocation62_spill] sm:$0xff] }
0x25c9   :  { %v15357_v61 = vld [vmem:[#allocation46_spill] sm:$0xff]  ;;  %v14015_v39 = vcvt.s32.f32 %v3513_v62 }
0x25ca   :  { %v8811_v27 = vadd.s32 %v8810_v4, %v8808_v3  ;;  %v8824_v36 = vadd.s32 %v8823_v52, %v8821_v57  ;;  %v3423_v4 = vsel %vm3407_vm13, %v10653_v14, 8  ;;  %v15358_v52 = vld [vmem:[#allocation64_spill] sm:$0xff]  ;;  %v13907_v57 = vcvt.s32.f32 %v3438_v22  ;;  %v15368_v22 = vld [vmem:[#allocation69_spill] sm:$0xff] }
0x25cb   :  { %v15359_v3 = vld [vmem:[#allocation48_spill] sm:$0xff]  ;;  %v13927_v56 = vsel %vm2218_vm3, %v3423_v4, 2147483647  ;;  %vm3411_vm13 = vcmp.ge.f32.partialorder %v15369_v50, %v15368_v22  ;;  %v3648_v22 = vshra.s32 %v13974_v51, 16  ;;  %15381 = vst [vmem:[#allocation156_spill] sm:$0xff] %v14015_v39 }
0x25cc   :  { %v13851_v25 = vsel %vm8825_vm0, %v8811_v27, %v15334_v53  ;;  %v13854_v18 = vsel %vm8826_vm1, %v8824_v36, %v15336_v54  ;;  %vm3408_vm0 = vcmp.ge.f32.partialorder %v15355_v33, %v15354_v19  ;;  %vm3415_vm1 = vcmp.ge.f32.partialorder %v15357_v61, %v15356_v1 }
0x25cd   :  { %15335 = vst [vmem:[#allocation136_spill] sm:$0xff] %v13851_v25  ;;  %15337 = vst [vmem:[#allocation154_spill] sm:$0xff] %v13854_v18  ;;  %8843 = vperm.xlu0 %9151, %v13851_v25   ;;  %8846 = vperm.xlu1 %9152, %v13854_v18   ;;  %vm3417_vm14 = vcmp.ge.f32.partialorder %v15359_v3, %v15358_v52  ;;  %v3573_v27 = vshra.s32 %v13889_v13, 16  ;;  %v3430_v36 = vsel %vm3414_vm11, %v10653_v14, 8  ;;  %v3424_v15 = vsel %vm3408_vm0, %v10653_v14, 8 }
0x25ce   :  { %v3431_v47 = vsel %vm3415_vm1, %v10653_v14, 8  ;;  %v3433_v28 = vsel %vm3417_vm14, %v10653_v14, 8  ;;  %v13938_v32 = vsel %vm2218_vm3, %v3430_v36, 2147483647  ;;  %v13948_v19 = vsel %vm2218_vm3, %v3424_v15, 2147483647 }
0x25cf   :  { %15371 = vst [vmem:[#allocation155_spill] sm:$0xff] %v13948_v19  ;;  %v13951_v33 = vsel %vm2218_vm3, %v3431_v47, 2147483647  ;;  %v3426_v1 = vsel %vm3410_vm5, %v10653_v14, 8  ;;  %v3435_v61 = vsel %vm3419_vm2, %v10653_v14, 8  ;;  %v3483_v4 = vshra.s32 %v13927_v56, 16 }
0x25d0   :  { %v13957_v52 = vsel %vm2218_vm3, %v3433_v28, 2147483647  ;;  %v3427_v3 = vsel %vm3411_vm13, %v10653_v14, 8  ;;  %v13960_v36 = vcvt.s32.f32 %v3573_v27  ;;  %v3588_v9 = vshra.s32 %v13938_v32, 16 }
0x25d1   :  { %15372 = vst [vmem:[#allocation139_spill] sm:$0xff] %v13957_v52  ;;  %v3498_v15 = vshra.s32 %v13948_v19, 16  ;;  %v3618_v47 = vshra.s32 %v13941_v11, 16  ;;  %v3603_v27 = vshra.s32 %v13951_v33, 16  ;;  %v13979_v17 = vsel %vm2218_vm3, %v3426_v1, 2147483647 }
0x25d2   :  { %15375 = vst [vmem:[#allocation157_spill] sm:$0xff] %v13979_v17  ;;  %v3633_v28 = vshra.s32 %v13957_v52, 16  ;;  %v13983_v23 = vsel %vm2218_vm3, %v3435_v61, 2147483647  ;;  %v13985_v7 = vcvt.s32.f32 %v3483_v4  ;;  %v13989_v5 = vsel %vm2218_vm3, %v3427_v3, 2147483647 }
0x25d3   :  { %15376 = vst [vmem:[#allocation141_spill] sm:$0xff] %v13983_v23  ;;  %15377 = vst [vmem:[#allocation158_spill] sm:$0xff] %v13989_v5  ;;  %v13991_v40 = vcvt.s32.f32 %v3588_v9  ;;  %v13999_v1 = vcvt.s32.f32 %v3498_v15  ;;  %v14001_v61 = vcvt.s32.f32 %v3618_v47  ;;  %v3528_v4 = vshra.s32 %v13979_v17, 16 }
0x25d4   :  { %v3663_v53 = vshra.s32 %v13983_v23, 16  ;;  %v4365_v3 = vcvt.f32.s32 %v13769_v8  ;;  %v14007_v9 = vcvt.s32.f32 %v3603_v27  ;;  %v14009_v54 = vcvt.s32.f32 %v3633_v28 }
0x25d5   :  { %15378 = vst [vmem:[#allocation142_spill] sm:$0xff] %v13999_v1  ;;  %15379 = vst [vmem:[#allocation161_spill] sm:$0xff] %v14001_v61  ;;  %v3543_v18 = vshra.s32 %v13989_v5, 16  ;;  %v4470_v25 = vcvt.f32.s32 %v13774_v35  ;;  %v4350_v15 = vcvt.f32.s32 %v13776_v2  ;;  %v4380_v47 = vcvt.f32.s32 %v13782_v49 }
0x25d6   :  { %15380 = vst [vmem:[#allocation145_spill] sm:$0xff] %v14007_v9  ;;  %v4395_v8 = vcvt.f32.s32 %v13792_v60  ;;  %v4500_v23 = vcvt.f32.s32 %v13796_v12  ;;  %v14020_v27 = vcvt.s32.f32 %v3648_v22  ;;  %v4410_v28 = vcvt.f32.s32 %v13802_v48 }
0x25d7   :  { %v4515_v5 = vcvt.f32.s32 %v13806_v21  ;;  %v14025_v51 = vcvt.s32.f32 %v3528_v4  ;;  %v14027_v49 = vcvt.s32.f32 %v3663_v53  ;;  %v4366_v62 = vshll.u32 %v4365_v3, 16 }
0x25d8   :  { %v4530_v60 = vcvt.f32.s32 %v13816_v6  ;;  %v14032_v12 = vcvt.s32.f32 %v3543_v18  ;;  %v4471_v48 = vshll.u32 %v4470_v25, 16  ;;  %v4351_v22 = vshll.u32 %v4350_v15, 16 }
0x25d9   :  { %v4381_v21 = vshll.u32 %v4380_v47, 16  ;;  %v4440_v17 = vcvt.f32.s32 %v13822_v0  ;;  %v4486_v52 = vshll.u32 %v4485_v24, 16  ;;  %v4396_v30 = vshll.u32 %v4395_v8, 16 }
0x25da   :  { %v4501_v4 = vshll.u32 %v4500_v23, 16  ;;  %v4516_v3 = vshll.u32 %v4515_v5, 16  ;;  %v4426_v25 = vshll.u32 %v4425_v44, 16  ;;  %v4531_v15 = vshll.u32 %v4530_v60, 16 }
0x25db   :  { %v4545_v47 = vcvt.f32.s32 %v13826_v34  ;;  %v4455_v0 = vcvt.f32.s32 %v13834_v58  ;;  %v4441_v24 = vshll.u32 %v4440_v17, 16  ;;  %vm15382_vm11 = vcmask 1046534  }
0x25dc   :  { %vm15383_vm12 = vmmov %vm15382_vm11  ;;  %vm15384_vm0 = vcmask 1047559  }
0x25dd   :  { %v4546_v17 = vshll.u32 %v4545_v47, 16  ;;  %v4456_v11 = vshll.u32 %v4455_v0, 16  ;;  %vm15385_vm1 = vmmov %vm15384_vm0 }
0x25eb   :  { %v13932_v43 = vpop.xlane.xlu1 %4362 }
0x25ec   :  { %3456 = vmin.xlane.f32.xlu0 %v13886_v26 }
0x25f0   :  { %3561 = vmin.xlane.f32.xlu0 %v13919_v63  ;;  %v13935_v59 = vpop.xlane.xlu0 %4347 }
0x25f1   :  { %3441 = vmin.xlane.f32.xlu1 %v13907_v57  ;;  %v4349_v53 = vcvt.f32.s32 %v13935_v59  ;;  %v4364_v59 = vcvt.f32.s32 %v13932_v43 }
0x25f3   :  { %v4352_v5 = vadd.s32 %v4351_v22, %v4349_v53 }
0x25f4   :  { %3471 = vmin.xlane.f32.xlu0 %v13945_v41  ;;  %v13967_v29 = vpop.xlane.xlu0 %4467  ;;  %v13969_v31 = vpop.xlane.xlu1 %4482 }
0x25f5   :  { %3576 = vmin.xlane.f32.xlu1 %v13960_v36  ;;  %v4469_v20 = vcvt.f32.s32 %v13967_v29  ;;  %v4484_v6 = vcvt.f32.s32 %v13969_v31  ;;  %v4560_v31 = vcvt.f32.s32 %v13836_v38  ;;  %v4367_v38 = vadd.s32 %v4366_v62, %v4364_v59 }
0x25f7   :  { %v4472_v44 = vadd.s32 %v4471_v48, %v4469_v20  ;;  %v4487_v60 = vadd.s32 %v4486_v52, %v4484_v6  ;;  %v4581_v52 = vrot.slane %v4352_v5, %v10657_v37 }
0x25f8   :  { %3486 = vmin.xlane.f32.xlu0 %v13985_v7  ;;  %v13995_v50 = vpop.xlane.xlu0 %4377  ;;  %v13997_v55 = vpop.xlane.xlu1 %4497 }
0x25f9   :  { %3591 = vmin.xlane.f32.xlu1 %v13991_v40  ;;  %v4379_v23 = vcvt.f32.s32 %v13995_v50  ;;  %v4499_v29 = vcvt.f32.s32 %v13997_v55  ;;  %v4575_v50 = vcvt.f32.s32 %v13844_v46  ;;  %v4613_v22 = vrot.slane %v4472_v44, %v10657_v37 }
0x25fa   :  { %v4617_v53 = vrot.slane %v4487_v60, %v10657_v37 }
0x25fb   :  { %v4382_v55 = vadd.s32 %v4381_v21, %v4379_v23 }
0x25fc   :  { %3501 = vmin.xlane.f32.xlu0 %v13999_v1  ;;  %v4393_v35 = vpop.xlane.xlu0 %4392  ;;  %v4513_v2 = vpop.xlane.xlu1 %4512  ;;  %v4411_v1 = vshll.u32 %v4410_v28, 16 }
0x25fd   :  { %3606 = vmin.xlane.f32.xlu1 %v14007_v9  ;;  %v4394_v8 = vcvt.f32.s32 %v4393_v35  ;;  %v4514_v28 = vcvt.f32.s32 %v4513_v2  ;;  %v4502_v35 = vadd.s32 %v4501_v4, %v4499_v29  ;;  %v4561_v2 = vshll.u32 %v4560_v31, 16 }
0x25fe   :  { %v4576_v4 = vshll.u32 %v4575_v50, 16 }
0x25ff   :  { %v4397_v48 = vadd.s32 %v4396_v30, %v4394_v8  ;;  %v4585_v30 = vrot.slane %v4367_v38, %v10657_v37  ;;  %v4621_v0 = vrot.slane %v4502_v35, %v10657_v37 }
0x2600   :  { %3516 = vmin.xlane.f32.xlu0 %v14015_v39  ;;  %v4408_v18 = vpop.xlane.xlu0 %4407  ;;  %v4528_v9 = vpop.xlane.xlu1 %4527 }
0x2601   :  { %3621 = vmin.xlane.f32.xlu1 %v14001_v61  ;;  %v4409_v39 = vcvt.f32.s32 %v4408_v18  ;;  %v4529_v34 = vcvt.f32.s32 %v4528_v9  ;;  %v4517_v9 = vadd.s32 %v4516_v3, %v4514_v28  ;;  %v4589_v3 = vrot.slane %v4382_v55, %v10657_v37 }
0x2603   :  { %v4412_v20 = vadd.s32 %v4411_v1, %v4409_v39  ;;  %v4532_v6 = vadd.s32 %v4531_v15, %v4529_v34  ;;  %v4593_v39 = vrot.slane %v4397_v48, %v10657_v37  ;;  %v4625_v1 = vrot.slane %v4517_v9, %v10657_v37 }
0x2604   :  { %3531 = vmin.xlane.f32.xlu0 %v14025_v51  ;;  %v4423_v58 = vpop.xlane.xlu0 %4422  ;;  %v4543_v61 = vpop.xlane.xlu1 %4542 }
0x2605   :  { %v4424_v43 = vcvt.f32.s32 %v4423_v58  ;;  %v4544_v19 = vcvt.f32.s32 %v4543_v61  ;;  %3636 = vmin.xlane.f32.xlu1 %v14009_v54  ;;  %v4597_v23 = vrot.slane %v4412_v20, %v10657_v37  ;;  %v4629_v29 = vrot.slane %v4532_v6, %v10657_v37 }
0x2607   :  { %v4427_v47 = vadd.s32 %v4426_v25, %v4424_v43  ;;  %v4547_v46 = vadd.s32 %v4546_v17, %v4544_v19  ;;  %v4642_v25 = vsel %vm2831_vm6, %v4585_v30, %v4581_v52  ;;  %v4649_v19 = vsel %vm2831_vm6, %v4617_v53, %v4613_v22 }
0x2608   :  { %3546 = vmin.xlane.f32.xlu0 %v14032_v12  ;;  %v4438_v61 = vpop.xlane.xlu0 %4437  ;;  %v4558_v18 = vpop.xlane.xlu1 %4557  ;;  %v4650_v34 = vsel %vm2833_vm7, %v4621_v0, %v4649_v19 }
0x2609   :  { %v4439_v62 = vcvt.f32.s32 %v4438_v61  ;;  %v4559_v21 = vcvt.f32.s32 %v4558_v18  ;;  %3651 = vmin.xlane.f32.xlu1 %v14020_v27  ;;  %v4601_v8 = vrot.slane %v4427_v47, %v10657_v37  ;;  %v4633_v28 = vrot.slane %v4547_v46, %v10657_v37 }
0x260a   :  { %v4651_v50 = vsel %vm2835_vm8, %v4625_v1, %v4650_v34  ;;  %v3572_v34 = vand.u32 65535, %v13889_v13 }
0x260b   :  { %v4442_v15 = vadd.s32 %v4441_v24, %v4439_v62  ;;  %v4562_v59 = vadd.s32 %v4561_v2, %v4559_v21  ;;  %v4643_v24 = vsel %vm2833_vm7, %v4589_v3, %v4642_v25  ;;  %v4652_v2 = vsel %vm2837_vm9, %v4629_v29, %v4651_v50 }
0x260c   :  { %v4453_v31 = vpop.xlane.xlu0 %4452  ;;  %v4573_v5 = vpop.xlane.xlu1 %4572  ;;  %v4644_v43 = vsel %vm2835_vm8, %v4593_v39, %v4643_v24  ;;  %v4653_v48 = vsel %vm2839_vm10, %v4633_v28, %v4652_v2  ;;  %v3557_v24 = vand.u32 65535, %v13881_v10  ;;  %v3587_v10 = vand.u32 65535, %v13938_v32 }
0x260d   :  { %v4454_v44 = vcvt.f32.s32 %v4453_v31  ;;  %v4574_v60 = vcvt.f32.s32 %v4573_v5  ;;  %3666 = vmin.xlane.f32.xlu1 %v14027_v49  ;;  %v4605_v58 = vrot.slane %v4442_v15, %v10657_v37  ;;  %v4637_v17 = vrot.slane %v4562_v59, %v10657_v37 }
0x260e   :  { %v4645_v35 = vsel %vm2837_vm9, %v4597_v23, %v4644_v43  ;;  %v3452_v23 = vand.u32 65535, %v13867_v45  ;;  %v3437_v5 = vand.u32 65535, %v13876_v42  ;;  %v3467_v43 = vand.u32 65535, %v13897_v16 }
0x260f   :  { %v4457_v38 = vadd.s32 %v4456_v11, %v4454_v44  ;;  %v4577_v55 = vadd.s32 %v4576_v4, %v4574_v60  ;;  %v4646_v52 = vsel %vm2839_vm10, %v4601_v8, %v4645_v35  ;;  %v4654_v20 = vsel %vm15383_vm12, %v4637_v17, %v4653_v48 }
0x2610   :  { %v4647_v53 = vsel %vm15382_vm11, %v4605_v58, %v4646_v52  ;;  %v3454_v31 = vcvt.s32.f32 %v3452_v23  ;;  %v3439_v60 = vcvt.s32.f32 %v3437_v5  ;;  %v3559_v58 = vcvt.s32.f32 %v3557_v24  ;;  %v15395_v23 = vld [vmem:[#allocation143_spill] sm:$0xff] }
0x2611   :  { %v4609_v9 = vrot.slane %v4457_v38, %v10657_v37  ;;  %v4641_v22 = vrot.slane %v4577_v55, %v10657_v37  ;;  %v3574_v17 = vcvt.s32.f32 %v3572_v34  ;;  %v3469_v38 = vcvt.s32.f32 %v3467_v43  ;;  %v15397_v43 = vld [vmem:[#allocation141_spill] sm:$0xff] }
0x2612   :  { %v3589_v55 = vcvt.s32.f32 %v3587_v10  ;;  %v3482_v16 = vand.u32 65535, %v13927_v56  ;;  %v3602_v32 = vand.u32 65535, %v13951_v33  ;;  %v3662_v10 = vand.u32 65535, %v15397_v43 }
0x2613   :  { %v4648_v6 = vsel %vm15384_vm0, %v4609_v9, %v4647_v53  ;;  %v4655_v11 = vsel %vm15385_vm1, %v4641_v22, %v4654_v20  ;;  %v15386_v9 = vld [vmem:[#allocation155_spill] sm:$0xff]  ;;  %v15387_v22 = vld [vmem:[#allocation138_spill] sm:$0xff]  ;;  %v15388_v53 = vld [vmem:[#allocation145_spill] sm:$0xff] }
0x2614   :  { %4656 = vst.msk [vmem:[#allocation5 + $0x30] sm:$0xff] %vm2218_vm3, %v4648_v6  ;;  %4657 = vst.msk [vmem:[#allocation5 + $0x38] sm:$0xff] %vm2218_vm3, %v4655_v11  ;;  %v3484_v52 = vcvt.s32.f32 %v3482_v16  ;;  %v3604_v48 = vcvt.s32.f32 %v3602_v32  ;;  %v3497_v56 = vand.u32 65535, %v15386_v9  ;;  %v3617_v33 = vand.u32 65535, %v15387_v22  ;;  %v15389_v6 = vld [vmem:[#allocation142_spill] sm:$0xff] }
0x261b   :  { %v8840_v47 = vld [vmem:[#allocation5 + $0x30] sm:$0xff]  ;;  %v8841_v46 = vld [vmem:[#allocation5 + $0x38] sm:$0xff] }
0x264c   :  { %v8844_v61 = vpop.permute.xlu0 %8843  ;;  %v8847_v18 = vpop.permute.xlu1 %8846 }
0x264d   :  { %vm8848_vm14 = vcmp.eq.s32.totalorder %v10653_v14, %v8844_v61  ;;  %vm8849_vm15 = vcmp.eq.s32.totalorder %v10653_v14, %v8847_v18  ;;  %v3499_v61 = vcvt.s32.f32 %v3497_v56  ;;  %v3619_v18 = vcvt.s32.f32 %v3617_v33  ;;  %v15398_v33 = vld [vmem:[#allocation174_spill] sm:$0xff] }
0x264e   :  { %v8850_v62 = vsel %vm8848_vm14, %v8840_v47, 0  ;;  %v8851_v21 = vsel %vm8849_vm15, %v8841_v46, 0  ;;  %v15390_v47 = vld [vmem:[#allocation159_spill] sm:$0xff] }
0x264f   :  { %v8852_v4 = vsel %vm2218_vm3, %v8850_v62, 0  ;;  %v8865_v30 = vsel %vm2218_vm3, %v8851_v21, 0  ;;  %v3512_v46 = vand.u32 65535, %v15390_v47  ;;  %v15391_v62 = vld [vmem:[#allocation139_spill] sm:$0xff]  ;;  %v15403_v47 = vld [vmem:[#allocation26_spill] sm:$0xff] }
0x2650   :  { %v8854_v3 = vshrl.u32 %v8852_v4, 16  ;;  %v8867_v0 = vshrl.u32 %v8865_v30, 16  ;;  %v8853_v39 = vand.u32 65535, %v8852_v4  ;;  %v8866_v1 = vand.u32 65535, %v8865_v30  ;;  %v15392_v4 = vld [vmem:[#allocation161_spill] sm:$0xff] }
0x2651   :  { %v3632_v21 = vand.u32 65535, %v15391_v62  ;;  %v15405_v62 = vld [vmem:[#allocation22_spill] sm:$0xff] }
0x2652   :  { %v8856_v15 = vcvt.s32.f32 %v8854_v3  ;;  %v8869_v59 = vcvt.s32.f32 %v8867_v0  ;;  %v8855_v25 = vcvt.s32.f32 %v8853_v39  ;;  %v8868_v19 = vcvt.s32.f32 %v8866_v1  ;;  %v15393_v0 = vld [vmem:[#allocation156_spill] sm:$0xff] }
0x2654   :  { %8859 = vadd.xlane.f32.xlu0 %v8856_v15  ;;  %8872 = vadd.xlane.f32.xlu1 %v8869_v59  ;;  %v3514_v15 = vcvt.s32.f32 %v3512_v46  ;;  %v3634_v59 = vcvt.s32.f32 %v3632_v21  ;;  %v15404_v46 = vld [vmem:[#allocation10_spill] sm:$0xff] }
0x2655   :  { %v15406_v21 = vld [vmem:[#allocation6_spill] sm:$0xff] }
0x2658   :  { %8857 = vadd.xlane.f32.xlu0 %v8855_v25  ;;  %8870 = vadd.xlane.f32.xlu1 %v8868_v19  ;;  %v15394_v25 = vld [vmem:[#allocation157_spill] sm:$0xff] }
0x2659   :  { %v3527_v19 = vand.u32 65535, %v15394_v25  ;;  %v15411_v25 = vld [vmem:[#allocation25_spill] sm:$0xff] }
0x265b   :  { %v3529_v34 = vcvt.s32.f32 %v3527_v19  ;;  %v15412_v19 = vld [vmem:[#allocation9_spill] sm:$0xff] }
0x2679   :  { %v14089_v29 = vpop.xlane.xlu0 %3456 }
0x267a   :  { %vm3458_vm4 = vcmp.eq.f32.partialorder %v13886_v26, %v14089_v29 }
0x267b   :  { %v3459_v8 = vsel %vm3458_vm4, %v3454_v31, inf  ;;  %v3647_v31 = vand.u32 65535, %v15395_v23 }
0x267c   :  { %3460 = vmin.xlane.f32.xlu1 %v3459_v8 }
0x267d   :  { %v14094_v28 = vpop.xlane.xlu0 %3561 }
0x267e   :  { %v14096_v44 = vpop.xlane.xlu1 %3441  ;;  %vm3563_vm2 = vcmp.eq.f32.partialorder %v13919_v63, %v14094_v28 }
0x267f   :  { %vm3443_vm5 = vcmp.eq.f32.partialorder %v13907_v57, %v14096_v44  ;;  %v3564_v13 = vsel %vm3563_vm2, %v3559_v58, inf  ;;  %v15396_v58 = vld [vmem:[#allocation158_spill] sm:$0xff] }
0x2680   :  { %v3444_v45 = vsel %vm3443_vm5, %v3439_v60, inf }
0x2681   :  { %v14104_v26 = vpop.xlane.xlu0 %3471  ;;  %3445 = vmin.xlane.f32.xlu0 %v3444_v45  ;;  %v3649_v45 = vcvt.s32.f32 %v3647_v31  ;;  %v15413_v31 = vld [vmem:[#allocation28_spill] sm:$0xff] }
0x2682   :  { %v14106_v42 = vpop.xlane.xlu1 %3576  ;;  %vm3473_vm11 = vcmp.eq.f32.partialorder %v13945_v41, %v14104_v26 }
0x2683   :  { %vm3578_vm13 = vcmp.eq.f32.partialorder %v13960_v36, %v14106_v42  ;;  %v3474_v36 = vsel %vm3473_vm11, %v3469_v38, inf  ;;  %v3664_v38 = vcvt.s32.f32 %v3662_v10 }
0x2684   :  { %v3579_v57 = vsel %vm3578_vm13, %v3574_v17, inf  ;;  %v3542_v17 = vand.u32 65535, %v15396_v58  ;;  %v15415_v58 = vld [vmem:[#allocation27_spill] sm:$0xff] }
0x2685   :  { %v14114_v63 = vpop.xlane.xlu0 %3486  ;;  %3565 = vmin.xlane.f32.xlu0 %v3564_v13  ;;  %3580 = vmin.xlane.f32.xlu1 %v3579_v57 }
0x2686   :  { %v14116_v50 = vpop.xlane.xlu1 %3591  ;;  %vm3488_vm0 = vcmp.eq.f32.partialorder %v13985_v7, %v14114_v63  ;;  %v3544_v57 = vcvt.s32.f32 %v3542_v17  ;;  %v15416_v17 = vld [vmem:[#allocation11_spill] sm:$0xff] }
0x2687   :  { %vm3593_vm12 = vcmp.eq.f32.partialorder %v13991_v40, %v14116_v50  ;;  %v3489_v40 = vsel %vm3488_vm0, %v3484_v52, inf  ;;  %vm8878_vm0 = vcmp.gt.s32.totalorder %v15398_v33, 2 }
0x2688   :  { %v3594_v35 = vsel %vm3593_vm12, %v3589_v55, inf }
0x2689   :  { %v14124_v41 = vpop.xlane.xlu0 %3501  ;;  %3475 = vmin.xlane.f32.xlu0 %v3474_v36  ;;  %3595 = vmin.xlane.f32.xlu1 %v3594_v35 }
0x268a   :  { %v14126_v2 = vpop.xlane.xlu1 %3606  ;;  %vm3503_vm14 = vcmp.eq.f32.partialorder %v15389_v6, %v14124_v41 }
0x268b   :  { %vm3608_vm1 = vcmp.eq.f32.partialorder %v15388_v53, %v14126_v2  ;;  %v3504_v30 = vsel %vm3503_vm14, %v3499_v61, inf  ;;  %v15399_v53 = vld [vmem:[#allocation187_spill] sm:$0xff]  ;;  %v15401_v61 = vld [vmem:[#allocation154_spill] sm:$0xff]  ;;  %vm2496_vm14 = vcmp.ge.f32.partialorder %v15404_v46, %v15403_v47 }
0x268c   :  { %v3609_v20 = vsel %vm3608_vm1, %v3604_v48, inf  ;;  %vm8879_vm1 = vcmp.gt.s32.totalorder %v15399_v53, 2  ;;  %v15424_v47 = vld [vmem:[#allocation15_spill] sm:$0xff] }
0x268d   :  { %v14134_v7 = vpop.xlane.xlu0 %3516  ;;  %3490 = vmin.xlane.f32.xlu0 %v3489_v40  ;;  %3610 = vmin.xlane.f32.xlu1 %v3609_v20  ;;  %v15400_v20 = vld [vmem:[#allocation136_spill] sm:$0xff] }
0x268e   :  { %v14136_v11 = vpop.xlane.xlu1 %3621  ;;  %vm3518_vm4 = vcmp.eq.f32.partialorder %v15393_v0, %v14134_v7  ;;  %v15410_v0 = vld [vmem:[#allocation8_spill] sm:$0xff] }
0x268f   :  { %vm3623_vm15 = vcmp.eq.f32.partialorder %v15392_v4, %v14136_v11  ;;  %v3519_v5 = vsel %vm3518_vm4, %v3514_v15, inf  ;;  %v15407_v4 = vld [vmem:[#allocation23_spill] sm:$0xff]  ;;  %v2512_v15 = vsel %vm2496_vm14, %v10653_v14, 8 }
0x2690   :  { %v3624_v3 = vsel %vm3623_vm15, %v3619_v18, inf  ;;  %vm2495_vm15 = vcmp.ge.f32.partialorder %v15406_v21, %v15405_v62 }
0x2691   :  { %v14144_v39 = vpop.xlane.xlu0 %3531  ;;  %3505 = vmin.xlane.f32.xlu0 %v3504_v30  ;;  %3625 = vmin.xlane.f32.xlu1 %v3624_v3  ;;  %v15408_v30 = vld [vmem:[#allocation7_spill] sm:$0xff]  ;;  %v15409_v3 = vld [vmem:[#allocation24_spill] sm:$0xff] }
0x2692   :  { %v14146_v1 = vpop.xlane.xlu1 %3636  ;;  %vm3533_vm2 = vcmp.eq.f32.partialorder %v14025_v51, %v14144_v39  ;;  %vm2503_vm4 = vcmp.ge.f32.partialorder %v15408_v30, %v15407_v4  ;;  %v3463_v4 = vcvt.f32.s32 %v14089_v29  ;;  %v3448_v29 = vcvt.f32.s32 %v14096_v44  ;;  %v15427_v44 = vld [vmem:[#allocation34_spill] sm:$0xff] }
0x2693   :  { %vm3638_vm5 = vcmp.eq.f32.partialorder %v14009_v54, %v14146_v1  ;;  %v3534_v54 = vsel %vm3533_vm2, %v3529_v34, inf  ;;  %vm2505_vm2 = vcmp.ge.f32.partialorder %v15412_v19, %v15411_v25  ;;  %v2519_v23 = vsel %vm2503_vm4, %v10653_v14, 8 }
0x2694   :  { %v3639_v8 = vsel %vm3638_vm5, %v3634_v59, inf  ;;  %vm2504_vm5 = vcmp.ge.f32.partialorder %v15410_v0, %v15409_v3  ;;  %v2511_v59 = vsel %vm2495_vm15, %v10653_v14, 8  ;;  %v14195_v34 = vsel %vm2218_vm3, %v2512_v15, 2147483647 }
0x2695   :  { %3520 = vmin.xlane.f32.xlu0 %v3519_v5  ;;  %3640 = vmin.xlane.f32.xlu1 %v3639_v8  ;;  %v14154_v60 = vpop.xlane.xlu0 %3546  ;;  %v15414_v5 = vld [vmem:[#allocation12_spill] sm:$0xff]  ;;  %v2520_v8 = vsel %vm2504_vm5, %v10653_v14, 8  ;;  %v14201_v43 = vsel %vm2218_vm3, %v2511_v59, 2147483647 }
0x2696   :  { %v14156_v24 = vpop.xlane.xlu1 %3651  ;;  %vm3548_vm11 = vcmp.eq.f32.partialorder %v14032_v12, %v14154_v60 }
0x2697   :  { %vm3653_vm13 = vcmp.eq.f32.partialorder %v14020_v27, %v14156_v24  ;;  %v3549_v55 = vsel %vm3548_vm11, %v3544_v57, inf  ;;  %vm2507_vm11 = vcmp.ge.f32.partialorder %v15416_v17, %v15415_v58  ;;  %v15419_v57 = vld [vmem:[#allocation30_spill] sm:$0xff] }
0x2698   :  { %v3654_v13 = vsel %vm3653_vm13, %v3649_v45, inf  ;;  %vm2497_vm13 = vcmp.ge.f32.partialorder %v15414_v5, %v15413_v31  ;;  %v2521_v45 = vsel %vm2505_vm2, %v10653_v14, 8 }
0x2699   :  { %3535 = vmin.xlane.f32.xlu0 %v3534_v54  ;;  %3655 = vmin.xlane.f32.xlu1 %v3654_v13  ;;  %v2513_v10 = vsel %vm2497_vm13, %v10653_v14, 8  ;;  %v15417_v54 = vld [vmem:[#allocation29_spill] sm:$0xff] }
0x269a   :  { %v14164_v51 = vpop.xlane.xlu1 %3666  ;;  %v15418_v13 = vld [vmem:[#allocation13_spill] sm:$0xff] }
0x269b   :  { %vm3668_vm12 = vcmp.eq.f32.partialorder %v14027_v49, %v14164_v51 }
0x269c   :  { %v3669_v16 = vsel %vm3668_vm12, %v3664_v38, inf  ;;  %vm2506_vm12 = vcmp.ge.f32.partialorder %v15418_v13, %v15417_v54  ;;  %v15420_v38 = vld [vmem:[#allocation14_spill] sm:$0xff]  ;;  %v15426_v54 = vld [vmem:[#allocation17_spill] sm:$0xff]  ;;  %v3464_v13 = vshll.u32 %v3463_v4, 16  ;;  %v15429_v4 = vld [vmem:[#allocation36_spill] sm:$0xff] }
0x269d   :  { %3550 = vmin.xlane.f32.xlu0 %v3549_v55  ;;  %3670 = vmin.xlane.f32.xlu1 %v3669_v16  ;;  %v14209_v55 = vsel %vm2218_vm3, %v2519_v23, 2147483647  ;;  %v2544_v16 = vshra.s32 %v14195_v34, 16 }
0x269f   :  { %v14231_v46 = vcvt.s32.f32 %v2544_v16  ;;  %v15428_v16 = vld [vmem:[#allocation18_spill] sm:$0xff] }
0x26a0   :  { %vm2500_vm4 = vcmp.ge.f32.partialorder %v15428_v16, %v15427_v44 }
0x26e1   :  { %v8860_v32 = vpop.xlane.xlu0 %8859  ;;  %v8873_v27 = vpop.xlane.xlu1 %8872 }
0x26e2   :  { %v8862_v36 = vcvt.f32.s32 %v8860_v32  ;;  %v8875_v35 = vcvt.f32.s32 %v8873_v27  ;;  %v14213_v32 = vsel %vm2218_vm3, %v2520_v8, 2147483647  ;;  %v2523_v27 = vsel %vm2507_vm11, %v10653_v14, 8 }
0x26e3   :  { %v14235_v21 = vsel %vm2218_vm3, %v2523_v27, 2147483647  ;;  %v3568_v27 = vcvt.f32.s32 %v14094_v28  ;;  %vm15435_vm11 = vcmask 1046534  }
0x26e4   :  { %v8863_v12 = vshll.u32 %v8862_v36, 16  ;;  %v8876_v9 = vshll.u32 %v8875_v35, 16  ;;  %v2529_v36 = vshra.s32 %v14201_v43, 16  ;;  %v14218_v35 = vsel %vm2218_vm3, %v2521_v45, 2147483647 }
0x26e5   :  { %v8858_v52 = vpop.xlane.xlu0 %8857  ;;  %v8871_v48 = vpop.xlane.xlu1 %8870  ;;  %v2679_v62 = vshra.s32 %v14218_v35, 16  ;;  %v2709_v5 = vshra.s32 %v14235_v21, 16 }
0x26e6   :  { %v8861_v56 = vcvt.f32.s32 %v8858_v52  ;;  %v8874_v22 = vcvt.f32.s32 %v8871_v48  ;;  %v2522_v52 = vsel %vm2506_vm12, %v10653_v14, 8  ;;  %v14249_v19 = vcvt.s32.f32 %v2529_v36  ;;  %vm15436_vm12 = vmmov %vm15435_vm11 }
0x26e7   :  { %v14243_v15 = vsel %vm2218_vm3, %v2522_v52, 2147483647  ;;  %v14256_v45 = vcvt.s32.f32 %v2679_v62  ;;  %v3583_v36 = vcvt.f32.s32 %v14106_v42  ;;  %v2516_v62 = vsel %vm2500_vm4, %v10653_v14, 8 }
0x26e8   :  { %v8864_v40 = vadd.s32 %v8863_v12, %v8861_v56  ;;  %v8877_v49 = vadd.s32 %v8876_v9, %v8874_v22  ;;  %v2649_v12 = vshra.s32 %v14209_v55, 16  ;;  %v14224_v9 = vsel %vm2218_vm3, %v2513_v10, 2147483647  ;;  %v15421_v56 = vld [vmem:[#allocation32_spill] sm:$0xff]  ;;  %v15425_v10 = vld [vmem:[#allocation33_spill] sm:$0xff] }
0x26e9   :  { %v15422_v22 = vld [vmem:[#allocation16_spill] sm:$0xff]  ;;  %v2559_v3 = vshra.s32 %v14224_v9, 16  ;;  %v2694_v17 = vshra.s32 %v14243_v15, 16  ;;  %vm2509_vm15 = vcmp.ge.f32.partialorder %v15426_v54, %v15425_v10 }
0x26ea   :  { %v14171_v6 = vsel %vm8878_vm0, %v8864_v40, %v15400_v20  ;;  %v14174_v18 = vsel %vm8879_vm1, %v8877_v49, %v15401_v61  ;;  %vm2499_vm0 = vcmp.ge.f32.partialorder %v15420_v38, %v15419_v57  ;;  %vm2498_vm1 = vcmp.ge.f32.partialorder %v15422_v22, %v15421_v56  ;;  %v15423_v49 = vld [vmem:[#allocation31_spill] sm:$0xff] }
0x26eb   :  { %15402 = vst [vmem:[#allocation140_spill] sm:$0xff] %v14174_v18  ;;  %8896 = vperm.xlu0 %9151, %v14171_v6   ;;  %8899 = vperm.xlu1 %9152, %v14174_v18   ;;  %v2515_v48 = vsel %vm2499_vm0, %v10653_v14, 8  ;;  %v2664_v40 = vshra.s32 %v14213_v32, 16  ;;  %vm2508_vm14 = vcmp.ge.f32.partialorder %v15424_v47, %v15423_v49  ;;  %v2514_v59 = vsel %vm2498_vm1, %v10653_v14, 8 }
0x26ec   :  { %v14240_v0 = vsel %vm2218_vm3, %v2515_v48, 2147483647  ;;  %v14247_v25 = vcvt.s32.f32 %v2649_v12  ;;  %v2524_v23 = vsel %vm2508_vm14, %v10653_v14, 8  ;;  %v14262_v57 = vcvt.s32.f32 %v2559_v3 }
0x26ed   :  { %v14254_v8 = vcvt.s32.f32 %v2664_v40  ;;  %v2589_v58 = vshra.s32 %v14240_v0, 16  ;;  %v14265_v38 = vsel %vm2218_vm3, %v2514_v59, 2147483647  ;;  %v14273_v48 = vsel %vm2218_vm3, %v2524_v23, 2147483647 }
0x26ee   :  { %v3449_v12 = vshll.u32 %v3448_v29, 16  ;;  %v14276_v40 = vcvt.s32.f32 %v2709_v5  ;;  %v2525_v49 = vsel %vm2509_vm15, %v10653_v14, 8  ;;  %v2574_v47 = vshra.s32 %v14265_v38, 16 }
0x26ef   :  { %v14280_v28 = vcvt.s32.f32 %v2589_v58  ;;  %v14282_v42 = vcvt.s32.f32 %v2694_v17  ;;  %v2724_v59 = vshra.s32 %v14273_v48, 16  ;;  %v3569_v23 = vshll.u32 %v3568_v27, 16 }
0x26f0   :  { %v3478_v29 = vcvt.f32.s32 %v14104_v26  ;;  %v3598_v5 = vcvt.f32.s32 %v14116_v50  ;;  %v14295_v27 = vcvt.s32.f32 %v2574_v47  ;;  %v14298_v26 = vsel %vm2218_vm3, %v2516_v62, 2147483647 }
0x26f1   :  { %v14301_v50 = vsel %vm2218_vm3, %v2525_v49, 2147483647  ;;  %v3613_v47 = vcvt.f32.s32 %v14126_v2  ;;  %v14318_v2 = vcvt.s32.f32 %v2724_v59  ;;  %vm15437_vm0 = vcmask 1047559  }
0x26f2   :  { %vm15438_vm1 = vmmov %vm15437_vm0 }
0x2709   :  { %v3461_v30 = vpop.xlane.xlu1 %3460 }
0x270a   :  { %2547 = vmin.xlane.f32.xlu0 %v14231_v46  ;;  %v3462_v31 = vcvt.f32.s32 %v3461_v30  ;;  %v15430_v30 = vld [vmem:[#allocation20_spill] sm:$0xff] }
0x270b   :  { %vm2501_vm5 = vcmp.ge.f32.partialorder %v15430_v30, %v15429_v4  ;;  %v3479_v4 = vshll.u32 %v3478_v29, 16  ;;  %v3493_v30 = vcvt.f32.s32 %v14114_v63  ;;  %v2604_v63 = vshra.s32 %v14298_v26, 16 }
0x270c   :  { %v3465_v56 = vadd.s32 %v3464_v13, %v3462_v31  ;;  %v3584_v31 = vshll.u32 %v3583_v36, 16  ;;  %v2517_v16 = vsel %vm2501_vm5, %v10653_v14, 8  ;;  %v15431_v36 = vld [vmem:[#allocation37_spill] sm:$0xff] }
0x270d   :  { %v14316_v29 = vsel %vm2218_vm3, %v2517_v16, 2147483647 }
0x270e   :  { %2652 = vmin.xlane.f32.xlu0 %v14247_v25  ;;  %v3446_v52 = vpop.xlane.xlu0 %3445  ;;  %v3683_v17 = vrot.slane %v3465_v56, %v10657_v37 }
0x270f   :  { %v3447_v22 = vcvt.f32.s32 %v3446_v52  ;;  %2532 = vmin.xlane.f32.xlu1 %v14249_v19  ;;  %v15432_v52 = vld [vmem:[#allocation21_spill] sm:$0xff] }
0x2710   :  { %vm2502_vm2 = vcmp.ge.f32.partialorder %v15432_v52, %v15431_v36 }
0x2711   :  { %v3450_v3 = vadd.s32 %v3449_v12, %v3447_v22 }
0x2712   :  { %2562 = vmin.xlane.f32.xlu0 %v14262_v57  ;;  %v3566_v58 = vpop.xlane.xlu0 %3565  ;;  %v3581_v10 = vpop.xlane.xlu1 %3580 }
0x2713   :  { %v3679_v54 = vrot.slane %v3450_v3, %v10657_v37  ;;  %v3567_v13 = vcvt.f32.s32 %v3566_v58  ;;  %v3582_v44 = vcvt.f32.s32 %v3581_v10  ;;  %2667 = vmin.xlane.f32.xlu1 %v14254_v8  ;;  %v3599_v3 = vshll.u32 %v3598_v5, 16 }
0x2714   :  { %v2518_v5 = vsel %vm2502_vm2, %v10653_v14, 8 }
0x2715   :  { %v3740_v12 = vsel %vm2831_vm6, %v3683_v17, %v3679_v54  ;;  %v3570_v56 = vadd.s32 %v3569_v23, %v3567_v13  ;;  %v3585_v22 = vadd.s32 %v3584_v31, %v3582_v44  ;;  %v15433_v23 = vld [vmem:[#allocation35_spill] sm:$0xff]  ;;  %v3494_v44 = vshll.u32 %v3493_v30, 16 }
0x2716   :  { %2577 = vmin.xlane.f32.xlu0 %v14295_v27  ;;  %v3476_v62 = vpop.xlane.xlu0 %3475  ;;  %v3596_v58 = vpop.xlane.xlu1 %3595  ;;  %v15434_v31 = vld [vmem:[#allocation19_spill] sm:$0xff] }
0x2717   :  { %v3711_v49 = vrot.slane %v3570_v56, %v10657_v37  ;;  %v3715_v10 = vrot.slane %v3585_v22, %v10657_v37  ;;  %v3477_v20 = vcvt.f32.s32 %v3476_v62  ;;  %v3597_v61 = vcvt.f32.s32 %v3596_v58  ;;  %2682 = vmin.xlane.f32.xlu1 %v14256_v45 }
0x2718   :  { %vm2510_vm13 = vcmp.ge.f32.partialorder %v15434_v31, %v15433_v23  ;;  %v3508_v56 = vcvt.f32.s32 %v14124_v41  ;;  %v3614_v22 = vshll.u32 %v3613_v47, 16  ;;  %v3628_v62 = vcvt.f32.s32 %v14136_v11 }
0x2719   :  { %v3747_v17 = vsel %vm2831_vm6, %v3715_v10, %v3711_v49  ;;  %v3480_v54 = vadd.s32 %v3479_v4, %v3477_v20  ;;  %v3600_v13 = vadd.s32 %v3599_v3, %v3597_v61  ;;  %v2526_v41 = vsel %vm2510_vm13, %v10653_v14, 8 }
0x271a   :  { %2592 = vmin.xlane.f32.xlu0 %v14280_v28  ;;  %v3491_v16 = vpop.xlane.xlu0 %3490  ;;  %v3611_v59 = vpop.xlane.xlu1 %3610  ;;  %v14335_v20 = vcvt.s32.f32 %v2604_v63  ;;  %v2619_v11 = vshra.s32 %v14316_v29, 16  ;;  %v14339_v61 = vsel %vm2218_vm3, %v2518_v5, 2147483647  ;;  %v3509_v49 = vshll.u32 %v3508_v56, 16 }
0x271b   :  { %v3687_v58 = vrot.slane %v3480_v54, %v10657_v37  ;;  %v3719_v18 = vrot.slane %v3600_v13, %v10657_v37  ;;  %v3492_v36 = vcvt.f32.s32 %v3491_v16  ;;  %v3612_v52 = vcvt.f32.s32 %v3611_v59  ;;  %2697 = vmin.xlane.f32.xlu1 %v14282_v42 }
0x271c   :  { %v3523_v10 = vcvt.f32.s32 %v14134_v7  ;;  %v3629_v54 = vshll.u32 %v3628_v62, 16  ;;  %v3643_v23 = vcvt.f32.s32 %v14146_v1  ;;  %v2739_v7 = vshra.s32 %v14301_v50, 16 }
0x271d   :  { %v3741_v4 = vsel %vm2833_vm7, %v3687_v58, %v3740_v12  ;;  %v3748_v30 = vsel %vm2833_vm7, %v3719_v18, %v3747_v17  ;;  %v3495_v3 = vadd.s32 %v3494_v44, %v3492_v36  ;;  %v3615_v47 = vadd.s32 %v3614_v22, %v3612_v52 }
0x271e   :  { %2607 = vmin.xlane.f32.xlu0 %v14335_v20  ;;  %v3506_v31 = vpop.xlane.xlu0 %3505  ;;  %v3626_v63 = vpop.xlane.xlu1 %3625  ;;  %v14349_v18 = vcvt.s32.f32 %v2619_v11  ;;  %v2634_v17 = vshra.s32 %v14339_v61, 16  ;;  %v14354_v1 = vsel %vm2218_vm3, %v2526_v41, 2147483647  ;;  %v3524_v59 = vshll.u32 %v3523_v10, 16 }
0x271f   :  { %v3691_v13 = vrot.slane %v3495_v3, %v10657_v37  ;;  %v3723_v5 = vrot.slane %v3615_v47, %v10657_v37  ;;  %v3507_v16 = vcvt.f32.s32 %v3506_v31  ;;  %v3627_v12 = vcvt.f32.s32 %v3626_v63  ;;  %2712 = vmin.xlane.f32.xlu1 %v14276_v40 }
0x2720   :  { %v3538_v58 = vcvt.f32.s32 %v14144_v39  ;;  %v3644_v36 = vshll.u32 %v3643_v23, 16  ;;  %v3658_v52 = vcvt.f32.s32 %v14156_v24  ;;  %v2754_v39 = vshra.s32 %v14354_v1, 16 }
0x2721   :  { %v3742_v44 = vsel %vm2835_vm8, %v3691_v13, %v3741_v4  ;;  %v3749_v56 = vsel %vm2835_vm8, %v3723_v5, %v3748_v30  ;;  %v3510_v22 = vadd.s32 %v3509_v49, %v3507_v16  ;;  %v3630_v62 = vadd.s32 %v3629_v54, %v3627_v12 }
0x2722   :  { %2622 = vmin.xlane.f32.xlu0 %v14349_v18  ;;  %v3521_v11 = vpop.xlane.xlu0 %3520  ;;  %v3641_v3 = vpop.xlane.xlu1 %3640  ;;  %v14364_v30 = vcvt.s32.f32 %v2634_v17  ;;  %v14366_v49 = vcvt.s32.f32 %v2739_v7  ;;  %v3539_v63 = vshll.u32 %v3538_v58, 16  ;;  %v3553_v13 = vcvt.f32.s32 %v14154_v60 }
0x2723   :  { %v3695_v47 = vrot.slane %v3510_v22, %v10657_v37  ;;  %v3727_v41 = vrot.slane %v3630_v62, %v10657_v37  ;;  %v3522_v31 = vcvt.f32.s32 %v3521_v11  ;;  %v3642_v4 = vcvt.f32.s32 %v3641_v3  ;;  %2727 = vmin.xlane.f32.xlu1 %v14318_v2 }
0x2724   :  { %v3659_v5 = vshll.u32 %v3658_v52, 16  ;;  %v3673_v16 = vcvt.f32.s32 %v14164_v51 }
0x2725   :  { %v3743_v24 = vsel %vm2837_vm9, %v3695_v47, %v3742_v44  ;;  %v3750_v10 = vsel %vm2837_vm9, %v3727_v41, %v3749_v56  ;;  %v3525_v54 = vadd.s32 %v3524_v59, %v3522_v31  ;;  %v3645_v23 = vadd.s32 %v3644_v36, %v3642_v4 }
0x2726   :  { %2637 = vmin.xlane.f32.xlu0 %v14364_v30  ;;  %v3536_v12 = vpop.xlane.xlu0 %3535  ;;  %v3656_v17 = vpop.xlane.xlu1 %3655  ;;  %v14377_v56 = vcvt.s32.f32 %v2754_v39  ;;  %v3554_v36 = vshll.u32 %v3553_v13, 16  ;;  %v3674_v52 = vshll.u32 %v3673_v16, 16 }
0x2727   :  { %v3699_v7 = vrot.slane %v3525_v54, %v10657_v37  ;;  %v3731_v22 = vrot.slane %v3645_v23, %v10657_v37  ;;  %v3537_v62 = vcvt.f32.s32 %v3536_v12  ;;  %v3657_v44 = vcvt.f32.s32 %v3656_v17  ;;  %2742 = vmin.xlane.f32.xlu1 %v14366_v49 }
0x2729   :  { %v3744_v59 = vsel %vm2839_vm10, %v3699_v7, %v3743_v24  ;;  %v3751_v60 = vsel %vm2839_vm10, %v3731_v22, %v3750_v10  ;;  %v3540_v58 = vadd.s32 %v3539_v63, %v3537_v62  ;;  %v3660_v51 = vadd.s32 %v3659_v5, %v3657_v44 }
0x272a   :  { %v3551_v11 = vpop.xlane.xlu0 %3550  ;;  %v3671_v3 = vpop.xlane.xlu1 %3670 }
0x272b   :  { %v3703_v47 = vrot.slane %v3540_v58, %v10657_v37  ;;  %v3735_v41 = vrot.slane %v3660_v51, %v10657_v37  ;;  %v3552_v31 = vcvt.f32.s32 %v3551_v11  ;;  %v3672_v4 = vcvt.f32.s32 %v3671_v3  ;;  %2757 = vmin.xlane.f32.xlu1 %v14377_v56 }
0x272d   :  { %v3745_v39 = vsel %vm15435_vm11, %v3703_v47, %v3744_v59  ;;  %v3752_v24 = vsel %vm15436_vm12, %v3735_v41, %v3751_v60  ;;  %v3555_v54 = vadd.s32 %v3554_v36, %v3552_v31  ;;  %v3675_v10 = vadd.s32 %v3674_v52, %v3672_v4 }
0x272e   :  { %v2543_v41 = vand.u32 65535, %v14195_v34 }
0x272f   :  { %v3707_v23 = vrot.slane %v3555_v54, %v10657_v37  ;;  %v3739_v63 = vrot.slane %v3675_v10, %v10657_v37 }
0x2730   :  { %v2545_v4 = vcvt.s32.f32 %v2543_v41 }
0x2731   :  { %v3746_v13 = vsel %vm15437_vm0, %v3707_v23, %v3745_v39  ;;  %v3753_v5 = vsel %vm15438_vm1, %v3739_v63, %v3752_v24  ;;  %v2528_v39 = vand.u32 65535, %v14201_v43  ;;  %v2648_v63 = vand.u32 65535, %v14209_v55 }
0x2732   :  { %3754 = vst.msk [vmem:[#allocation5 + $0x20] sm:$0xff] %vm2218_vm3, %v3746_v13  ;;  %3755 = vst.msk [vmem:[#allocation5 + $0x28] sm:$0xff] %vm2218_vm3, %v3753_v5  ;;  %v2663_v13 = vand.u32 65535, %v14213_v32  ;;  %v2678_v55 = vand.u32 65535, %v14218_v35  ;;  %v2693_v35 = vand.u32 65535, %v14243_v15  ;;  %v2708_v15 = vand.u32 65535, %v14235_v21 }
0x2733   :  { %v2530_v23 = vcvt.s32.f32 %v2528_v39  ;;  %v2650_v5 = vcvt.s32.f32 %v2648_v63  ;;  %v2723_v21 = vand.u32 65535, %v14273_v48  ;;  %v2738_v48 = vand.u32 65535, %v14301_v50 }
0x2734   :  { %v2753_v50 = vand.u32 65535, %v14354_v1 }
0x2735   :  { %v2725_v41 = vcvt.s32.f32 %v2723_v21 }
0x2739   :  { %v8893_v17 = vld [vmem:[#allocation5 + $0x20] sm:$0xff]  ;;  %v8894_v7 = vld [vmem:[#allocation5 + $0x28] sm:$0xff] }
0x276a   :  { %v8897_v16 = vpop.permute.xlu0 %8896  ;;  %v8900_v12 = vpop.permute.xlu1 %8899 }
0x276b   :  { %vm8901_vm14 = vcmp.eq.s32.totalorder %v10653_v14, %v8897_v16  ;;  %vm8902_vm15 = vcmp.eq.s32.totalorder %v10653_v14, %v8900_v12  ;;  %v2665_v16 = vcvt.s32.f32 %v2663_v13  ;;  %v2558_v12 = vand.u32 65535, %v14224_v9 }
0x276c   :  { %v8903_v22 = vsel %vm8901_vm14, %v8893_v17, 0  ;;  %v8904_v62 = vsel %vm8902_vm15, %v8894_v7, 0  ;;  %v2573_v9 = vand.u32 65535, %v14265_v38  ;;  %v2588_v38 = vand.u32 65535, %v14240_v0 }
0x276d   :  { %v8905_v44 = vsel %vm2218_vm3, %v8903_v22, 0  ;;  %v8918_v59 = vsel %vm2218_vm3, %v8904_v62, 0  ;;  %v2560_v7 = vcvt.s32.f32 %v2558_v12  ;;  %v2680_v22 = vcvt.s32.f32 %v2678_v55 }
0x276e   :  { %v8907_v60 = vshrl.u32 %v8905_v44, 16  ;;  %v8920_v58 = vshrl.u32 %v8918_v59, 16  ;;  %v8906_v51 = vand.u32 65535, %v8905_v44  ;;  %v8919_v36 = vand.u32 65535, %v8918_v59 }
0x276f   :  { %v2575_v59 = vcvt.s32.f32 %v2573_v9  ;;  %v2603_v0 = vand.u32 65535, %v14298_v26  ;;  %v2618_v26 = vand.u32 65535, %v14316_v29  ;;  %v2633_v29 = vand.u32 65535, %v14339_v61 }
0x2770   :  { %v8909_v52 = vcvt.s32.f32 %v8907_v60  ;;  %v8922_v11 = vcvt.s32.f32 %v8920_v58  ;;  %v8908_v3 = vcvt.s32.f32 %v8906_v51  ;;  %v8921_v47 = vcvt.s32.f32 %v8919_v36 }
0x2771   :  { %v2695_v60 = vcvt.s32.f32 %v2693_v35  ;;  %v2590_v36 = vcvt.s32.f32 %v2588_v38  ;;  %v2635_v13 = vcvt.s32.f32 %v2633_v29  ;;  %v15441_v38 = vld [vmem:[#allocation173_spill] sm:$0xff] }
0x2772   :  { %8912 = vadd.xlane.f32.xlu0 %v8909_v52  ;;  %8925 = vadd.xlane.f32.xlu1 %v8922_v11  ;;  %v2710_v52 = vcvt.s32.f32 %v2708_v15 }
0x2776   :  { %8910 = vadd.xlane.f32.xlu0 %v8908_v3  ;;  %8923 = vadd.xlane.f32.xlu1 %v8921_v47  ;;  %v2605_v47 = vcvt.s32.f32 %v2603_v0  ;;  %v15444_v0 = vld [vmem:[#allocation176_spill] sm:$0xff] }
0x2797   :  { %v14397_v31 = vpop.xlane.xlu0 %2547 }
0x2798   :  { %vm2549_vm4 = vcmp.eq.f32.partialorder %v14231_v46, %v14397_v31 }
0x2799   :  { %v2550_v24 = vsel %vm2549_vm4, %v2545_v4, inf }
0x279a   :  { %2551 = vmin.xlane.f32.xlu1 %v2550_v24  ;;  %v2620_v24 = vcvt.s32.f32 %v2618_v26  ;;  %v15447_v26 = vld [vmem:[#allocation180_spill] sm:$0xff] }
0x279b   :  { %v14402_v54 = vpop.xlane.xlu0 %2652 }
0x279c   :  { %v14404_v10 = vpop.xlane.xlu1 %2532  ;;  %vm2654_vm2 = vcmp.eq.f32.partialorder %v14247_v25, %v14402_v54 }
0x279d   :  { %vm2534_vm5 = vcmp.eq.f32.partialorder %v14249_v19, %v14404_v10  ;;  %v2655_v32 = vsel %vm2654_vm2, %v2650_v5, inf }
0x279e   :  { %v2535_v34 = vsel %vm2534_vm5, %v2530_v23, inf  ;;  %v2740_v23 = vcvt.s32.f32 %v2738_v48 }
0x279f   :  { %v14412_v46 = vpop.xlane.xlu0 %2562  ;;  %2536 = vmin.xlane.f32.xlu0 %v2535_v34  ;;  %v2755_v34 = vcvt.s32.f32 %v2753_v50 }
0x27a0   :  { %v14414_v43 = vpop.xlane.xlu1 %2667  ;;  %vm2564_vm11 = vcmp.eq.f32.partialorder %v14262_v57, %v14412_v46 }
0x27a1   :  { %vm2669_vm13 = vcmp.eq.f32.partialorder %v14254_v8, %v14414_v43  ;;  %v2565_v8 = vsel %vm2564_vm11, %v2560_v7, inf }
0x27a2   :  { %v2670_v19 = vsel %vm2669_vm13, %v2665_v16, inf }
0x27a3   :  { %v14422_v25 = vpop.xlane.xlu0 %2577  ;;  %2656 = vmin.xlane.f32.xlu0 %v2655_v32  ;;  %2671 = vmin.xlane.f32.xlu1 %v2670_v19 }
0x27a4   :  { %v14424_v17 = vpop.xlane.xlu1 %2682  ;;  %vm2579_vm0 = vcmp.eq.f32.partialorder %v14295_v27, %v14422_v25 }
0x27a5   :  { %vm2684_vm12 = vcmp.eq.f32.partialorder %v14256_v45, %v14424_v17  ;;  %v2580_v45 = vsel %vm2579_vm0, %v2575_v59, inf  ;;  %vm8931_vm0 = vcmp.gt.s32.totalorder %v15398_v33, 1  ;;  %v15440_v59 = vld [vmem:[#allocation186_spill] sm:$0xff] }
0x27a6   :  { %v2685_v62 = vsel %vm2684_vm12, %v2680_v22, inf }
0x27a7   :  { %v14432_v57 = vpop.xlane.xlu0 %2592  ;;  %2566 = vmin.xlane.f32.xlu0 %v2565_v8  ;;  %2686 = vmin.xlane.f32.xlu1 %v2685_v62  ;;  %v15439_v8 = vld [vmem:[#allocation140_spill] sm:$0xff] }
0x27a8   :  { %v14434_v44 = vpop.xlane.xlu1 %2697  ;;  %vm2594_vm14 = vcmp.eq.f32.partialorder %v14280_v28, %v14432_v57 }
0x27a9   :  { %vm2699_vm1 = vcmp.eq.f32.partialorder %v14282_v42, %v14434_v44  ;;  %v2595_v42 = vsel %vm2594_vm14, %v2590_v36, inf  ;;  %vm8623_vm14 = vcmp.ge.s32.totalorder %v15398_v33, 7  ;;  %v15443_v36 = vld [vmem:[#allocation188_spill] sm:$0xff] }
0x27aa   :  { %v2700_v58 = vsel %vm2699_vm1, %v2695_v60, inf  ;;  %vm8932_vm1 = vcmp.gt.s32.totalorder %v15399_v53, 1  ;;  %v8625_v60 = vsel %vm8623_vm14, %v15440_v59, 4294967295  ;;  %vm8883_vm14 = vcmp.ge.s32.totalorder %v15399_v53, 2 }
0x27ab   :  { %v14442_v27 = vpop.xlane.xlu0 %2607  ;;  %2581 = vmin.xlane.f32.xlu0 %v2580_v45  ;;  %2701 = vmin.xlane.f32.xlu1 %v2700_v58  ;;  %v15442_v45 = vld [vmem:[#allocation175_spill] sm:$0xff]  ;;  %v8885_v29 = vsel %vm8883_vm14, %v15439_v8, 4294967295  ;;  %vm8984_vm14 = vcmp.gt.s32.totalorder %v15398_v33, 0 }
0x27ac   :  { %v14444_v51 = vpop.xlane.xlu1 %2712  ;;  %vm2609_vm4 = vcmp.eq.f32.partialorder %v14335_v20, %v14442_v27 }
0x27ad   :  { %vm2714_vm15 = vcmp.eq.f32.partialorder %v14276_v40, %v14444_v51  ;;  %v2610_v40 = vsel %vm2609_vm4, %v2605_v47, inf  ;;  %vm8671_vm4 = vcmp.ge.s32.totalorder %v15399_v53, 6  ;;  %v15446_v47 = vld [vmem:[#allocation168_spill] sm:$0xff] }
0x27ae   :  { %v2715_v11 = vsel %vm2714_vm15, %v2710_v52, inf  ;;  %vm8624_vm15 = vcmp.ge.s32.totalorder %v15399_v53, 7  ;;  %v8673_v58 = vsel %vm8671_vm4, %v15442_v45, 4294967295 }
0x27af   :  { %v14452_v28 = vpop.xlane.xlu0 %2622  ;;  %2596 = vmin.xlane.f32.xlu0 %v2595_v42  ;;  %2716 = vmin.xlane.f32.xlu1 %v2715_v11  ;;  %v8626_v15 = vsel %vm8624_vm15, %v15441_v38, 4294967295  ;;  %v15445_v42 = vld [vmem:[#allocation189_spill] sm:$0xff]  ;;  %vm8882_vm15 = vcmp.ge.s32.totalorder %v15398_v33, 2  ;;  %v2584_v38 = vcvt.f32.s32 %v14422_v25  ;;  %v2719_v25 = vcvt.f32.s32 %v14444_v51 }
0x27b0   :  { %v14454_v3 = vpop.xlane.xlu1 %2727  ;;  %vm2624_vm2 = vcmp.eq.f32.partialorder %v14349_v18, %v14452_v28  ;;  %v8884_v50 = vsel %vm8882_vm15, %v14171_v6, 4294967295  ;;  %vm8988_vm15 = vcmp.ge.s32.totalorder %v15398_v33, 0 }
0x27b1   :  { %vm2729_vm5 = vcmp.eq.f32.partialorder %v14318_v2, %v14454_v3  ;;  %v2625_v2 = vsel %vm2624_vm2, %v2620_v24, inf  ;;  %vm8724_vm2 = vcmp.ge.s32.totalorder %v15399_v53, 5  ;;  %v15449_v24 = vld [vmem:[#allocation136_spill] sm:$0xff]  ;;  %v2734_v51 = vcvt.f32.s32 %v14454_v3 }
0x27b2   :  { %v2730_v4 = vsel %vm2729_vm5, %v2725_v41, inf  ;;  %vm8670_vm5 = vcmp.ge.s32.totalorder %v15398_v33, 6  ;;  %v8726_v21 = vsel %vm8724_vm2, %v15444_v0, 4294967295  ;;  %vm8678_vm2 = vcmask 56368  }
0x27b3   :  { %2611 = vmin.xlane.f32.xlu0 %v2610_v40  ;;  %2731 = vmin.xlane.f32.xlu1 %v2730_v4  ;;  %v14462_v20 = vpop.xlane.xlu0 %2637  ;;  %v8672_v52 = vsel %vm8670_vm5, %v15443_v36, 4294967295  ;;  %v15448_v40 = vld [vmem:[#allocation154_spill] sm:$0xff]  ;;  %vm8631_vm5 = vcmask 64568  }
0x27b4   :  { %v14464_v39 = vpop.xlane.xlu1 %2742  ;;  %vm2639_vm11 = vcmp.eq.f32.partialorder %v14364_v30, %v14462_v20 }
0x27b5   :  { %vm2744_vm13 = vcmp.eq.f32.partialorder %v14366_v49, %v14464_v39  ;;  %v2640_v61 = vsel %vm2639_vm11, %v2635_v13, inf  ;;  %vm8777_vm11 = vcmp.ge.s32.totalorder %v15399_v53, 4  ;;  %v2539_v13 = vcvt.f32.s32 %v14404_v10 }
0x27b6   :  { %v2745_v63 = vsel %vm2744_vm13, %v2740_v23, inf  ;;  %vm8723_vm13 = vcmp.ge.s32.totalorder %v15398_v33, 5  ;;  %v8779_v41 = vsel %vm8777_vm11, %v15446_v47, 4294967295  ;;  %v2585_v47 = vshll.u32 %v2584_v38, 16 }
0x27b7   :  { %2626 = vmin.xlane.f32.xlu0 %v2625_v2  ;;  %2746 = vmin.xlane.f32.xlu1 %v2745_v63  ;;  %v8725_v11 = vsel %vm8723_vm13, %v15445_v42, 4294967295  ;;  %v2554_v2 = vcvt.f32.s32 %v14397_v31  ;;  %v2689_v31 = vcvt.f32.s32 %v14424_v17  ;;  %v2749_v3 = vcvt.f32.s32 %v14464_v39 }
0x27b8   :  { %v14472_v18 = vpop.xlane.xlu1 %2757  ;;  %vm8784_vm13 = vcmask 39968   ;;  %vm8837_vm11 = vcmask 31768  }
0x27b9   :  { %vm2759_vm12 = vcmp.eq.f32.partialorder %v14377_v56, %v14472_v18  ;;  %v2764_v39 = vcvt.f32.s32 %v14472_v18 }
0x27ba   :  { %v2760_v5 = vsel %vm2759_vm12, %v2755_v34, inf  ;;  %vm8776_vm12 = vcmp.ge.s32.totalorder %v15398_v33, 4 }
0x27bb   :  { %2641 = vmin.xlane.f32.xlu0 %v2640_v61  ;;  %2761 = vmin.xlane.f32.xlu1 %v2760_v5  ;;  %v8778_v48 = vsel %vm8776_vm12, %v15447_v26, 4294967295  ;;  %v2555_v61 = vshll.u32 %v2554_v2, 16  ;;  %v2659_v5 = vcvt.f32.s32 %v14402_v54  ;;  %vm8890_vm12 = vcmask 23568  }
0x27ff   :  { %v8913_v1 = vpop.xlane.xlu0 %8912  ;;  %v8926_v49 = vpop.xlane.xlu1 %8925 }
0x2800   :  { %v8915_v16 = vcvt.f32.s32 %v8913_v1  ;;  %v8928_v12 = vcvt.f32.s32 %v8926_v49  ;;  %v2674_v1 = vcvt.f32.s32 %v14414_v43 }
0x2802   :  { %v8916_v30 = vshll.u32 %v8915_v16, 16  ;;  %v8929_v19 = vshll.u32 %v8928_v12, 16  ;;  %v2540_v16 = vshll.u32 %v2539_v13, 16 }
0x2803   :  { %v8911_v55 = vpop.xlane.xlu0 %8910  ;;  %v8924_v32 = vpop.xlane.xlu1 %8923 }
0x2804   :  { %v8914_v7 = vcvt.f32.s32 %v8911_v55  ;;  %v8927_v22 = vcvt.f32.s32 %v8924_v32 }
0x2806   :  { %v8917_v9 = vadd.s32 %v8916_v30, %v8914_v7  ;;  %v8930_v56 = vadd.s32 %v8929_v19, %v8927_v22  ;;  %v2569_v30 = vcvt.f32.s32 %v14412_v46  ;;  %v2675_v19 = vshll.u32 %v2674_v1, 16 }
0x2807   :  { %v2704_v46 = vcvt.f32.s32 %v14434_v44 }
0x2808   :  { %v14479_v35 = vsel %vm8931_vm0, %v8917_v9, %v14171_v6  ;;  %v14482_v62 = vsel %vm8932_vm1, %v8930_v56, %v15439_v8  ;;  %vm8830_vm0 = vcmp.ge.s32.totalorder %v15399_v53, 3  ;;  %vm8829_vm1 = vcmp.ge.s32.totalorder %v15398_v33, 3 }
0x2809   :  { %8949 = vperm.xlu0 %9151, %v14479_v35   ;;  %8952 = vperm.xlu1 %9152, %v14482_v62   ;;  %v8832_v4 = vsel %vm8830_vm0, %v15448_v40, 4294967295  ;;  %v8831_v23 = vsel %vm8829_vm1, %v15449_v24, 4294967295  ;;  %v2660_v6 = vshll.u32 %v2659_v5, 16  ;;  %v2705_v26 = vshll.u32 %v2704_v46, 16 }
0x280a   :  { %vm8935_vm0 = vcmp.ge.s32.totalorder %v15398_v33, 1  ;;  %vm8936_vm1 = vcmp.ge.s32.totalorder %v15399_v53, 1 }
0x280d   :  { %8627 = vrot.lane.b32.xlu0 %v8625_v60, %s9463_s1  ;;  %8629 = vrot.lane.b32.xlu1 %v8626_v15, %s9463_s1  ;;  %v2570_v60 = vshll.u32 %v2569_v30, 16  ;;  %v2690_v15 = vshll.u32 %v2689_v31, 16  ;;  %v2735_v31 = vshll.u32 %v2734_v51, 16  ;;  %s9469_s1 = smov 1  }
0x2811   :  { %8676 = vrot.lane.b32.xlu0 %v8673_v58, %s9464_s27  ;;  %8674 = vrot.lane.b32.xlu1 %v8672_v52, %s9464_s27 }
0x2815   :  { %8729 = vrot.lane.b32.xlu0 %v8726_v21, %s9465_s28  ;;  %8727 = vrot.lane.b32.xlu1 %v8725_v11, %s9465_s28 }
0x2819   :  { %8782 = vrot.lane.b32.xlu0 %v8779_v41, %s9466_s3  ;;  %8780 = vrot.lane.b32.xlu1 %v8778_v48, %s9466_s3  ;;  %v2599_v41 = vcvt.f32.s32 %v14432_v57  ;;  %v2614_v57 = vcvt.f32.s32 %v14442_v27  ;;  %v2629_v27 = vcvt.f32.s32 %v14452_v28  ;;  %v2644_v28 = vcvt.f32.s32 %v14462_v20 }
0x281b   :  { %v2600_v13 = vshll.u32 %v2599_v41, 16  ;;  %v2630_v38 = vshll.u32 %v2629_v27, 16  ;;  %v2765_v41 = vshll.u32 %v2764_v39, 16 }
0x281d   :  { %8835 = vrot.lane.b32.xlu0 %v8832_v4, %s9467_s29  ;;  %8833 = vrot.lane.b32.xlu1 %v8831_v23, %s9467_s29 }
0x2821   :  { %8888 = vrot.lane.b32.xlu0 %v8885_v29, %s9468_s2  ;;  %8886 = vrot.lane.b32.xlu1 %v8884_v50, %s9468_s2 }
0x2827   :  { %v2552_v63 = vpop.xlane.xlu1 %2551 }
0x2828   :  { %v2553_v34 = vcvt.f32.s32 %v2552_v63 }
0x282a   :  { %v2556_v12 = vadd.s32 %v2555_v61, %v2553_v34  ;;  %v2720_v34 = vshll.u32 %v2719_v25, 16 }
0x282c   :  { %v2537_v49 = vpop.xlane.xlu0 %2536  ;;  %v2774_v10 = vrot.slane %v2556_v12, %v10657_v37 }
0x282d   :  { %v2538_v55 = vcvt.f32.s32 %v2537_v49 }
0x282f   :  { %v2541_v32 = vadd.s32 %v2540_v16, %v2538_v55 }
0x2830   :  { %v2657_v7 = vpop.xlane.xlu0 %2656  ;;  %v2672_v22 = vpop.xlane.xlu1 %2671 }
0x2831   :  { %v2770_v9 = vrot.slane %v2541_v32, %v10657_v37  ;;  %v2658_v54 = vcvt.f32.s32 %v2657_v7  ;;  %v2673_v56 = vcvt.f32.s32 %v2672_v22 }
0x2833   :  { %v2832_v43 = vsel %vm2831_vm6, %v2774_v10, %v2770_v9  ;;  %v2661_v8 = vadd.s32 %v2660_v6, %v2658_v54  ;;  %v2676_v59 = vadd.s32 %v2675_v19, %v2673_v56  ;;  %v2615_v19 = vshll.u32 %v2614_v57, 16 }
0x2834   :  { %v2567_v45 = vpop.xlane.xlu0 %2566  ;;  %v2687_v17 = vpop.xlane.xlu1 %2686 }
0x2835   :  { %v2802_v58 = vrot.slane %v2661_v8, %v10657_v37  ;;  %v2806_v36 = vrot.slane %v2676_v59, %v10657_v37  ;;  %v2568_v52 = vcvt.f32.s32 %v2567_v45  ;;  %v2688_v0 = vcvt.f32.s32 %v2687_v17 }
0x2837   :  { %v2845_v21 = vsel %vm2831_vm6, %v2806_v36, %v2802_v58  ;;  %v2571_v42 = vadd.s32 %v2570_v60, %v2568_v52  ;;  %v2691_v11 = vadd.s32 %v2690_v15, %v2688_v0  ;;  %v2750_v15 = vshll.u32 %v2749_v3, 16 }
0x2838   :  { %v2582_v48 = vpop.xlane.xlu0 %2581  ;;  %v2702_v44 = vpop.xlane.xlu1 %2701  ;;  %vm15450_vm6 = vcmask 1046534  }
0x2839   :  { %v2778_v40 = vrot.slane %v2571_v42, %v10657_v37  ;;  %v2810_v4 = vrot.slane %v2691_v11, %v10657_v37  ;;  %v2583_v24 = vcvt.f32.s32 %v2582_v48  ;;  %v2703_v23 = vcvt.f32.s32 %v2702_v44 }
0x283b   :  { %v2834_v29 = vsel %vm2833_vm7, %v2778_v40, %v2832_v43  ;;  %v2846_v50 = vsel %vm2833_vm7, %v2810_v4, %v2845_v21  ;;  %v2586_v2 = vadd.s32 %v2585_v47, %v2583_v24  ;;  %v2706_v63 = vadd.s32 %v2705_v26, %v2703_v23  ;;  %vm15451_vm7 = vmmov %vm15450_vm6 }
0x283c   :  { %v2597_v61 = vpop.xlane.xlu0 %2596  ;;  %v2717_v5 = vpop.xlane.xlu1 %2716  ;;  %v2645_v47 = vshll.u32 %v2644_v28, 16 }
0x283d   :  { %v2782_v1 = vrot.slane %v2586_v2, %v10657_v37  ;;  %v2814_v49 = vrot.slane %v2706_v63, %v10657_v37  ;;  %v2598_v16 = vcvt.f32.s32 %v2597_v61  ;;  %v2718_v12 = vcvt.f32.s32 %v2717_v5 }
0x283f   :  { %v2836_v55 = vsel %vm2835_vm8, %v2782_v1, %v2834_v29  ;;  %v2847_v32 = vsel %vm2835_vm8, %v2814_v49, %v2846_v50  ;;  %v2601_v6 = vadd.s32 %v2600_v13, %v2598_v16  ;;  %v2721_v30 = vadd.s32 %v2720_v34, %v2718_v12 }
0x2840   :  { %v2612_v7 = vpop.xlane.xlu0 %2611  ;;  %v2732_v22 = vpop.xlane.xlu1 %2731  ;;  %vm15452_vm8 = vcmask 1047559  }
0x2841   :  { %v2786_v10 = vrot.slane %v2601_v6, %v10657_v37  ;;  %v2818_v9 = vrot.slane %v2721_v30, %v10657_v37  ;;  %v2613_v54 = vcvt.f32.s32 %v2612_v7  ;;  %v2733_v56 = vcvt.f32.s32 %v2732_v22 }
0x2843   :  { %v2838_v43 = vsel %vm2837_vm9, %v2786_v10, %v2836_v55  ;;  %v2848_v8 = vsel %vm2837_vm9, %v2818_v9, %v2847_v32  ;;  %v2616_v59 = vadd.s32 %v2615_v19, %v2613_v54  ;;  %v2736_v60 = vadd.s32 %v2735_v31, %v2733_v56  ;;  %vm15453_vm9 = vmmov %vm15452_vm8 }
0x2844   :  { %v2627_v46 = vpop.xlane.xlu0 %2626  ;;  %v2747_v45 = vpop.xlane.xlu1 %2746 }
0x2845   :  { %v2790_v17 = vrot.slane %v2616_v59, %v10657_v37  ;;  %v2822_v58 = vrot.slane %v2736_v60, %v10657_v37  ;;  %v2628_v36 = vcvt.f32.s32 %v2627_v46  ;;  %v2748_v52 = vcvt.f32.s32 %v2747_v45 }
0x2846   :  { %v8937_v59 = vsel %vm8935_vm0, %v14479_v35, 4294967295  ;;  %v8938_v60 = vsel %vm8936_vm1, %v14482_v62, 4294967295 }
0x2847   :  { %v2840_v0 = vsel %vm2839_vm10, %v2790_v17, %v2838_v43  ;;  %v2849_v21 = vsel %vm2839_vm10, %v2822_v58, %v2848_v8  ;;  %v2631_v42 = vadd.s32 %v2630_v38, %v2628_v36  ;;  %v2751_v11 = vadd.s32 %v2750_v15, %v2748_v52 }
0x2848   :  { %v2642_v20 = vpop.xlane.xlu0 %2641  ;;  %v2762_v26 = vpop.xlane.xlu1 %2761 }
0x2849   :  { %v2794_v18 = vrot.slane %v2631_v42, %v10657_v37  ;;  %v2826_v25 = vrot.slane %v2751_v11, %v10657_v37  ;;  %v2643_v48 = vcvt.f32.s32 %v2642_v20  ;;  %v2763_v44 = vcvt.f32.s32 %v2762_v26 }
0x284b   :  { %v2842_v40 = vsel %vm15450_vm6, %v2794_v18, %v2840_v0  ;;  %v2850_v4 = vsel %vm15451_vm7, %v2826_v25, %v2849_v21  ;;  %v2646_v24 = vadd.s32 %v2645_v47, %v2643_v48  ;;  %v2766_v23 = vadd.s32 %v2765_v41, %v2763_v44 }
0x284c   :  { %vm8943_vm6 = vcmask 15368   ;;  %vm8992_vm7 = vcmask 7168  }
0x284d   :  { %v2798_v29 = vrot.slane %v2646_v24, %v10657_v37  ;;  %v2830_v50 = vrot.slane %v2766_v23, %v10657_v37 }
0x284f   :  { %v2844_v2 = vsel %vm15452_vm8, %v2798_v29, %v2842_v40  ;;  %v2851_v63 = vsel %vm15453_vm9, %v2830_v50, %v2850_v4  ;;  %vm8985_vm8 = vcmp.gt.s32.totalorder %v15399_v53, 0  ;;  %vm8989_vm9 = vcmp.ge.s32.totalorder %v15399_v53, 0 }
0x2850   :  { %2852 = vst.msk [vmem:[#allocation5 + $0x10] sm:$0xff] %vm2218_vm3, %v2844_v2  ;;  %2853 = vst.msk [vmem:[#allocation5 + $0x18] sm:$0xff] %vm2218_vm3, %v2851_v63 }
0x2857   :  { %v8946_v34 = vld [vmem:[#allocation5 + $0x10] sm:$0xff]  ;;  %v8947_v51 = vld [vmem:[#allocation5 + $0x18] sm:$0xff] }
0x2888   :  { %v8950_v13 = vpop.permute.xlu0 %8949  ;;  %v8953_v57 = vpop.permute.xlu1 %8952 }
0x2889   :  { %vm8954_vm10 = vcmp.eq.s32.totalorder %v10653_v14, %v8950_v13  ;;  %vm8955_vm4 = vcmp.eq.s32.totalorder %v10653_v14, %v8953_v57 }
0x288a   :  { %v8956_v61 = vsel %vm8954_vm10, %v8946_v34, 0  ;;  %v8957_v5 = vsel %vm8955_vm4, %v8947_v51, 0 }
0x288b   :  { %v8958_v37 = vsel %vm2218_vm3, %v8956_v61, 0  ;;  %v8971_v1 = vsel %vm2218_vm3, %v8957_v5, 0  ;;  %vm8731_vm3 = vcmask 48168  }
0x288c   :  { %v8959_v49 = vand.u32 65535, %v8958_v37  ;;  %v8960_v16 = vshrl.u32 %v8958_v37, 16  ;;  %v8628_v12 = vpop.permute.xlu0 %8627  ;;  %v8630_v55 = vpop.permute.xlu1 %8629  ;;  %v8972_v14 = vand.u32 65535, %v8971_v1  ;;  %v8973_v32 = vshrl.u32 %v8971_v1, 16 }
0x288d   :  { %8632 = vst.msk [vmem:[%s14631_s11] sm:$0xff] %vm8631_vm5, %v8628_v12  ;;  %8633 = vst.msk [vmem:[%s14631_s11 + $0x8] sm:$0xff] %vm8631_vm5, %v8630_v55 }
0x288e   :  { %v8962_v6 = vcvt.s32.f32 %v8960_v16  ;;  %v8961_v30 = vcvt.s32.f32 %v8959_v49  ;;  %v8975_v31 = vcvt.s32.f32 %v8973_v32  ;;  %v8974_v3 = vcvt.s32.f32 %v8972_v14 }
0x2890   :  { %v8677_v19 = vpop.permute.xlu0 %8676  ;;  %8965 = vadd.xlane.f32.xlu1 %v8962_v6  ;;  %8963 = vadd.xlane.f32.xlu0 %v8961_v30  ;;  %v8675_v27 = vpop.permute.xlu1 %8674 }
0x2891   :  { %8680 = vst.msk [vmem:[%s14631_s11 + $0x8] sm:$0xff] %vm8678_vm2, %v8677_v19  ;;  %8679 = vst.msk [vmem:[%s14631_s11] sm:$0xff] %vm8678_vm2, %v8675_v27 }
0x2894   :  { %v8730_v7 = vpop.permute.xlu0 %8729  ;;  %8978 = vadd.xlane.f32.xlu0 %v8975_v31  ;;  %8976 = vadd.xlane.f32.xlu1 %v8974_v3  ;;  %v8728_v22 = vpop.permute.xlu1 %8727 }
0x2895   :  { %8733 = vst.msk [vmem:[%s14631_s11 + $0x8] sm:$0xff] %vm8731_vm3, %v8730_v7  ;;  %8732 = vst.msk [vmem:[%s14631_s11] sm:$0xff] %vm8731_vm3, %v8728_v22 }
0x2898   :  { %v8783_v10 = vpop.permute.xlu0 %8782  ;;  %v8781_v9 = vpop.permute.xlu1 %8780 }
0x2899   :  { %8786 = vst.msk [vmem:[%s14631_s11 + $0x8] sm:$0xff] %vm8784_vm13, %v8783_v10  ;;  %8785 = vst.msk [vmem:[%s14631_s11] sm:$0xff] %vm8784_vm13, %v8781_v9 }
0x289c   :  { %v8836_v54 = vpop.permute.xlu0 %8835  ;;  %v8834_v56 = vpop.permute.xlu1 %8833 }
0x289d   :  { %8839 = vst.msk [vmem:[%s14631_s11 + $0x8] sm:$0xff] %vm8837_vm11, %v8836_v54  ;;  %8838 = vst.msk [vmem:[%s14631_s11] sm:$0xff] %vm8837_vm11, %v8834_v56 }
0x28a0   :  { %v8889_v43 = vpop.permute.xlu0 %8888  ;;  %v8887_v8 = vpop.permute.xlu1 %8886 }
0x28a1   :  { %8892 = vst.msk [vmem:[%s14631_s11 + $0x8] sm:$0xff] %vm8890_vm12, %v8889_v43  ;;  %8891 = vst.msk [vmem:[%s14631_s11] sm:$0xff] %vm8890_vm12, %v8887_v8 }
0x28a5   :  { %8939 = vrot.lane.b32.xlu1 %v8937_v59, %s9469_s1 }
0x28aa   :  { %8941 = vrot.lane.b32.xlu0 %v8938_v60, %s9469_s1 }
0x291d   :  { %v8964_v38 = vpop.xlane.xlu0 %8963  ;;  %v8966_v28 = vpop.xlane.xlu1 %8965 }
0x291e   :  { %v8968_v15 = vcvt.f32.s32 %v8966_v28  ;;  %v8967_v39 = vcvt.f32.s32 %v8964_v38 }
0x2920   :  { %v8969_v46 = vshll.u32 %v8968_v15, 16 }
0x2921   :  { %v8979_v45 = vpop.xlane.xlu0 %8978  ;;  %v8977_v17 = vpop.xlane.xlu1 %8976 }
0x2922   :  { %v8970_v58 = vadd.s32 %v8969_v46, %v8967_v39  ;;  %v8981_v36 = vcvt.f32.s32 %v8979_v45  ;;  %v8980_v21 = vcvt.f32.s32 %v8977_v17 }
0x2924   :  { %v8986_v52 = vsel %vm8984_vm14, %v8970_v58, %v14479_v35  ;;  %v8982_v0 = vshll.u32 %v8981_v36, 16 }
0x2925   :  { %v8990_v42 = vsel %vm8988_vm15, %v8986_v52, 4294967295  ;;  %v8942_v11 = vpop.permute.xlu0 %8941  ;;  %v8940_v47 = vpop.permute.xlu1 %8939 }
0x2926   :  { %v8983_v41 = vadd.s32 %v8982_v0, %v8980_v21  ;;  %8945 = vst.msk [vmem:[%s14631_s11 + $0x8] sm:$0xff] %vm8943_vm6, %v8942_v11  ;;  %8944 = vst.msk [vmem:[%s14631_s11] sm:$0xff] %vm8943_vm6, %v8940_v47 }
0x2927   :  { %8993 = vst.msk [vmem:[%s14631_s11] sm:$0xff] %vm8992_vm7, %v8990_v42 }
0x2928   :  { %v8987_v33 = vsel %vm8985_vm8, %v8983_v41, %v14482_v62 }
0x2929   :  { %v8991_v35 = vsel %vm8989_vm9, %v8987_v33, 4294967295 }
0x292a   :  { %8994 = vst.msk [vmem:[%s14631_s11 + $0x8] sm:$0xff] %vm8992_vm7, %v8991_v35 }

</bundles_post_ra>
